<compile_context>
chip_gen: v5e
topology: v5e:2x2
jax: 0.10.0
libtpu: 0.0.40
codegen_flags: <defaults>
</compile_context>

<pallas_src>
import jax
import jax.numpy as jnp
from jax.experimental import pallas as pl
from jax.experimental.pallas import tpu as pltpu


def ccu_kernel(x_ref, w1_ref, b1_ref, w2_ref, b2_ref, out_ref,
               col1_ref, col2_ref):
    # x_ref   : (1, H, W, Cin)      one batch element, NHWC
    # w1_ref  : (9*Cin, Cout)       conv1 weights, taps folded into K
    # b1_ref  : (1, Cout)
    # w2_ref  : (9*Cout, Cout)      conv2 weights, taps folded into K
    # b2_ref  : (1, Cout)
    # out_ref : (1, 2H, 2W*Cout)    lane-dense upsampled output slab
    # col1_ref/col2_ref : VMEM im2col scratch (H, W, 9*Cin) / (H, W, 9*Cout)
    _, H, W, Cin = x_ref.shape
    Cout = w1_ref.shape[1]

    # Halo entries of the im2col scratch encode the SAME-padding zeros.  They
    # are written once; every grid step rewrites only the interior rectangles.
    @pl.when(pl.program_id(0) == 0)
    def _init():
        col1_ref[...] = jnp.zeros_like(col1_ref)
        col2_ref[...] = jnp.zeros_like(col2_ref)

    def scatter_taps(src, col_ref, c):
        # col[h, w, t*c:(t+1)*c] = src[h+dh, w+dw, :]   (zero outside image)
        t = 0
        for dh in (-1, 0, 1):
            for dw in (-1, 0, 1):
                h0, h1 = max(0, -dh), min(H, H - dh)
                w0, w1 = max(0, -dw), min(W, W - dw)
                col_ref[h0:h1, w0:w1, t * c:(t + 1) * c] = (
                    src[h0 + dh:h1 + dh, w0 + dw:w1 + dw, :])
                t += 1

    # ---- conv1 (3x3, SAME) as a single MXU matmul + ReLU ----
    xv = x_ref[0].astype(jnp.float32)                      # (H, W, Cin)
    scatter_taps(xv, col1_ref, Cin)
    a1 = jnp.dot(col1_ref[...].reshape(H * W, 9 * Cin), w1_ref[...],
                 preferred_element_type=jnp.float32)
    a1 = jnp.maximum(a1 + b1_ref[...], 0.0).reshape(H, W, Cout)

    # ---- conv2 (3x3, SAME) as a single MXU matmul + ReLU ----
    scatter_taps(a1, col2_ref, Cout)
    y = jnp.dot(col2_ref[...].reshape(H * W, 9 * Cout), w2_ref[...],
                preferred_element_type=jnp.float32)
    y = jnp.maximum(y + b2_ref[...], 0.0).reshape(H, W, Cout)

    # ---- 2x nearest-neighbour upsample, emitted lane-dense ----
    # row[h, (2w+i)*Cout + c] = y[h, w, c]  (pixel duplication along lanes)
    pieces = []
    for w in range(W):
        px = y[:, w:w + 1, :]                              # (H, 1, Cout)
        pieces.append(px)
        pieces.append(px)
    row = jnp.concatenate(pieces, axis=-1)                 # (H, 1, 2*W*Cout)
    up = jnp.broadcast_to(row, (H, 2, 2 * W * Cout))       # row duplication
    out_ref[0] = up.reshape(2 * H, 2 * W * Cout).astype(out_ref.dtype)


@jax.jit
def ccu_forward(x_nchw, w1_oihw, b1, w2_oihw, b2):
    """Forward pass of CCU.  Inputs use PyTorch layouts (NCHW / OIHW)."""
    N, Cin, H, W = x_nchw.shape
    Cout = w1_oihw.shape[0]

    # Layout plumbing (wrapper-side glue, not compute hoisting).
    x_nhwc = jnp.transpose(x_nchw, (0, 2, 3, 1))
    # Fold the 3x3 taps into the contraction dim: rows ordered (ky, kx, cin).
    w1r = jnp.transpose(w1_oihw, (2, 3, 1, 0)).reshape(9 * Cin, Cout)
    w2r = jnp.transpose(w2_oihw, (2, 3, 1, 0)).reshape(9 * Cout, Cout)
    b1r = b1.reshape(1, Cout)
    b2r = b2.reshape(1, Cout)

    out_flat = pl.pallas_call(
        ccu_kernel,
        out_shape=jax.ShapeDtypeStruct((N, 2 * H, 2 * W * Cout), x_nchw.dtype),
        grid=(N,),
        in_specs=[
            pl.BlockSpec((1, H, W, Cin), lambda n: (n, 0, 0, 0)),
            pl.BlockSpec((9 * Cin, Cout), lambda n: (0, 0)),
            pl.BlockSpec((1, Cout), lambda n: (0, 0)),
            pl.BlockSpec((9 * Cout, Cout), lambda n: (0, 0)),
            pl.BlockSpec((1, Cout), lambda n: (0, 0)),
        ],
        out_specs=pl.BlockSpec((1, 2 * H, 2 * W * Cout), lambda n: (n, 0, 0)),
        scratch_shapes=[
            pltpu.VMEM((H, W, 9 * Cin), jnp.float32),
            pltpu.VMEM((H, W, 9 * Cout), jnp.float32),
        ],
        compiler_params=pltpu.CompilerParams(
            dimension_semantics=("parallel",)),
    )(x_nhwc, w1r, b1r, w2r, b2r)

    out_nhwc = out_flat.reshape(N, 2 * H, 2 * W, Cout)
    return jnp.transpose(out_nhwc, (0, 3, 1, 2))           # back to NCHW


def reference_forward(x_nchw, w1_oihw, b1, w2_oihw, b2):
    dn = ("NCHW", "OIHW", "NCHW")
    hi = jax.lax.Precision.HIGHEST
    y = jax.lax.conv_general_dilated(x_nchw, w1_oihw, (1, 1), "SAME",
                                     dimension_numbers=dn, precision=hi)
    y = jnp.maximum(y + b1.reshape(1, -1, 1, 1), 0.0)
    y = jax.lax.conv_general_dilated(y, w2_oihw, (1, 1), "SAME",
                                     dimension_numbers=dn, precision=hi)
    y = jnp.maximum(y + b2.reshape(1, -1, 1, 1), 0.0)
    # nn.Upsample(scale_factor=2), default mode='nearest'
    y = jnp.repeat(jnp.repeat(y, 2, axis=2), 2, axis=3)
    return y


if __name__ == "__main__":
    N, Cin, Cout, H, W = 2, 4, 8, 16, 16

    key = jax.random.PRNGKey(0)
    ks = jax.random.split(key, 5)

    x = jax.random.normal(ks[0], (N, Cin, H, W), jnp.float32)          # NCHW
    w1 = jax.random.normal(ks[1], (Cout, Cin, 3, 3), jnp.float32) * 0.1  # OIHW
    b1 = jax.random.normal(ks[2], (Cout,), jnp.float32) * 0.1
    w2 = jax.random.normal(ks[3], (Cout, Cout, 3, 3), jnp.float32) * 0.1
    b2 = jax.random.normal(ks[4], (Cout,), jnp.float32) * 0.1

    out = ccu_forward(x, w1, b1, w2, b2)
    out = jax.block_until_ready(out)

    ref = reference_forward(x, w1, b1, w2, b2)
    assert out.shape == (N, Cout, 2 * H, 2 * W)
    assert jnp.allclose(out, ref, atol=1e-4, rtol=1e-4), (
        float(jnp.max(jnp.abs(out - ref))))

    print("KERNEL_OK")
</pallas_src>

<mosaic_0001>
module attributes {stable_mosaic.version = 11 : i64} {
  func.func @ccu_kernel(%arg0: i32, %arg1: memref<1x16x16x4xf32, #tpu.memory_space<vmem>>, %arg2: memref<36x8xf32, #tpu.memory_space<vmem>>, %arg3: memref<1x8xf32, #tpu.memory_space<vmem>>, %arg4: memref<72x8xf32, #tpu.memory_space<vmem>>, %arg5: memref<1x8xf32, #tpu.memory_space<vmem>>, %arg6: memref<1x32x256xf32, #tpu.memory_space<vmem>>, %arg7: memref<16x16x36xf32, #tpu.memory_space<vmem>>, %arg8: memref<16x16x72xf32, #tpu.memory_space<vmem>>) attributes {dimension_semantics = [#tpu.dimension_semantics<parallel>], iteration_bounds = array<i64: 2>, scalar_prefetch = 0 : i64, scratch_operands = 2 : i64, tpu.core_type = #tpu.core_type<tc>, window_params = [{transform_indices = @transform_0, window_bounds = array<i64: 1, 16, 16, 4>}, {pipeline_mode = #tpu.pipeline_mode<synchronous>, transform_indices = @transform_1, window_bounds = array<i64: 36, 8>}, {pipeline_mode = #tpu.pipeline_mode<synchronous>, transform_indices = @transform_2, window_bounds = array<i64: 1, 8>}, {pipeline_mode = #tpu.pipeline_mode<synchronous>, transform_indices = @transform_3, window_bounds = array<i64: 72, 8>}, {pipeline_mode = #tpu.pipeline_mode<synchronous>, transform_indices = @transform_4, window_bounds = array<i64: 1, 8>}, {transform_indices = @transform_5, window_bounds = array<i64: 1, 32, 256>}]} {
    %c0_i32 = arith.constant 0 : i32
    %0 = arith.cmpi eq, %arg0, %c0_i32 : i32
    %1 = arith.extui %0 : i1 to i32
    %c0_i32_0 = arith.constant 0 : i32
    %2 = arith.cmpi ne, %1, %c0_i32_0 : i32
    scf.if %2 {
      %cst_65 = arith.constant 0.000000e+00 : f32
      %84 = vector.broadcast %cst_65 : f32 to vector<16x16x36xf32>
      %c0_66 = arith.constant 0 : index
      %c0_67 = arith.constant 0 : index
      %c0_68 = arith.constant 0 : index
      %85 = vector.load %arg7[%c0_66, %c0_67, %c0_68] : memref<16x16x36xf32, #tpu.memory_space<vmem>>, vector<16x16x36xf32>
      tpu.vector_store %arg7[%c0_66, %c0_67, %c0_68], %84 {strides = array<i32>} : memref<16x16x36xf32, #tpu.memory_space<vmem>>, vector<16x16x36xf32>,
      %cst_69 = arith.constant 0.000000e+00 : f32
      %86 = vector.broadcast %cst_69 : f32 to vector<16x16x72xf32>
      %c0_70 = arith.constant 0 : index
      %c0_71 = arith.constant 0 : index
      %c0_72 = arith.constant 0 : index
      %87 = vector.load %arg8[%c0_70, %c0_71, %c0_72] : memref<16x16x72xf32, #tpu.memory_space<vmem>>, vector<16x16x72xf32>
      tpu.vector_store %arg8[%c0_70, %c0_71, %c0_72], %86 {strides = array<i32>} : memref<16x16x72xf32, #tpu.memory_space<vmem>>, vector<16x16x72xf32>,
    } else {
    }
    %c0 = arith.constant 0 : index
    %c0_1 = arith.constant 0 : index
    %c0_2 = arith.constant 0 : index
    %c0_3 = arith.constant 0 : index
    %3 = vector.load %arg1[%c0, %c0_1, %c0_2, %c0_3] : memref<1x16x16x4xf32, #tpu.memory_space<vmem>>, vector<1x16x16x4xf32>
    %4 = vector.shape_cast %3 : vector<1x16x16x4xf32> to vector<16x16x4xf32>
    %5 = vector.extract_strided_slice %4 {offsets = [0, 0, 0], sizes = [15, 15, 4], strides = [1, 1, 1]} : vector<16x16x4xf32> to vector<15x15x4xf32>
    %c1 = arith.constant 1 : index
    %c1_4 = arith.constant 1 : index
    %c0_5 = arith.constant 0 : index
    %6 = vector.load %arg7[%c1, %c1_4, %c0_5] : memref<16x16x36xf32, #tpu.memory_space<vmem>>, vector<15x15x4xf32>
    tpu.vector_store %arg7[%c1, %c1_4, %c0_5], %5 {strides = array<i32>} : memref<16x16x36xf32, #tpu.memory_space<vmem>>, vector<15x15x4xf32>,
    %7 = vector.extract_strided_slice %4 {offsets = [0, 0, 0], sizes = [15, 16, 4], strides = [1, 1, 1]} : vector<16x16x4xf32> to vector<15x16x4xf32>
    %c1_6 = arith.constant 1 : index
    %c0_7 = arith.constant 0 : index
    %c4 = arith.constant 4 : index
    %8 = vector.load %arg7[%c1_6, %c0_7, %c4] : memref<16x16x36xf32, #tpu.memory_space<vmem>>, vector<15x16x4xf32>
    tpu.vector_store %arg7[%c1_6, %c0_7, %c4], %7 {strides = array<i32>} : memref<16x16x36xf32, #tpu.memory_space<vmem>>, vector<15x16x4xf32>,
    %9 = vector.extract_strided_slice %4 {offsets = [0, 1, 0], sizes = [15, 15, 4], strides = [1, 1, 1]} : vector<16x16x4xf32> to vector<15x15x4xf32>
    %c1_8 = arith.constant 1 : index
    %c0_9 = arith.constant 0 : index
    %c8 = arith.constant 8 : index
    %10 = vector.load %arg7[%c1_8, %c0_9, %c8] : memref<16x16x36xf32, #tpu.memory_space<vmem>>, vector<15x15x4xf32>
    tpu.vector_store %arg7[%c1_8, %c0_9, %c8], %9 {strides = array<i32>} : memref<16x16x36xf32, #tpu.memory_space<vmem>>, vector<15x15x4xf32>,
    %11 = vector.extract_strided_slice %4 {offsets = [0, 0, 0], sizes = [16, 15, 4], strides = [1, 1, 1]} : vector<16x16x4xf32> to vector<16x15x4xf32>
    %c0_10 = arith.constant 0 : index
    %c1_11 = arith.constant 1 : index
    %c12 = arith.constant 12 : index
    %12 = vector.load %arg7[%c0_10, %c1_11, %c12] : memref<16x16x36xf32, #tpu.memory_space<vmem>>, vector<16x15x4xf32>
    tpu.vector_store %arg7[%c0_10, %c1_11, %c12], %11 {strides = array<i32>} : memref<16x16x36xf32, #tpu.memory_space<vmem>>, vector<16x15x4xf32>,
    %c0_12 = arith.constant 0 : index
    %c0_13 = arith.constant 0 : index
    %c16 = arith.constant 16 : index
    %13 = vector.load %arg7[%c0_12, %c0_13, %c16] : memref<16x16x36xf32, #tpu.memory_space<vmem>>, vector<16x16x4xf32>
    tpu.vector_store %arg7[%c0_12, %c0_13, %c16], %4 {strides = array<i32>} : memref<16x16x36xf32, #tpu.memory_space<vmem>>, vector<16x16x4xf32>,
    %14 = vector.extract_strided_slice %4 {offsets = [0, 1, 0], sizes = [16, 15, 4], strides = [1, 1, 1]} : vector<16x16x4xf32> to vector<16x15x4xf32>
    %c0_14 = arith.constant 0 : index
    %c0_15 = arith.constant 0 : index
    %c20 = arith.constant 20 : index
    %15 = vector.load %arg7[%c0_14, %c0_15, %c20] : memref<16x16x36xf32, #tpu.memory_space<vmem>>, vector<16x15x4xf32>
    tpu.vector_store %arg7[%c0_14, %c0_15, %c20], %14 {strides = array<i32>} : memref<16x16x36xf32, #tpu.memory_space<vmem>>, vector<16x15x4xf32>,
    %16 = vector.extract_strided_slice %4 {offsets = [1, 0, 0], sizes = [15, 15, 4], strides = [1, 1, 1]} : vector<16x16x4xf32> to vector<15x15x4xf32>
    %c0_16 = arith.constant 0 : index
    %c1_17 = arith.constant 1 : index
    %c24 = arith.constant 24 : index
    %17 = vector.load %arg7[%c0_16, %c1_17, %c24] : memref<16x16x36xf32, #tpu.memory_space<vmem>>, vector<15x15x4xf32>
    tpu.vector_store %arg7[%c0_16, %c1_17, %c24], %16 {strides = array<i32>} : memref<16x16x36xf32, #tpu.memory_space<vmem>>, vector<15x15x4xf32>,
    %18 = vector.extract_strided_slice %4 {offsets = [1, 0, 0], sizes = [15, 16, 4], strides = [1, 1, 1]} : vector<16x16x4xf32> to vector<15x16x4xf32>
    %c0_18 = arith.constant 0 : index
    %c0_19 = arith.constant 0 : index
    %c28 = arith.constant 28 : index
    %19 = vector.load %arg7[%c0_18, %c0_19, %c28] : memref<16x16x36xf32, #tpu.memory_space<vmem>>, vector<15x16x4xf32>
    tpu.vector_store %arg7[%c0_18, %c0_19, %c28], %18 {strides = array<i32>} : memref<16x16x36xf32, #tpu.memory_space<vmem>>, vector<15x16x4xf32>,
    %20 = vector.extract_strided_slice %4 {offsets = [1, 1, 0], sizes = [15, 15, 4], strides = [1, 1, 1]} : vector<16x16x4xf32> to vector<15x15x4xf32>
    %c0_20 = arith.constant 0 : index
    %c0_21 = arith.constant 0 : index
    %c32 = arith.constant 32 : index
    %21 = vector.load %arg7[%c0_20, %c0_21, %c32] : memref<16x16x36xf32, #tpu.memory_space<vmem>>, vector<15x15x4xf32>
    tpu.vector_store %arg7[%c0_20, %c0_21, %c32], %20 {strides = array<i32>} : memref<16x16x36xf32, #tpu.memory_space<vmem>>, vector<15x15x4xf32>,
    %c0_22 = arith.constant 0 : index
    %c0_23 = arith.constant 0 : index
    %c0_24 = arith.constant 0 : index
    %22 = vector.load %arg7[%c0_22, %c0_23, %c0_24] : memref<16x16x36xf32, #tpu.memory_space<vmem>>, vector<16x16x36xf32>
    %23 = vector.shape_cast %22 : vector<16x16x36xf32> to vector<256x36xf32>
    %c0_25 = arith.constant 0 : index
    %c0_26 = arith.constant 0 : index
    %24 = vector.load %arg2[%c0_25, %c0_26] : memref<36x8xf32, #tpu.memory_space<vmem>>, vector<36x8xf32>
    %cst = arith.constant dense<0.000000e+00> : vector<256x8xf32>
    %25 = tpu.matmul %23, %24, %cst {dimension_numbers = #tpu.dot_dimension_numbers<[1], [0], [0], [1], [0, 0, 1, 1], [], []>} : vector<256x36xf32>, vector<36x8xf32>, vector<256x8xf32> -> vector<256x8xf32>
    %c0_27 = arith.constant 0 : index
    %c0_28 = arith.constant 0 : index
    %26 = vector.load %arg3[%c0_27, %c0_28] : memref<1x8xf32, #tpu.memory_space<vmem>>, vector<1x8xf32>
    %27 = vector.broadcast %26 : vector<1x8xf32> to vector<256x8xf32>
    %28 = arith.addf %25, %27 : vector<256x8xf32>
    %cst_29 = arith.constant 0.000000e+00 : f32
    %29 = vector.broadcast %cst_29 : f32 to vector<256x8xf32>
    %30 = arith.maximumf %28, %29 : vector<256x8xf32>
    %31 = vector.shape_cast %30 : vector<256x8xf32> to vector<16x16x8xf32>
    %32 = vector.extract_strided_slice %31 {offsets = [0, 0, 0], sizes = [15, 15, 8], strides = [1, 1, 1]} : vector<16x16x8xf32> to vector<15x15x8xf32>
    %c1_30 = arith.constant 1 : index
    %c1_31 = arith.constant 1 : index
    %c0_32 = arith.constant 0 : index
    %33 = vector.load %arg8[%c1_30, %c1_31, %c0_32] : memref<16x16x72xf32, #tpu.memory_space<vmem>>, vector<15x15x8xf32>
    tpu.vector_store %arg8[%c1_30, %c1_31, %c0_32], %32 {strides = array<i32>} : memref<16x16x72xf32, #tpu.memory_space<vmem>>, vector<15x15x8xf32>,
    %34 = vector.extract_strided_slice %31 {offsets = [0, 0, 0], sizes = [15, 16, 8], strides = [1, 1, 1]} : vector<16x16x8xf32> to vector<15x16x8xf32>
    %c1_33 = arith.constant 1 : index
    %c0_34 = arith.constant 0 : index
    %c8_35 = arith.constant 8 : index
    %35 = vector.load %arg8[%c1_33, %c0_34, %c8_35] : memref<16x16x72xf32, #tpu.memory_space<vmem>>, vector<15x16x8xf32>
    tpu.vector_store %arg8[%c1_33, %c0_34, %c8_35], %34 {strides = array<i32>} : memref<16x16x72xf32, #tpu.memory_space<vmem>>, vector<15x16x8xf32>,
    %36 = vector.extract_strided_slice %31 {offsets = [0, 1, 0], sizes = [15, 15, 8], strides = [1, 1, 1]} : vector<16x16x8xf32> to vector<15x15x8xf32>
    %c1_36 = arith.constant 1 : index
    %c0_37 = arith.constant 0 : index
    %c16_38 = arith.constant 16 : index
    %37 = vector.load %arg8[%c1_36, %c0_37, %c16_38] : memref<16x16x72xf32, #tpu.memory_space<vmem>>, vector<15x15x8xf32>
    tpu.vector_store %arg8[%c1_36, %c0_37, %c16_38], %36 {strides = array<i32>} : memref<16x16x72xf32, #tpu.memory_space<vmem>>, vector<15x15x8xf32>,
    %38 = vector.extract_strided_slice %31 {offsets = [0, 0, 0], sizes = [16, 15, 8], strides = [1, 1, 1]} : vector<16x16x8xf32> to vector<16x15x8xf32>
    %c0_39 = arith.constant 0 : index
    %c1_40 = arith.constant 1 : index
    %c24_41 = arith.constant 24 : index
    %39 = vector.load %arg8[%c0_39, %c1_40, %c24_41] : memref<16x16x72xf32, #tpu.memory_space<vmem>>, vector<16x15x8xf32>
    tpu.vector_store %arg8[%c0_39, %c1_40, %c24_41], %38 {strides = array<i32>} : memref<16x16x72xf32, #tpu.memory_space<vmem>>, vector<16x15x8xf32>,
    %c0_42 = arith.constant 0 : index
    %c0_43 = arith.constant 0 : index
    %c32_44 = arith.constant 32 : index
    %40 = vector.load %arg8[%c0_42, %c0_43, %c32_44] : memref<16x16x72xf32, #tpu.memory_space<vmem>>, vector<16x16x8xf32>
    tpu.vector_store %arg8[%c0_42, %c0_43, %c32_44], %31 {strides = array<i32>} : memref<16x16x72xf32, #tpu.memory_space<vmem>>, vector<16x16x8xf32>,
    %41 = vector.extract_strided_slice %31 {offsets = [0, 1, 0], sizes = [16, 15, 8], strides = [1, 1, 1]} : vector<16x16x8xf32> to vector<16x15x8xf32>
    %c0_45 = arith.constant 0 : index
    %c0_46 = arith.constant 0 : index
    %c40 = arith.constant 40 : index
    %42 = vector.load %arg8[%c0_45, %c0_46, %c40] : memref<16x16x72xf32, #tpu.memory_space<vmem>>, vector<16x15x8xf32>
    tpu.vector_store %arg8[%c0_45, %c0_46, %c40], %41 {strides = array<i32>} : memref<16x16x72xf32, #tpu.memory_space<vmem>>, vector<16x15x8xf32>,
    %43 = vector.extract_strided_slice %31 {offsets = [1, 0, 0], sizes = [15, 15, 8], strides = [1, 1, 1]} : vector<16x16x8xf32> to vector<15x15x8xf32>
    %c0_47 = arith.constant 0 : index
    %c1_48 = arith.constant 1 : index
    %c48 = arith.constant 48 : index
    %44 = vector.load %arg8[%c0_47, %c1_48, %c48] : memref<16x16x72xf32, #tpu.memory_space<vmem>>, vector<15x15x8xf32>
    tpu.vector_store %arg8[%c0_47, %c1_48, %c48], %43 {strides = array<i32>} : memref<16x16x72xf32, #tpu.memory_space<vmem>>, vector<15x15x8xf32>,
    %45 = vector.extract_strided_slice %31 {offsets = [1, 0, 0], sizes = [15, 16, 8], strides = [1, 1, 1]} : vector<16x16x8xf32> to vector<15x16x8xf32>
    %c0_49 = arith.constant 0 : index
    %c0_50 = arith.constant 0 : index
    %c56 = arith.constant 56 : index
    %46 = vector.load %arg8[%c0_49, %c0_50, %c56] : memref<16x16x72xf32, #tpu.memory_space<vmem>>, vector<15x16x8xf32>
    tpu.vector_store %arg8[%c0_49, %c0_50, %c56], %45 {strides = array<i32>} : memref<16x16x72xf32, #tpu.memory_space<vmem>>, vector<15x16x8xf32>,
    %47 = vector.extract_strided_slice %31 {offsets = [1, 1, 0], sizes = [15, 15, 8], strides = [1, 1, 1]} : vector<16x16x8xf32> to vector<15x15x8xf32>
    %c0_51 = arith.constant 0 : index
    %c0_52 = arith.constant 0 : index
    %c64 = arith.constant 64 : index
    %48 = vector.load %arg8[%c0_51, %c0_52, %c64] : memref<16x16x72xf32, #tpu.memory_space<vmem>>, vector<15x15x8xf32>
    tpu.vector_store %arg8[%c0_51, %c0_52, %c64], %47 {strides = array<i32>} : memref<16x16x72xf32, #tpu.memory_space<vmem>>, vector<15x15x8xf32>,
    %c0_53 = arith.constant 0 : index
    %c0_54 = arith.constant 0 : index
    %c0_55 = arith.constant 0 : index
    %49 = vector.load %arg8[%c0_53, %c0_54, %c0_55] : memref<16x16x72xf32, #tpu.memory_space<vmem>>, vector<16x16x72xf32>
    %50 = vector.shape_cast %49 : vector<16x16x72xf32> to vector<256x72xf32>
    %c0_56 = arith.constant 0 : index
    %c0_57 = arith.constant 0 : index
    %51 = vector.load %arg4[%c0_56, %c0_57] : memref<72x8xf32, #tpu.memory_space<vmem>>, vector<72x8xf32>
    %cst_58 = arith.constant dense<0.000000e+00> : vector<256x8xf32>
    %52 = tpu.matmul %50, %51, %cst_58 {dimension_numbers = #tpu.dot_dimension_numbers<[1], [0], [0], [1], [0, 0, 1, 1], [], []>} : vector<256x72xf32>, vector<72x8xf32>, vector<256x8xf32> -> vector<256x8xf32>
    %c0_59 = arith.constant 0 : index
    %c0_60 = arith.constant 0 : index
    %53 = vector.load %arg5[%c0_59, %c0_60] : memref<1x8xf32, #tpu.memory_space<vmem>>, vector<1x8xf32>
    %54 = vector.broadcast %53 : vector<1x8xf32> to vector<256x8xf32>
    %55 = arith.addf %52, %54 : vector<256x8xf32>
    %cst_61 = arith.constant 0.000000e+00 : f32
    %56 = vector.broadcast %cst_61 : f32 to vector<256x8xf32>
    %57 = arith.maximumf %55, %56 : vector<256x8xf32>
    %58 = vector.shape_cast %57 : vector<256x8xf32> to vector<16x16x8xf32>
    %59 = vector.extract_strided_slice %58 {offsets = [0, 0, 0], sizes = [16, 1, 8], strides = [1, 1, 1]} : vector<16x16x8xf32> to vector<16x1x8xf32>
    %60 = vector.extract_strided_slice %58 {offsets = [0, 1, 0], sizes = [16, 1, 8], strides = [1, 1, 1]} : vector<16x16x8xf32> to vector<16x1x8xf32>
    %61 = vector.extract_strided_slice %58 {offsets = [0, 2, 0], sizes = [16, 1, 8], strides = [1, 1, 1]} : vector<16x16x8xf32> to vector<16x1x8xf32>
    %62 = vector.extract_strided_slice %58 {offsets = [0, 3, 0], sizes = [16, 1, 8], strides = [1, 1, 1]} : vector<16x16x8xf32> to vector<16x1x8xf32>
    %63 = vector.extract_strided_slice %58 {offsets = [0, 4, 0], sizes = [16, 1, 8], strides = [1, 1, 1]} : vector<16x16x8xf32> to vector<16x1x8xf32>
    %64 = vector.extract_strided_slice %58 {offsets = [0, 5, 0], sizes = [16, 1, 8], strides = [1, 1, 1]} : vector<16x16x8xf32> to vector<16x1x8xf32>
    %65 = vector.extract_strided_slice %58 {offsets = [0, 6, 0], sizes = [16, 1, 8], strides = [1, 1, 1]} : vector<16x16x8xf32> to vector<16x1x8xf32>
    %66 = vector.extract_strided_slice %58 {offsets = [0, 7, 0], sizes = [16, 1, 8], strides = [1, 1, 1]} : vector<16x16x8xf32> to vector<16x1x8xf32>
    %67 = vector.extract_strided_slice %58 {offsets = [0, 8, 0], sizes = [16, 1, 8], strides = [1, 1, 1]} : vector<16x16x8xf32> to vector<16x1x8xf32>
    %68 = vector.extract_strided_slice %58 {offsets = [0, 9, 0], sizes = [16, 1, 8], strides = [1, 1, 1]} : vector<16x16x8xf32> to vector<16x1x8xf32>
    %69 = vector.extract_strided_slice %58 {offsets = [0, 10, 0], sizes = [16, 1, 8], strides = [1, 1, 1]} : vector<16x16x8xf32> to vector<16x1x8xf32>
    %70 = vector.extract_strided_slice %58 {offsets = [0, 11, 0], sizes = [16, 1, 8], strides = [1, 1, 1]} : vector<16x16x8xf32> to vector<16x1x8xf32>
    %71 = vector.extract_strided_slice %58 {offsets = [0, 12, 0], sizes = [16, 1, 8], strides = [1, 1, 1]} : vector<16x16x8xf32> to vector<16x1x8xf32>
    %72 = vector.extract_strided_slice %58 {offsets = [0, 13, 0], sizes = [16, 1, 8], strides = [1, 1, 1]} : vector<16x16x8xf32> to vector<16x1x8xf32>
    %73 = vector.extract_strided_slice %58 {offsets = [0, 14, 0], sizes = [16, 1, 8], strides = [1, 1, 1]} : vector<16x16x8xf32> to vector<16x1x8xf32>
    %74 = vector.extract_strided_slice %58 {offsets = [0, 15, 0], sizes = [16, 1, 8], strides = [1, 1, 1]} : vector<16x16x8xf32> to vector<16x1x8xf32>
    %75 = tpu.concatenate %59, %59, %60, %60, %61, %61, %62, %62, %63, %63, %64, %64, %65, %65, %66, %66 in 2 : vector<16x1x8xf32>, vector<16x1x8xf32>, vector<16x1x8xf32>, vector<16x1x8xf32>, vector<16x1x8xf32>, vector<16x1x8xf32>, vector<16x1x8xf32>, vector<16x1x8xf32>, vector<16x1x8xf32>, vector<16x1x8xf32>, vector<16x1x8xf32>, vector<16x1x8xf32>, vector<16x1x8xf32>, vector<16x1x8xf32>, vector<16x1x8xf32>, vector<16x1x8xf32> -> vector<16x1x128xf32>
    %76 = tpu.concatenate %67, %67, %68, %68, %69, %69, %70, %70, %71, %71, %72, %72, %73, %73, %74, %74 in 2 : vector<16x1x8xf32>, vector<16x1x8xf32>, vector<16x1x8xf32>, vector<16x1x8xf32>, vector<16x1x8xf32>, vector<16x1x8xf32>, vector<16x1x8xf32>, vector<16x1x8xf32>, vector<16x1x8xf32>, vector<16x1x8xf32>, vector<16x1x8xf32>, vector<16x1x8xf32>, vector<16x1x8xf32>, vector<16x1x8xf32>, vector<16x1x8xf32>, vector<16x1x8xf32> -> vector<16x1x128xf32>
    %77 = tpu.concatenate %75, %76 in 2 : vector<16x1x128xf32>, vector<16x1x128xf32> -> vector<16x1x256xf32>
    %78 = vector.shape_cast %77 : vector<16x1x256xf32> to vector<16x1x256xf32>
    %79 = vector.broadcast %78 : vector<16x1x256xf32> to vector<16x2x256xf32>
    %80 = vector.shape_cast %79 : vector<16x2x256xf32> to vector<32x256xf32>
    %c0_62 = arith.constant 0 : index
    %c0_63 = arith.constant 0 : index
    %c0_64 = arith.constant 0 : index
    %81 = vector.load %arg6[%c0_62, %c0_63, %c0_64] : memref<1x32x256xf32, #tpu.memory_space<vmem>>, vector<1x32x256xf32>
    %82 = vector.shape_cast %81 : vector<1x32x256xf32> to vector<32x256xf32>
    %83 = vector.shape_cast %80 : vector<32x256xf32> to vector<1x32x256xf32>
    tpu.vector_store %arg6[%c0_62, %c0_63, %c0_64], %83 {strides = array<i32>} : memref<1x32x256xf32, #tpu.memory_space<vmem>>, vector<1x32x256xf32>,
    return
  }
  func.func @transform_0(%arg0: i32) -> (i32, i32, i32, i32) {
    %c0_i32 = arith.constant 0 : i32
    %c0_i32_0 = arith.constant 0 : i32
    %c0_i32_1 = arith.constant 0 : i32
    %c0_i32_2 = arith.constant 0 : i32
    return %arg0, %c0_i32, %c0_i32_0, %c0_i32_1 : i32, i32, i32, i32
  }
  func.func @transform_1(%arg0: i32) -> (i32, i32) {
    %c0_i32 = arith.constant 0 : i32
    %c0_i32_0 = arith.constant 0 : i32
    %c0_i32_1 = arith.constant 0 : i32
    return %c0_i32, %c0_i32_0 : i32, i32
  }
  func.func @transform_2(%arg0: i32) -> (i32, i32) {
    %c0_i32 = arith.constant 0 : i32
    %c0_i32_0 = arith.constant 0 : i32
    %c0_i32_1 = arith.constant 0 : i32
    return %c0_i32, %c0_i32_0 : i32, i32
  }
  func.func @transform_3(%arg0: i32) -> (i32, i32) {
    %c0_i32 = arith.constant 0 : i32
    %c0_i32_0 = arith.constant 0 : i32
    %c0_i32_1 = arith.constant 0 : i32
    return %c0_i32, %c0_i32_0 : i32, i32
  }
  func.func @transform_4(%arg0: i32) -> (i32, i32) {
    %c0_i32 = arith.constant 0 : i32
    %c0_i32_0 = arith.constant 0 : i32
    %c0_i32_1 = arith.constant 0 : i32
    return %c0_i32, %c0_i32_0 : i32, i32
  }
  func.func @transform_5(%arg0: i32) -> (i32, i32, i32) {
    %c0_i32 = arith.constant 0 : i32
    %c0_i32_0 = arith.constant 0 : i32
    %c0_i32_1 = arith.constant 0 : i32
    return %arg0, %c0_i32, %c0_i32_0 : i32, i32, i32
  }
}

</mosaic_0001>

<bundles_post_ra>
// kernel: ccu_forward.1
= control target key start
LH: loop header
LB: loop body
LE: loop exit
PB: predicated region body
PF: predicated region fallthrough
CT: control target
= control target key end

     0   :  { %s5595_s18 = smov 0   ;;  %s10408_s0 = inlined_call_operand.vmem [shape: f32[2,16,16,4], index: 0, kind: input, shape index: {}]   ;;  %s10409_s1 = inlined_call_operand.vmem [shape: f32[36,8], index: 1, kind: input, shape index: {}]   ;;  %s10410_s2 = inlined_call_operand.vmem [shape: f32[1,8], index: 2, kind: input, shape index: {}]   ;;  %s10411_s3 = inlined_call_operand.vmem [shape: f32[72,8], index: 3, kind: input, shape index: {}]   ;;  %s10412_s4 = inlined_call_operand.vmem [shape: f32[1,8], index: 4, kind: input, shape index: {}]   ;;  %s10413_s5 = inlined_call_operand.vmem [shape: f32[2,32,256], index: 5, kind: output, shape index: {}]  }
   0x1 LB: > { %s5413_s19 = sadd.s32 4294967295, %s5543_s18   ;;  %p5417_p0 = scmp.ge.s32.totalorder %s5543_s18, 1  ;;  %s5543_s18 = sphi %s5595_s18, %s15_s18  }
   0x2   : > { %p187_p1 = scmp.lt.s32.totalorder %s5543_s18, 3 }
   0x4   : > { %p188_p2 = pnand %p5417_p0, %p187_p1 }
   0x6   : > { %191 = sbr.rel (%p188_p2) target bundleno = 3357 (0xd1d), region = 40 }
   0xb   : > { %p215_p3 = scmp.lt.s32.totalorder %s5413_s19, 1  ;;  %p5422_p4 = scmp.ne.s32.totalorder %s5413_s19, 0 }
   0xd   : > { %s216_s20 = scalar_select %p215_p3, %s5413_s19, 1 }
   0xe   : > { %228 = sbr.rel (%p5422_p4) target bundleno = 84 (0x54), region = 44 }
   0xf   : > { %s5490_s21 = sshll.u32 %s216_s20, 8  ;;  %s5491_s22 = sshll.u32 %s216_s20, 6 }
  0x10   : > { %s5606_s25 = scalar_lea.vmem %s10408_s0, %s5490_s21  ;;  %s5611_s28 = scalar_lea.vmem %s10413_s5, %s5491_s22 }
  0x13   : > { %vm229_vm0 = vcmask 293888   ;;  %v5545_v0 = vmov 0.0   ;;  %vm262_vm1 = vcmask 588800  }
  0x14   : > { %230 = vst.msk [vmem:[#allocation2] sm:$0xff] %vm229_vm0, %v5545_v0 }
  0x15   : > { %231 = vst.msk [vmem:[#allocation2 + $0x8] sm:$0xff] %vm229_vm0, %v5545_v0 }
  0x16   : > { %232 = vst.msk [vmem:[#allocation2 + $0x10] sm:$0xff] %vm229_vm0, %v5545_v0 }
  0x17   : > { %233 = vst.msk [vmem:[#allocation2 + $0x18] sm:$0xff] %vm229_vm0, %v5545_v0 }
  0x18   : > { %234 = vst.msk [vmem:[#allocation2 + $0x20] sm:$0xff] %vm229_vm0, %v5545_v0 }
  0x19   : > { %235 = vst.msk [vmem:[#allocation2 + $0x28] sm:$0xff] %vm229_vm0, %v5545_v0 }
  0x1a   : > { %236 = vst.msk [vmem:[#allocation2 + $0x30] sm:$0xff] %vm229_vm0, %v5545_v0 }
  0x1b   : > { %237 = vst.msk [vmem:[#allocation2 + $0x38] sm:$0xff] %vm229_vm0, %v5545_v0 }
  0x1c   : > { %238 = vst.msk [vmem:[#allocation2 + $0x40] sm:$0xff] %vm229_vm0, %v5545_v0 }
  0x1d   : > { %239 = vst.msk [vmem:[#allocation2 + $0x48] sm:$0xff] %vm229_vm0, %v5545_v0 }
  0x1e   : > { %240 = vst.msk [vmem:[#allocation2 + $0x50] sm:$0xff] %vm229_vm0, %v5545_v0 }
  0x1f   : > { %241 = vst.msk [vmem:[#allocation2 + $0x58] sm:$0xff] %vm229_vm0, %v5545_v0 }
  0x20   : > { %242 = vst.msk [vmem:[#allocation2 + $0x60] sm:$0xff] %vm229_vm0, %v5545_v0 }
  0x21   : > { %243 = vst.msk [vmem:[#allocation2 + $0x68] sm:$0xff] %vm229_vm0, %v5545_v0 }
  0x22   : > { %244 = vst.msk [vmem:[#allocation2 + $0x70] sm:$0xff] %vm229_vm0, %v5545_v0 }
  0x23   : > { %245 = vst.msk [vmem:[#allocation2 + $0x78] sm:$0xff] %vm229_vm0, %v5545_v0 }
  0x24   : > { %246 = vst.msk [vmem:[#allocation2 + $0x80] sm:$0xff] %vm229_vm0, %v5545_v0 }
  0x25   : > { %247 = vst.msk [vmem:[#allocation2 + $0x88] sm:$0xff] %vm229_vm0, %v5545_v0 }
  0x26   : > { %248 = vst.msk [vmem:[#allocation2 + $0x90] sm:$0xff] %vm229_vm0, %v5545_v0 }
  0x27   : > { %249 = vst.msk [vmem:[#allocation2 + $0x98] sm:$0xff] %vm229_vm0, %v5545_v0 }
  0x28   : > { %250 = vst.msk [vmem:[#allocation2 + $0xa0] sm:$0xff] %vm229_vm0, %v5545_v0 }
  0x29   : > { %251 = vst.msk [vmem:[#allocation2 + $0xa8] sm:$0xff] %vm229_vm0, %v5545_v0 }
  0x2a   : > { %252 = vst.msk [vmem:[#allocation2 + $0xb0] sm:$0xff] %vm229_vm0, %v5545_v0 }
  0x2b   : > { %253 = vst.msk [vmem:[#allocation2 + $0xb8] sm:$0xff] %vm229_vm0, %v5545_v0 }
  0x2c   : > { %254 = vst.msk [vmem:[#allocation2 + $0xc0] sm:$0xff] %vm229_vm0, %v5545_v0 }
  0x2d   : > { %255 = vst.msk [vmem:[#allocation2 + $0xc8] sm:$0xff] %vm229_vm0, %v5545_v0 }
  0x2e   : > { %256 = vst.msk [vmem:[#allocation2 + $0xd0] sm:$0xff] %vm229_vm0, %v5545_v0 }
  0x2f   : > { %257 = vst.msk [vmem:[#allocation2 + $0xd8] sm:$0xff] %vm229_vm0, %v5545_v0 }
  0x30   : > { %258 = vst.msk [vmem:[#allocation2 + $0xe0] sm:$0xff] %vm229_vm0, %v5545_v0 }
  0x31   : > { %259 = vst.msk [vmem:[#allocation2 + $0xe8] sm:$0xff] %vm229_vm0, %v5545_v0 }
  0x32   : > { %260 = vst.msk [vmem:[#allocation2 + $0xf0] sm:$0xff] %vm229_vm0, %v5545_v0 }
  0x33   : > { %261 = vst.msk [vmem:[#allocation2 + $0xf8] sm:$0xff] %vm229_vm0, %v5545_v0 }
  0x34   : > { %263 = vst.msk [vmem:[#allocation3] sm:$0xff] %vm262_vm1, %v5545_v0 }
  0x35   : > { %264 = vst.msk [vmem:[#allocation3 + $0x8] sm:$0xff] %vm262_vm1, %v5545_v0 }
  0x36   : > { %265 = vst.msk [vmem:[#allocation3 + $0x10] sm:$0xff] %vm262_vm1, %v5545_v0 }
  0x37   : > { %266 = vst.msk [vmem:[#allocation3 + $0x18] sm:$0xff] %vm262_vm1, %v5545_v0 }
  0x38   : > { %267 = vst.msk [vmem:[#allocation3 + $0x20] sm:$0xff] %vm262_vm1, %v5545_v0 }
  0x39   : > { %268 = vst.msk [vmem:[#allocation3 + $0x28] sm:$0xff] %vm262_vm1, %v5545_v0 }
  0x3a   : > { %269 = vst.msk [vmem:[#allocation3 + $0x30] sm:$0xff] %vm262_vm1, %v5545_v0 }
  0x3b   : > { %270 = vst.msk [vmem:[#allocation3 + $0x38] sm:$0xff] %vm262_vm1, %v5545_v0 }
  0x3c   : > { %271 = vst.msk [vmem:[#allocation3 + $0x40] sm:$0xff] %vm262_vm1, %v5545_v0 }
  0x3d   : > { %272 = vst.msk [vmem:[#allocation3 + $0x48] sm:$0xff] %vm262_vm1, %v5545_v0 }
  0x3e   : > { %273 = vst.msk [vmem:[#allocation3 + $0x50] sm:$0xff] %vm262_vm1, %v5545_v0 }
  0x3f   : > { %274 = vst.msk [vmem:[#allocation3 + $0x58] sm:$0xff] %vm262_vm1, %v5545_v0 }
  0x40   : > { %275 = vst.msk [vmem:[#allocation3 + $0x60] sm:$0xff] %vm262_vm1, %v5545_v0 }
  0x41   : > { %276 = vst.msk [vmem:[#allocation3 + $0x68] sm:$0xff] %vm262_vm1, %v5545_v0 }
  0x42   : > { %277 = vst.msk [vmem:[#allocation3 + $0x70] sm:$0xff] %vm262_vm1, %v5545_v0 }
  0x43   : > { %278 = vst.msk [vmem:[#allocation3 + $0x78] sm:$0xff] %vm262_vm1, %v5545_v0 }
  0x44   : > { %279 = vst.msk [vmem:[#allocation3 + $0x80] sm:$0xff] %vm262_vm1, %v5545_v0 }
  0x45   : > { %280 = vst.msk [vmem:[#allocation3 + $0x88] sm:$0xff] %vm262_vm1, %v5545_v0 }
  0x46   : > { %281 = vst.msk [vmem:[#allocation3 + $0x90] sm:$0xff] %vm262_vm1, %v5545_v0 }
  0x47   : > { %282 = vst.msk [vmem:[#allocation3 + $0x98] sm:$0xff] %vm262_vm1, %v5545_v0 }
  0x48   : > { %283 = vst.msk [vmem:[#allocation3 + $0xa0] sm:$0xff] %vm262_vm1, %v5545_v0 }
  0x49   : > { %284 = vst.msk [vmem:[#allocation3 + $0xa8] sm:$0xff] %vm262_vm1, %v5545_v0 }
  0x4a   : > { %285 = vst.msk [vmem:[#allocation3 + $0xb0] sm:$0xff] %vm262_vm1, %v5545_v0 }
  0x4b   : > { %286 = vst.msk [vmem:[#allocation3 + $0xb8] sm:$0xff] %vm262_vm1, %v5545_v0 }
  0x4c   : > { %287 = vst.msk [vmem:[#allocation3 + $0xc0] sm:$0xff] %vm262_vm1, %v5545_v0 }
  0x4d   : > { %288 = vst.msk [vmem:[#allocation3 + $0xc8] sm:$0xff] %vm262_vm1, %v5545_v0 }
  0x4e   : > { %289 = vst.msk [vmem:[#allocation3 + $0xd0] sm:$0xff] %vm262_vm1, %v5545_v0 }
  0x4f   : > { %290 = vst.msk [vmem:[#allocation3 + $0xd8] sm:$0xff] %vm262_vm1, %v5545_v0 }
  0x50   : > { %291 = vst.msk [vmem:[#allocation3 + $0xe0] sm:$0xff] %vm262_vm1, %v5545_v0 }
  0x51   : > { %292 = vst.msk [vmem:[#allocation3 + $0xe8] sm:$0xff] %vm262_vm1, %v5545_v0 }
  0x52   : > { %293 = vst.msk [vmem:[#allocation3 + $0xf0] sm:$0xff] %vm262_vm1, %v5545_v0 }
  0x53   : > { %294 = vst.msk [vmem:[#allocation3 + $0xf8] sm:$0xff] %vm262_vm1, %v5545_v0 }
  0x54 PF: > { %v5742_v1 = vld [vmem:[%s5606_s25 + $0x20] sm:$0xff]  ;;  %v5745_v2 = vld [vmem:[%s5606_s25 + $0x10] sm:$0xff]  ;;  %s5546_s29 = smov 4   ;;  %v5757_v4 = vld [vmem:[%s5606_s25 + $0x28] sm:$0xff]  ;;  %vm328_vm2 = vcmask 31744   ;;  %vm330_vm3 = vcmask 30720  }
  0x55   : > { %v5748_v3 = vld [vmem:[%s5606_s25] sm:$0xff]  ;;  %398 = vrot.lane.b32.xlu2 %v5742_v1, %s5546_s29  ;;  %394 = vrot.lane.b32.xlu1 %v5745_v2, %s5546_s29  ;;  %v5760_v5 = vld [vmem:[%s5606_s25 + $0x18] sm:$0xff]  ;;  %334 = vst.msk [vmem:[#allocation2 + $0x31] sm:$0xff] %vm328_vm2, %v5742_v1  ;;  %s5547_s30 = smov 8   ;;  %vm480_vm4 = vcmask 64544   ;;  %s5548_s6 = smov 12  }
  0x56   : > { %390 = vrot.lane.b32.xlu0 %v5748_v3, %s5546_s29  ;;  %v5763_v6 = vld [vmem:[%s5606_s25 + $0x8] sm:$0xff]  ;;  %v5772_v7 = vld [vmem:[%s5606_s25 + $0x40] sm:$0xff]  ;;  %v5775_v8 = vld [vmem:[%s5606_s25 + $0x38] sm:$0xff]  ;;  %329 = vst.msk [vmem:[#allocation2 + $0x11] sm:$0xff] %vm328_vm2, %v5748_v3  ;;  %vm601_vm5 = vcmask 97345   ;;  %vm603_vm6 = vcmask 97344  }
  0x57   : > { %v5778_v9 = vld [vmem:[%s5606_s25 + $0x30] sm:$0xff]  ;;  %v5787_v10 = vld [vmem:[%s5606_s25 + $0x58] sm:$0xff]  ;;  %v5793_v12 = vld [vmem:[%s5606_s25 + $0x48] sm:$0xff]  ;;  %332 = vst.msk [vmem:[#allocation2 + $0x21] sm:$0xff] %vm328_vm2, %v5745_v2  ;;  %s5549_s7 = smov 16   ;;  %vm731_vm7 = vcmask 130144  }
  0x58   : > { %v5790_v11 = vld [vmem:[%s5606_s25 + $0x50] sm:$0xff]  ;;  %v5805_v14 = vld [vmem:[%s5606_s25 + $0x68] sm:$0xff]  ;;  %v5808_v15 = vld [vmem:[%s5606_s25 + $0x60] sm:$0xff]  ;;  %336 = vst.msk [vmem:[#allocation2 + $0x41] sm:$0xff] %vm328_vm2, %v5778_v9  ;;  %vm733_vm8 = vcmask 129120   ;;  %s5550_s8 = smov 20  }
  0x59   : > { %v5802_v13 = vld [vmem:[%s5606_s25 + $0x70] sm:$0xff]  ;;  %v5817_v16 = vld [vmem:[%s5606_s25 + $0x88] sm:$0xff]  ;;  %v5820_v17 = vld [vmem:[%s5606_s25 + $0x80] sm:$0xff]  ;;  %338 = vst.msk [vmem:[#allocation2 + $0x51] sm:$0xff] %vm328_vm2, %v5772_v7  ;;  %vm861_vm9 = vcmask 162944   ;;  %s5551_s9 = smov 24  }
  0x5a   : > { %v5823_v18 = vld [vmem:[%s5606_s25 + $0x78] sm:$0xff]  ;;  %v5832_v19 = vld [vmem:[%s5606_s25 + $0xa0] sm:$0xff]  ;;  %v5838_v21 = vld [vmem:[%s5606_s25 + $0x90] sm:$0xff]  ;;  %340 = vst.msk [vmem:[#allocation2 + $0x61] sm:$0xff] %vm328_vm2, %v5790_v11  ;;  %vm992_vm10 = vcmask 195744   ;;  %vm990_vm11 = vcmask 195745  }
  0x5b   : > { %v5835_v20 = vld [vmem:[%s5606_s25 + $0x98] sm:$0xff]  ;;  %v5850_v23 = vld [vmem:[%s5606_s25 + $0xb0] sm:$0xff]  ;;  %v5853_v24 = vld [vmem:[%s5606_s25 + $0xa8] sm:$0xff]  ;;  %342 = vst.msk [vmem:[#allocation2 + $0x71] sm:$0xff] %vm328_vm2, %v5808_v15  ;;  %s5552_s10 = smov 28   ;;  %vm1114_vm12 = vcmask 228544  }
  0x5c   : > { %v5847_v22 = vld [vmem:[%s5606_s25 + $0xb8] sm:$0xff]  ;;  %v5868_v25 = vld [vmem:[%s5606_s25 + $0xd0] sm:$0xff]  ;;  %v5871_v26 = vld [vmem:[%s5606_s25 + $0xc8] sm:$0xff]  ;;  %344 = vst.msk [vmem:[#allocation2 + $0x81] sm:$0xff] %vm328_vm2, %v5802_v13  ;;  %vm1116_vm13 = vcmask 227520   ;;  %s5553_s11 = smov 32  }
  0x5d   : > { %400 = vrot.lane.b32.xlu2 %v5757_v4, %s5546_s29  ;;  %396 = vrot.lane.b32.xlu1 %v5760_v5, %s5546_s29  ;;  %v5876_v27 = vld [vmem:[%s5606_s25 + $0xc0] sm:$0xff]  ;;  %346 = vst.msk [vmem:[#allocation2 + $0x91] sm:$0xff] %vm328_vm2, %v5820_v17  ;;  %v5899_v28 = vld [vmem:[%s5606_s25 + $0xe8] sm:$0xff]  ;;  %vm1236_vm14 = vcmask 261344   ;;  %vm1527_vm15 = vcmask 1043456   ;;  %vm1357_vm0 = vcmask 294145  }
  0x5e   : > { %392 = vrot.lane.b32.xlu0 %v5763_v6, %s5546_s29  ;;  %348 = vst.msk [vmem:[#allocation2 + $0xa1] sm:$0xff] %vm328_vm2, %v5838_v21  ;;  %v5902_v29 = vld [vmem:[%s5606_s25 + $0xe0] sm:$0xff]  ;;  %v5907_v30 = vld [vmem:[%s5606_s25 + $0xd8] sm:$0xff]  ;;  %vm1359_vm1 = vcmask 294144   ;;  %s5555_s26 = smov 48   ;;  %s5556_s27 = smov 56  }
  0x5f   : > { %350 = vst.msk [vmem:[#allocation2 + $0xb1] sm:$0xff] %vm328_vm2, %v5832_v19  ;;  %s5558_s14 = smov 72   ;;  %s5559_s15 = smov 80  }
  0x60   : > { %352 = vst.msk [vmem:[#allocation2 + $0xc1] sm:$0xff] %vm328_vm2, %v5850_v23  ;;  %s5560_s16 = smov 88   ;;  %s5561_s17 = smov 96  }
  0x61   : > { %354 = vst.msk [vmem:[#allocation2 + $0xd1] sm:$0xff] %vm328_vm2, %v5876_v27  ;;  %s5562_s19 = smov 104   ;;  %s5563_s20 = smov 112  }
  0x62   : > { %356 = vst.msk [vmem:[#allocation2 + $0xe1] sm:$0xff] %vm328_vm2, %v5868_v25  ;;  %s5564_s21 = smov 120  }
  0x63   : > { %358 = vst.msk [vmem:[#allocation2 + $0xf1] sm:$0xff] %vm328_vm2, %v5902_v29  ;;  %vm1430_vm2 = vcmask 293888  }
  0x64   : > { %335 = vst.msk [vmem:[#allocation2 + $0x39] sm:$0x7f] %vm330_vm3, %v5757_v4 }
  0x65   : > { %406 = vrot.lane.b32.xlu2 %v5772_v7, %s5546_s29  ;;  %404 = vrot.lane.b32.xlu1 %v5775_v8, %s5546_s29  ;;  %331 = vst.msk [vmem:[#allocation2 + $0x19] sm:$0x7f] %vm330_vm3, %v5763_v6 }
  0x66   : > { %402 = vrot.lane.b32.xlu0 %v5778_v9, %s5546_s29  ;;  %333 = vst.msk [vmem:[#allocation2 + $0x29] sm:$0x7f] %vm330_vm3, %v5760_v5 }
  0x67   : > { %337 = vst.msk [vmem:[#allocation2 + $0x49] sm:$0x7f] %vm330_vm3, %v5775_v8 }
  0x68   : > { %339 = vst.msk [vmem:[#allocation2 + $0x59] sm:$0x7f] %vm330_vm3, %v5793_v12 }
  0x69   : > { %341 = vst.msk [vmem:[#allocation2 + $0x69] sm:$0x7f] %vm330_vm3, %v5787_v10 }
  0x6a   : > { %343 = vst.msk [vmem:[#allocation2 + $0x79] sm:$0x7f] %vm330_vm3, %v5805_v14 }
  0x6b   : > { %345 = vst.msk [vmem:[#allocation2 + $0x89] sm:$0x7f] %vm330_vm3, %v5823_v18 }
  0x6c   : > { %347 = vst.msk [vmem:[#allocation2 + $0x99] sm:$0x7f] %vm330_vm3, %v5817_v16 }
  0x6d   : > { %412 = vrot.lane.b32.xlu2 %v5787_v10, %s5546_s29  ;;  %410 = vrot.lane.b32.xlu1 %v5790_v11, %s5546_s29  ;;  %349 = vst.msk [vmem:[#allocation2 + $0xa9] sm:$0x7f] %vm330_vm3, %v5835_v20 }
  0x6e   : > { %408 = vrot.lane.b32.xlu0 %v5793_v12, %s5546_s29  ;;  %351 = vst.msk [vmem:[#allocation2 + $0xb9] sm:$0x7f] %vm330_vm3, %v5853_v24 }
  0x6f   : > { %353 = vst.msk [vmem:[#allocation2 + $0xc9] sm:$0x7f] %vm330_vm3, %v5847_v22 }
  0x70   : > { %355 = vst.msk [vmem:[#allocation2 + $0xd9] sm:$0x7f] %vm330_vm3, %v5871_v26 }
  0x71   : > { %357 = vst.msk [vmem:[#allocation2 + $0xe9] sm:$0x7f] %vm330_vm3, %v5907_v30 }
  0x72   : > { %359 = vst.msk [vmem:[#allocation2 + $0xf9] sm:$0x7f] %vm330_vm3, %v5899_v28  ;;  %vm1677_vm3 = vcmask 64512  }
  0x75   : > { %418 = vrot.lane.b32.xlu2 %v5802_v13, %s5546_s29  ;;  %416 = vrot.lane.b32.xlu1 %v5805_v14, %s5546_s29 }
  0x76   : > { %414 = vrot.lane.b32.xlu0 %v5808_v15, %s5546_s29 }
  0x7d   : > { %424 = vrot.lane.b32.xlu2 %v5817_v16, %s5546_s29  ;;  %422 = vrot.lane.b32.xlu1 %v5820_v17, %s5546_s29 }
  0x7e   : > { %420 = vrot.lane.b32.xlu0 %v5823_v18, %s5546_s29 }
  0x85   : > { %430 = vrot.lane.b32.xlu2 %v5832_v19, %s5546_s29  ;;  %428 = vrot.lane.b32.xlu1 %v5835_v20, %s5546_s29 }
  0x86   : > { %426 = vrot.lane.b32.xlu0 %v5838_v21, %s5546_s29 }
  0x8d   : > { %436 = vrot.lane.b32.xlu2 %v5847_v22, %s5546_s29  ;;  %434 = vrot.lane.b32.xlu1 %v5850_v23, %s5546_s29 }
  0x8e   : > { %432 = vrot.lane.b32.xlu0 %v5853_v24, %s5546_s29 }
  0x95   : > { %442 = vrot.lane.b32.xlu2 %v5868_v25, %s5546_s29  ;;  %440 = vrot.lane.b32.xlu1 %v5871_v26, %s5546_s29 }
  0x96   : > { %438 = vrot.lane.b32.xlu0 %v5876_v27, %s5546_s29 }
  0x9d   : > { %448 = vrot.lane.b32.xlu2 %v5899_v28, %s5546_s29  ;;  %446 = vrot.lane.b32.xlu1 %v5902_v29, %s5546_s29 }
  0x9e   : > { %444 = vrot.lane.b32.xlu0 %v5907_v30, %s5546_s29  ;;  %s5557_s29 = smov 64  }
  0xa5   : > { %515 = vrot.lane.b32.xlu2 %v5745_v2, %s5547_s30  ;;  %513 = vrot.lane.b32.xlu1 %v5763_v6, %s5547_s30 }
  0xa6   : > { %511 = vrot.lane.b32.xlu0 %v5748_v3, %s5547_s30 }
  0xad   : > { %521 = vrot.lane.b32.xlu2 %v5757_v4, %s5547_s30  ;;  %519 = vrot.lane.b32.xlu1 %v5742_v1, %s5547_s30 }
  0xae   : > { %517 = vrot.lane.b32.xlu0 %v5760_v5, %s5547_s30 }
  0xaf   : > { %v399_v31 = vpop.permute.xlu2 %398 }
  0xb0   : > { %485 = vst.msk [vmem:[#allocation2 + $0x30] sm:$0xff] %vm480_vm4, %v399_v31 }
  0xb5   : > { %527 = vrot.lane.b32.xlu2 %v5772_v7, %s5547_s30  ;;  %525 = vrot.lane.b32.xlu1 %v5775_v8, %s5547_s30 }
  0xb6   : > { %523 = vrot.lane.b32.xlu0 %v5778_v9, %s5547_s30 }
  0xb7   : > { %v401_v32 = vpop.permute.xlu2 %400 }
  0xb8   : > { %486 = vst.msk [vmem:[#allocation2 + $0x38] sm:$0xff] %vm480_vm4, %v401_v32 }
  0xbd   : > { %533 = vrot.lane.b32.xlu2 %v5787_v10, %s5547_s30  ;;  %531 = vrot.lane.b32.xlu1 %v5790_v11, %s5547_s30 }
  0xbe   : > { %529 = vrot.lane.b32.xlu0 %v5793_v12, %s5547_s30 }
  0xbf   : > { %v407_v33 = vpop.permute.xlu2 %406 }
  0xc0   : > { %489 = vst.msk [vmem:[#allocation2 + $0x50] sm:$0xff] %vm480_vm4, %v407_v33 }
  0xc5   : > { %539 = vrot.lane.b32.xlu2 %v5802_v13, %s5547_s30  ;;  %537 = vrot.lane.b32.xlu1 %v5805_v14, %s5547_s30 }
  0xc6   : > { %535 = vrot.lane.b32.xlu0 %v5808_v15, %s5547_s30 }
  0xc7   : > { %v413_v34 = vpop.permute.xlu2 %412  ;;  %v395_v35 = vpop.permute.xlu1 %394 }
  0xc8   : > { %492 = vst.msk [vmem:[#allocation2 + $0x68] sm:$0xff] %vm480_vm4, %v413_v34  ;;  %v391_v36 = vpop.permute.xlu0 %390 }
  0xc9   : > { %483 = vst.msk [vmem:[#allocation2 + $0x20] sm:$0xff] %vm480_vm4, %v395_v35 }
  0xca   : > { %481 = vst.msk [vmem:[#allocation2 + $0x10] sm:$0xff] %vm480_vm4, %v391_v36 }
  0xcd   : > { %545 = vrot.lane.b32.xlu2 %v5817_v16, %s5547_s30  ;;  %543 = vrot.lane.b32.xlu1 %v5820_v17, %s5547_s30 }
  0xce   : > { %541 = vrot.lane.b32.xlu0 %v5823_v18, %s5547_s30 }
  0xcf   : > { %v419_v37 = vpop.permute.xlu2 %418  ;;  %v397_v38 = vpop.permute.xlu1 %396 }
  0xd0   : > { %495 = vst.msk [vmem:[#allocation2 + $0x80] sm:$0xff] %vm480_vm4, %v419_v37  ;;  %v393_v39 = vpop.permute.xlu0 %392 }
  0xd1   : > { %484 = vst.msk [vmem:[#allocation2 + $0x28] sm:$0xff] %vm480_vm4, %v397_v38 }
  0xd2   : > { %482 = vst.msk [vmem:[#allocation2 + $0x18] sm:$0xff] %vm480_vm4, %v393_v39 }
  0xd5   : > { %551 = vrot.lane.b32.xlu2 %v5832_v19, %s5547_s30  ;;  %549 = vrot.lane.b32.xlu1 %v5835_v20, %s5547_s30 }
  0xd6   : > { %547 = vrot.lane.b32.xlu0 %v5838_v21, %s5547_s30 }
  0xd7   : > { %v425_v40 = vpop.permute.xlu2 %424  ;;  %v405_v41 = vpop.permute.xlu1 %404 }
  0xd8   : > { %498 = vst.msk [vmem:[#allocation2 + $0x98] sm:$0xff] %vm480_vm4, %v425_v40  ;;  %v403_v42 = vpop.permute.xlu0 %402 }
  0xd9   : > { %488 = vst.msk [vmem:[#allocation2 + $0x48] sm:$0xff] %vm480_vm4, %v405_v41 }
  0xda   : > { %487 = vst.msk [vmem:[#allocation2 + $0x40] sm:$0xff] %vm480_vm4, %v403_v42 }
  0xdd   : > { %557 = vrot.lane.b32.xlu2 %v5847_v22, %s5547_s30  ;;  %555 = vrot.lane.b32.xlu1 %v5850_v23, %s5547_s30 }
  0xde   : > { %553 = vrot.lane.b32.xlu0 %v5853_v24, %s5547_s30 }
  0xdf   : > { %v431_v43 = vpop.permute.xlu2 %430  ;;  %v411_v44 = vpop.permute.xlu1 %410 }
  0xe0   : > { %501 = vst.msk [vmem:[#allocation2 + $0xb0] sm:$0xff] %vm480_vm4, %v431_v43  ;;  %v409_v45 = vpop.permute.xlu0 %408 }
  0xe1   : > { %491 = vst.msk [vmem:[#allocation2 + $0x60] sm:$0xff] %vm480_vm4, %v411_v44 }
  0xe2   : > { %490 = vst.msk [vmem:[#allocation2 + $0x58] sm:$0xff] %vm480_vm4, %v409_v45 }
  0xe5   : > { %563 = vrot.lane.b32.xlu2 %v5868_v25, %s5547_s30  ;;  %561 = vrot.lane.b32.xlu1 %v5871_v26, %s5547_s30 }
  0xe6   : > { %559 = vrot.lane.b32.xlu0 %v5876_v27, %s5547_s30 }
  0xe7   : > { %v437_v46 = vpop.permute.xlu2 %436  ;;  %v417_v47 = vpop.permute.xlu1 %416 }
  0xe8   : > { %504 = vst.msk [vmem:[#allocation2 + $0xc8] sm:$0xff] %vm480_vm4, %v437_v46  ;;  %v415_v48 = vpop.permute.xlu0 %414 }
  0xe9   : > { %494 = vst.msk [vmem:[#allocation2 + $0x78] sm:$0xff] %vm480_vm4, %v417_v47 }
  0xea   : > { %493 = vst.msk [vmem:[#allocation2 + $0x70] sm:$0xff] %vm480_vm4, %v415_v48  ;;  %v6123_v48 = vld [vmem:[%s5606_s25 + $0xf8] sm:$0xff] }
  0xed   : > { %569 = vrot.lane.b32.xlu2 %v5899_v28, %s5547_s30  ;;  %567 = vrot.lane.b32.xlu1 %v5902_v29, %s5547_s30 }
  0xee   : > { %565 = vrot.lane.b32.xlu0 %v5907_v30, %s5547_s30 }
  0xef   : > { %v443_v49 = vpop.permute.xlu2 %442  ;;  %v423_v50 = vpop.permute.xlu1 %422 }
  0xf0   : > { %507 = vst.msk [vmem:[#allocation2 + $0xe0] sm:$0xff] %vm480_vm4, %v443_v49  ;;  %v421_v51 = vpop.permute.xlu0 %420  ;;  %v6126_v49 = vld [vmem:[%s5606_s25 + $0xf0] sm:$0xff]  ;;  %s5554_s25 = smov 40  }
  0xf1   : > { %497 = vst.msk [vmem:[#allocation2 + $0x90] sm:$0xff] %vm480_vm4, %v423_v50 }
  0xf2   : > { %496 = vst.msk [vmem:[#allocation2 + $0x88] sm:$0xff] %vm480_vm4, %v421_v51 }
  0xf5   : > { %639 = vrot.lane.b32.xlu2 %v5745_v2, %s5548_s6  ;;  %637 = vrot.lane.b32.xlu1 %v5763_v6, %s5548_s6 }
  0xf6   : > { %635 = vrot.lane.b32.xlu0 %v5748_v3, %s5548_s6 }
  0xf7   : > { %v449_v52 = vpop.permute.xlu2 %448  ;;  %v429_v53 = vpop.permute.xlu1 %428 }
  0xf8   : > { %510 = vst.msk [vmem:[#allocation2 + $0xf8] sm:$0xff] %vm480_vm4, %v449_v52  ;;  %v427_v54 = vpop.permute.xlu0 %426 }
  0xf9   : > { %500 = vst.msk [vmem:[#allocation2 + $0xa8] sm:$0xff] %vm480_vm4, %v429_v53 }
  0xfa   : > { %499 = vst.msk [vmem:[#allocation2 + $0xa0] sm:$0xff] %vm480_vm4, %v427_v54 }
  0xfd   : > { %645 = vrot.lane.b32.xlu2 %v5757_v4, %s5548_s6  ;;  %643 = vrot.lane.b32.xlu1 %v5742_v1, %s5548_s6 }
  0xfe   : > { %641 = vrot.lane.b32.xlu0 %v5760_v5, %s5548_s6 }
  0xff   : > { %v516_v55 = vpop.permute.xlu2 %515  ;;  %v435_v56 = vpop.permute.xlu1 %434 }
 0x100   : > { %605 = vst.msk [vmem:[#allocation2 + $0x1f] sm:$0xfe] %vm601_vm5, %v516_v55  ;;  %v433_v57 = vpop.permute.xlu0 %432 }
 0x101   : > { %503 = vst.msk [vmem:[#allocation2 + $0xc0] sm:$0xff] %vm480_vm4, %v435_v56 }
 0x102   : > { %502 = vst.msk [vmem:[#allocation2 + $0xb8] sm:$0xff] %vm480_vm4, %v433_v57 }
 0x105   : > { %651 = vrot.lane.b32.xlu2 %v5772_v7, %s5548_s6  ;;  %649 = vrot.lane.b32.xlu1 %v5775_v8, %s5548_s6 }
 0x106   : > { %647 = vrot.lane.b32.xlu0 %v5778_v9, %s5548_s6 }
 0x107   : > { %v522_v58 = vpop.permute.xlu2 %521  ;;  %v441_v59 = vpop.permute.xlu1 %440 }
 0x108   : > { %608 = vst.msk [vmem:[#allocation2 + $0x37] sm:$0xff] %vm603_vm6, %v522_v58  ;;  %v439_v60 = vpop.permute.xlu0 %438 }
 0x109   : > { %506 = vst.msk [vmem:[#allocation2 + $0xd8] sm:$0xff] %vm480_vm4, %v441_v59 }
 0x10a   : > { %505 = vst.msk [vmem:[#allocation2 + $0xd0] sm:$0xff] %vm480_vm4, %v439_v60 }
 0x10d   : > { %657 = vrot.lane.b32.xlu2 %v5787_v10, %s5548_s6  ;;  %655 = vrot.lane.b32.xlu1 %v5790_v11, %s5548_s6 }
 0x10e   : > { %653 = vrot.lane.b32.xlu0 %v5793_v12, %s5548_s6 }
 0x10f   : > { %v528_v61 = vpop.permute.xlu2 %527  ;;  %v447_v62 = vpop.permute.xlu1 %446 }
 0x110   : > { %611 = vst.msk [vmem:[#allocation2 + $0x4f] sm:$0xfe] %vm601_vm5, %v528_v61  ;;  %v445_v63 = vpop.permute.xlu0 %444 }
 0x111   : > { %509 = vst.msk [vmem:[#allocation2 + $0xf0] sm:$0xff] %vm480_vm4, %v447_v62 }
 0x112   : > { %508 = vst.msk [vmem:[#allocation2 + $0xe8] sm:$0xff] %vm480_vm4, %v445_v63  ;;  %vm1679_vm4 = vcmask 63488  }
 0x115   : > { %663 = vrot.lane.b32.xlu2 %v5802_v13, %s5548_s6  ;;  %661 = vrot.lane.b32.xlu1 %v5805_v14, %s5548_s6 }
 0x116   : > { %659 = vrot.lane.b32.xlu0 %v5808_v15, %s5548_s6 }
 0x117   : > { %v534_v0 = vpop.permute.xlu2 %533  ;;  %v514_v31 = vpop.permute.xlu1 %513 }
 0x118   : > { %614 = vst.msk [vmem:[#allocation2 + $0x67] sm:$0xff] %vm603_vm6, %v534_v0  ;;  %v512_v32 = vpop.permute.xlu0 %511 }
 0x119   : > { %604 = vst.msk [vmem:[#allocation2 + $0x17] sm:$0xff] %vm603_vm6, %v514_v31 }
 0x11a   : > { %602 = vst.msk [vmem:[#allocation2 + $0xf] sm:$0xfe] %vm601_vm5, %v512_v32 }
 0x11d   : > { %669 = vrot.lane.b32.xlu2 %v5817_v16, %s5548_s6  ;;  %667 = vrot.lane.b32.xlu1 %v5820_v17, %s5548_s6 }
 0x11e   : > { %665 = vrot.lane.b32.xlu0 %v5823_v18, %s5548_s6 }
 0x11f   : > { %v540_v33 = vpop.permute.xlu2 %539  ;;  %v520_v34 = vpop.permute.xlu1 %519 }
 0x120   : > { %617 = vst.msk [vmem:[#allocation2 + $0x7f] sm:$0xfe] %vm601_vm5, %v540_v33  ;;  %v518_v35 = vpop.permute.xlu0 %517 }
 0x121   : > { %607 = vst.msk [vmem:[#allocation2 + $0x2f] sm:$0xfe] %vm601_vm5, %v520_v34 }
 0x122   : > { %606 = vst.msk [vmem:[#allocation2 + $0x27] sm:$0xff] %vm603_vm6, %v518_v35 }
 0x125   : > { %675 = vrot.lane.b32.xlu2 %v5832_v19, %s5548_s6  ;;  %673 = vrot.lane.b32.xlu1 %v5835_v20, %s5548_s6 }
 0x126   : > { %671 = vrot.lane.b32.xlu0 %v5838_v21, %s5548_s6 }
 0x127   : > { %v546_v36 = vpop.permute.xlu2 %545  ;;  %v526_v37 = vpop.permute.xlu1 %525 }
 0x128   : > { %620 = vst.msk [vmem:[#allocation2 + $0x97] sm:$0xff] %vm603_vm6, %v546_v36  ;;  %v524_v38 = vpop.permute.xlu0 %523 }
 0x129   : > { %610 = vst.msk [vmem:[#allocation2 + $0x47] sm:$0xff] %vm603_vm6, %v526_v37 }
 0x12a   : > { %609 = vst.msk [vmem:[#allocation2 + $0x3f] sm:$0xfe] %vm601_vm5, %v524_v38 }
 0x12d   : > { %681 = vrot.lane.b32.xlu2 %v5847_v22, %s5548_s6  ;;  %679 = vrot.lane.b32.xlu1 %v5850_v23, %s5548_s6 }
 0x12e   : > { %677 = vrot.lane.b32.xlu0 %v5853_v24, %s5548_s6 }
 0x12f   : > { %v552_v39 = vpop.permute.xlu2 %551  ;;  %v532_v40 = vpop.permute.xlu1 %531 }
 0x130   : > { %623 = vst.msk [vmem:[#allocation2 + $0xaf] sm:$0xfe] %vm601_vm5, %v552_v39  ;;  %v530_v41 = vpop.permute.xlu0 %529 }
 0x131   : > { %613 = vst.msk [vmem:[#allocation2 + $0x5f] sm:$0xfe] %vm601_vm5, %v532_v40 }
 0x132   : > { %612 = vst.msk [vmem:[#allocation2 + $0x57] sm:$0xff] %vm603_vm6, %v530_v41 }
 0x135   : > { %687 = vrot.lane.b32.xlu2 %v5868_v25, %s5548_s6  ;;  %685 = vrot.lane.b32.xlu1 %v5871_v26, %s5548_s6 }
 0x136   : > { %683 = vrot.lane.b32.xlu0 %v5876_v27, %s5548_s6 }
 0x137   : > { %v558_v42 = vpop.permute.xlu2 %557  ;;  %v538_v43 = vpop.permute.xlu1 %537 }
 0x138   : > { %626 = vst.msk [vmem:[#allocation2 + $0xc7] sm:$0xff] %vm603_vm6, %v558_v42  ;;  %v536_v44 = vpop.permute.xlu0 %535 }
 0x139   : > { %616 = vst.msk [vmem:[#allocation2 + $0x77] sm:$0xff] %vm603_vm6, %v538_v43 }
 0x13a   : > { %615 = vst.msk [vmem:[#allocation2 + $0x6f] sm:$0xfe] %vm601_vm5, %v536_v44 }
 0x13d   : > { %693 = vrot.lane.b32.xlu2 %v5899_v28, %s5548_s6  ;;  %691 = vrot.lane.b32.xlu1 %v5902_v29, %s5548_s6 }
 0x13e   : > { %689 = vrot.lane.b32.xlu0 %v5907_v30, %s5548_s6 }
 0x13f   : > { %v564_v45 = vpop.permute.xlu2 %563  ;;  %v544_v46 = vpop.permute.xlu1 %543 }
 0x140   : > { %629 = vst.msk [vmem:[#allocation2 + $0xdf] sm:$0xfe] %vm601_vm5, %v564_v45  ;;  %v542_v47 = vpop.permute.xlu0 %541 }
 0x141   : > { %619 = vst.msk [vmem:[#allocation2 + $0x8f] sm:$0xfe] %vm601_vm5, %v544_v46 }
 0x142   : > { %618 = vst.msk [vmem:[#allocation2 + $0x87] sm:$0xff] %vm603_vm6, %v542_v47 }
 0x145   : > { %697 = vrot.lane.b32.xlu1 %v6123_v48, %s5548_s6  ;;  %765 = vrot.lane.b32.xlu2 %v5748_v3, %s5549_s7 }
 0x146   : > { %695 = vrot.lane.b32.xlu0 %v6126_v49, %s5548_s6 }
 0x147   : > { %v570_v50 = vpop.permute.xlu2 %569  ;;  %v550_v51 = vpop.permute.xlu1 %549 }
 0x148   : > { %632 = vst.msk [vmem:[#allocation2 + $0xf7] sm:$0xff] %vm603_vm6, %v570_v50  ;;  %v548_v52 = vpop.permute.xlu0 %547 }
 0x149   : > { %622 = vst.msk [vmem:[#allocation2 + $0xa7] sm:$0xff] %vm603_vm6, %v550_v51 }
 0x14a   : > { %621 = vst.msk [vmem:[#allocation2 + $0x9f] sm:$0xfe] %vm601_vm5, %v548_v52 }
 0x14d   : > { %769 = vrot.lane.b32.xlu1 %v5745_v2, %s5549_s7  ;;  %771 = vrot.lane.b32.xlu2 %v5760_v5, %s5549_s7 }
 0x14e   : > { %767 = vrot.lane.b32.xlu0 %v5763_v6, %s5549_s7 }
 0x14f   : > { %v640_v53 = vpop.permute.xlu2 %639  ;;  %v556_v54 = vpop.permute.xlu1 %555 }
 0x150   : > { %735 = vst.msk [vmem:[#allocation2 + $0x11] sm:$0xff] %vm731_vm7, %v640_v53  ;;  %v554_v55 = vpop.permute.xlu0 %553 }
 0x151   : > { %625 = vst.msk [vmem:[#allocation2 + $0xbf] sm:$0xfe] %vm601_vm5, %v556_v54 }
 0x152   : > { %624 = vst.msk [vmem:[#allocation2 + $0xb7] sm:$0xff] %vm603_vm6, %v554_v55 }
 0x155   : > { %775 = vrot.lane.b32.xlu1 %v5757_v4, %s5549_s7  ;;  %777 = vrot.lane.b32.xlu2 %v5778_v9, %s5549_s7 }
 0x156   : > { %773 = vrot.lane.b32.xlu0 %v5742_v1, %s5549_s7 }
 0x157   : > { %v646_v56 = vpop.permute.xlu2 %645  ;;  %v562_v57 = vpop.permute.xlu1 %561 }
 0x158   : > { %738 = vst.msk [vmem:[#allocation2 + $0x29] sm:$0x7f] %vm733_vm8, %v646_v56  ;;  %v560_v58 = vpop.permute.xlu0 %559 }
 0x159   : > { %628 = vst.msk [vmem:[#allocation2 + $0xd7] sm:$0xff] %vm603_vm6, %v562_v57 }
 0x15a   : > { %627 = vst.msk [vmem:[#allocation2 + $0xcf] sm:$0xfe] %vm601_vm5, %v560_v58 }
 0x15d   : > { %781 = vrot.lane.b32.xlu1 %v5772_v7, %s5549_s7  ;;  %783 = vrot.lane.b32.xlu2 %v5793_v12, %s5549_s7 }
 0x15e   : > { %779 = vrot.lane.b32.xlu0 %v5775_v8, %s5549_s7 }
 0x15f   : > { %v652_v59 = vpop.permute.xlu2 %651  ;;  %v568_v60 = vpop.permute.xlu1 %567 }
 0x160   : > { %741 = vst.msk [vmem:[#allocation2 + $0x41] sm:$0xff] %vm731_vm7, %v652_v59  ;;  %v566_v61 = vpop.permute.xlu0 %565 }
 0x161   : > { %631 = vst.msk [vmem:[#allocation2 + $0xef] sm:$0xfe] %vm601_vm5, %v568_v60  ;;  %vm1829_vm5 = vcmask 130112  }
 0x162   : > { %630 = vst.msk [vmem:[#allocation2 + $0xe7] sm:$0xff] %vm603_vm6, %v566_v61  ;;  %vm1950_vm6 = vcmask 195713  }
 0x165   : > { %787 = vrot.lane.b32.xlu1 %v5787_v10, %s5549_s7  ;;  %789 = vrot.lane.b32.xlu2 %v5808_v15, %s5549_s7 }
 0x166   : > { %785 = vrot.lane.b32.xlu0 %v5790_v11, %s5549_s7 }
 0x167   : > { %v658_v62 = vpop.permute.xlu2 %657  ;;  %v638_v63 = vpop.permute.xlu1 %637 }
 0x168   : > { %744 = vst.msk [vmem:[#allocation2 + $0x59] sm:$0x7f] %vm733_vm8, %v658_v62  ;;  %v636_v0 = vpop.permute.xlu0 %635 }
 0x169   : > { %734 = vst.msk [vmem:[#allocation2 + $0x9] sm:$0x7f] %vm733_vm8, %v638_v63 }
 0x16a   : > { %732 = vst.msk [vmem:[#allocation2 + $0x1] sm:$0xff] %vm731_vm7, %v636_v0 }
 0x16d   : > { %793 = vrot.lane.b32.xlu1 %v5802_v13, %s5549_s7  ;;  %795 = vrot.lane.b32.xlu2 %v5823_v18, %s5549_s7 }
 0x16e   : > { %791 = vrot.lane.b32.xlu0 %v5805_v14, %s5549_s7 }
 0x16f   : > { %v664_v31 = vpop.permute.xlu2 %663  ;;  %v644_v32 = vpop.permute.xlu1 %643 }
 0x170   : > { %747 = vst.msk [vmem:[#allocation2 + $0x71] sm:$0xff] %vm731_vm7, %v664_v31  ;;  %v642_v33 = vpop.permute.xlu0 %641 }
 0x171   : > { %737 = vst.msk [vmem:[#allocation2 + $0x21] sm:$0xff] %vm731_vm7, %v644_v32 }
 0x172   : > { %736 = vst.msk [vmem:[#allocation2 + $0x19] sm:$0x7f] %vm733_vm8, %v642_v33 }
 0x175   : > { %799 = vrot.lane.b32.xlu1 %v5817_v16, %s5549_s7  ;;  %801 = vrot.lane.b32.xlu2 %v5838_v21, %s5549_s7 }
 0x176   : > { %797 = vrot.lane.b32.xlu0 %v5820_v17, %s5549_s7 }
 0x177   : > { %v670_v34 = vpop.permute.xlu2 %669  ;;  %v650_v35 = vpop.permute.xlu1 %649 }
 0x178   : > { %750 = vst.msk [vmem:[#allocation2 + $0x89] sm:$0x7f] %vm733_vm8, %v670_v34  ;;  %v648_v36 = vpop.permute.xlu0 %647 }
 0x179   : > { %740 = vst.msk [vmem:[#allocation2 + $0x39] sm:$0x7f] %vm733_vm8, %v650_v35 }
 0x17a   : > { %739 = vst.msk [vmem:[#allocation2 + $0x31] sm:$0xff] %vm731_vm7, %v648_v36 }
 0x17d   : > { %805 = vrot.lane.b32.xlu1 %v5832_v19, %s5549_s7  ;;  %807 = vrot.lane.b32.xlu2 %v5853_v24, %s5549_s7 }
 0x17e   : > { %803 = vrot.lane.b32.xlu0 %v5835_v20, %s5549_s7 }
 0x17f   : > { %v676_v37 = vpop.permute.xlu2 %675  ;;  %v656_v38 = vpop.permute.xlu1 %655 }
 0x180   : > { %753 = vst.msk [vmem:[#allocation2 + $0xa1] sm:$0xff] %vm731_vm7, %v676_v37  ;;  %v654_v39 = vpop.permute.xlu0 %653 }
 0x181   : > { %743 = vst.msk [vmem:[#allocation2 + $0x51] sm:$0xff] %vm731_vm7, %v656_v38 }
 0x182   : > { %742 = vst.msk [vmem:[#allocation2 + $0x49] sm:$0x7f] %vm733_vm8, %v654_v39 }
 0x185   : > { %811 = vrot.lane.b32.xlu1 %v5847_v22, %s5549_s7  ;;  %813 = vrot.lane.b32.xlu2 %v5876_v27, %s5549_s7 }
 0x186   : > { %809 = vrot.lane.b32.xlu0 %v5850_v23, %s5549_s7 }
 0x187   : > { %v682_v40 = vpop.permute.xlu2 %681  ;;  %v662_v41 = vpop.permute.xlu1 %661 }
 0x188   : > { %756 = vst.msk [vmem:[#allocation2 + $0xb9] sm:$0x7f] %vm733_vm8, %v682_v40  ;;  %v660_v42 = vpop.permute.xlu0 %659 }
 0x189   : > { %746 = vst.msk [vmem:[#allocation2 + $0x69] sm:$0x7f] %vm733_vm8, %v662_v41 }
 0x18a   : > { %745 = vst.msk [vmem:[#allocation2 + $0x61] sm:$0xff] %vm731_vm7, %v660_v42 }
 0x18d   : > { %817 = vrot.lane.b32.xlu1 %v5868_v25, %s5549_s7  ;;  %819 = vrot.lane.b32.xlu2 %v5907_v30, %s5549_s7 }
 0x18e   : > { %815 = vrot.lane.b32.xlu0 %v5871_v26, %s5549_s7 }
 0x18f   : > { %v688_v43 = vpop.permute.xlu2 %687  ;;  %v668_v44 = vpop.permute.xlu1 %667 }
 0x190   : > { %759 = vst.msk [vmem:[#allocation2 + $0xd1] sm:$0xff] %vm731_vm7, %v688_v43  ;;  %v666_v45 = vpop.permute.xlu0 %665 }
 0x191   : > { %749 = vst.msk [vmem:[#allocation2 + $0x81] sm:$0xff] %vm731_vm7, %v668_v44 }
 0x192   : > { %748 = vst.msk [vmem:[#allocation2 + $0x79] sm:$0x7f] %vm733_vm8, %v666_v45 }
 0x195   : > { %823 = vrot.lane.b32.xlu1 %v5899_v28, %s5549_s7  ;;  %825 = vrot.lane.b32.xlu2 %v6126_v49, %s5549_s7 }
 0x196   : > { %821 = vrot.lane.b32.xlu0 %v5902_v29, %s5549_s7 }
 0x197   : > { %v694_v46 = vpop.permute.xlu2 %693  ;;  %v674_v47 = vpop.permute.xlu1 %673 }
 0x198   : > { %762 = vst.msk [vmem:[#allocation2 + $0xe9] sm:$0x7f] %vm733_vm8, %v694_v46  ;;  %v672_v50 = vpop.permute.xlu0 %671 }
 0x199   : > { %752 = vst.msk [vmem:[#allocation2 + $0x99] sm:$0x7f] %vm733_vm8, %v674_v47 }
 0x19a   : > { %751 = vst.msk [vmem:[#allocation2 + $0x91] sm:$0xff] %vm731_vm7, %v672_v50 }
 0x19d   : > { %894 = vrot.lane.b32.xlu1 %v5748_v3, %s5550_s8  ;;  %896 = vrot.lane.b32.xlu2 %v5763_v6, %s5550_s8 }
 0x19e   : > { %827 = vrot.lane.b32.xlu0 %v6123_v48, %s5549_s7 }
 0x19f   : > { %v680_v51 = vpop.permute.xlu1 %679  ;;  %v766_v52 = vpop.permute.xlu2 %765 }
 0x1a0   : > { %755 = vst.msk [vmem:[#allocation2 + $0xb1] sm:$0xff] %vm731_vm7, %v680_v51  ;;  %v678_v53 = vpop.permute.xlu0 %677 }
 0x1a1   : > { %862 = vst.msk [vmem:[#allocation2] sm:$0xff] %vm861_vm9, %v766_v52 }
 0x1a2   : > { %754 = vst.msk [vmem:[#allocation2 + $0xa9] sm:$0x7f] %vm733_vm8, %v678_v53 }
 0x1a5   : > { %900 = vrot.lane.b32.xlu1 %v5760_v5, %s5550_s8  ;;  %902 = vrot.lane.b32.xlu2 %v5742_v1, %s5550_s8 }
 0x1a6   : > { %898 = vrot.lane.b32.xlu0 %v5745_v2, %s5550_s8 }
 0x1a7   : > { %v686_v3 = vpop.permute.xlu1 %685  ;;  %v772_v6 = vpop.permute.xlu2 %771 }
 0x1a8   : > { %758 = vst.msk [vmem:[#allocation2 + $0xc9] sm:$0x7f] %vm733_vm8, %v686_v3  ;;  %v684_v54 = vpop.permute.xlu0 %683 }
 0x1a9   : > { %865 = vst.msk [vmem:[#allocation2 + $0x18] sm:$0xff] %vm861_vm9, %v772_v6 }
 0x1aa   : > { %757 = vst.msk [vmem:[#allocation2 + $0xc1] sm:$0xff] %vm731_vm7, %v684_v54 }
 0x1ad   : > { %906 = vrot.lane.b32.xlu1 %v5778_v9, %s5550_s8  ;;  %908 = vrot.lane.b32.xlu2 %v5775_v8, %s5550_s8 }
 0x1ae   : > { %904 = vrot.lane.b32.xlu0 %v5757_v4, %s5550_s8 }
 0x1af   : > { %v692_v55 = vpop.permute.xlu1 %691  ;;  %v778_v56 = vpop.permute.xlu2 %777 }
 0x1b0   : > { %761 = vst.msk [vmem:[#allocation2 + $0xe1] sm:$0xff] %vm731_vm7, %v692_v55  ;;  %v690_v57 = vpop.permute.xlu0 %689 }
 0x1b1   : > { %868 = vst.msk [vmem:[#allocation2 + $0x30] sm:$0xff] %vm861_vm9, %v778_v56 }
 0x1b2   : > { %760 = vst.msk [vmem:[#allocation2 + $0xd9] sm:$0x7f] %vm733_vm8, %v690_v57 }
 0x1b5   : > { %912 = vrot.lane.b32.xlu1 %v5793_v12, %s5550_s8  ;;  %914 = vrot.lane.b32.xlu2 %v5790_v11, %s5550_s8 }
 0x1b6   : > { %910 = vrot.lane.b32.xlu0 %v5772_v7, %s5550_s8 }
 0x1b7   : > { %v698_v58 = vpop.permute.xlu1 %697  ;;  %v784_v59 = vpop.permute.xlu2 %783 }
 0x1b8   : > { %764 = vst.msk [vmem:[#allocation2 + $0xf9] sm:$0x7f] %vm733_vm8, %v698_v58  ;;  %v696_v60 = vpop.permute.xlu0 %695  ;;  %vm2080_vm8 = vcmask 261312  }
 0x1b9   : > { %871 = vst.msk [vmem:[#allocation2 + $0x48] sm:$0xff] %vm861_vm9, %v784_v59 }
 0x1ba   : > { %763 = vst.msk [vmem:[#allocation2 + $0xf1] sm:$0xff] %vm731_vm7, %v696_v60  ;;  %vm1952_vm7 = vcmask 195712  }
 0x1bd   : > { %918 = vrot.lane.b32.xlu1 %v5808_v15, %s5550_s8  ;;  %920 = vrot.lane.b32.xlu2 %v5805_v14, %s5550_s8 }
 0x1be   : > { %916 = vrot.lane.b32.xlu0 %v5787_v10, %s5550_s8 }
 0x1bf   : > { %v770_v61 = vpop.permute.xlu1 %769  ;;  %v790_v62 = vpop.permute.xlu2 %789 }
 0x1c0   : > { %864 = vst.msk [vmem:[#allocation2 + $0x10] sm:$0xff] %vm861_vm9, %v770_v61  ;;  %v768_v63 = vpop.permute.xlu0 %767 }
 0x1c1   : > { %874 = vst.msk [vmem:[#allocation2 + $0x60] sm:$0xff] %vm861_vm9, %v790_v62 }
 0x1c2   : > { %863 = vst.msk [vmem:[#allocation2 + $0x8] sm:$0xff] %vm861_vm9, %v768_v63 }
 0x1c5   : > { %924 = vrot.lane.b32.xlu1 %v5823_v18, %s5550_s8  ;;  %926 = vrot.lane.b32.xlu2 %v5820_v17, %s5550_s8 }
 0x1c6   : > { %922 = vrot.lane.b32.xlu0 %v5802_v13, %s5550_s8 }
 0x1c7   : > { %v776_v0 = vpop.permute.xlu1 %775  ;;  %v796_v31 = vpop.permute.xlu2 %795 }
 0x1c8   : > { %867 = vst.msk [vmem:[#allocation2 + $0x28] sm:$0xff] %vm861_vm9, %v776_v0  ;;  %v774_v32 = vpop.permute.xlu0 %773 }
 0x1c9   : > { %877 = vst.msk [vmem:[#allocation2 + $0x78] sm:$0xff] %vm861_vm9, %v796_v31 }
 0x1ca   : > { %866 = vst.msk [vmem:[#allocation2 + $0x20] sm:$0xff] %vm861_vm9, %v774_v32 }
 0x1cd   : > { %930 = vrot.lane.b32.xlu1 %v5838_v21, %s5550_s8  ;;  %932 = vrot.lane.b32.xlu2 %v5835_v20, %s5550_s8 }
 0x1ce   : > { %928 = vrot.lane.b32.xlu0 %v5817_v16, %s5550_s8 }
 0x1cf   : > { %v782_v33 = vpop.permute.xlu1 %781  ;;  %v802_v34 = vpop.permute.xlu2 %801 }
 0x1d0   : > { %870 = vst.msk [vmem:[#allocation2 + $0x40] sm:$0xff] %vm861_vm9, %v782_v33  ;;  %v780_v35 = vpop.permute.xlu0 %779 }
 0x1d1   : > { %880 = vst.msk [vmem:[#allocation2 + $0x90] sm:$0xff] %vm861_vm9, %v802_v34 }
 0x1d2   : > { %869 = vst.msk [vmem:[#allocation2 + $0x38] sm:$0xff] %vm861_vm9, %v780_v35 }
 0x1d5   : > { %936 = vrot.lane.b32.xlu1 %v5853_v24, %s5550_s8  ;;  %938 = vrot.lane.b32.xlu2 %v5850_v23, %s5550_s8 }
 0x1d6   : > { %934 = vrot.lane.b32.xlu0 %v5832_v19, %s5550_s8 }
 0x1d7   : > { %v788_v36 = vpop.permute.xlu1 %787  ;;  %v808_v37 = vpop.permute.xlu2 %807 }
 0x1d8   : > { %873 = vst.msk [vmem:[#allocation2 + $0x58] sm:$0xff] %vm861_vm9, %v788_v36  ;;  %v786_v38 = vpop.permute.xlu0 %785 }
 0x1d9   : > { %883 = vst.msk [vmem:[#allocation2 + $0xa8] sm:$0xff] %vm861_vm9, %v808_v37 }
 0x1da   : > { %872 = vst.msk [vmem:[#allocation2 + $0x50] sm:$0xff] %vm861_vm9, %v786_v38 }
 0x1dd   : > { %942 = vrot.lane.b32.xlu1 %v5876_v27, %s5550_s8  ;;  %944 = vrot.lane.b32.xlu2 %v5871_v26, %s5550_s8 }
 0x1de   : > { %940 = vrot.lane.b32.xlu0 %v5847_v22, %s5550_s8 }
 0x1df   : > { %v794_v39 = vpop.permute.xlu1 %793  ;;  %v814_v40 = vpop.permute.xlu2 %813 }
 0x1e0   : > { %876 = vst.msk [vmem:[#allocation2 + $0x70] sm:$0xff] %vm861_vm9, %v794_v39  ;;  %v792_v41 = vpop.permute.xlu0 %791 }
 0x1e1   : > { %886 = vst.msk [vmem:[#allocation2 + $0xc0] sm:$0xff] %vm861_vm9, %v814_v40 }
 0x1e2   : > { %875 = vst.msk [vmem:[#allocation2 + $0x68] sm:$0xff] %vm861_vm9, %v792_v41 }
 0x1e5   : > { %948 = vrot.lane.b32.xlu1 %v5907_v30, %s5550_s8  ;;  %950 = vrot.lane.b32.xlu2 %v5902_v29, %s5550_s8 }
 0x1e6   : > { %946 = vrot.lane.b32.xlu0 %v5868_v25, %s5550_s8 }
 0x1e7   : > { %v800_v42 = vpop.permute.xlu1 %799  ;;  %v820_v43 = vpop.permute.xlu2 %819 }
 0x1e8   : > { %879 = vst.msk [vmem:[#allocation2 + $0x88] sm:$0xff] %vm861_vm9, %v800_v42  ;;  %v798_v44 = vpop.permute.xlu0 %797 }
 0x1e9   : > { %889 = vst.msk [vmem:[#allocation2 + $0xd8] sm:$0xff] %vm861_vm9, %v820_v43 }
 0x1ea   : > { %878 = vst.msk [vmem:[#allocation2 + $0x80] sm:$0xff] %vm861_vm9, %v798_v44 }
 0x1ed   : > { %954 = vrot.lane.b32.xlu1 %v6126_v49, %s5550_s8  ;;  %956 = vrot.lane.b32.xlu2 %v6123_v48, %s5550_s8 }
 0x1ee   : > { %952 = vrot.lane.b32.xlu0 %v5899_v28, %s5550_s8 }
 0x1ef   : > { %v806_v45 = vpop.permute.xlu1 %805  ;;  %v826_v46 = vpop.permute.xlu2 %825 }
 0x1f0   : > { %882 = vst.msk [vmem:[#allocation2 + $0xa0] sm:$0xff] %vm861_vm9, %v806_v45  ;;  %v804_v47 = vpop.permute.xlu0 %803 }
 0x1f1   : > { %892 = vst.msk [vmem:[#allocation2 + $0xf0] sm:$0xff] %vm861_vm9, %v826_v46 }
 0x1f2   : > { %881 = vst.msk [vmem:[#allocation2 + $0x98] sm:$0xff] %vm861_vm9, %v804_v47 }
 0x1f5   : > { %1026 = vrot.lane.b32.xlu1 %v5760_v5, %s5551_s9  ;;  %1028 = vrot.lane.b32.xlu2 %v5742_v1, %s5551_s9 }
 0x1f6   : > { %1024 = vrot.lane.b32.xlu0 %v5745_v2, %s5551_s9 }
 0x1f7   : > { %v812_v50 = vpop.permute.xlu1 %811  ;;  %v897_v51 = vpop.permute.xlu2 %896 }
 0x1f8   : > { %885 = vst.msk [vmem:[#allocation2 + $0xb8] sm:$0xff] %vm861_vm9, %v812_v50  ;;  %v810_v52 = vpop.permute.xlu0 %809 }
 0x1f9   : > { %993 = vst.msk [vmem:[#allocation2 + $0x7] sm:$0xff] %vm992_vm10, %v897_v51 }
 0x1fa   : > { %884 = vst.msk [vmem:[#allocation2 + $0xb0] sm:$0xff] %vm861_vm9, %v810_v52 }
 0x1fd   : > { %1032 = vrot.lane.b32.xlu1 %v5778_v9, %s5551_s9  ;;  %1034 = vrot.lane.b32.xlu2 %v5775_v8, %s5551_s9 }
 0x1fe   : > { %1030 = vrot.lane.b32.xlu0 %v5757_v4, %s5551_s9 }
 0x1ff   : > { %v818_v53 = vpop.permute.xlu1 %817  ;;  %v903_v3 = vpop.permute.xlu2 %902 }
 0x200   : > { %888 = vst.msk [vmem:[#allocation2 + $0xd0] sm:$0xff] %vm861_vm9, %v818_v53  ;;  %v816_v6 = vpop.permute.xlu0 %815 }
 0x201   : > { %996 = vst.msk [vmem:[#allocation2 + $0x1f] sm:$0xfe] %vm990_vm11, %v903_v3 }
 0x202   : > { %887 = vst.msk [vmem:[#allocation2 + $0xc8] sm:$0xff] %vm861_vm9, %v816_v6 }
 0x205   : > { %1038 = vrot.lane.b32.xlu1 %v5793_v12, %s5551_s9  ;;  %1040 = vrot.lane.b32.xlu2 %v5790_v11, %s5551_s9 }
 0x206   : > { %1036 = vrot.lane.b32.xlu0 %v5772_v7, %s5551_s9 }
 0x207   : > { %v824_v54 = vpop.permute.xlu1 %823  ;;  %v909_v55 = vpop.permute.xlu2 %908 }
 0x208   : > { %891 = vst.msk [vmem:[#allocation2 + $0xe8] sm:$0xff] %vm861_vm9, %v824_v54  ;;  %v822_v56 = vpop.permute.xlu0 %821 }
 0x209   : > { %999 = vst.msk [vmem:[#allocation2 + $0x37] sm:$0xff] %vm992_vm10, %v909_v55 }
 0x20a   : > { %890 = vst.msk [vmem:[#allocation2 + $0xe0] sm:$0xff] %vm861_vm9, %v822_v56 }
 0x20d   : > { %1044 = vrot.lane.b32.xlu1 %v5808_v15, %s5551_s9  ;;  %1046 = vrot.lane.b32.xlu2 %v5805_v14, %s5551_s9 }
 0x20e   : > { %1042 = vrot.lane.b32.xlu0 %v5787_v10, %s5551_s9 }
 0x20f   : > { %v895_v57 = vpop.permute.xlu1 %894  ;;  %v915_v58 = vpop.permute.xlu2 %914 }
 0x210   : > { %991 = vst.msk [vmem:[#allocation2 - $0x1] sm:$0xfe] %vm990_vm11, %v895_v57  ;;  %v828_v59 = vpop.permute.xlu0 %827 }
 0x211   : > { %1002 = vst.msk [vmem:[#allocation2 + $0x4f] sm:$0xfe] %vm990_vm11, %v915_v58 }
 0x212   : > { %893 = vst.msk [vmem:[#allocation2 + $0xf8] sm:$0xff] %vm861_vm9, %v828_v59  ;;  %vm2082_vm9 = vcmask 260288  }
 0x215   : > { %1050 = vrot.lane.b32.xlu1 %v5823_v18, %s5551_s9  ;;  %1052 = vrot.lane.b32.xlu2 %v5820_v17, %s5551_s9 }
 0x216   : > { %1048 = vrot.lane.b32.xlu0 %v5802_v13, %s5551_s9 }
 0x217   : > { %v901_v60 = vpop.permute.xlu1 %900  ;;  %v921_v61 = vpop.permute.xlu2 %920 }
 0x218   : > { %995 = vst.msk [vmem:[#allocation2 + $0x17] sm:$0xff] %vm992_vm10, %v901_v60  ;;  %v899_v62 = vpop.permute.xlu0 %898 }
 0x219   : > { %1005 = vst.msk [vmem:[#allocation2 + $0x67] sm:$0xff] %vm992_vm10, %v921_v61 }
 0x21a   : > { %994 = vst.msk [vmem:[#allocation2 + $0xf] sm:$0xfe] %vm990_vm11, %v899_v62 }
 0x21d   : > { %1056 = vrot.lane.b32.xlu1 %v5838_v21, %s5551_s9  ;;  %1058 = vrot.lane.b32.xlu2 %v5835_v20, %s5551_s9 }
 0x21e   : > { %1054 = vrot.lane.b32.xlu0 %v5817_v16, %s5551_s9 }
 0x21f   : > { %v907_v63 = vpop.permute.xlu1 %906  ;;  %v927_v0 = vpop.permute.xlu2 %926 }
 0x220   : > { %998 = vst.msk [vmem:[#allocation2 + $0x2f] sm:$0xfe] %vm990_vm11, %v907_v63  ;;  %v905_v31 = vpop.permute.xlu0 %904 }
 0x221   : > { %1008 = vst.msk [vmem:[#allocation2 + $0x7f] sm:$0xfe] %vm990_vm11, %v927_v0 }
 0x222   : > { %997 = vst.msk [vmem:[#allocation2 + $0x27] sm:$0xff] %vm992_vm10, %v905_v31 }
 0x225   : > { %1062 = vrot.lane.b32.xlu1 %v5853_v24, %s5551_s9  ;;  %1064 = vrot.lane.b32.xlu2 %v5850_v23, %s5551_s9 }
 0x226   : > { %1060 = vrot.lane.b32.xlu0 %v5832_v19, %s5551_s9 }
 0x227   : > { %v913_v32 = vpop.permute.xlu1 %912  ;;  %v933_v33 = vpop.permute.xlu2 %932 }
 0x228   : > { %1001 = vst.msk [vmem:[#allocation2 + $0x47] sm:$0xff] %vm992_vm10, %v913_v32  ;;  %v911_v34 = vpop.permute.xlu0 %910 }
 0x229   : > { %1011 = vst.msk [vmem:[#allocation2 + $0x97] sm:$0xff] %vm992_vm10, %v933_v33 }
 0x22a   : > { %1000 = vst.msk [vmem:[#allocation2 + $0x3f] sm:$0xfe] %vm990_vm11, %v911_v34 }
 0x22d   : > { %1068 = vrot.lane.b32.xlu1 %v5876_v27, %s5551_s9  ;;  %1070 = vrot.lane.b32.xlu2 %v5871_v26, %s5551_s9 }
 0x22e   : > { %1066 = vrot.lane.b32.xlu0 %v5847_v22, %s5551_s9 }
 0x22f   : > { %v919_v35 = vpop.permute.xlu1 %918  ;;  %v939_v36 = vpop.permute.xlu2 %938 }
 0x230   : > { %1004 = vst.msk [vmem:[#allocation2 + $0x5f] sm:$0xfe] %vm990_vm11, %v919_v35  ;;  %v917_v37 = vpop.permute.xlu0 %916 }
 0x231   : > { %1014 = vst.msk [vmem:[#allocation2 + $0xaf] sm:$0xfe] %vm990_vm11, %v939_v36 }
 0x232   : > { %1003 = vst.msk [vmem:[#allocation2 + $0x57] sm:$0xff] %vm992_vm10, %v917_v37 }
 0x235   : > { %1074 = vrot.lane.b32.xlu1 %v5907_v30, %s5551_s9  ;;  %1076 = vrot.lane.b32.xlu2 %v5902_v29, %s5551_s9 }
 0x236   : > { %1072 = vrot.lane.b32.xlu0 %v5868_v25, %s5551_s9 }
 0x237   : > { %v925_v38 = vpop.permute.xlu1 %924  ;;  %v945_v39 = vpop.permute.xlu2 %944 }
 0x238   : > { %1007 = vst.msk [vmem:[#allocation2 + $0x77] sm:$0xff] %vm992_vm10, %v925_v38  ;;  %v923_v40 = vpop.permute.xlu0 %922 }
 0x239   : > { %1017 = vst.msk [vmem:[#allocation2 + $0xc7] sm:$0xff] %vm992_vm10, %v945_v39 }
 0x23a   : > { %1006 = vst.msk [vmem:[#allocation2 + $0x6f] sm:$0xfe] %vm990_vm11, %v923_v40 }
 0x23d   : > { %1080 = vrot.lane.b32.xlu1 %v6126_v49, %s5551_s9  ;;  %1082 = vrot.lane.b32.xlu2 %v6123_v48, %s5551_s9 }
 0x23e   : > { %1078 = vrot.lane.b32.xlu0 %v5899_v28, %s5551_s9 }
 0x23f   : > { %v931_v41 = vpop.permute.xlu1 %930  ;;  %v951_v42 = vpop.permute.xlu2 %950 }
 0x240   : > { %1010 = vst.msk [vmem:[#allocation2 + $0x8f] sm:$0xfe] %vm990_vm11, %v931_v41  ;;  %v929_v43 = vpop.permute.xlu0 %928 }
 0x241   : > { %1020 = vst.msk [vmem:[#allocation2 + $0xdf] sm:$0xfe] %vm990_vm11, %v951_v42 }
 0x242   : > { %1009 = vst.msk [vmem:[#allocation2 + $0x87] sm:$0xff] %vm992_vm10, %v929_v43  ;;  %v1425_v43 = vld [vmem:[%s10409_s1 + $0x20] sm:$0xf] }
 0x243   : > { %5423 = vmatpush.msk.msra.mxu0 %vm1527_vm15, %v1425_v43  ;;  %5492 = vmatpush.msk.msra.mxu3 %vm1527_vm15, %v1425_v43  ;;  %vm2585_vm15 = vcmask 523712  }
 0x245   : > { %1148 = vrot.lane.b32.xlu1 %v5760_v5, %s5552_s10  ;;  %1150 = vrot.lane.b32.xlu2 %v5742_v1, %s5552_s10 }
 0x246   : > { %1146 = vrot.lane.b32.xlu0 %v5745_v2, %s5552_s10 }
 0x247   : > { %v937_v44 = vpop.permute.xlu1 %936  ;;  %v957_v45 = vpop.permute.xlu2 %956 }
 0x248   : > { %1013 = vst.msk [vmem:[#allocation2 + $0xa7] sm:$0xff] %vm992_vm10, %v937_v44  ;;  %v935_v46 = vpop.permute.xlu0 %934  ;;  %v1424_v44 = vld [vmem:[%s10409_s1 + $0x18] sm:$0xff] }
 0x249   : > { %1023 = vst.msk [vmem:[#allocation2 + $0xf7] sm:$0xff] %vm992_vm10, %v957_v45  ;;  %v1423_v45 = vld [vmem:[%s10409_s1 + $0x10] sm:$0xff]  ;;  %1543 = vmatpush.msra.mxu0 %v1424_v44  ;;  %5493 = vmatpush.msra.mxu3 %v1424_v44 }
 0x24a   : > { %1012 = vst.msk [vmem:[#allocation2 + $0x9f] sm:$0xfe] %vm990_vm11, %v935_v46  ;;  %v1422_v46 = vld [vmem:[%s10409_s1 + $0x8] sm:$0xff] }
 0x24b   : > { %1544 = vmatpush.msra.mxu0 %v1423_v45  ;;  %5494 = vmatpush.msra.mxu3 %v1423_v45 }
 0x24d   : > { %1154 = vrot.lane.b32.xlu1 %v5778_v9, %s5552_s10  ;;  %1156 = vrot.lane.b32.xlu2 %v5775_v8, %s5552_s10 }
 0x24e   : > { %1152 = vrot.lane.b32.xlu0 %v5757_v4, %s5552_s10  ;;  %1545 = vmatpush.msra.mxu0 %v1422_v46 }
 0x24f   : > { %v943_v47 = vpop.permute.xlu1 %942  ;;  %v1029_v50 = vpop.permute.xlu2 %1028  ;;  %5495 = vmatpush.msra.mxu3 %v1422_v46 }
 0x250   : > { %1016 = vst.msk [vmem:[#allocation2 + $0xbf] sm:$0xfe] %vm990_vm11, %v943_v47  ;;  %v941_v51 = vpop.permute.xlu0 %940  ;;  %v1421_v47 = vld [vmem:[%s10409_s1] sm:$0xff] }
 0x251   : > { %1118 = vst.msk [vmem:[#allocation2 + $0x11] sm:$0xff] %vm1114_vm12, %v1029_v50  ;;  %1546 = vmatpush.msra.mxu0 %v1421_v47  ;;  %5496 = vmatpush.msra.mxu3 %v1421_v47  ;;  %v6680_v47 = vld [vmem:[%s10410_s2] ss:$0 sm:$0xff] }
 0x252   : > { %1015 = vst.msk [vmem:[#allocation2 + $0xb7] sm:$0xff] %vm992_vm10, %v941_v51 }
 0x255   : > { %1160 = vrot.lane.b32.xlu1 %v5793_v12, %s5552_s10  ;;  %1162 = vrot.lane.b32.xlu2 %v5790_v11, %s5552_s10 }
 0x256   : > { %1158 = vrot.lane.b32.xlu0 %v5772_v7, %s5552_s10 }
 0x257   : > { %v949_v52 = vpop.permute.xlu1 %948  ;;  %v1035_v53 = vpop.permute.xlu2 %1034 }
 0x258   : > { %1019 = vst.msk [vmem:[#allocation2 + $0xd7] sm:$0xff] %vm992_vm10, %v949_v52  ;;  %v947_v3 = vpop.permute.xlu0 %946 }
 0x259   : > { %1121 = vst.msk [vmem:[#allocation2 + $0x29] sm:$0x7f] %vm1116_vm13, %v1035_v53 }
 0x25a   : > { %1018 = vst.msk [vmem:[#allocation2 + $0xcf] sm:$0xfe] %vm990_vm11, %v947_v3 }
 0x25d   : > { %1166 = vrot.lane.b32.xlu1 %v5808_v15, %s5552_s10  ;;  %1168 = vrot.lane.b32.xlu2 %v5805_v14, %s5552_s10 }
 0x25e   : > { %1164 = vrot.lane.b32.xlu0 %v5787_v10, %s5552_s10 }
 0x25f   : > { %v955_v6 = vpop.permute.xlu1 %954  ;;  %v1041_v54 = vpop.permute.xlu2 %1040 }
 0x260   : > { %1022 = vst.msk [vmem:[#allocation2 + $0xef] sm:$0xfe] %vm990_vm11, %v955_v6  ;;  %v953_v55 = vpop.permute.xlu0 %952  ;;  %vm2341_vm11 = vcmask 392512  }
 0x261   : > { %1124 = vst.msk [vmem:[#allocation2 + $0x41] sm:$0xff] %vm1114_vm12, %v1041_v54 }
 0x262   : > { %1021 = vst.msk [vmem:[#allocation2 + $0xe7] sm:$0xff] %vm992_vm10, %v953_v55  ;;  %vm2210_vm10 = vcmask 326912  }
 0x265   : > { %1172 = vrot.lane.b32.xlu1 %v5823_v18, %s5552_s10  ;;  %1174 = vrot.lane.b32.xlu2 %v5820_v17, %s5552_s10 }
 0x266   : > { %1170 = vrot.lane.b32.xlu0 %v5802_v13, %s5552_s10 }
 0x267   : > { %v1027_v56 = vpop.permute.xlu1 %1026  ;;  %v1047_v57 = vpop.permute.xlu2 %1046 }
 0x268   : > { %1117 = vst.msk [vmem:[#allocation2 + $0x9] sm:$0x7f] %vm1116_vm13, %v1027_v56  ;;  %v1025_v58 = vpop.permute.xlu0 %1024 }
 0x269   : > { %1127 = vst.msk [vmem:[#allocation2 + $0x59] sm:$0x7f] %vm1116_vm13, %v1047_v57 }
 0x26a   : > { %1115 = vst.msk [vmem:[#allocation2 + $0x1] sm:$0xff] %vm1114_vm12, %v1025_v58 }
 0x26d   : > { %1178 = vrot.lane.b32.xlu1 %v5838_v21, %s5552_s10  ;;  %1180 = vrot.lane.b32.xlu2 %v5835_v20, %s5552_s10 }
 0x26e   : > { %1176 = vrot.lane.b32.xlu0 %v5817_v16, %s5552_s10 }
 0x26f   : > { %v1033_v59 = vpop.permute.xlu1 %1032  ;;  %v1053_v60 = vpop.permute.xlu2 %1052 }
 0x270   : > { %1120 = vst.msk [vmem:[#allocation2 + $0x21] sm:$0xff] %vm1114_vm12, %v1033_v59  ;;  %v1031_v61 = vpop.permute.xlu0 %1030 }
 0x271   : > { %1130 = vst.msk [vmem:[#allocation2 + $0x71] sm:$0xff] %vm1114_vm12, %v1053_v60 }
 0x272   : > { %1119 = vst.msk [vmem:[#allocation2 + $0x19] sm:$0x7f] %vm1116_vm13, %v1031_v61 }
 0x275   : > { %1184 = vrot.lane.b32.xlu1 %v5853_v24, %s5552_s10  ;;  %1186 = vrot.lane.b32.xlu2 %v5850_v23, %s5552_s10 }
 0x276   : > { %1182 = vrot.lane.b32.xlu0 %v5832_v19, %s5552_s10 }
 0x277   : > { %v1039_v62 = vpop.permute.xlu1 %1038  ;;  %v1059_v63 = vpop.permute.xlu2 %1058 }
 0x278   : > { %1123 = vst.msk [vmem:[#allocation2 + $0x39] sm:$0x7f] %vm1116_vm13, %v1039_v62  ;;  %v1037_v0 = vpop.permute.xlu0 %1036 }
 0x279   : > { %1133 = vst.msk [vmem:[#allocation2 + $0x89] sm:$0x7f] %vm1116_vm13, %v1059_v63 }
 0x27a   : > { %1122 = vst.msk [vmem:[#allocation2 + $0x31] sm:$0xff] %vm1114_vm12, %v1037_v0 }
 0x27d   : > { %1190 = vrot.lane.b32.xlu1 %v5876_v27, %s5552_s10  ;;  %1192 = vrot.lane.b32.xlu2 %v5871_v26, %s5552_s10 }
 0x27e   : > { %1188 = vrot.lane.b32.xlu0 %v5847_v22, %s5552_s10 }
 0x27f   : > { %v1045_v31 = vpop.permute.xlu1 %1044  ;;  %v1065_v32 = vpop.permute.xlu2 %1064 }
 0x280   : > { %1126 = vst.msk [vmem:[#allocation2 + $0x51] sm:$0xff] %vm1114_vm12, %v1045_v31  ;;  %v1043_v33 = vpop.permute.xlu0 %1042 }
 0x281   : > { %1136 = vst.msk [vmem:[#allocation2 + $0xa1] sm:$0xff] %vm1114_vm12, %v1065_v32 }
 0x282   : > { %1125 = vst.msk [vmem:[#allocation2 + $0x49] sm:$0x7f] %vm1116_vm13, %v1043_v33 }
 0x285   : > { %1196 = vrot.lane.b32.xlu1 %v5907_v30, %s5552_s10  ;;  %1198 = vrot.lane.b32.xlu2 %v5902_v29, %s5552_s10 }
 0x286   : > { %1194 = vrot.lane.b32.xlu0 %v5868_v25, %s5552_s10 }
 0x287   : > { %v1051_v34 = vpop.permute.xlu1 %1050  ;;  %v1071_v35 = vpop.permute.xlu2 %1070 }
 0x288   : > { %1129 = vst.msk [vmem:[#allocation2 + $0x69] sm:$0x7f] %vm1116_vm13, %v1051_v34  ;;  %v1049_v36 = vpop.permute.xlu0 %1048 }
 0x289   : > { %1139 = vst.msk [vmem:[#allocation2 + $0xb9] sm:$0x7f] %vm1116_vm13, %v1071_v35 }
 0x28a   : > { %1128 = vst.msk [vmem:[#allocation2 + $0x61] sm:$0xff] %vm1114_vm12, %v1049_v36 }
 0x28d   : > { %1202 = vrot.lane.b32.xlu1 %v6126_v49, %s5552_s10  ;;  %1204 = vrot.lane.b32.xlu2 %v6123_v48, %s5552_s10 }
 0x28e   : > { %1200 = vrot.lane.b32.xlu0 %v5899_v28, %s5552_s10 }
 0x28f   : > { %v1057_v37 = vpop.permute.xlu1 %1056  ;;  %v1077_v38 = vpop.permute.xlu2 %1076 }
 0x290   : > { %1132 = vst.msk [vmem:[#allocation2 + $0x81] sm:$0xff] %vm1114_vm12, %v1057_v37  ;;  %v1055_v39 = vpop.permute.xlu0 %1054 }
 0x291   : > { %1142 = vst.msk [vmem:[#allocation2 + $0xd1] sm:$0xff] %vm1114_vm12, %v1077_v38 }
 0x292   : > { %1131 = vst.msk [vmem:[#allocation2 + $0x79] sm:$0x7f] %vm1116_vm13, %v1055_v39 }
 0x295   : > { %1269 = vrot.lane.b32.xlu1 %v5760_v5, %s5553_s11  ;;  %1271 = vrot.lane.b32.xlu2 %v5742_v1, %s5553_s11 }
 0x296   : > { %1267 = vrot.lane.b32.xlu0 %v5745_v2, %s5553_s11 }
 0x297   : > { %v1063_v40 = vpop.permute.xlu1 %1062  ;;  %v1083_v41 = vpop.permute.xlu2 %1082 }
 0x298   : > { %1135 = vst.msk [vmem:[#allocation2 + $0x99] sm:$0x7f] %vm1116_vm13, %v1063_v40  ;;  %v1061_v42 = vpop.permute.xlu0 %1060 }
 0x299   : > { %1145 = vst.msk [vmem:[#allocation2 + $0xe9] sm:$0x7f] %vm1116_vm13, %v1083_v41 }
 0x29a   : > { %1134 = vst.msk [vmem:[#allocation2 + $0x91] sm:$0xff] %vm1114_vm12, %v1061_v42 }
 0x29d   : > { %1275 = vrot.lane.b32.xlu1 %v5778_v9, %s5553_s11  ;;  %1277 = vrot.lane.b32.xlu2 %v5775_v8, %s5553_s11 }
 0x29e   : > { %1273 = vrot.lane.b32.xlu0 %v5757_v4, %s5553_s11 }
 0x29f   : > { %v1069_v1 = vpop.permute.xlu1 %1068  ;;  %v1151_v2 = vpop.permute.xlu2 %1150 }
 0x2a0   : > { %1138 = vst.msk [vmem:[#allocation2 + $0xb1] sm:$0xff] %vm1114_vm12, %v1069_v1  ;;  %v1067_v5 = vpop.permute.xlu0 %1066 }
 0x2a1   : > { %1239 = vst.msk [vmem:[#allocation2 + $0x10] sm:$0xff] %vm1236_vm14, %v1151_v2 }
 0x2a2   : > { %1137 = vst.msk [vmem:[#allocation2 + $0xa9] sm:$0x7f] %vm1116_vm13, %v1067_v5 }
 0x2a5   : > { %1281 = vrot.lane.b32.xlu1 %v5793_v12, %s5553_s11  ;;  %1283 = vrot.lane.b32.xlu2 %v5790_v11, %s5553_s11 }
 0x2a6   : > { %1279 = vrot.lane.b32.xlu0 %v5772_v7, %s5553_s11 }
 0x2a7   : > { %v1075_v4 = vpop.permute.xlu1 %1074  ;;  %v1157_v8 = vpop.permute.xlu2 %1156 }
 0x2a8   : > { %1141 = vst.msk [vmem:[#allocation2 + $0xc9] sm:$0x7f] %vm1116_vm13, %v1075_v4  ;;  %v1073_v9 = vpop.permute.xlu0 %1072 }
 0x2a9   : > { %1242 = vst.msk [vmem:[#allocation2 + $0x28] sm:$0xff] %vm1236_vm14, %v1157_v8 }
 0x2aa   : > { %1140 = vst.msk [vmem:[#allocation2 + $0xc1] sm:$0xff] %vm1114_vm12, %v1073_v9 }
 0x2ad   : > { %1287 = vrot.lane.b32.xlu1 %v5808_v15, %s5553_s11  ;;  %1289 = vrot.lane.b32.xlu2 %v5805_v14, %s5553_s11 }
 0x2ae   : > { %1285 = vrot.lane.b32.xlu0 %v5787_v10, %s5553_s11 }
 0x2af   : > { %v1081_v11 = vpop.permute.xlu1 %1080  ;;  %v1163_v7 = vpop.permute.xlu2 %1162 }
 0x2b0   : > { %1144 = vst.msk [vmem:[#allocation2 + $0xe1] sm:$0xff] %vm1114_vm12, %v1081_v11  ;;  %v1079_v12 = vpop.permute.xlu0 %1078  ;;  %vm2339_vm12 = vcmask 392513  }
 0x2b1   : > { %1245 = vst.msk [vmem:[#allocation2 + $0x40] sm:$0xff] %vm1236_vm14, %v1163_v7 }
 0x2b2   : > { %1143 = vst.msk [vmem:[#allocation2 + $0xd9] sm:$0x7f] %vm1116_vm13, %v1079_v12  ;;  %vm2463_vm13 = vcmask 458112  }
 0x2b5   : > { %1293 = vrot.lane.b32.xlu1 %v5823_v18, %s5553_s11  ;;  %1295 = vrot.lane.b32.xlu2 %v5820_v17, %s5553_s11 }
 0x2b6   : > { %1291 = vrot.lane.b32.xlu0 %v5802_v13, %s5553_s11 }
 0x2b7   : > { %v1149_v14 = vpop.permute.xlu1 %1148  ;;  %v1169_v10 = vpop.permute.xlu2 %1168 }
 0x2b8   : > { %1238 = vst.msk [vmem:[#allocation2 + $0x8] sm:$0xff] %vm1236_vm14, %v1149_v14  ;;  %v1147_v15 = vpop.permute.xlu0 %1146 }
 0x2b9   : > { %1248 = vst.msk [vmem:[#allocation2 + $0x58] sm:$0xff] %vm1236_vm14, %v1169_v10 }
 0x2ba   : > { %1237 = vst.msk [vmem:[#allocation2] sm:$0xff] %vm1236_vm14, %v1147_v15 }
 0x2bd   : > { %1299 = vrot.lane.b32.xlu1 %v5838_v21, %s5553_s11  ;;  %1301 = vrot.lane.b32.xlu2 %v5835_v20, %s5553_s11 }
 0x2be   : > { %1297 = vrot.lane.b32.xlu0 %v5817_v16, %s5553_s11 }
 0x2bf   : > { %v1155_v17 = vpop.permute.xlu1 %1154  ;;  %v1175_v13 = vpop.permute.xlu2 %1174 }
 0x2c0   : > { %1241 = vst.msk [vmem:[#allocation2 + $0x20] sm:$0xff] %vm1236_vm14, %v1155_v17  ;;  %v1153_v18 = vpop.permute.xlu0 %1152 }
 0x2c1   : > { %1251 = vst.msk [vmem:[#allocation2 + $0x70] sm:$0xff] %vm1236_vm14, %v1175_v13 }
 0x2c2   : > { %1240 = vst.msk [vmem:[#allocation2 + $0x18] sm:$0xff] %vm1236_vm14, %v1153_v18 }
 0x2c5   : > { %1305 = vrot.lane.b32.xlu1 %v5853_v24, %s5553_s11  ;;  %1307 = vrot.lane.b32.xlu2 %v5850_v23, %s5553_s11 }
 0x2c6   : > { %1303 = vrot.lane.b32.xlu0 %v5832_v19, %s5553_s11 }
 0x2c7   : > { %v1161_v20 = vpop.permute.xlu1 %1160  ;;  %v1181_v16 = vpop.permute.xlu2 %1180 }
 0x2c8   : > { %1244 = vst.msk [vmem:[#allocation2 + $0x38] sm:$0xff] %vm1236_vm14, %v1161_v20  ;;  %v1159_v21 = vpop.permute.xlu0 %1158 }
 0x2c9   : > { %1254 = vst.msk [vmem:[#allocation2 + $0x88] sm:$0xff] %vm1236_vm14, %v1181_v16 }
 0x2ca   : > { %1243 = vst.msk [vmem:[#allocation2 + $0x30] sm:$0xff] %vm1236_vm14, %v1159_v21 }
 0x2cd   : > { %1311 = vrot.lane.b32.xlu1 %v5876_v27, %s5553_s11  ;;  %1313 = vrot.lane.b32.xlu2 %v5871_v26, %s5553_s11 }
 0x2ce   : > { %1309 = vrot.lane.b32.xlu0 %v5847_v22, %s5553_s11 }
 0x2cf   : > { %v1167_v23 = vpop.permute.xlu1 %1166  ;;  %v1187_v19 = vpop.permute.xlu2 %1186 }
 0x2d0   : > { %1247 = vst.msk [vmem:[#allocation2 + $0x50] sm:$0xff] %vm1236_vm14, %v1167_v23  ;;  %v1165_v24 = vpop.permute.xlu0 %1164 }
 0x2d1   : > { %1257 = vst.msk [vmem:[#allocation2 + $0xa0] sm:$0xff] %vm1236_vm14, %v1187_v19 }
 0x2d2   : > { %1246 = vst.msk [vmem:[#allocation2 + $0x48] sm:$0xff] %vm1236_vm14, %v1165_v24 }
 0x2d5   : > { %1317 = vrot.lane.b32.xlu1 %v5907_v30, %s5553_s11  ;;  %1319 = vrot.lane.b32.xlu2 %v5902_v29, %s5553_s11 }
 0x2d6   : > { %1315 = vrot.lane.b32.xlu0 %v5868_v25, %s5553_s11 }
 0x2d7   : > { %v1173_v26 = vpop.permute.xlu1 %1172  ;;  %v1193_v22 = vpop.permute.xlu2 %1192 }
 0x2d8   : > { %1250 = vst.msk [vmem:[#allocation2 + $0x68] sm:$0xff] %vm1236_vm14, %v1173_v26  ;;  %v1171_v27 = vpop.permute.xlu0 %1170 }
 0x2d9   : > { %1260 = vst.msk [vmem:[#allocation2 + $0xb8] sm:$0xff] %vm1236_vm14, %v1193_v22 }
 0x2da   : > { %1249 = vst.msk [vmem:[#allocation2 + $0x60] sm:$0xff] %vm1236_vm14, %v1171_v27 }
 0x2dd   : > { %1325 = vrot.lane.b32.xlu2 %v6123_v48, %s5553_s11  ;;  %1323 = vrot.lane.b32.xlu1 %v6126_v49, %s5553_s11 }
 0x2de   : > { %1321 = vrot.lane.b32.xlu0 %v5899_v28, %s5553_s11 }
 0x2df   : > { %v1179_v29 = vpop.permute.xlu1 %1178  ;;  %v1199_v25 = vpop.permute.xlu2 %1198 }
 0x2e0   : > { %1253 = vst.msk [vmem:[#allocation2 + $0x80] sm:$0xff] %vm1236_vm14, %v1179_v29  ;;  %v1177_v30 = vpop.permute.xlu0 %1176 }
 0x2e1   : > { %1263 = vst.msk [vmem:[#allocation2 + $0xd0] sm:$0xff] %vm1236_vm14, %v1199_v25 }
 0x2e2   : > { %1252 = vst.msk [vmem:[#allocation2 + $0x78] sm:$0xff] %vm1236_vm14, %v1177_v30 }
 0x2e7   : > { %v1185_v48 = vpop.permute.xlu1 %1184  ;;  %v1205_v49 = vpop.permute.xlu2 %1204 }
 0x2e8   : > { %1256 = vst.msk [vmem:[#allocation2 + $0x98] sm:$0xff] %vm1236_vm14, %v1185_v48  ;;  %v1183_v28 = vpop.permute.xlu0 %1182 }
 0x2e9   : > { %1266 = vst.msk [vmem:[#allocation2 + $0xe8] sm:$0xff] %vm1236_vm14, %v1205_v49 }
 0x2ea   : > { %1255 = vst.msk [vmem:[#allocation2 + $0x90] sm:$0xff] %vm1236_vm14, %v1183_v28 }
 0x2ef   : > { %v1191_v50 = vpop.permute.xlu1 %1190  ;;  %v1272_v51 = vpop.permute.xlu2 %1271 }
 0x2f0   : > { %1259 = vst.msk [vmem:[#allocation2 + $0xb0] sm:$0xff] %vm1236_vm14, %v1191_v50  ;;  %v1189_v52 = vpop.permute.xlu0 %1188 }
 0x2f1   : > { %1361 = vst.msk [vmem:[#allocation2 + $0xf] sm:$0xfe] %vm1357_vm0, %v1272_v51 }
 0x2f2   : > { %1258 = vst.msk [vmem:[#allocation2 + $0xa8] sm:$0xff] %vm1236_vm14, %v1189_v52 }
 0x2f7   : > { %v1197_v53 = vpop.permute.xlu1 %1196  ;;  %v1278_v3 = vpop.permute.xlu2 %1277 }
 0x2f8   : > { %1262 = vst.msk [vmem:[#allocation2 + $0xc8] sm:$0xff] %vm1236_vm14, %v1197_v53  ;;  %v1195_v6 = vpop.permute.xlu0 %1194 }
 0x2f9   : > { %1364 = vst.msk [vmem:[#allocation2 + $0x27] sm:$0xff] %vm1359_vm1, %v1278_v3 }
 0x2fa   : > { %1261 = vst.msk [vmem:[#allocation2 + $0xc0] sm:$0xff] %vm1236_vm14, %v1195_v6 }
 0x2ff   : > { %v1203_v54 = vpop.permute.xlu1 %1202  ;;  %v1284_v55 = vpop.permute.xlu2 %1283 }
 0x300   : > { %1265 = vst.msk [vmem:[#allocation2 + $0xe0] sm:$0xff] %vm1236_vm14, %v1203_v54  ;;  %v1201_v56 = vpop.permute.xlu0 %1200  ;;  %v1394_v7 = vld [vmem:[#allocation2 + $0x28] sm:$0xff] }
 0x301   : > { %1367 = vst.msk [vmem:[#allocation2 + $0x3f] sm:$0xfe] %vm1357_vm0, %v1284_v55 }
 0x302   : > { %1264 = vst.msk [vmem:[#allocation2 + $0xd8] sm:$0xff] %vm1236_vm14, %v1201_v56  ;;  %vm2465_vm14 = vcmask 457088  }
 0x307   : > { %v1270_v57 = vpop.permute.xlu1 %1269  ;;  %v1290_v58 = vpop.permute.xlu2 %1289 }
 0x308   : > { %1360 = vst.msk [vmem:[#allocation2 + $0x7] sm:$0xff] %vm1359_vm1, %v1270_v57  ;;  %v1268_v59 = vpop.permute.xlu0 %1267 }
 0x309   : > { %1370 = vst.msk [vmem:[#allocation2 + $0x57] sm:$0xff] %vm1359_vm1, %v1290_v58 }
 0x30a   : > { %1358 = vst.msk [vmem:[#allocation2 - $0x1] sm:$0xfe] %vm1357_vm0, %v1268_v59  ;;  %v1419_v59 = vld [vmem:[#allocation2 + $0xf0] sm:$0xff] }
 0x30f   : > { %v1276_v60 = vpop.permute.xlu1 %1275  ;;  %v1296_v61 = vpop.permute.xlu2 %1295  ;;  %v1390_v33 = vld [vmem:[#allocation2 + $0x8] sm:$0xff] }
 0x310   : > { %1363 = vst.msk [vmem:[#allocation2 + $0x1f] sm:$0xfe] %vm1357_vm0, %v1276_v60  ;;  %v1274_v62 = vpop.permute.xlu0 %1273  ;;  %v1400_v29 = vld [vmem:[#allocation2 + $0x58] sm:$0xff] }
 0x311   : > { %1373 = vst.msk [vmem:[#allocation2 + $0x6f] sm:$0xfe] %vm1357_vm0, %v1296_v61  ;;  %v1389_v63 = vld [vmem:[#allocation2] sm:$0xff] }
 0x312   : > { %1362 = vst.msk [vmem:[#allocation2 + $0x17] sm:$0xff] %vm1359_vm1, %v1274_v62  ;;  %5424 = vmatmul.msk.f32.vlgmr.msra.gmra.mxu0 %vm1430_vm2, %v1389_v63 }
 0x317   : > { %v1282_v0 = vpop.permute.xlu1 %1281  ;;  %v1302_v31 = vpop.permute.xlu2 %1301  ;;  %v1393_v5 = vld [vmem:[#allocation2 + $0x20] sm:$0xff] }
 0x318   : > { %1366 = vst.msk [vmem:[#allocation2 + $0x37] sm:$0xff] %vm1359_vm1, %v1282_v0  ;;  %v1280_v32 = vpop.permute.xlu0 %1279 }
 0x319   : > { %1376 = vst.msk [vmem:[#allocation2 + $0x87] sm:$0xff] %vm1359_vm1, %v1302_v31  ;;  %v1391_v36 = vld [vmem:[#allocation2 + $0x10] sm:$0xff]  ;;  %v1392_v42 = vld [vmem:[#allocation2 + $0x18] sm:$0xff] }
 0x31a   : > { %1365 = vst.msk [vmem:[#allocation2 + $0x2f] sm:$0xfe] %vm1357_vm0, %v1280_v32  ;;  %5425 = vmatmul.msk.f32.gmra.mxu0 %vm1430_vm2, %v1390_v33  ;;  %v1420_v32 = vld [vmem:[#allocation2 + $0xf8] sm:$0xff] }
 0x31f   : > { %v1288_v34 = vpop.permute.xlu1 %1287  ;;  %v1308_v35 = vpop.permute.xlu2 %1307  ;;  %v1396_v18 = vld [vmem:[#allocation2 + $0x38] sm:$0xff] }
 0x320   : > { %1369 = vst.msk [vmem:[#allocation2 + $0x4f] sm:$0xfe] %vm1357_vm0, %v1288_v34  ;;  %v1286_v37 = vpop.permute.xlu0 %1285  ;;  %v1406_v38 = vld [vmem:[#allocation2 + $0x88] sm:$0xff] }
 0x321   : > { %1379 = vst.msk [vmem:[#allocation2 + $0x9f] sm:$0xfe] %vm1357_vm0, %v1308_v35  ;;  %5441 = vmatmul.msk.f32.vlgmr.msra.gmra.mxu3 %vm1430_vm2, %v1406_v38  ;;  %v1395_v10 = vld [vmem:[#allocation2 + $0x30] sm:$0xff] }
 0x322   : > { %1368 = vst.msk [vmem:[#allocation2 + $0x47] sm:$0xff] %vm1359_vm1, %v1286_v37  ;;  %5426 = vmatmul.msk.f32.gmra.mxu0 %vm1430_vm2, %v1391_v36 }
 0x327   : > { %v1294_v39 = vpop.permute.xlu1 %1293  ;;  %v1314_v40 = vpop.permute.xlu2 %1313  ;;  %v1399_v22 = vld [vmem:[#allocation2 + $0x50] sm:$0xff] }
 0x328   : > { %1372 = vst.msk [vmem:[#allocation2 + $0x67] sm:$0xff] %vm1359_vm1, %v1294_v39  ;;  %v1292_v41 = vpop.permute.xlu0 %1291 }
 0x329   : > { %1382 = vst.msk [vmem:[#allocation2 + $0xb7] sm:$0xff] %vm1359_vm1, %v1314_v40  ;;  %v1397_v23 = vld [vmem:[#allocation2 + $0x40] sm:$0xff]  ;;  %v1398_v19 = vld [vmem:[#allocation2 + $0x48] sm:$0xff] }
 0x32a   : > { %1371 = vst.msk [vmem:[#allocation2 + $0x5f] sm:$0xfe] %vm1357_vm0, %v1292_v41  ;;  %5427 = vmatmul.msk.f32.gmra.mxu0 %vm1430_vm2, %v1392_v42 }
 0x32f   : > { %v1300_v1 = vpop.permute.xlu1 %1299  ;;  %v1320_v2 = vpop.permute.xlu2 %1319  ;;  %v1402_v48 = vld [vmem:[#allocation2 + $0x68] sm:$0xff] }
 0x330   : > { %1375 = vst.msk [vmem:[#allocation2 + $0x7f] sm:$0xfe] %vm1357_vm0, %v1300_v1  ;;  %v1298_v4 = vpop.permute.xlu0 %1297  ;;  %v1412_v25 = vld [vmem:[#allocation2 + $0xb8] sm:$0xff] }
 0x331   : > { %1385 = vst.msk [vmem:[#allocation2 + $0xcf] sm:$0xfe] %vm1357_vm0, %v1320_v2  ;;  %v1401_v43 = vld [vmem:[#allocation2 + $0x60] sm:$0xff] }
 0x332   : > { %1374 = vst.msk [vmem:[#allocation2 + $0x77] sm:$0xff] %vm1359_vm1, %v1298_v4  ;;  %5428 = vmatmul.msk.f32.gmra.mxu0 %vm1430_vm2, %v1393_v5 }
 0x337   : > { %v1306_v8 = vpop.permute.xlu1 %1305  ;;  %v1326_v9 = vpop.permute.xlu2 %1325  ;;  %v1405_v53 = vld [vmem:[#allocation2 + $0x80] sm:$0xff] }
 0x338   : > { %1378 = vst.msk [vmem:[#allocation2 + $0x97] sm:$0xff] %vm1359_vm1, %v1306_v8  ;;  %v1304_v11 = vpop.permute.xlu0 %1303 }
 0x339   : > { %1388 = vst.msk [vmem:[#allocation2 + $0xe7] sm:$0xff] %vm1359_vm1, %v1326_v9  ;;  %v1403_v44 = vld [vmem:[#allocation2 + $0x70] sm:$0xff]  ;;  %v1404_v45 = vld [vmem:[#allocation2 + $0x78] sm:$0xff] }
 0x33a   : > { %1377 = vst.msk [vmem:[#allocation2 + $0x8f] sm:$0xfe] %vm1357_vm0, %v1304_v11  ;;  %5429 = vmatmul.msk.f32.gmra.mxu0 %vm1430_vm2, %v1394_v7 }
 0x33f   : > { %v1312_v12 = vpop.permute.xlu1 %1311  ;;  %v1408_v20 = vld [vmem:[#allocation2 + $0x98] sm:$0xff] }
 0x340   : > { %1381 = vst.msk [vmem:[#allocation2 + $0xaf] sm:$0xfe] %vm1357_vm0, %v1312_v12  ;;  %v1310_v14 = vpop.permute.xlu0 %1309  ;;  %v1418_v55 = vld [vmem:[#allocation2 + $0xe8] sm:$0xff] }
 0x341   : > { %1380 = vst.msk [vmem:[#allocation2 + $0xa7] sm:$0xff] %vm1359_vm1, %v1310_v14  ;;  %v1407_v15 = vld [vmem:[#allocation2 + $0x90] sm:$0xff] }
 0x342   : > { %5430 = vmatmul.msk.f32.gmra.mxu0 %vm1430_vm2, %v1395_v10  ;;  %5442 = vmatmul.msk.f32.gmra.mxu3 %vm1430_vm2, %v1407_v15 }
 0x347   : > { %v1318_v17 = vpop.permute.xlu1 %1317  ;;  %v1411_v26 = vld [vmem:[#allocation2 + $0xb0] sm:$0xff] }
 0x348   : > { %1384 = vst.msk [vmem:[#allocation2 + $0xc7] sm:$0xff] %vm1359_vm1, %v1318_v17  ;;  %v1316_v13 = vpop.permute.xlu0 %1315  ;;  %v1409_v16 = vld [vmem:[#allocation2 + $0xa0] sm:$0xff]  ;;  %v1410_v24 = vld [vmem:[#allocation2 + $0xa8] sm:$0xff] }
 0x349   : > { %1383 = vst.msk [vmem:[#allocation2 + $0xbf] sm:$0xfe] %vm1357_vm0, %v1316_v13 }
 0x34a   : > { %5431 = vmatmul.msk.f32.gmra.mxu0 %vm1430_vm2, %v1396_v18  ;;  %5443 = vmatmul.msk.f32.gmra.mxu3 %vm1430_vm2, %v1408_v20 }
 0x34f   : > { %v1324_v27 = vpop.permute.xlu1 %1323  ;;  %v1414_v49 = vld [vmem:[#allocation2 + $0xc8] sm:$0xff] }
 0x350   : > { %v1322_v21 = vpop.permute.xlu0 %1321  ;;  %1387 = vst.msk [vmem:[#allocation2 + $0xdf] sm:$0xfe] %vm1357_vm0, %v1324_v27  ;;  %v1413_v30 = vld [vmem:[#allocation2 + $0xc0] sm:$0xff]  ;;  %vm2706_vm0 = vcmask 589313  }
 0x351   : > { %1386 = vst.msk [vmem:[#allocation2 + $0xd7] sm:$0xff] %vm1359_vm1, %v1322_v21  ;;  %vm2708_vm1 = vcmask 589312  }
 0x352   : > { %5432 = vmatmul.msk.f32.gmra.mxu0 %vm1430_vm2, %v1397_v23  ;;  %5444 = vmatmul.msk.f32.gmra.mxu3 %vm1430_vm2, %v1409_v16 }
 0x357   : > { %v1417_v51 = vld [vmem:[#allocation2 + $0xe0] sm:$0xff] }
 0x358   : > { %v1415_v28 = vld [vmem:[#allocation2 + $0xd0] sm:$0xff]  ;;  %v1416_v46 = vld [vmem:[#allocation2 + $0xd8] sm:$0xff] }
 0x35a   : > { %5433 = vmatmul.msk.f32.gmra.mxu0 %vm1430_vm2, %v1398_v19  ;;  %5445 = vmatmul.msk.f32.gmra.mxu3 %vm1430_vm2, %v1410_v24 }
 0x362   : > { %5434 = vmatmul.msk.f32.gmra.mxu0 %vm1430_vm2, %v1399_v22  ;;  %5446 = vmatmul.msk.f32.gmra.mxu3 %vm1430_vm2, %v1411_v26 }
 0x36a   : > { %5435 = vmatmul.msk.f32.gmra.mxu0 %vm1430_vm2, %v1400_v29  ;;  %5447 = vmatmul.msk.f32.gmra.mxu3 %vm1430_vm2, %v1412_v25 }
 0x372   : > { %5436 = vmatmul.msk.f32.gmra.mxu0 %vm1430_vm2, %v1401_v43  ;;  %5448 = vmatmul.msk.f32.gmra.mxu3 %vm1430_vm2, %v1413_v30 }
 0x37a   : > { %5437 = vmatmul.msk.f32.gmra.mxu0 %vm1430_vm2, %v1402_v48  ;;  %5449 = vmatmul.msk.f32.gmra.mxu3 %vm1430_vm2, %v1414_v49 }
 0x382   : > { %5438 = vmatmul.msk.f32.gmra.mxu0 %vm1430_vm2, %v1403_v44  ;;  %5450 = vmatmul.msk.f32.gmra.mxu3 %vm1430_vm2, %v1415_v28 }
 0x38a   : > { %5439 = vmatmul.msk.f32.gmra.mxu0 %vm1430_vm2, %v1404_v45  ;;  %5451 = vmatmul.msk.f32.gmra.mxu3 %vm1430_vm2, %v1416_v46 }
 0x38f   : > { %v1548_v50 = vpop.f32.mrf.mxu0 }
 0x390   : > { %v1549_v52 = vadd.f32 %v6680_v47, %v1548_v50 }
 0x392   : > { %v6683_v3 = vmax.f32 %v1549_v52, 0.0  ;;  %5440 = vmatmul.msk.f32.gmra.mxu0 %vm1430_vm2, %v1405_v53  ;;  %5452 = vmatmul.msk.f32.gmra.mxu3 %vm1430_vm2, %v1417_v51 }
 0x394   : > { %1739 = vrot.lane.b32.xlu0 %v6683_v3, %s5547_s30  ;;  %1678 = vst.msk [vmem:[#allocation3 + $0x11] sm:$0xff] %vm1677_vm3, %v6683_v3 }
 0x397   : > { %v1551_v6 = vpop.f32.mrf.mxu0 }
 0x398   : > { %v1552_v54 = vadd.f32 %v6680_v47, %v1551_v6 }
 0x39a   : > { %v6692_v56 = vmax.f32 %v1552_v54, 0.0  ;;  %5453 = vmatmul.msk.f32.gmra.mxu3 %vm1430_vm2, %v1418_v55 }
 0x39c   : > { %1741 = vrot.lane.b32.xlu1 %v6692_v56, %s5547_s30  ;;  %1680 = vst.msk [vmem:[#allocation3 + $0x19] sm:$0x7f] %vm1679_vm4, %v6692_v56 }
 0x39f   : > { %v1554_v57 = vpop.f32.mrf.mxu0 }
 0x3a0   : > { %v1555_v58 = vadd.f32 %v6680_v47, %v1554_v57 }
 0x3a2   : > { %v6700_v60 = vmax.f32 %v1555_v58, 0.0  ;;  %5454 = vmatmul.msk.f32.gmra.mxu3 %vm1430_vm2, %v1419_v59 }
 0x3a4   : > { %1743 = vrot.lane.b32.xlu2 %v6700_v60, %s5547_s30  ;;  %v1599_v61 = vpop.f32.mrf.mxu3  ;;  %1681 = vst.msk [vmem:[#allocation3 + $0x21] sm:$0xff] %vm1677_vm3, %v6700_v60 }
 0x3a5   : > { %v1600_v62 = vadd.f32 %v6680_v47, %v1599_v61 }
 0x3a7   : > { %v6708_v63 = vmax.f32 %v1600_v62, 0.0  ;;  %v1557_v0 = vpop.f32.mrf.mxu0 }
 0x3a8   : > { %v1558_v31 = vadd.f32 %v6680_v47, %v1557_v0 }
 0x3a9   : > { %1696 = vst.msk [vmem:[#allocation3 + $0x99] sm:$0x7f] %vm1679_vm4, %v6708_v63 }
 0x3aa   : > { %v6713_v33 = vmax.f32 %v1558_v31, 0.0  ;;  %5455 = vmatmul.msk.f32.gmra.mxu3 %vm1430_vm2, %v1420_v32  ;;  %vm2783_vm2 = vcmask 588800  }
 0x3ac   : > { %1745 = vrot.lane.b32.xlu0 %v6713_v33, %s5547_s30  ;;  %1682 = vst.msk [vmem:[#allocation3 + $0x29] sm:$0x7f] %vm1679_vm4, %v6713_v33 }
 0x3af   : > { %v1560_v34 = vpop.f32.mrf.mxu0 }
 0x3b0   : > { %v1561_v35 = vadd.f32 %v6680_v47, %v1560_v34 }
 0x3b2   : > { %v6721_v36 = vmax.f32 %v1561_v35, 0.0 }
 0x3b4   : > { %1747 = vrot.lane.b32.xlu1 %v6721_v36, %s5547_s30  ;;  %1683 = vst.msk [vmem:[#allocation3 + $0x31] sm:$0xff] %vm1677_vm3, %v6721_v36 }
 0x3b7   : > { %v1563_v37 = vpop.f32.mrf.mxu0 }
 0x3b8   : > { %v1564_v38 = vadd.f32 %v6680_v47, %v1563_v37 }
 0x3ba   : > { %v6728_v39 = vmax.f32 %v1564_v38, 0.0 }
 0x3bc   : > { %1749 = vrot.lane.b32.xlu2 %v6728_v39, %s5547_s30  ;;  %1684 = vst.msk [vmem:[#allocation3 + $0x39] sm:$0x7f] %vm1679_vm4, %v6728_v39 }
 0x3bf   : > { %v1566_v40 = vpop.f32.mrf.mxu0 }
 0x3c0   : > { %v1567_v41 = vadd.f32 %v6680_v47, %v1566_v40 }
 0x3c2   : > { %v6735_v42 = vmax.f32 %v1567_v41, 0.0 }
 0x3c4   : > { %1751 = vrot.lane.b32.xlu0 %v6735_v42, %s5547_s30  ;;  %1685 = vst.msk [vmem:[#allocation3 + $0x41] sm:$0xff] %vm1677_vm3, %v6735_v42 }
 0x3c5   : > { %v1602_v1 = vpop.f32.mrf.mxu3 }
 0x3c6   : > { %v1603_v2 = vadd.f32 %v6680_v47, %v1602_v1 }
 0x3c7   : > { %v1569_v5 = vpop.f32.mrf.mxu0 }
 0x3c8   : > { %v6742_v4 = vmax.f32 %v1603_v2, 0.0  ;;  %v1570_v8 = vadd.f32 %v6680_v47, %v1569_v5 }
 0x3ca   : > { %v6745_v9 = vmax.f32 %v1570_v8, 0.0  ;;  %1697 = vst.msk [vmem:[#allocation3 + $0xa1] sm:$0xff] %vm1677_vm3, %v6742_v4 }
 0x3cc   : > { %1753 = vrot.lane.b32.xlu1 %v6745_v9, %s5547_s30  ;;  %1686 = vst.msk [vmem:[#allocation3 + $0x49] sm:$0x7f] %vm1679_vm4, %v6745_v9 }
 0x3cd   : > { %v1605_v11 = vpop.f32.mrf.mxu3 }
 0x3ce   : > { %v1606_v7 = vadd.f32 %v6680_v47, %v1605_v11 }
 0x3cf   : > { %v1572_v12 = vpop.f32.mrf.mxu0 }
 0x3d0   : > { %v6754_v14 = vmax.f32 %v1606_v7, 0.0  ;;  %v1573_v10 = vadd.f32 %v6680_v47, %v1572_v12 }
 0x3d2   : > { %v6757_v15 = vmax.f32 %v1573_v10, 0.0  ;;  %1698 = vst.msk [vmem:[#allocation3 + $0xa9] sm:$0x7f] %vm1679_vm4, %v6754_v14 }
 0x3d4   : > { %1755 = vrot.lane.b32.xlu2 %v6757_v15, %s5547_s30  ;;  %1687 = vst.msk [vmem:[#allocation3 + $0x51] sm:$0xff] %vm1677_vm3, %v6757_v15 }
 0x3d5   : > { %v1608_v17 = vpop.f32.mrf.mxu3 }
 0x3d6   : > { %v1609_v13 = vadd.f32 %v6680_v47, %v1608_v17 }
 0x3d7   : > { %v1575_v18 = vpop.f32.mrf.mxu0 }
 0x3d8   : > { %v6766_v20 = vmax.f32 %v1609_v13, 0.0  ;;  %v1576_v16 = vadd.f32 %v6680_v47, %v1575_v18 }
 0x3da   : > { %v6769_v21 = vmax.f32 %v1576_v16, 0.0  ;;  %1699 = vst.msk [vmem:[#allocation3 + $0xb1] sm:$0xff] %vm1677_vm3, %v6766_v20 }
 0x3dc   : > { %1757 = vrot.lane.b32.xlu0 %v6769_v21, %s5547_s30  ;;  %1688 = vst.msk [vmem:[#allocation3 + $0x59] sm:$0x7f] %vm1679_vm4, %v6769_v21 }
 0x3dd   : > { %v1611_v23 = vpop.f32.mrf.mxu3 }
 0x3de   : > { %v1612_v19 = vadd.f32 %v6680_v47, %v1611_v23 }
 0x3df   : > { %v1578_v24 = vpop.f32.mrf.mxu0 }
 0x3e0   : > { %v6778_v26 = vmax.f32 %v1612_v19, 0.0  ;;  %v1579_v22 = vadd.f32 %v6680_v47, %v1578_v24 }
 0x3e2   : > { %v6781_v27 = vmax.f32 %v1579_v22, 0.0  ;;  %1700 = vst.msk [vmem:[#allocation3 + $0xb9] sm:$0x7f] %vm1679_vm4, %v6778_v26 }
 0x3e4   : > { %1759 = vrot.lane.b32.xlu1 %v6781_v27, %s5547_s30  ;;  %1689 = vst.msk [vmem:[#allocation3 + $0x61] sm:$0xff] %vm1677_vm3, %v6781_v27 }
 0x3e5   : > { %v1614_v29 = vpop.f32.mrf.mxu3 }
 0x3e6   : > { %v1615_v25 = vadd.f32 %v6680_v47, %v1614_v29 }
 0x3e7   : > { %v1581_v30 = vpop.f32.mrf.mxu0 }
 0x3e8   : > { %v6790_v43 = vmax.f32 %v1615_v25, 0.0  ;;  %v1582_v48 = vadd.f32 %v6680_v47, %v1581_v30 }
 0x3ea   : > { %v6793_v49 = vmax.f32 %v1582_v48, 0.0  ;;  %1701 = vst.msk [vmem:[#allocation3 + $0xc1] sm:$0xff] %vm1677_vm3, %v6790_v43 }
 0x3ec   : > { %1761 = vrot.lane.b32.xlu2 %v6793_v49, %s5547_s30  ;;  %1690 = vst.msk [vmem:[#allocation3 + $0x69] sm:$0x7f] %vm1679_vm4, %v6793_v49 }
 0x3ed   : > { %v1617_v28 = vpop.f32.mrf.mxu3 }
 0x3ee   : > { %v1618_v44 = vadd.f32 %v6680_v47, %v1617_v28 }
 0x3ef   : > { %v1584_v45 = vpop.f32.mrf.mxu0 }
 0x3f0   : > { %v6802_v46 = vmax.f32 %v1618_v44, 0.0  ;;  %v1585_v50 = vadd.f32 %v6680_v47, %v1584_v45 }
 0x3f2   : > { %v6805_v51 = vmax.f32 %v1585_v50, 0.0  ;;  %1702 = vst.msk [vmem:[#allocation3 + $0xc9] sm:$0x7f] %vm1679_vm4, %v6802_v46 }
 0x3f4   : > { %1763 = vrot.lane.b32.xlu0 %v6805_v51, %s5547_s30  ;;  %1691 = vst.msk [vmem:[#allocation3 + $0x71] sm:$0xff] %vm1677_vm3, %v6805_v51 }
 0x3f5   : > { %v1620_v52 = vpop.f32.mrf.mxu3 }
 0x3f6   : > { %v1621_v53 = vadd.f32 %v6680_v47, %v1620_v52 }
 0x3f7   : > { %v1587_v6 = vpop.f32.mrf.mxu0 }
 0x3f8   : > { %v6814_v54 = vmax.f32 %v1621_v53, 0.0  ;;  %v1588_v55 = vadd.f32 %v6680_v47, %v1587_v6 }
 0x3fa   : > { %v6817_v57 = vmax.f32 %v1588_v55, 0.0  ;;  %1703 = vst.msk [vmem:[#allocation3 + $0xd1] sm:$0xff] %vm1677_vm3, %v6814_v54 }
 0x3fc   : > { %1765 = vrot.lane.b32.xlu1 %v6817_v57, %s5547_s30  ;;  %1692 = vst.msk [vmem:[#allocation3 + $0x79] sm:$0x7f] %vm1679_vm4, %v6817_v57 }
 0x3fd   : > { %v1623_v58 = vpop.f32.mrf.mxu3 }
 0x3fe   : > { %v1624_v59 = vadd.f32 %v6680_v47, %v1623_v58  ;;  %v1744_v61 = vpop.permute.xlu2 %1743 }
 0x3ff   : > { %1832 = vst.msk [vmem:[#allocation3 + $0x20] sm:$0xff] %vm1829_vm5, %v1744_v61  ;;  %v1590_v62 = vpop.f32.mrf.mxu0 }
 0x400   : > { %v6827_v0 = vmax.f32 %v1624_v59, 0.0  ;;  %v1591_v31 = vadd.f32 %v6680_v47, %v1590_v62 }
 0x402   : > { %v6830_v32 = vmax.f32 %v1591_v31, 0.0  ;;  %1704 = vst.msk [vmem:[#allocation3 + $0xd9] sm:$0x7f] %vm1679_vm4, %v6827_v0 }
 0x404   : > { %1693 = vst.msk [vmem:[#allocation3 + $0x81] sm:$0xff] %vm1677_vm3, %v6830_v32  ;;  %1767 = vrot.lane.b32.xlu2 %v6830_v32, %s5547_s30 }
 0x405   : > { %v1626_v34 = vpop.f32.mrf.mxu3 }
 0x406   : > { %v1627_v35 = vadd.f32 %v6680_v47, %v1626_v34  ;;  %v1740_v37 = vpop.permute.xlu0 %1739 }
 0x407   : > { %1830 = vst.msk [vmem:[#allocation3 + $0x10] sm:$0xff] %vm1829_vm5, %v1740_v37  ;;  %v1593_v38 = vpop.f32.mrf.mxu0 }
 0x408   : > { %v6840_v40 = vmax.f32 %v1627_v35, 0.0  ;;  %v1594_v41 = vadd.f32 %v6680_v47, %v1593_v38 }
 0x40a   : > { %1705 = vst.msk [vmem:[#allocation3 + $0xe1] sm:$0xff] %vm1677_vm3, %v6840_v40  ;;  %v6845_v1 = vmax.f32 %v1594_v41, 0.0 }
 0x40c   : > { %1769 = vrot.lane.b32.xlu0 %v6845_v1, %s5547_s30  ;;  %1773 = vrot.lane.b32.xlu2 %v6708_v63, %s5547_s30  ;;  %1694 = vst.msk [vmem:[#allocation3 + $0x89] sm:$0x7f] %vm1679_vm4, %v6845_v1 }
 0x40d   : > { %v1629_v2 = vpop.f32.mrf.mxu3 }
 0x40e   : > { %v1630_v5 = vadd.f32 %v6680_v47, %v1629_v2  ;;  %v1742_v8 = vpop.permute.xlu1 %1741 }
 0x40f   : > { %1831 = vst.msk [vmem:[#allocation3 + $0x18] sm:$0xff] %vm1829_vm5, %v1742_v8  ;;  %v1596_v11 = vpop.f32.mrf.mxu0 }
 0x410   : > { %v6855_v7 = vmax.f32 %v1630_v5, 0.0  ;;  %v1597_v12 = vadd.f32 %v6680_v47, %v1596_v11 }
 0x412   : > { %1706 = vst.msk [vmem:[#allocation3 + $0xe9] sm:$0x7f] %vm1679_vm4, %v6855_v7  ;;  %v6860_v10 = vmax.f32 %v1597_v12, 0.0 }
 0x414   : > { %1695 = vst.msk [vmem:[#allocation3 + $0x91] sm:$0xff] %vm1677_vm3, %v6860_v10  ;;  %1771 = vrot.lane.b32.xlu1 %v6860_v10, %s5547_s30  ;;  %1775 = vrot.lane.b32.xlu0 %v6742_v4, %s5547_s30 }
 0x415   : > { %1779 = vrot.lane.b32.xlu2 %v6766_v20, %s5547_s30  ;;  %v1632_v17 = vpop.f32.mrf.mxu3 }
 0x416   : > { %v1633_v13 = vadd.f32 %v6680_v47, %v1632_v17  ;;  %v1750_v18 = vpop.permute.xlu2 %1749 }
 0x417   : > { %1835 = vst.msk [vmem:[#allocation3 + $0x38] sm:$0xff] %vm1829_vm5, %v1750_v18 }
 0x418   : > { %v6872_v16 = vmax.f32 %v1633_v13, 0.0 }
 0x41a   : > { %1707 = vst.msk [vmem:[#allocation3 + $0xf1] sm:$0xff] %vm1677_vm3, %v6872_v16 }
 0x41c   : > { %1777 = vrot.lane.b32.xlu1 %v6754_v14, %s5547_s30  ;;  %1781 = vrot.lane.b32.xlu0 %v6778_v26, %s5547_s30 }
 0x41d   : > { %1785 = vrot.lane.b32.xlu2 %v6802_v46, %s5547_s30  ;;  %v1635_v23 = vpop.f32.mrf.mxu3 }
 0x41e   : > { %v1636_v19 = vadd.f32 %v6680_v47, %v1635_v23  ;;  %v1746_v24 = vpop.permute.xlu0 %1745 }
 0x41f   : > { %1833 = vst.msk [vmem:[#allocation3 + $0x28] sm:$0xff] %vm1829_vm5, %v1746_v24 }
 0x420   : > { %v6884_v22 = vmax.f32 %v1636_v19, 0.0 }
 0x422   : > { %1708 = vst.msk [vmem:[#allocation3 + $0xf9] sm:$0x7f] %vm1679_vm4, %v6884_v22  ;;  %vm3889_vm4 = vcmask 130048  }
 0x424   : > { %1783 = vrot.lane.b32.xlu1 %v6790_v43, %s5547_s30  ;;  %1787 = vrot.lane.b32.xlu0 %v6814_v54, %s5547_s30 }
 0x425   : > { %1791 = vrot.lane.b32.xlu2 %v6840_v40, %s5547_s30 }
 0x426   : > { %v1748_v29 = vpop.permute.xlu1 %1747 }
 0x427   : > { %1834 = vst.msk [vmem:[#allocation3 + $0x30] sm:$0xff] %vm1829_vm5, %v1748_v29 }
 0x42c   : > { %1789 = vrot.lane.b32.xlu1 %v6827_v0, %s5547_s30  ;;  %1793 = vrot.lane.b32.xlu0 %v6855_v7, %s5547_s30 }
 0x42d   : > { %1797 = vrot.lane.b32.xlu2 %v6884_v22, %s5547_s30 }
 0x42e   : > { %v1756_v25 = vpop.permute.xlu2 %1755 }
 0x42f   : > { %1838 = vst.msk [vmem:[#allocation3 + $0x50] sm:$0xff] %vm1829_vm5, %v1756_v25 }
 0x434   : > { %1795 = vrot.lane.b32.xlu1 %v6872_v16, %s5547_s30  ;;  %1860 = vrot.lane.b32.xlu0 %v6683_v3, %s5549_s7 }
 0x435   : > { %1864 = vrot.lane.b32.xlu2 %v6700_v60, %s5549_s7 }
 0x436   : > { %v1752_v30 = vpop.permute.xlu0 %1751 }
 0x437   : > { %1836 = vst.msk [vmem:[#allocation3 + $0x40] sm:$0xff] %vm1829_vm5, %v1752_v30 }
 0x43c   : > { %1862 = vrot.lane.b32.xlu1 %v6692_v56, %s5549_s7  ;;  %1866 = vrot.lane.b32.xlu0 %v6713_v33, %s5549_s7 }
 0x43d   : > { %1870 = vrot.lane.b32.xlu2 %v6728_v39, %s5549_s7 }
 0x43e   : > { %v1754_v48 = vpop.permute.xlu1 %1753 }
 0x43f   : > { %1837 = vst.msk [vmem:[#allocation3 + $0x48] sm:$0xff] %vm1829_vm5, %v1754_v48 }
 0x444   : > { %1868 = vrot.lane.b32.xlu1 %v6721_v36, %s5549_s7  ;;  %1872 = vrot.lane.b32.xlu0 %v6735_v42, %s5549_s7 }
 0x445   : > { %1876 = vrot.lane.b32.xlu2 %v6757_v15, %s5549_s7 }
 0x446   : > { %v1762_v28 = vpop.permute.xlu2 %1761 }
 0x447   : > { %1841 = vst.msk [vmem:[#allocation3 + $0x68] sm:$0xff] %vm1829_vm5, %v1762_v28 }
 0x44c   : > { %1874 = vrot.lane.b32.xlu1 %v6745_v9, %s5549_s7  ;;  %1878 = vrot.lane.b32.xlu0 %v6769_v21, %s5549_s7 }
 0x44d   : > { %1882 = vrot.lane.b32.xlu2 %v6793_v49, %s5549_s7 }
 0x44e   : > { %v1758_v44 = vpop.permute.xlu0 %1757 }
 0x44f   : > { %1839 = vst.msk [vmem:[#allocation3 + $0x58] sm:$0xff] %vm1829_vm5, %v1758_v44 }
 0x454   : > { %1880 = vrot.lane.b32.xlu1 %v6781_v27, %s5549_s7  ;;  %1884 = vrot.lane.b32.xlu0 %v6805_v51, %s5549_s7 }
 0x455   : > { %1888 = vrot.lane.b32.xlu2 %v6830_v32, %s5549_s7 }
 0x456   : > { %v1760_v45 = vpop.permute.xlu1 %1759 }
 0x457   : > { %1840 = vst.msk [vmem:[#allocation3 + $0x60] sm:$0xff] %vm1829_vm5, %v1760_v45 }
 0x45c   : > { %1886 = vrot.lane.b32.xlu1 %v6817_v57, %s5549_s7  ;;  %1890 = vrot.lane.b32.xlu0 %v6845_v1, %s5549_s7 }
 0x45d   : > { %1894 = vrot.lane.b32.xlu2 %v6708_v63, %s5549_s7 }
 0x45e   : > { %v1768_v50 = vpop.permute.xlu2 %1767 }
 0x45f   : > { %1844 = vst.msk [vmem:[#allocation3 + $0x80] sm:$0xff] %vm1829_vm5, %v1768_v50 }
 0x464   : > { %1892 = vrot.lane.b32.xlu1 %v6860_v10, %s5549_s7  ;;  %1896 = vrot.lane.b32.xlu0 %v6742_v4, %s5549_s7 }
 0x465   : > { %1900 = vrot.lane.b32.xlu2 %v6766_v20, %s5549_s7 }
 0x466   : > { %v1764_v52 = vpop.permute.xlu0 %1763  ;;  %v1774_v53 = vpop.permute.xlu2 %1773 }
 0x467   : > { %1842 = vst.msk [vmem:[#allocation3 + $0x70] sm:$0xff] %vm1829_vm5, %v1764_v52 }
 0x468   : > { %1847 = vst.msk [vmem:[#allocation3 + $0x98] sm:$0xff] %vm1829_vm5, %v1774_v53  ;;  %v1638_v53 = vpop.f32.mrf.mxu3 }
 0x46c   : > { %1898 = vrot.lane.b32.xlu1 %v6754_v14, %s5549_s7  ;;  %1902 = vrot.lane.b32.xlu0 %v6778_v26, %s5549_s7 }
 0x46d   : > { %1906 = vrot.lane.b32.xlu2 %v6802_v46, %s5549_s7 }
 0x46e   : > { %v1766_v6 = vpop.permute.xlu1 %1765 }
 0x46f   : > { %1843 = vst.msk [vmem:[#allocation3 + $0x78] sm:$0xff] %vm1829_vm5, %v1766_v6  ;;  %v1780_v55 = vpop.permute.xlu2 %1779  ;;  %v1639_v6 = vadd.f32 %v6680_v47, %v1638_v53 }
 0x470   : > { %1850 = vst.msk [vmem:[#allocation3 + $0xb0] sm:$0xff] %vm1829_vm5, %v1780_v55 }
 0x474   : > { %1904 = vrot.lane.b32.xlu1 %v6790_v43, %s5549_s7  ;;  %1908 = vrot.lane.b32.xlu0 %v6814_v54, %s5549_s7 }
 0x475   : > { %1912 = vrot.lane.b32.xlu2 %v6840_v40, %s5549_s7 }
 0x477   : > { %v1786_v58 = vpop.permute.xlu2 %1785 }
 0x478   : > { %1853 = vst.msk [vmem:[#allocation3 + $0xc8] sm:$0xff] %vm1829_vm5, %v1786_v58 }
 0x47c   : > { %1910 = vrot.lane.b32.xlu1 %v6827_v0, %s5549_s7  ;;  %1914 = vrot.lane.b32.xlu0 %v6855_v7, %s5549_s7 }
 0x47d   : > { %1918 = vrot.lane.b32.xlu2 %v6884_v22, %s5549_s7 }
 0x47e   : > { %v1770_v59 = vpop.permute.xlu0 %1769 }
 0x47f   : > { %1845 = vst.msk [vmem:[#allocation3 + $0x88] sm:$0xff] %vm1829_vm5, %v1770_v59  ;;  %v1792_v61 = vpop.permute.xlu2 %1791 }
 0x480   : > { %1856 = vst.msk [vmem:[#allocation3 + $0xe0] sm:$0xff] %vm1829_vm5, %v1792_v61  ;;  %v7066_v61 = vmax.f32 %v1639_v6, 0.0 }
 0x484   : > { %1916 = vrot.lane.b32.xlu1 %v6872_v16, %s5549_s7  ;;  %1984 = vrot.lane.b32.xlu0 %v6683_v3, %s5551_s9 }
 0x485   : > { %1988 = vrot.lane.b32.xlu2 %v6700_v60, %s5551_s9 }
 0x486   : > { %v1772_v62 = vpop.permute.xlu1 %1771  ;;  %v1776_v31 = vpop.permute.xlu0 %1775 }
 0x487   : > { %1846 = vst.msk [vmem:[#allocation3 + $0x90] sm:$0xff] %vm1829_vm5, %v1772_v62  ;;  %v1798_v34 = vpop.permute.xlu2 %1797  ;;  %v1641_v62 = vpop.f32.mrf.mxu3 }
 0x488   : > { %1848 = vst.msk [vmem:[#allocation3 + $0xa0] sm:$0xff] %vm1829_vm5, %v1776_v31  ;;  %v1642_v31 = vadd.f32 %v6680_v47, %v1641_v62 }
 0x489   : > { %1859 = vst.msk [vmem:[#allocation3 + $0xf8] sm:$0xff] %vm1829_vm5, %v1798_v34 }
 0x48c   : > { %1986 = vrot.lane.b32.xlu1 %v6692_v56, %s5551_s9  ;;  %1990 = vrot.lane.b32.xlu0 %v6713_v33, %s5551_s9 }
 0x48d   : > { %1994 = vrot.lane.b32.xlu2 %v6728_v39, %s5551_s9 }
 0x48e   : > { %v1778_v35 = vpop.permute.xlu1 %1777  ;;  %v1782_v37 = vpop.permute.xlu0 %1781 }
 0x48f   : > { %1849 = vst.msk [vmem:[#allocation3 + $0xa8] sm:$0xff] %vm1829_vm5, %v1778_v35  ;;  %v1865_v38 = vpop.permute.xlu2 %1864 }
 0x490   : > { %1851 = vst.msk [vmem:[#allocation3 + $0xb8] sm:$0xff] %vm1829_vm5, %v1782_v37 }
 0x491   : > { %1954 = vst.msk [vmem:[#allocation3 + $0x1f] sm:$0xfe] %vm1950_vm6, %v1865_v38  ;;  %v7078_v38 = vmax.f32 %v1642_v31, 0.0 }
 0x494   : > { %1992 = vrot.lane.b32.xlu1 %v6721_v36, %s5551_s9  ;;  %1996 = vrot.lane.b32.xlu0 %v6735_v42, %s5551_s9 }
 0x495   : > { %2000 = vrot.lane.b32.xlu2 %v6757_v15, %s5551_s9 }
 0x496   : > { %v1784_v41 = vpop.permute.xlu1 %1783  ;;  %v1788_v2 = vpop.permute.xlu0 %1787 }
 0x497   : > { %1852 = vst.msk [vmem:[#allocation3 + $0xc0] sm:$0xff] %vm1829_vm5, %v1784_v41  ;;  %v1871_v5 = vpop.permute.xlu2 %1870 }
 0x498   : > { %1854 = vst.msk [vmem:[#allocation3 + $0xd0] sm:$0xff] %vm1829_vm5, %v1788_v2 }
 0x499   : > { %1957 = vst.msk [vmem:[#allocation3 + $0x37] sm:$0xff] %vm1952_vm7, %v1871_v5 }
 0x49c   : > { %1998 = vrot.lane.b32.xlu1 %v6745_v9, %s5551_s9  ;;  %2002 = vrot.lane.b32.xlu0 %v6769_v21, %s5551_s9 }
 0x49d   : > { %2006 = vrot.lane.b32.xlu2 %v6793_v49, %s5551_s9 }
 0x49e   : > { %v1790_v8 = vpop.permute.xlu1 %1789  ;;  %v1794_v11 = vpop.permute.xlu0 %1793 }
 0x49f   : > { %1855 = vst.msk [vmem:[#allocation3 + $0xd8] sm:$0xff] %vm1829_vm5, %v1790_v8  ;;  %v1877_v12 = vpop.permute.xlu2 %1876 }
 0x4a0   : > { %1857 = vst.msk [vmem:[#allocation3 + $0xe8] sm:$0xff] %vm1829_vm5, %v1794_v11 }
 0x4a1   : > { %1960 = vst.msk [vmem:[#allocation3 + $0x4f] sm:$0xfe] %vm1950_vm6, %v1877_v12 }
 0x4a4   : > { %2004 = vrot.lane.b32.xlu1 %v6781_v27, %s5551_s9  ;;  %2008 = vrot.lane.b32.xlu0 %v6805_v51, %s5551_s9 }
 0x4a5   : > { %2012 = vrot.lane.b32.xlu2 %v6830_v32, %s5551_s9 }
 0x4a6   : > { %v1796_v17 = vpop.permute.xlu1 %1795  ;;  %v1861_v13 = vpop.permute.xlu0 %1860 }
 0x4a7   : > { %1858 = vst.msk [vmem:[#allocation3 + $0xf0] sm:$0xff] %vm1829_vm5, %v1796_v17  ;;  %v1883_v18 = vpop.permute.xlu2 %1882  ;;  %vm3906_vm5 = vcmask 195584  }
 0x4a8   : > { %1951 = vst.msk [vmem:[#allocation3 + $0xf] sm:$0xfe] %vm1950_vm6, %v1861_v13 }
 0x4a9   : > { %1963 = vst.msk [vmem:[#allocation3 + $0x67] sm:$0xff] %vm1952_vm7, %v1883_v18 }
 0x4ac   : > { %2010 = vrot.lane.b32.xlu1 %v6817_v57, %s5551_s9  ;;  %2014 = vrot.lane.b32.xlu0 %v6845_v1, %s5551_s9 }
 0x4ad   : > { %2018 = vrot.lane.b32.xlu2 %v6708_v63, %s5551_s9 }
 0x4ae   : > { %v1863_v23 = vpop.permute.xlu1 %1862  ;;  %v1867_v19 = vpop.permute.xlu0 %1866 }
 0x4af   : > { %1953 = vst.msk [vmem:[#allocation3 + $0x17] sm:$0xff] %vm1952_vm7, %v1863_v23  ;;  %v1889_v24 = vpop.permute.xlu2 %1888 }
 0x4b0   : > { %1955 = vst.msk [vmem:[#allocation3 + $0x27] sm:$0xff] %vm1952_vm7, %v1867_v19 }
 0x4b1   : > { %1966 = vst.msk [vmem:[#allocation3 + $0x7f] sm:$0xfe] %vm1950_vm6, %v1889_v24 }
 0x4b4   : > { %2016 = vrot.lane.b32.xlu1 %v6860_v10, %s5551_s9  ;;  %2020 = vrot.lane.b32.xlu0 %v6742_v4, %s5551_s9 }
 0x4b5   : > { %2024 = vrot.lane.b32.xlu2 %v6766_v20, %s5551_s9 }
 0x4b6   : > { %v1869_v29 = vpop.permute.xlu1 %1868  ;;  %v1873_v25 = vpop.permute.xlu0 %1872 }
 0x4b7   : > { %1956 = vst.msk [vmem:[#allocation3 + $0x2f] sm:$0xfe] %vm1950_vm6, %v1869_v29  ;;  %v1895_v30 = vpop.permute.xlu2 %1894 }
 0x4b8   : > { %1958 = vst.msk [vmem:[#allocation3 + $0x3f] sm:$0xfe] %vm1950_vm6, %v1873_v25 }
 0x4b9   : > { %1969 = vst.msk [vmem:[#allocation3 + $0x97] sm:$0xff] %vm1952_vm7, %v1895_v30 }
 0x4bc   : > { %2022 = vrot.lane.b32.xlu1 %v6754_v14, %s5551_s9  ;;  %2026 = vrot.lane.b32.xlu0 %v6778_v26, %s5551_s9 }
 0x4bd   : > { %2030 = vrot.lane.b32.xlu2 %v6802_v46, %s5551_s9 }
 0x4be   : > { %v1875_v48 = vpop.permute.xlu1 %1874  ;;  %v1879_v28 = vpop.permute.xlu0 %1878 }
 0x4bf   : > { %1959 = vst.msk [vmem:[#allocation3 + $0x47] sm:$0xff] %vm1952_vm7, %v1875_v48  ;;  %v1901_v44 = vpop.permute.xlu2 %1900 }
 0x4c0   : > { %1961 = vst.msk [vmem:[#allocation3 + $0x57] sm:$0xff] %vm1952_vm7, %v1879_v28 }
 0x4c1   : > { %1972 = vst.msk [vmem:[#allocation3 + $0xaf] sm:$0xfe] %vm1950_vm6, %v1901_v44 }
 0x4c4   : > { %2028 = vrot.lane.b32.xlu1 %v6790_v43, %s5551_s9  ;;  %2032 = vrot.lane.b32.xlu0 %v6814_v54, %s5551_s9 }
 0x4c5   : > { %2036 = vrot.lane.b32.xlu2 %v6840_v40, %s5551_s9 }
 0x4c6   : > { %v1881_v45 = vpop.permute.xlu1 %1880  ;;  %v1885_v50 = vpop.permute.xlu0 %1884 }
 0x4c7   : > { %1962 = vst.msk [vmem:[#allocation3 + $0x5f] sm:$0xfe] %vm1950_vm6, %v1881_v45  ;;  %v1907_v52 = vpop.permute.xlu2 %1906 }
 0x4c8   : > { %1964 = vst.msk [vmem:[#allocation3 + $0x6f] sm:$0xfe] %vm1950_vm6, %v1885_v50 }
 0x4c9   : > { %1975 = vst.msk [vmem:[#allocation3 + $0xc7] sm:$0xff] %vm1952_vm7, %v1907_v52 }
 0x4cc   : > { %2034 = vrot.lane.b32.xlu1 %v6827_v0, %s5551_s9  ;;  %2038 = vrot.lane.b32.xlu0 %v6855_v7, %s5551_s9 }
 0x4cd   : > { %2042 = vrot.lane.b32.xlu2 %v6884_v22, %s5551_s9 }
 0x4ce   : > { %v1887_v55 = vpop.permute.xlu1 %1886  ;;  %v1891_v58 = vpop.permute.xlu0 %1890 }
 0x4cf   : > { %1965 = vst.msk [vmem:[#allocation3 + $0x77] sm:$0xff] %vm1952_vm7, %v1887_v55  ;;  %v1913_v59 = vpop.permute.xlu2 %1912 }
 0x4d0   : > { %1967 = vst.msk [vmem:[#allocation3 + $0x87] sm:$0xff] %vm1952_vm7, %v1891_v58 }
 0x4d1   : > { %1978 = vst.msk [vmem:[#allocation3 + $0xdf] sm:$0xfe] %vm1950_vm6, %v1913_v59 }
 0x4d4   : > { %2040 = vrot.lane.b32.xlu1 %v6872_v16, %s5551_s9  ;;  %2044 = vrot.lane.b32.xlu0 %v7066_v61, %s5551_s9 }
 0x4d5   : > { %2114 = vrot.lane.b32.xlu2 %v6683_v3, %s5553_s11 }
 0x4d6   : > { %v1893_v34 = vpop.permute.xlu1 %1892  ;;  %v1897_v35 = vpop.permute.xlu0 %1896 }
 0x4d7   : > { %1968 = vst.msk [vmem:[#allocation3 + $0x8f] sm:$0xfe] %vm1950_vm6, %v1893_v34  ;;  %v1919_v37 = vpop.permute.xlu2 %1918 }
 0x4d8   : > { %1970 = vst.msk [vmem:[#allocation3 + $0x9f] sm:$0xfe] %vm1950_vm6, %v1897_v35 }
 0x4d9   : > { %1981 = vst.msk [vmem:[#allocation3 + $0xf7] sm:$0xff] %vm1952_vm7, %v1919_v37 }
 0x4dc   : > { %2046 = vrot.lane.b32.xlu1 %v7078_v38, %s5551_s9  ;;  %2116 = vrot.lane.b32.xlu0 %v6692_v56, %s5553_s11 }
 0x4dd   : > { %2120 = vrot.lane.b32.xlu2 %v6713_v33, %s5553_s11 }
 0x4de   : > { %v1899_v47 = vpop.permute.xlu1 %1898  ;;  %v1903_v41 = vpop.permute.xlu0 %1902 }
 0x4df   : > { %1971 = vst.msk [vmem:[#allocation3 + $0xa7] sm:$0xff] %vm1952_vm7, %v1899_v47  ;;  %v1989_v2 = vpop.permute.xlu2 %1988 }
 0x4e0   : > { %1973 = vst.msk [vmem:[#allocation3 + $0xb7] sm:$0xff] %vm1952_vm7, %v1903_v41 }
 0x4e1   : > { %2084 = vst.msk [vmem:[#allocation3 + $0x11] sm:$0xff] %vm2080_vm8, %v1989_v2 }
 0x4e4   : > { %2122 = vrot.lane.b32.xlu0 %v6721_v36, %s5553_s11  ;;  %2118 = vrot.lane.b32.xlu1 %v6700_v60, %s5553_s11 }
 0x4e5   : > { %2126 = vrot.lane.b32.xlu2 %v6735_v42, %s5553_s11 }
 0x4e6   : > { %v1905_v5 = vpop.permute.xlu1 %1904  ;;  %v1909_v8 = vpop.permute.xlu0 %1908 }
 0x4e7   : > { %1974 = vst.msk [vmem:[#allocation3 + $0xbf] sm:$0xfe] %vm1950_vm6, %v1905_v5  ;;  %v1995_v11 = vpop.permute.xlu2 %1994 }
 0x4e8   : > { %1976 = vst.msk [vmem:[#allocation3 + $0xcf] sm:$0xfe] %vm1950_vm6, %v1909_v8 }
 0x4e9   : > { %2087 = vst.msk [vmem:[#allocation3 + $0x29] sm:$0x7f] %vm2082_vm9, %v1995_v11 }
 0x4ec   : > { %2128 = vrot.lane.b32.xlu0 %v6745_v9, %s5553_s11  ;;  %2124 = vrot.lane.b32.xlu1 %v6728_v39, %s5553_s11 }
 0x4ed   : > { %2132 = vrot.lane.b32.xlu2 %v6769_v21, %s5553_s11 }
 0x4ee   : > { %v1911_v12 = vpop.permute.xlu1 %1910  ;;  %v1915_v17 = vpop.permute.xlu0 %1914 }
 0x4ef   : > { %1977 = vst.msk [vmem:[#allocation3 + $0xd7] sm:$0xff] %vm1952_vm7, %v1911_v12  ;;  %v2001_v13 = vpop.permute.xlu2 %2000 }
 0x4f0   : > { %1979 = vst.msk [vmem:[#allocation3 + $0xe7] sm:$0xff] %vm1952_vm7, %v1915_v17  ;;  %vm3940_vm7 = vcmask 326656  }
 0x4f1   : > { %2090 = vst.msk [vmem:[#allocation3 + $0x41] sm:$0xff] %vm2080_vm8, %v2001_v13 }
 0x4f4   : > { %2134 = vrot.lane.b32.xlu0 %v6781_v27, %s5553_s11  ;;  %2130 = vrot.lane.b32.xlu1 %v6757_v15, %s5553_s11 }
 0x4f5   : > { %2138 = vrot.lane.b32.xlu2 %v6805_v51, %s5553_s11 }
 0x4f6   : > { %v1917_v18 = vpop.permute.xlu1 %1916  ;;  %v1985_v23 = vpop.permute.xlu0 %1984 }
 0x4f7   : > { %1980 = vst.msk [vmem:[#allocation3 + $0xef] sm:$0xfe] %vm1950_vm6, %v1917_v18  ;;  %v2007_v19 = vpop.permute.xlu2 %2006  ;;  %vm3923_vm6 = vcmask 261120  }
 0x4f8   : > { %2081 = vst.msk [vmem:[#allocation3 + $0x1] sm:$0xff] %vm2080_vm8, %v1985_v23 }
 0x4f9   : > { %2093 = vst.msk [vmem:[#allocation3 + $0x59] sm:$0x7f] %vm2082_vm9, %v2007_v19 }
 0x4fc   : > { %2140 = vrot.lane.b32.xlu0 %v6817_v57, %s5553_s11  ;;  %2136 = vrot.lane.b32.xlu1 %v6793_v49, %s5553_s11 }
 0x4fd   : > { %2144 = vrot.lane.b32.xlu2 %v6845_v1, %s5553_s11 }
 0x4fe   : > { %v1987_v24 = vpop.permute.xlu1 %1986  ;;  %v1991_v29 = vpop.permute.xlu0 %1990 }
 0x4ff   : > { %2083 = vst.msk [vmem:[#allocation3 + $0x9] sm:$0x7f] %vm2082_vm9, %v1987_v24  ;;  %v2013_v25 = vpop.permute.xlu2 %2012 }
 0x500   : > { %2085 = vst.msk [vmem:[#allocation3 + $0x19] sm:$0x7f] %vm2082_vm9, %v1991_v29 }
 0x501   : > { %2096 = vst.msk [vmem:[#allocation3 + $0x71] sm:$0xff] %vm2080_vm8, %v2013_v25 }
 0x504   : > { %2146 = vrot.lane.b32.xlu0 %v6860_v10, %s5553_s11  ;;  %2142 = vrot.lane.b32.xlu1 %v6830_v32, %s5553_s11 }
 0x505   : > { %2150 = vrot.lane.b32.xlu2 %v6742_v4, %s5553_s11 }
 0x506   : > { %v1993_v30 = vpop.permute.xlu1 %1992  ;;  %v1997_v48 = vpop.permute.xlu0 %1996 }
 0x507   : > { %2086 = vst.msk [vmem:[#allocation3 + $0x21] sm:$0xff] %vm2080_vm8, %v1993_v30  ;;  %v2019_v28 = vpop.permute.xlu2 %2018 }
 0x508   : > { %2088 = vst.msk [vmem:[#allocation3 + $0x31] sm:$0xff] %vm2080_vm8, %v1997_v48 }
 0x509   : > { %2099 = vst.msk [vmem:[#allocation3 + $0x89] sm:$0x7f] %vm2082_vm9, %v2019_v28 }
 0x50c   : > { %2152 = vrot.lane.b32.xlu0 %v6754_v14, %s5553_s11  ;;  %2148 = vrot.lane.b32.xlu1 %v6708_v63, %s5553_s11 }
 0x50d   : > { %2156 = vrot.lane.b32.xlu2 %v6778_v26, %s5553_s11 }
 0x50e   : > { %v1999_v44 = vpop.permute.xlu1 %1998  ;;  %v2003_v45 = vpop.permute.xlu0 %2002 }
 0x50f   : > { %2089 = vst.msk [vmem:[#allocation3 + $0x39] sm:$0x7f] %vm2082_vm9, %v1999_v44  ;;  %v2025_v50 = vpop.permute.xlu2 %2024 }
 0x510   : > { %2091 = vst.msk [vmem:[#allocation3 + $0x49] sm:$0x7f] %vm2082_vm9, %v2003_v45 }
 0x511   : > { %2102 = vst.msk [vmem:[#allocation3 + $0xa1] sm:$0xff] %vm2080_vm8, %v2025_v50 }
 0x514   : > { %2158 = vrot.lane.b32.xlu0 %v6790_v43, %s5553_s11  ;;  %2154 = vrot.lane.b32.xlu1 %v6766_v20, %s5553_s11 }
 0x515   : > { %2162 = vrot.lane.b32.xlu2 %v6814_v54, %s5553_s11 }
 0x516   : > { %v2005_v52 = vpop.permute.xlu1 %2004  ;;  %v2009_v53 = vpop.permute.xlu0 %2008 }
 0x517   : > { %2092 = vst.msk [vmem:[#allocation3 + $0x51] sm:$0xff] %vm2080_vm8, %v2005_v52  ;;  %v2031_v6 = vpop.permute.xlu2 %2030 }
 0x518   : > { %2094 = vst.msk [vmem:[#allocation3 + $0x61] sm:$0xff] %vm2080_vm8, %v2009_v53 }
 0x519   : > { %2105 = vst.msk [vmem:[#allocation3 + $0xb9] sm:$0x7f] %vm2082_vm9, %v2031_v6 }
 0x51c   : > { %2164 = vrot.lane.b32.xlu0 %v6827_v0, %s5553_s11  ;;  %2160 = vrot.lane.b32.xlu1 %v6802_v46, %s5553_s11 }
 0x51d   : > { %2168 = vrot.lane.b32.xlu2 %v6855_v7, %s5553_s11 }
 0x51e   : > { %v2011_v55 = vpop.permute.xlu1 %2010  ;;  %v2015_v58 = vpop.permute.xlu0 %2014 }
 0x51f   : > { %2095 = vst.msk [vmem:[#allocation3 + $0x69] sm:$0x7f] %vm2082_vm9, %v2011_v55  ;;  %v2037_v59 = vpop.permute.xlu2 %2036 }
 0x520   : > { %2097 = vst.msk [vmem:[#allocation3 + $0x79] sm:$0x7f] %vm2082_vm9, %v2015_v58 }
 0x521   : > { %2108 = vst.msk [vmem:[#allocation3 + $0xd1] sm:$0xff] %vm2080_vm8, %v2037_v59 }
 0x524   : > { %2170 = vrot.lane.b32.xlu0 %v6872_v16, %s5553_s11  ;;  %2166 = vrot.lane.b32.xlu1 %v6840_v40, %s5553_s11 }
 0x525   : > { %2174 = vrot.lane.b32.xlu2 %v7066_v61, %s5553_s11 }
 0x526   : > { %v2017_v62 = vpop.permute.xlu1 %2016  ;;  %v2021_v31 = vpop.permute.xlu0 %2020 }
 0x527   : > { %2098 = vst.msk [vmem:[#allocation3 + $0x81] sm:$0xff] %vm2080_vm8, %v2017_v62  ;;  %v2043_v34 = vpop.permute.xlu2 %2042 }
 0x528   : > { %2100 = vst.msk [vmem:[#allocation3 + $0x91] sm:$0xff] %vm2080_vm8, %v2021_v31 }
 0x529   : > { %2111 = vst.msk [vmem:[#allocation3 + $0xe9] sm:$0x7f] %vm2082_vm9, %v2043_v34 }
 0x52c   : > { %2176 = vrot.lane.b32.xlu0 %v7078_v38, %s5553_s11  ;;  %2172 = vrot.lane.b32.xlu1 %v6884_v22, %s5553_s11 }
 0x52d   : > { %2245 = vrot.lane.b32.xlu2 %v6692_v56, %s5554_s25 }
 0x52e   : > { %v2023_v35 = vpop.permute.xlu1 %2022  ;;  %v2027_v37 = vpop.permute.xlu0 %2026 }
 0x52f   : > { %2101 = vst.msk [vmem:[#allocation3 + $0x99] sm:$0x7f] %vm2082_vm9, %v2023_v35  ;;  %v2115_v47 = vpop.permute.xlu2 %2114 }
 0x530   : > { %2103 = vst.msk [vmem:[#allocation3 + $0xa9] sm:$0x7f] %vm2082_vm9, %v2027_v37 }
 0x531   : > { %2211 = vst.msk [vmem:[#allocation3] sm:$0xff] %vm2210_vm10, %v2115_v47 }
 0x534   : > { %2247 = vrot.lane.b32.xlu0 %v6700_v60, %s5554_s25  ;;  %2243 = vrot.lane.b32.xlu1 %v6683_v3, %s5554_s25 }
 0x535   : > { %2251 = vrot.lane.b32.xlu2 %v6721_v36, %s5554_s25 }
 0x536   : > { %v2029_v56 = vpop.permute.xlu1 %2028  ;;  %v2033_v41 = vpop.permute.xlu0 %2032 }
 0x537   : > { %2104 = vst.msk [vmem:[#allocation3 + $0xb1] sm:$0xff] %vm2080_vm8, %v2029_v56  ;;  %v2121_v2 = vpop.permute.xlu2 %2120 }
 0x538   : > { %2106 = vst.msk [vmem:[#allocation3 + $0xc1] sm:$0xff] %vm2080_vm8, %v2033_v41 }
 0x539   : > { %2214 = vst.msk [vmem:[#allocation3 + $0x18] sm:$0xff] %vm2210_vm10, %v2121_v2 }
 0x53c   : > { %2253 = vrot.lane.b32.xlu0 %v6728_v39, %s5554_s25  ;;  %2249 = vrot.lane.b32.xlu1 %v6713_v33, %s5554_s25 }
 0x53d   : > { %2257 = vrot.lane.b32.xlu2 %v6745_v9, %s5554_s25 }
 0x53e   : > { %v2035_v3 = vpop.permute.xlu1 %2034  ;;  %v2039_v5 = vpop.permute.xlu0 %2038 }
 0x53f   : > { %2107 = vst.msk [vmem:[#allocation3 + $0xc9] sm:$0x7f] %vm2082_vm9, %v2035_v3  ;;  %v2127_v8 = vpop.permute.xlu2 %2126 }
 0x540   : > { %2109 = vst.msk [vmem:[#allocation3 + $0xd9] sm:$0x7f] %vm2082_vm9, %v2039_v5 }
 0x541   : > { %2217 = vst.msk [vmem:[#allocation3 + $0x30] sm:$0xff] %vm2210_vm10, %v2127_v8 }
 0x544   : > { %2259 = vrot.lane.b32.xlu0 %v6757_v15, %s5554_s25  ;;  %2255 = vrot.lane.b32.xlu1 %v6735_v42, %s5554_s25 }
 0x545   : > { %2263 = vrot.lane.b32.xlu2 %v6781_v27, %s5554_s25 }
 0x546   : > { %v2041_v11 = vpop.permute.xlu1 %2040  ;;  %v2045_v12 = vpop.permute.xlu0 %2044 }
 0x547   : > { %2110 = vst.msk [vmem:[#allocation3 + $0xe1] sm:$0xff] %vm2080_vm8, %v2041_v11  ;;  %v2133_v17 = vpop.permute.xlu2 %2132 }
 0x548   : > { %2112 = vst.msk [vmem:[#allocation3 + $0xf1] sm:$0xff] %vm2080_vm8, %v2045_v12  ;;  %vm3957_vm8 = vcmask 392192  }
 0x549   : > { %2220 = vst.msk [vmem:[#allocation3 + $0x48] sm:$0xff] %vm2210_vm10, %v2133_v17 }
 0x54c   : > { %2265 = vrot.lane.b32.xlu0 %v6793_v49, %s5554_s25  ;;  %2261 = vrot.lane.b32.xlu1 %v6769_v21, %s5554_s25 }
 0x54d   : > { %2269 = vrot.lane.b32.xlu2 %v6817_v57, %s5554_s25 }
 0x54e   : > { %v2047_v13 = vpop.permute.xlu1 %2046  ;;  %v2117_v18 = vpop.permute.xlu0 %2116 }
 0x54f   : > { %2113 = vst.msk [vmem:[#allocation3 + $0xf9] sm:$0x7f] %vm2082_vm9, %v2047_v13  ;;  %v2139_v23 = vpop.permute.xlu2 %2138  ;;  %vm3974_vm9 = vcmask 457728  }
 0x550   : > { %2212 = vst.msk [vmem:[#allocation3 + $0x8] sm:$0xff] %vm2210_vm10, %v2117_v18 }
 0x551   : > { %2223 = vst.msk [vmem:[#allocation3 + $0x60] sm:$0xff] %vm2210_vm10, %v2139_v23 }
 0x554   : > { %2271 = vrot.lane.b32.xlu0 %v6830_v32, %s5554_s25  ;;  %2267 = vrot.lane.b32.xlu1 %v6805_v51, %s5554_s25 }
 0x555   : > { %2275 = vrot.lane.b32.xlu2 %v6860_v10, %s5554_s25 }
 0x556   : > { %v2123_v19 = vpop.permute.xlu0 %2122  ;;  %v2119_v24 = vpop.permute.xlu1 %2118 }
 0x557   : > { %2215 = vst.msk [vmem:[#allocation3 + $0x20] sm:$0xff] %vm2210_vm10, %v2123_v19  ;;  %v2145_v29 = vpop.permute.xlu2 %2144 }
 0x558   : > { %2213 = vst.msk [vmem:[#allocation3 + $0x10] sm:$0xff] %vm2210_vm10, %v2119_v24 }
 0x559   : > { %2226 = vst.msk [vmem:[#allocation3 + $0x78] sm:$0xff] %vm2210_vm10, %v2145_v29 }
 0x55c   : > { %2277 = vrot.lane.b32.xlu0 %v6708_v63, %s5554_s25  ;;  %2273 = vrot.lane.b32.xlu1 %v6845_v1, %s5554_s25 }
 0x55d   : > { %2281 = vrot.lane.b32.xlu2 %v6754_v14, %s5554_s25 }
 0x55e   : > { %v2129_v25 = vpop.permute.xlu0 %2128  ;;  %v2125_v30 = vpop.permute.xlu1 %2124 }
 0x55f   : > { %2218 = vst.msk [vmem:[#allocation3 + $0x38] sm:$0xff] %vm2210_vm10, %v2129_v25  ;;  %v2151_v48 = vpop.permute.xlu2 %2150 }
 0x560   : > { %2216 = vst.msk [vmem:[#allocation3 + $0x28] sm:$0xff] %vm2210_vm10, %v2125_v30 }
 0x561   : > { %2229 = vst.msk [vmem:[#allocation3 + $0x90] sm:$0xff] %vm2210_vm10, %v2151_v48 }
 0x564   : > { %2283 = vrot.lane.b32.xlu0 %v6766_v20, %s5554_s25  ;;  %2279 = vrot.lane.b32.xlu1 %v6742_v4, %s5554_s25 }
 0x565   : > { %2287 = vrot.lane.b32.xlu2 %v6790_v43, %s5554_s25 }
 0x566   : > { %v2135_v28 = vpop.permute.xlu0 %2134  ;;  %v2131_v44 = vpop.permute.xlu1 %2130 }
 0x567   : > { %2221 = vst.msk [vmem:[#allocation3 + $0x50] sm:$0xff] %vm2210_vm10, %v2135_v28  ;;  %v2157_v45 = vpop.permute.xlu2 %2156 }
 0x568   : > { %2219 = vst.msk [vmem:[#allocation3 + $0x40] sm:$0xff] %vm2210_vm10, %v2131_v44 }
 0x569   : > { %2232 = vst.msk [vmem:[#allocation3 + $0xa8] sm:$0xff] %vm2210_vm10, %v2157_v45 }
 0x56c   : > { %2289 = vrot.lane.b32.xlu0 %v6802_v46, %s5554_s25  ;;  %2285 = vrot.lane.b32.xlu1 %v6778_v26, %s5554_s25 }
 0x56d   : > { %2293 = vrot.lane.b32.xlu2 %v6827_v0, %s5554_s25 }
 0x56e   : > { %v2141_v50 = vpop.permute.xlu0 %2140  ;;  %v2137_v52 = vpop.permute.xlu1 %2136 }
 0x56f   : > { %2224 = vst.msk [vmem:[#allocation3 + $0x68] sm:$0xff] %vm2210_vm10, %v2141_v50  ;;  %v2163_v53 = vpop.permute.xlu2 %2162 }
 0x570   : > { %2222 = vst.msk [vmem:[#allocation3 + $0x58] sm:$0xff] %vm2210_vm10, %v2137_v52 }
 0x571   : > { %2235 = vst.msk [vmem:[#allocation3 + $0xc0] sm:$0xff] %vm2210_vm10, %v2163_v53 }
 0x574   : > { %2295 = vrot.lane.b32.xlu0 %v6840_v40, %s5554_s25  ;;  %2291 = vrot.lane.b32.xlu1 %v6814_v54, %s5554_s25 }
 0x575   : > { %2299 = vrot.lane.b32.xlu2 %v6872_v16, %s5554_s25 }
 0x576   : > { %v2147_v6 = vpop.permute.xlu0 %2146  ;;  %v2143_v55 = vpop.permute.xlu1 %2142 }
 0x577   : > { %2227 = vst.msk [vmem:[#allocation3 + $0x80] sm:$0xff] %vm2210_vm10, %v2147_v6  ;;  %v2169_v58 = vpop.permute.xlu2 %2168 }
 0x578   : > { %2225 = vst.msk [vmem:[#allocation3 + $0x70] sm:$0xff] %vm2210_vm10, %v2143_v55 }
 0x579   : > { %2238 = vst.msk [vmem:[#allocation3 + $0xd8] sm:$0xff] %vm2210_vm10, %v2169_v58 }
 0x57c   : > { %2301 = vrot.lane.b32.xlu0 %v6884_v22, %s5554_s25  ;;  %2297 = vrot.lane.b32.xlu1 %v6855_v7, %s5554_s25 }
 0x57d   : > { %2305 = vrot.lane.b32.xlu2 %v7078_v38, %s5554_s25 }
 0x57e   : > { %v2153_v59 = vpop.permute.xlu0 %2152  ;;  %v2149_v62 = vpop.permute.xlu1 %2148 }
 0x57f   : > { %2230 = vst.msk [vmem:[#allocation3 + $0x98] sm:$0xff] %vm2210_vm10, %v2153_v59  ;;  %v2175_v31 = vpop.permute.xlu2 %2174 }
 0x580   : > { %2228 = vst.msk [vmem:[#allocation3 + $0x88] sm:$0xff] %vm2210_vm10, %v2149_v62 }
 0x581   : > { %2241 = vst.msk [vmem:[#allocation3 + $0xf0] sm:$0xff] %vm2210_vm10, %v2175_v31 }
 0x584   : > { %2373 = vrot.lane.b32.xlu0 %v6700_v60, %s5555_s26  ;;  %2303 = vrot.lane.b32.xlu1 %v7066_v61, %s5554_s25 }
 0x585   : > { %2377 = vrot.lane.b32.xlu2 %v6721_v36, %s5555_s26 }
 0x586   : > { %v2159_v34 = vpop.permute.xlu0 %2158  ;;  %v2155_v35 = vpop.permute.xlu1 %2154 }
 0x587   : > { %2233 = vst.msk [vmem:[#allocation3 + $0xb0] sm:$0xff] %vm2210_vm10, %v2159_v34  ;;  %v2246_v37 = vpop.permute.xlu2 %2245 }
 0x588   : > { %2231 = vst.msk [vmem:[#allocation3 + $0xa0] sm:$0xff] %vm2210_vm10, %v2155_v35 }
 0x589   : > { %2342 = vst.msk [vmem:[#allocation3 + $0x7] sm:$0xff] %vm2341_vm11, %v2246_v37 }
 0x58c   : > { %2379 = vrot.lane.b32.xlu0 %v6728_v39, %s5555_s26  ;;  %2375 = vrot.lane.b32.xlu1 %v6713_v33, %s5555_s26 }
 0x58d   : > { %2383 = vrot.lane.b32.xlu2 %v6745_v9, %s5555_s26 }
 0x58e   : > { %v2165_v47 = vpop.permute.xlu0 %2164  ;;  %v2161_v56 = vpop.permute.xlu1 %2160 }
 0x58f   : > { %2236 = vst.msk [vmem:[#allocation3 + $0xc8] sm:$0xff] %vm2210_vm10, %v2165_v47  ;;  %v2252_v41 = vpop.permute.xlu2 %2251 }
 0x590   : > { %2234 = vst.msk [vmem:[#allocation3 + $0xb8] sm:$0xff] %vm2210_vm10, %v2161_v56 }
 0x591   : > { %2345 = vst.msk [vmem:[#allocation3 + $0x1f] sm:$0xfe] %vm2339_vm12, %v2252_v41 }
 0x594   : > { %2385 = vrot.lane.b32.xlu0 %v6757_v15, %s5555_s26  ;;  %2381 = vrot.lane.b32.xlu1 %v6735_v42, %s5555_s26 }
 0x595   : > { %2389 = vrot.lane.b32.xlu2 %v6781_v27, %s5555_s26 }
 0x596   : > { %v2171_v2 = vpop.permute.xlu0 %2170  ;;  %v2167_v3 = vpop.permute.xlu1 %2166 }
 0x597   : > { %2239 = vst.msk [vmem:[#allocation3 + $0xe0] sm:$0xff] %vm2210_vm10, %v2171_v2  ;;  %v2258_v5 = vpop.permute.xlu2 %2257 }
 0x598   : > { %2237 = vst.msk [vmem:[#allocation3 + $0xd0] sm:$0xff] %vm2210_vm10, %v2167_v3 }
 0x599   : > { %2348 = vst.msk [vmem:[#allocation3 + $0x37] sm:$0xff] %vm2341_vm11, %v2258_v5 }
 0x59c   : > { %2391 = vrot.lane.b32.xlu0 %v6793_v49, %s5555_s26  ;;  %2387 = vrot.lane.b32.xlu1 %v6769_v21, %s5555_s26 }
 0x59d   : > { %2395 = vrot.lane.b32.xlu2 %v6817_v57, %s5555_s26 }
 0x59e   : > { %v2177_v8 = vpop.permute.xlu0 %2176  ;;  %v2173_v11 = vpop.permute.xlu1 %2172 }
 0x59f   : > { %2242 = vst.msk [vmem:[#allocation3 + $0xf8] sm:$0xff] %vm2210_vm10, %v2177_v8  ;;  %v2264_v12 = vpop.permute.xlu2 %2263 }
 0x5a0   : > { %2240 = vst.msk [vmem:[#allocation3 + $0xe8] sm:$0xff] %vm2210_vm10, %v2173_v11  ;;  %vm3991_vm10 = vcmask 523264  }
 0x5a1   : > { %2351 = vst.msk [vmem:[#allocation3 + $0x4f] sm:$0xfe] %vm2339_vm12, %v2264_v12 }
 0x5a4   : > { %2397 = vrot.lane.b32.xlu0 %v6830_v32, %s5555_s26  ;;  %2393 = vrot.lane.b32.xlu1 %v6805_v51, %s5555_s26 }
 0x5a5   : > { %2401 = vrot.lane.b32.xlu2 %v6860_v10, %s5555_s26 }
 0x5a6   : > { %v2248_v17 = vpop.permute.xlu0 %2247  ;;  %v2244_v13 = vpop.permute.xlu1 %2243 }
 0x5a7   : > { %2343 = vst.msk [vmem:[#allocation3 + $0xf] sm:$0xfe] %vm2339_vm12, %v2248_v17  ;;  %v2270_v18 = vpop.permute.xlu2 %2269 }
 0x5a8   : > { %2340 = vst.msk [vmem:[#allocation3 - $0x1] sm:$0xfe] %vm2339_vm12, %v2244_v13 }
 0x5a9   : > { %2354 = vst.msk [vmem:[#allocation3 + $0x67] sm:$0xff] %vm2341_vm11, %v2270_v18 }
 0x5ac   : > { %2403 = vrot.lane.b32.xlu0 %v6708_v63, %s5555_s26  ;;  %2399 = vrot.lane.b32.xlu1 %v6845_v1, %s5555_s26 }
 0x5ad   : > { %2407 = vrot.lane.b32.xlu2 %v6754_v14, %s5555_s26 }
 0x5ae   : > { %v2254_v23 = vpop.permute.xlu0 %2253  ;;  %v2250_v19 = vpop.permute.xlu1 %2249 }
 0x5af   : > { %2346 = vst.msk [vmem:[#allocation3 + $0x27] sm:$0xff] %vm2341_vm11, %v2254_v23  ;;  %v2276_v24 = vpop.permute.xlu2 %2275 }
 0x5b0   : > { %2344 = vst.msk [vmem:[#allocation3 + $0x17] sm:$0xff] %vm2341_vm11, %v2250_v19 }
 0x5b1   : > { %2357 = vst.msk [vmem:[#allocation3 + $0x7f] sm:$0xfe] %vm2339_vm12, %v2276_v24 }
 0x5b4   : > { %2409 = vrot.lane.b32.xlu0 %v6766_v20, %s5555_s26  ;;  %2405 = vrot.lane.b32.xlu1 %v6742_v4, %s5555_s26 }
 0x5b5   : > { %2413 = vrot.lane.b32.xlu2 %v6790_v43, %s5555_s26 }
 0x5b6   : > { %v2260_v29 = vpop.permute.xlu0 %2259  ;;  %v2256_v25 = vpop.permute.xlu1 %2255 }
 0x5b7   : > { %2349 = vst.msk [vmem:[#allocation3 + $0x3f] sm:$0xfe] %vm2339_vm12, %v2260_v29  ;;  %v2282_v30 = vpop.permute.xlu2 %2281 }
 0x5b8   : > { %2347 = vst.msk [vmem:[#allocation3 + $0x2f] sm:$0xfe] %vm2339_vm12, %v2256_v25 }
 0x5b9   : > { %2360 = vst.msk [vmem:[#allocation3 + $0x97] sm:$0xff] %vm2341_vm11, %v2282_v30 }
 0x5bc   : > { %2415 = vrot.lane.b32.xlu0 %v6802_v46, %s5555_s26  ;;  %2411 = vrot.lane.b32.xlu1 %v6778_v26, %s5555_s26 }
 0x5bd   : > { %2419 = vrot.lane.b32.xlu2 %v6827_v0, %s5555_s26 }
 0x5be   : > { %v2266_v48 = vpop.permute.xlu0 %2265  ;;  %v2262_v28 = vpop.permute.xlu1 %2261 }
 0x5bf   : > { %2352 = vst.msk [vmem:[#allocation3 + $0x57] sm:$0xff] %vm2341_vm11, %v2266_v48  ;;  %v2288_v44 = vpop.permute.xlu2 %2287 }
 0x5c0   : > { %2350 = vst.msk [vmem:[#allocation3 + $0x47] sm:$0xff] %vm2341_vm11, %v2262_v28 }
 0x5c1   : > { %2363 = vst.msk [vmem:[#allocation3 + $0xaf] sm:$0xfe] %vm2339_vm12, %v2288_v44 }
 0x5c4   : > { %2421 = vrot.lane.b32.xlu0 %v6840_v40, %s5555_s26  ;;  %2417 = vrot.lane.b32.xlu1 %v6814_v54, %s5555_s26 }
 0x5c5   : > { %2425 = vrot.lane.b32.xlu2 %v6872_v16, %s5555_s26 }
 0x5c6   : > { %v2272_v45 = vpop.permute.xlu0 %2271  ;;  %v2268_v50 = vpop.permute.xlu1 %2267 }
 0x5c7   : > { %2355 = vst.msk [vmem:[#allocation3 + $0x6f] sm:$0xfe] %vm2339_vm12, %v2272_v45  ;;  %v2294_v52 = vpop.permute.xlu2 %2293 }
 0x5c8   : > { %2353 = vst.msk [vmem:[#allocation3 + $0x5f] sm:$0xfe] %vm2339_vm12, %v2268_v50 }
 0x5c9   : > { %2366 = vst.msk [vmem:[#allocation3 + $0xc7] sm:$0xff] %vm2341_vm11, %v2294_v52 }
 0x5cc   : > { %2427 = vrot.lane.b32.xlu0 %v6884_v22, %s5555_s26  ;;  %2423 = vrot.lane.b32.xlu1 %v6855_v7, %s5555_s26 }
 0x5cd   : > { %2431 = vrot.lane.b32.xlu2 %v7078_v38, %s5555_s26 }
 0x5ce   : > { %v2278_v53 = vpop.permute.xlu0 %2277  ;;  %v2274_v6 = vpop.permute.xlu1 %2273 }
 0x5cf   : > { %2358 = vst.msk [vmem:[#allocation3 + $0x87] sm:$0xff] %vm2341_vm11, %v2278_v53  ;;  %v2300_v55 = vpop.permute.xlu2 %2299 }
 0x5d0   : > { %2356 = vst.msk [vmem:[#allocation3 + $0x77] sm:$0xff] %vm2341_vm11, %v2274_v6 }
 0x5d1   : > { %2369 = vst.msk [vmem:[#allocation3 + $0xdf] sm:$0xfe] %vm2339_vm12, %v2300_v55 }
 0x5d4   : > { %2495 = vrot.lane.b32.xlu0 %v6700_v60, %s5556_s27  ;;  %2429 = vrot.lane.b32.xlu1 %v7066_v61, %s5555_s26 }
 0x5d5   : > { %2499 = vrot.lane.b32.xlu2 %v6721_v36, %s5556_s27 }
 0x5d6   : > { %v2284_v58 = vpop.permute.xlu0 %2283  ;;  %v2280_v59 = vpop.permute.xlu1 %2279 }
 0x5d7   : > { %2361 = vst.msk [vmem:[#allocation3 + $0x9f] sm:$0xfe] %vm2339_vm12, %v2284_v58  ;;  %v2306_v62 = vpop.permute.xlu2 %2305  ;;  %v2778_v58 = vld [vmem:[%s10411_s3 + $0x40] sm:$0xff] }
 0x5d8   : > { %2359 = vst.msk [vmem:[#allocation3 + $0x8f] sm:$0xfe] %vm2339_vm12, %v2280_v59  ;;  %2887 = vmatpush.msra.mxu1 %v2778_v58  ;;  %5497 = vmatpush.msra.mxu2 %v2778_v58  ;;  %v2777_v59 = vld [vmem:[%s10411_s3 + $0x38] sm:$0xff] }
 0x5d9   : > { %2372 = vst.msk [vmem:[#allocation3 + $0xf7] sm:$0xff] %vm2341_vm11, %v2306_v62  ;;  %v2776_v62 = vld [vmem:[%s10411_s3 + $0x30] sm:$0xff] }
 0x5da   : > { %2888 = vmatpush.msra.mxu1 %v2777_v59  ;;  %5498 = vmatpush.msra.mxu2 %v2777_v59 }
 0x5dc   : > { %2501 = vrot.lane.b32.xlu0 %v6728_v39, %s5556_s27  ;;  %2497 = vrot.lane.b32.xlu1 %v6713_v33, %s5556_s27 }
 0x5dd   : > { %2505 = vrot.lane.b32.xlu2 %v6745_v9, %s5556_s27  ;;  %2889 = vmatpush.msra.mxu1 %v2776_v62 }
 0x5de   : > { %v2290_v31 = vpop.permute.xlu0 %2289  ;;  %v2286_v34 = vpop.permute.xlu1 %2285  ;;  %5499 = vmatpush.msra.mxu2 %v2776_v62 }
 0x5df   : > { %2364 = vst.msk [vmem:[#allocation3 + $0xb7] sm:$0xff] %vm2341_vm11, %v2290_v31  ;;  %v2378_v35 = vpop.permute.xlu2 %2377  ;;  %v2774_v31 = vld [vmem:[%s10411_s3 + $0x20] sm:$0xff] }
 0x5e0   : > { %2362 = vst.msk [vmem:[#allocation3 + $0xa7] sm:$0xff] %vm2341_vm11, %v2286_v34 }
 0x5e1   : > { %2467 = vst.msk [vmem:[#allocation3 + $0x11] sm:$0xff] %vm2463_vm13, %v2378_v35 }
 0x5e4   : > { %2507 = vrot.lane.b32.xlu0 %v6757_v15, %s5556_s27  ;;  %2503 = vrot.lane.b32.xlu1 %v6735_v42, %s5556_s27 }
 0x5e5   : > { %2511 = vrot.lane.b32.xlu2 %v6781_v27, %s5556_s27 }
 0x5e6   : > { %v2296_v37 = vpop.permute.xlu0 %2295  ;;  %v2292_v47 = vpop.permute.xlu1 %2291 }
 0x5e7   : > { %2367 = vst.msk [vmem:[#allocation3 + $0xcf] sm:$0xfe] %vm2339_vm12, %v2296_v37  ;;  %v2384_v56 = vpop.permute.xlu2 %2383 }
 0x5e8   : > { %2365 = vst.msk [vmem:[#allocation3 + $0xbf] sm:$0xfe] %vm2339_vm12, %v2292_v47  ;;  %v2773_v47 = vld [vmem:[%s10411_s3 + $0x18] sm:$0xff] }
 0x5e9   : > { %2470 = vst.msk [vmem:[#allocation3 + $0x29] sm:$0x7f] %vm2465_vm14, %v2384_v56  ;;  %v2772_v56 = vld [vmem:[%s10411_s3 + $0x10] sm:$0xff] }
 0x5ec   : > { %2513 = vrot.lane.b32.xlu0 %v6793_v49, %s5556_s27  ;;  %2509 = vrot.lane.b32.xlu1 %v6769_v21, %s5556_s27 }
 0x5ed   : > { %2517 = vrot.lane.b32.xlu2 %v6817_v57, %s5556_s27 }
 0x5ee   : > { %v2302_v41 = vpop.permute.xlu0 %2301  ;;  %v2298_v2 = vpop.permute.xlu1 %2297 }
 0x5ef   : > { %2370 = vst.msk [vmem:[#allocation3 + $0xe7] sm:$0xff] %vm2341_vm11, %v2302_v41  ;;  %v2390_v3 = vpop.permute.xlu2 %2389  ;;  %v2771_v41 = vld [vmem:[%s10411_s3 + $0x8] sm:$0xff] }
 0x5f0   : > { %2368 = vst.msk [vmem:[#allocation3 + $0xd7] sm:$0xff] %vm2341_vm11, %v2298_v2  ;;  %v2770_v2 = vld [vmem:[%s10411_s3] sm:$0xff]  ;;  %vm4024_vm11 = vcmask 654336  }
 0x5f1   : > { %2473 = vst.msk [vmem:[#allocation3 + $0x41] sm:$0xff] %vm2463_vm13, %v2390_v3 }
 0x5f4   : > { %2519 = vrot.lane.b32.xlu0 %v6830_v32, %s5556_s27  ;;  %2515 = vrot.lane.b32.xlu1 %v6805_v51, %s5556_s27 }
 0x5f5   : > { %2523 = vrot.lane.b32.xlu2 %v6860_v10, %s5556_s27 }
 0x5f6   : > { %v2374_v5 = vpop.permute.xlu0 %2373  ;;  %v2304_v8 = vpop.permute.xlu1 %2303 }
 0x5f7   : > { %2464 = vst.msk [vmem:[#allocation3 + $0x1] sm:$0xff] %vm2463_vm13, %v2374_v5  ;;  %v2396_v11 = vpop.permute.xlu2 %2395 }
 0x5f8   : > { %2371 = vst.msk [vmem:[#allocation3 + $0xef] sm:$0xfe] %vm2339_vm12, %v2304_v8  ;;  %vm4041_vm12 = vcmask 719872  }
 0x5f9   : > { %2476 = vst.msk [vmem:[#allocation3 + $0x59] sm:$0x7f] %vm2465_vm14, %v2396_v11 }
 0x5fc   : > { %2525 = vrot.lane.b32.xlu0 %v6708_v63, %s5556_s27  ;;  %2521 = vrot.lane.b32.xlu1 %v6845_v1, %s5556_s27 }
 0x5fd   : > { %2529 = vrot.lane.b32.xlu2 %v6754_v14, %s5556_s27 }
 0x5fe   : > { %v2380_v12 = vpop.permute.xlu0 %2379  ;;  %v2376_v17 = vpop.permute.xlu1 %2375 }
 0x5ff   : > { %2468 = vst.msk [vmem:[#allocation3 + $0x19] sm:$0x7f] %vm2465_vm14, %v2380_v12  ;;  %v2402_v13 = vpop.permute.xlu2 %2401 }
 0x600   : > { %2466 = vst.msk [vmem:[#allocation3 + $0x9] sm:$0x7f] %vm2465_vm14, %v2376_v17 }
 0x601   : > { %2479 = vst.msk [vmem:[#allocation3 + $0x71] sm:$0xff] %vm2463_vm13, %v2402_v13 }
 0x604   : > { %2531 = vrot.lane.b32.xlu0 %v6766_v20, %s5556_s27  ;;  %2527 = vrot.lane.b32.xlu1 %v6742_v4, %s5556_s27 }
 0x605   : > { %2535 = vrot.lane.b32.xlu2 %v6790_v43, %s5556_s27 }
 0x606   : > { %v2386_v18 = vpop.permute.xlu0 %2385  ;;  %v2382_v23 = vpop.permute.xlu1 %2381 }
 0x607   : > { %2471 = vst.msk [vmem:[#allocation3 + $0x31] sm:$0xff] %vm2463_vm13, %v2386_v18  ;;  %v2408_v19 = vpop.permute.xlu2 %2407 }
 0x608   : > { %2469 = vst.msk [vmem:[#allocation3 + $0x21] sm:$0xff] %vm2463_vm13, %v2382_v23 }
 0x609   : > { %2482 = vst.msk [vmem:[#allocation3 + $0x89] sm:$0x7f] %vm2465_vm14, %v2408_v19 }
 0x60c   : > { %2537 = vrot.lane.b32.xlu0 %v6802_v46, %s5556_s27  ;;  %2533 = vrot.lane.b32.xlu1 %v6778_v26, %s5556_s27 }
 0x60d   : > { %2541 = vrot.lane.b32.xlu2 %v6827_v0, %s5556_s27 }
 0x60e   : > { %v2392_v24 = vpop.permute.xlu0 %2391  ;;  %v2388_v29 = vpop.permute.xlu1 %2387 }
 0x60f   : > { %2474 = vst.msk [vmem:[#allocation3 + $0x49] sm:$0x7f] %vm2465_vm14, %v2392_v24  ;;  %v2414_v25 = vpop.permute.xlu2 %2413 }
 0x610   : > { %2472 = vst.msk [vmem:[#allocation3 + $0x39] sm:$0x7f] %vm2465_vm14, %v2388_v29 }
 0x611   : > { %2485 = vst.msk [vmem:[#allocation3 + $0xa1] sm:$0xff] %vm2463_vm13, %v2414_v25 }
 0x614   : > { %2543 = vrot.lane.b32.xlu0 %v6840_v40, %s5556_s27  ;;  %2539 = vrot.lane.b32.xlu1 %v6814_v54, %s5556_s27 }
 0x615   : > { %2547 = vrot.lane.b32.xlu2 %v6872_v16, %s5556_s27 }
 0x616   : > { %v2398_v30 = vpop.permute.xlu0 %2397  ;;  %v2394_v48 = vpop.permute.xlu1 %2393 }
 0x617   : > { %2477 = vst.msk [vmem:[#allocation3 + $0x61] sm:$0xff] %vm2463_vm13, %v2398_v30  ;;  %v2420_v28 = vpop.permute.xlu2 %2419 }
 0x618   : > { %2475 = vst.msk [vmem:[#allocation3 + $0x51] sm:$0xff] %vm2463_vm13, %v2394_v48 }
 0x619   : > { %2488 = vst.msk [vmem:[#allocation3 + $0xb9] sm:$0x7f] %vm2465_vm14, %v2420_v28 }
 0x61c   : > { %2549 = vrot.lane.b32.xlu0 %v6884_v22, %s5556_s27  ;;  %2545 = vrot.lane.b32.xlu1 %v6855_v7, %s5556_s27 }
 0x61d   : > { %2553 = vrot.lane.b32.xlu2 %v7078_v38, %s5556_s27 }
 0x61e   : > { %v2404_v44 = vpop.permute.xlu0 %2403  ;;  %v2400_v45 = vpop.permute.xlu1 %2399 }
 0x61f   : > { %2480 = vst.msk [vmem:[#allocation3 + $0x79] sm:$0x7f] %vm2465_vm14, %v2404_v44  ;;  %v2426_v50 = vpop.permute.xlu2 %2425 }
 0x620   : > { %2478 = vst.msk [vmem:[#allocation3 + $0x69] sm:$0x7f] %vm2465_vm14, %v2400_v45 }
 0x621   : > { %2491 = vst.msk [vmem:[#allocation3 + $0xd1] sm:$0xff] %vm2463_vm13, %v2426_v50 }
 0x624   : > { %2616 = vrot.lane.b32.xlu0 %v6700_v60, %s5557_s29  ;;  %2551 = vrot.lane.b32.xlu1 %v7066_v61, %s5556_s27 }
 0x625   : > { %2620 = vrot.lane.b32.xlu2 %v6721_v36, %s5557_s29 }
 0x626   : > { %v2410_v52 = vpop.permute.xlu0 %2409  ;;  %v2406_v53 = vpop.permute.xlu1 %2405 }
 0x627   : > { %2483 = vst.msk [vmem:[#allocation3 + $0x91] sm:$0xff] %vm2463_vm13, %v2410_v52  ;;  %v2432_v6 = vpop.permute.xlu2 %2431 }
 0x628   : > { %2481 = vst.msk [vmem:[#allocation3 + $0x81] sm:$0xff] %vm2463_vm13, %v2406_v53 }
 0x629   : > { %2494 = vst.msk [vmem:[#allocation3 + $0xe9] sm:$0x7f] %vm2465_vm14, %v2432_v6 }
 0x62c   : > { %2622 = vrot.lane.b32.xlu0 %v6728_v39, %s5557_s29  ;;  %2618 = vrot.lane.b32.xlu1 %v6713_v33, %s5557_s29 }
 0x62d   : > { %2626 = vrot.lane.b32.xlu2 %v6745_v9, %s5557_s29 }
 0x62e   : > { %v2416_v60 = vpop.permute.xlu0 %2415  ;;  %v2412_v36 = vpop.permute.xlu1 %2411 }
 0x62f   : > { %2486 = vst.msk [vmem:[#allocation3 + $0xa9] sm:$0x7f] %vm2465_vm14, %v2416_v60  ;;  %v2500_v55 = vpop.permute.xlu2 %2499 }
 0x630   : > { %2484 = vst.msk [vmem:[#allocation3 + $0x99] sm:$0x7f] %vm2465_vm14, %v2412_v36 }
 0x631   : > { %2588 = vst.msk [vmem:[#allocation3 + $0x10] sm:$0xff] %vm2585_vm15, %v2500_v55 }
 0x634   : > { %2628 = vrot.lane.b32.xlu0 %v6757_v15, %s5557_s29  ;;  %2624 = vrot.lane.b32.xlu1 %v6735_v42, %s5557_s29 }
 0x635   : > { %2632 = vrot.lane.b32.xlu2 %v6781_v27, %s5557_s29 }
 0x636   : > { %v2422_v33 = vpop.permute.xlu0 %2421  ;;  %v2418_v39 = vpop.permute.xlu1 %2417 }
 0x637   : > { %2489 = vst.msk [vmem:[#allocation3 + $0xc1] sm:$0xff] %vm2463_vm13, %v2422_v33  ;;  %v2506_v9 = vpop.permute.xlu2 %2505 }
 0x638   : > { %2487 = vst.msk [vmem:[#allocation3 + $0xb1] sm:$0xff] %vm2463_vm13, %v2418_v39 }
 0x639   : > { %2591 = vst.msk [vmem:[#allocation3 + $0x28] sm:$0xff] %vm2585_vm15, %v2506_v9 }
 0x63c   : > { %2634 = vrot.lane.b32.xlu0 %v6793_v49, %s5557_s29  ;;  %2630 = vrot.lane.b32.xlu1 %v6769_v21, %s5557_s29 }
 0x63d   : > { %2638 = vrot.lane.b32.xlu2 %v6817_v57, %s5557_s29 }
 0x63e   : > { %v2428_v42 = vpop.permute.xlu0 %2427  ;;  %v2424_v15 = vpop.permute.xlu1 %2423 }
 0x63f   : > { %2492 = vst.msk [vmem:[#allocation3 + $0xd9] sm:$0x7f] %vm2465_vm14, %v2428_v42  ;;  %v2512_v27 = vpop.permute.xlu2 %2511 }
 0x640   : > { %2490 = vst.msk [vmem:[#allocation3 + $0xc9] sm:$0x7f] %vm2465_vm14, %v2424_v15  ;;  %vm4075_vm14 = vcmask 850944  }
 0x641   : > { %2594 = vst.msk [vmem:[#allocation3 + $0x40] sm:$0xff] %vm2585_vm15, %v2512_v27 }
 0x644   : > { %2640 = vrot.lane.b32.xlu0 %v6830_v32, %s5557_s29  ;;  %2636 = vrot.lane.b32.xlu1 %v6805_v51, %s5557_s29 }
 0x645   : > { %2644 = vrot.lane.b32.xlu2 %v6860_v10, %s5557_s29 }
 0x646   : > { %v2496_v21 = vpop.permute.xlu0 %2495  ;;  %v2430_v49 = vpop.permute.xlu1 %2429 }
 0x647   : > { %2586 = vst.msk [vmem:[#allocation3] sm:$0xff] %vm2585_vm15, %v2496_v21  ;;  %v2518_v57 = vpop.permute.xlu2 %2517 }
 0x648   : > { %2493 = vst.msk [vmem:[#allocation3 + $0xe1] sm:$0xff] %vm2463_vm13, %v2430_v49  ;;  %vm4058_vm13 = vcmask 785408  }
 0x649   : > { %2597 = vst.msk [vmem:[#allocation3 + $0x58] sm:$0xff] %vm2585_vm15, %v2518_v57 }
 0x64c   : > { %2646 = vrot.lane.b32.xlu0 %v6708_v63, %s5557_s29  ;;  %2642 = vrot.lane.b32.xlu1 %v6845_v1, %s5557_s29 }
 0x64d   : > { %2650 = vrot.lane.b32.xlu2 %v6754_v14, %s5557_s29 }
 0x64e   : > { %v2502_v51 = vpop.permute.xlu0 %2501  ;;  %v2498_v32 = vpop.permute.xlu1 %2497 }
 0x64f   : > { %2589 = vst.msk [vmem:[#allocation3 + $0x18] sm:$0xff] %vm2585_vm15, %v2502_v51  ;;  %v2524_v10 = vpop.permute.xlu2 %2523 }
 0x650   : > { %2587 = vst.msk [vmem:[#allocation3 + $0x8] sm:$0xff] %vm2585_vm15, %v2498_v32 }
 0x651   : > { %2600 = vst.msk [vmem:[#allocation3 + $0x70] sm:$0xff] %vm2585_vm15, %v2524_v10 }
 0x654   : > { %2652 = vrot.lane.b32.xlu0 %v6766_v20, %s5557_s29  ;;  %2648 = vrot.lane.b32.xlu1 %v6742_v4, %s5557_s29 }
 0x655   : > { %2656 = vrot.lane.b32.xlu2 %v6790_v43, %s5557_s29 }
 0x656   : > { %v2508_v63 = vpop.permute.xlu0 %2507  ;;  %v2504_v14 = vpop.permute.xlu1 %2503 }
 0x657   : > { %2592 = vst.msk [vmem:[#allocation3 + $0x30] sm:$0xff] %vm2585_vm15, %v2508_v63  ;;  %v2530_v1 = vpop.permute.xlu2 %2529 }
 0x658   : > { %2590 = vst.msk [vmem:[#allocation3 + $0x20] sm:$0xff] %vm2585_vm15, %v2504_v14 }
 0x659   : > { %2603 = vst.msk [vmem:[#allocation3 + $0x88] sm:$0xff] %vm2585_vm15, %v2530_v1 }
 0x65c   : > { %2658 = vrot.lane.b32.xlu0 %v6802_v46, %s5557_s29  ;;  %2654 = vrot.lane.b32.xlu1 %v6778_v26, %s5557_s29 }
 0x65d   : > { %2662 = vrot.lane.b32.xlu2 %v6827_v0, %s5557_s29 }
 0x65e   : > { %v2514_v4 = vpop.permute.xlu0 %2513  ;;  %v2510_v20 = vpop.permute.xlu1 %2509 }
 0x65f   : > { %2595 = vst.msk [vmem:[#allocation3 + $0x48] sm:$0xff] %vm2585_vm15, %v2514_v4  ;;  %v2536_v43 = vpop.permute.xlu2 %2535 }
 0x660   : > { %2593 = vst.msk [vmem:[#allocation3 + $0x38] sm:$0xff] %vm2585_vm15, %v2510_v20 }
 0x661   : > { %2606 = vst.msk [vmem:[#allocation3 + $0xa0] sm:$0xff] %vm2585_vm15, %v2536_v43 }
 0x664   : > { %2664 = vrot.lane.b32.xlu0 %v6840_v40, %s5557_s29  ;;  %2660 = vrot.lane.b32.xlu1 %v6814_v54, %s5557_s29 }
 0x665   : > { %2668 = vrot.lane.b32.xlu2 %v6872_v16, %s5557_s29 }
 0x666   : > { %v2520_v26 = vpop.permute.xlu0 %2519  ;;  %v2516_v46 = vpop.permute.xlu1 %2515 }
 0x667   : > { %2598 = vst.msk [vmem:[#allocation3 + $0x60] sm:$0xff] %vm2585_vm15, %v2520_v26  ;;  %v2542_v0 = vpop.permute.xlu2 %2541 }
 0x668   : > { %2596 = vst.msk [vmem:[#allocation3 + $0x50] sm:$0xff] %vm2585_vm15, %v2516_v46 }
 0x669   : > { %2609 = vst.msk [vmem:[#allocation3 + $0xb8] sm:$0xff] %vm2585_vm15, %v2542_v0 }
 0x66c   : > { %2670 = vrot.lane.b32.xlu0 %v6884_v22, %s5557_s29  ;;  %2666 = vrot.lane.b32.xlu1 %v6855_v7, %s5557_s29 }
 0x66d   : > { %2674 = vrot.lane.b32.xlu2 %v7078_v38, %s5557_s29 }
 0x66e   : > { %v2526_v54 = vpop.permute.xlu0 %2525  ;;  %v2522_v40 = vpop.permute.xlu1 %2521 }
 0x66f   : > { %2601 = vst.msk [vmem:[#allocation3 + $0x78] sm:$0xff] %vm2585_vm15, %v2526_v54  ;;  %v2548_v16 = vpop.permute.xlu2 %2547 }
 0x670   : > { %2599 = vst.msk [vmem:[#allocation3 + $0x68] sm:$0xff] %vm2585_vm15, %v2522_v40 }
 0x671   : > { %2612 = vst.msk [vmem:[#allocation3 + $0xd0] sm:$0xff] %vm2585_vm15, %v2548_v16 }
 0x674   : > { %2672 = vrot.lane.b32.xlu1 %v7066_v61, %s5557_s29  ;;  %v2775_v61 = vld [vmem:[%s10411_s3 + $0x28] sm:$0xff] }
 0x675   : > { %2890 = vmatpush.msra.mxu1 %v2775_v61  ;;  %5500 = vmatpush.msra.mxu2 %v2775_v61 }
 0x676   : > { %v2532_v7 = vpop.permute.xlu0 %2531  ;;  %v2528_v22 = vpop.permute.xlu1 %2527 }
 0x677   : > { %2604 = vst.msk [vmem:[#allocation3 + $0x90] sm:$0xff] %vm2585_vm15, %v2532_v7  ;;  %v2554_v38 = vpop.permute.xlu2 %2553  ;;  %2891 = vmatpush.msra.mxu1 %v2774_v31  ;;  %5501 = vmatpush.msra.mxu2 %v2774_v31 }
 0x678   : > { %2602 = vst.msk [vmem:[#allocation3 + $0x80] sm:$0xff] %vm2585_vm15, %v2528_v22 }
 0x679   : > { %2615 = vst.msk [vmem:[#allocation3 + $0xe8] sm:$0xff] %vm2585_vm15, %v2554_v38  ;;  %2892 = vmatpush.msra.mxu1 %v2773_v47  ;;  %5502 = vmatpush.msra.mxu2 %v2773_v47 }
 0x67b   : > { %2893 = vmatpush.msra.mxu1 %v2772_v56  ;;  %5503 = vmatpush.msra.mxu2 %v2772_v56  ;;  %v7638_v56 = vld [vmem:[%s10412_s4] ss:$0 sm:$0xff] }
 0x67d   : > { %2894 = vmatpush.msra.mxu1 %v2771_v41  ;;  %5504 = vmatpush.msra.mxu2 %v2771_v41 }
 0x67e   : > { %v2538_v34 = vpop.permute.xlu0 %2537  ;;  %v2534_v35 = vpop.permute.xlu1 %2533 }
 0x67f   : > { %2607 = vst.msk [vmem:[#allocation3 + $0xa8] sm:$0xff] %vm2585_vm15, %v2538_v34  ;;  %v2621_v37 = vpop.permute.xlu2 %2620  ;;  %2895 = vmatpush.msra.mxu1 %v2770_v2  ;;  %5505 = vmatpush.msra.mxu2 %v2770_v2 }
 0x680   : > { %2605 = vst.msk [vmem:[#allocation3 + $0x98] sm:$0xff] %vm2585_vm15, %v2534_v35 }
 0x681   : > { %2710 = vst.msk [vmem:[#allocation3 + $0xf] sm:$0xfe] %vm2706_vm0, %v2621_v37 }
 0x686   : > { %v2544_v3 = vpop.permute.xlu0 %2543  ;;  %v2540_v5 = vpop.permute.xlu1 %2539 }
 0x687   : > { %2610 = vst.msk [vmem:[#allocation3 + $0xc0] sm:$0xff] %vm2585_vm15, %v2544_v3  ;;  %v2627_v8 = vpop.permute.xlu2 %2626 }
 0x688   : > { %2608 = vst.msk [vmem:[#allocation3 + $0xb0] sm:$0xff] %vm2585_vm15, %v2540_v5 }
 0x689   : > { %2713 = vst.msk [vmem:[#allocation3 + $0x27] sm:$0xff] %vm2708_vm1, %v2627_v8 }
 0x68e   : > { %v2550_v11 = vpop.permute.xlu0 %2549  ;;  %v2546_v12 = vpop.permute.xlu1 %2545 }
 0x68f   : > { %2613 = vst.msk [vmem:[#allocation3 + $0xd8] sm:$0xff] %vm2585_vm15, %v2550_v11  ;;  %v2633_v17 = vpop.permute.xlu2 %2632 }
 0x690   : > { %2611 = vst.msk [vmem:[#allocation3 + $0xc8] sm:$0xff] %vm2585_vm15, %v2546_v12  ;;  %v2743_v51 = vld [vmem:[#allocation3 + $0x28] sm:$0xff] }
 0x691   : > { %2716 = vst.msk [vmem:[#allocation3 + $0x3f] sm:$0xfe] %vm2706_vm0, %v2633_v17 }
 0x696   : > { %v2617_v13 = vpop.permute.xlu0 %2616  ;;  %v2552_v18 = vpop.permute.xlu1 %2551 }
 0x697   : > { %2707 = vst.msk [vmem:[#allocation3 - $0x1] sm:$0xfe] %vm2706_vm0, %v2617_v13  ;;  %v2639_v23 = vpop.permute.xlu2 %2638 }
 0x698   : > { %2614 = vst.msk [vmem:[#allocation3 + $0xe0] sm:$0xff] %vm2585_vm15, %v2552_v18  ;;  %vm4092_vm15 = vcmask 916480  }
 0x699   : > { %2719 = vst.msk [vmem:[#allocation3 + $0x57] sm:$0xff] %vm2708_vm1, %v2639_v23 }
 0x69e   : > { %v2623_v19 = vpop.permute.xlu0 %2622  ;;  %v2619_v24 = vpop.permute.xlu1 %2618 }
 0x69f   : > { %2711 = vst.msk [vmem:[#allocation3 + $0x17] sm:$0xff] %vm2708_vm1, %v2623_v19  ;;  %v2645_v29 = vpop.permute.xlu2 %2644  ;;  %v2768_v19 = vld [vmem:[#allocation3 + $0xf0] sm:$0xff] }
 0x6a0   : > { %2709 = vst.msk [vmem:[#allocation3 + $0x7] sm:$0xff] %vm2708_vm1, %v2619_v24  ;;  %v2749_v22 = vld [vmem:[#allocation3 + $0x58] sm:$0xff] }
 0x6a1   : > { %2722 = vst.msk [vmem:[#allocation3 + $0x6f] sm:$0xfe] %vm2706_vm0, %v2645_v29 }
 0x6a6   : > { %v2629_v25 = vpop.permute.xlu0 %2628  ;;  %v2625_v30 = vpop.permute.xlu1 %2624  ;;  %v2740_v36 = vld [vmem:[#allocation3 + $0x10] sm:$0xff]  ;;  %v2741_v9 = vld [vmem:[#allocation3 + $0x18] sm:$0xff] }
 0x6a7   : > { %2714 = vst.msk [vmem:[#allocation3 + $0x2f] sm:$0xfe] %vm2706_vm0, %v2629_v25  ;;  %v2651_v48 = vpop.permute.xlu2 %2650  ;;  %v2738_v28 = vld [vmem:[#allocation3] sm:$0xff]  ;;  %v2739_v52 = vld [vmem:[#allocation3 + $0x8] sm:$0xff]  ;;  %v2769_v25 = vld [vmem:[#allocation3 + $0xf8] sm:$0xff] }
 0x6a8   : > { %2712 = vst.msk [vmem:[#allocation3 + $0x1f] sm:$0xfe] %vm2706_vm0, %v2625_v30  ;;  %5456 = vmatmul.msk.f32.vlgmr.msra.gmra.mxu1 %vm2783_vm2, %v2738_v28 }
 0x6a9   : > { %2725 = vst.msk [vmem:[#allocation3 + $0x87] sm:$0xff] %vm2708_vm1, %v2651_v48 }
 0x6ae   : > { %v2635_v44 = vpop.permute.xlu0 %2634  ;;  %v2631_v45 = vpop.permute.xlu1 %2630 }
 0x6af   : > { %2717 = vst.msk [vmem:[#allocation3 + $0x47] sm:$0xff] %vm2708_vm1, %v2635_v44  ;;  %v2657_v50 = vpop.permute.xlu2 %2656  ;;  %v2742_v21 = vld [vmem:[#allocation3 + $0x20] sm:$0xff] }
 0x6b0   : > { %2715 = vst.msk [vmem:[#allocation3 + $0x37] sm:$0xff] %vm2708_vm1, %v2631_v45  ;;  %5457 = vmatmul.msk.f32.gmra.mxu1 %vm2783_vm2, %v2739_v52  ;;  %v2755_v1 = vld [vmem:[#allocation3 + $0x88] sm:$0xff] }
 0x6b1   : > { %2728 = vst.msk [vmem:[#allocation3 + $0x9f] sm:$0xfe] %vm2706_vm0, %v2657_v50 }
 0x6b6   : > { %v2641_v53 = vpop.permute.xlu0 %2640  ;;  %v2637_v6 = vpop.permute.xlu1 %2636  ;;  %v2746_v0 = vld [vmem:[#allocation3 + $0x40] sm:$0xff]  ;;  %v2747_v40 = vld [vmem:[#allocation3 + $0x48] sm:$0xff] }
 0x6b7   : > { %2720 = vst.msk [vmem:[#allocation3 + $0x5f] sm:$0xfe] %vm2706_vm0, %v2641_v53  ;;  %v2663_v60 = vpop.permute.xlu2 %2662  ;;  %v2744_v14 = vld [vmem:[#allocation3 + $0x30] sm:$0xff]  ;;  %v2745_v43 = vld [vmem:[#allocation3 + $0x38] sm:$0xff] }
 0x6b8   : > { %2718 = vst.msk [vmem:[#allocation3 + $0x4f] sm:$0xfe] %vm2706_vm0, %v2637_v6  ;;  %5458 = vmatmul.msk.f32.gmra.mxu1 %vm2783_vm2, %v2740_v36 }
 0x6b9   : > { %2731 = vst.msk [vmem:[#allocation3 + $0xb7] sm:$0xff] %vm2708_vm1, %v2663_v60 }
 0x6be   : > { %v2647_v55 = vpop.permute.xlu0 %2646  ;;  %v2643_v33 = vpop.permute.xlu1 %2642 }
 0x6bf   : > { %2723 = vst.msk [vmem:[#allocation3 + $0x77] sm:$0xff] %vm2708_vm1, %v2647_v55  ;;  %v2669_v39 = vpop.permute.xlu2 %2668  ;;  %v2748_v58 = vld [vmem:[#allocation3 + $0x50] sm:$0xff] }
 0x6c0   : > { %2721 = vst.msk [vmem:[#allocation3 + $0x67] sm:$0xff] %vm2708_vm1, %v2643_v33  ;;  %5459 = vmatmul.msk.f32.gmra.mxu1 %vm2783_vm2, %v2741_v9  ;;  %v2761_v62 = vld [vmem:[#allocation3 + $0xb8] sm:$0xff] }
 0x6c1   : > { %2734 = vst.msk [vmem:[#allocation3 + $0xcf] sm:$0xfe] %vm2706_vm0, %v2669_v39 }
 0x6c6   : > { %v2653_v42 = vpop.permute.xlu0 %2652  ;;  %v2649_v15 = vpop.permute.xlu1 %2648  ;;  %v2752_v34 = vld [vmem:[#allocation3 + $0x70] sm:$0xff]  ;;  %v2753_v37 = vld [vmem:[#allocation3 + $0x78] sm:$0xff] }
 0x6c7   : > { %2726 = vst.msk [vmem:[#allocation3 + $0x8f] sm:$0xfe] %vm2706_vm0, %v2653_v42  ;;  %v2675_v27 = vpop.permute.xlu2 %2674  ;;  %v2750_v59 = vld [vmem:[#allocation3 + $0x60] sm:$0xff]  ;;  %v2751_v61 = vld [vmem:[#allocation3 + $0x68] sm:$0xff] }
 0x6c8   : > { %2724 = vst.msk [vmem:[#allocation3 + $0x7f] sm:$0xfe] %vm2706_vm0, %v2649_v15  ;;  %5460 = vmatmul.msk.f32.gmra.mxu1 %vm2783_vm2, %v2742_v21 }
 0x6c9   : > { %2737 = vst.msk [vmem:[#allocation3 + $0xe7] sm:$0xff] %vm2708_vm1, %v2675_v27 }
 0x6ce   : > { %v2659_v49 = vpop.permute.xlu0 %2658  ;;  %v2655_v57 = vpop.permute.xlu1 %2654 }
 0x6cf   : > { %2729 = vst.msk [vmem:[#allocation3 + $0xa7] sm:$0xff] %vm2708_vm1, %v2659_v49  ;;  %v2754_v32 = vld [vmem:[#allocation3 + $0x80] sm:$0xff] }
 0x6d0   : > { %2727 = vst.msk [vmem:[#allocation3 + $0x97] sm:$0xff] %vm2708_vm1, %v2655_v57  ;;  %5461 = vmatmul.msk.f32.gmra.mxu1 %vm2783_vm2, %v2743_v51  ;;  %5472 = vmatmul.msk.f32.vlgmr.msra.gmra.mxu2 %vm2783_vm2, %v2754_v32  ;;  %v2767_v13 = vld [vmem:[#allocation3 + $0xe8] sm:$0xff] }
 0x6d6   : > { %v2665_v10 = vpop.permute.xlu0 %2664  ;;  %v2661_v63 = vpop.permute.xlu1 %2660  ;;  %v2758_v16 = vld [vmem:[#allocation3 + $0xa0] sm:$0xff]  ;;  %v2759_v7 = vld [vmem:[#allocation3 + $0xa8] sm:$0xff] }
 0x6d7   : > { %2732 = vst.msk [vmem:[#allocation3 + $0xbf] sm:$0xfe] %vm2706_vm0, %v2665_v10  ;;  %v2756_v26 = vld [vmem:[#allocation3 + $0x90] sm:$0xff]  ;;  %v2757_v54 = vld [vmem:[#allocation3 + $0x98] sm:$0xff] }
 0x6d8   : > { %2730 = vst.msk [vmem:[#allocation3 + $0xaf] sm:$0xfe] %vm2706_vm0, %v2661_v63  ;;  %5462 = vmatmul.msk.f32.gmra.mxu1 %vm2783_vm2, %v2744_v14  ;;  %5473 = vmatmul.msk.f32.gmra.mxu2 %vm2783_vm2, %v2755_v1 }
 0x6de   : > { %v2671_v4 = vpop.permute.xlu0 %2670  ;;  %v2667_v20 = vpop.permute.xlu1 %2666 }
 0x6df   : > { %2735 = vst.msk [vmem:[#allocation3 + $0xd7] sm:$0xff] %vm2708_vm1, %v2671_v4  ;;  %v2760_v38 = vld [vmem:[#allocation3 + $0xb0] sm:$0xff] }
 0x6e0   : > { %2733 = vst.msk [vmem:[#allocation3 + $0xc7] sm:$0xff] %vm2708_vm1, %v2667_v20  ;;  %5463 = vmatmul.msk.f32.gmra.mxu1 %vm2783_vm2, %v2745_v43  ;;  %5474 = vmatmul.msk.f32.gmra.mxu2 %vm2783_vm2, %v2756_v26  ;;  %vm5294_vm1 = vcmask 1041408  }
 0x6e6   : > { %v2673_v46 = vpop.permute.xlu1 %2672  ;;  %v2764_v47 = vld [vmem:[#allocation3 + $0xd0] sm:$0xff]  ;;  %v2765_v3 = vld [vmem:[#allocation3 + $0xd8] sm:$0xff] }
 0x6e7   : > { %2736 = vst.msk [vmem:[#allocation3 + $0xdf] sm:$0xfe] %vm2706_vm0, %v2673_v46  ;;  %v2762_v31 = vld [vmem:[#allocation3 + $0xc0] sm:$0xff]  ;;  %v2763_v35 = vld [vmem:[#allocation3 + $0xc8] sm:$0xff]  ;;  %vm4109_vm0 = vcmask 982016  }
 0x6e8   : > { %5464 = vmatmul.msk.f32.gmra.mxu1 %vm2783_vm2, %v2746_v0  ;;  %5475 = vmatmul.msk.f32.gmra.mxu2 %vm2783_vm2, %v2757_v54 }
 0x6ee   : > { %v2766_v11 = vld [vmem:[#allocation3 + $0xe0] sm:$0xff] }
 0x6f0   : > { %5465 = vmatmul.msk.f32.gmra.mxu1 %vm2783_vm2, %v2747_v40  ;;  %5476 = vmatmul.msk.f32.gmra.mxu2 %vm2783_vm2, %v2758_v16 }
 0x6f8   : > { %5466 = vmatmul.msk.f32.gmra.mxu1 %vm2783_vm2, %v2748_v58  ;;  %5477 = vmatmul.msk.f32.gmra.mxu2 %vm2783_vm2, %v2759_v7 }
 0x700   : > { %5467 = vmatmul.msk.f32.gmra.mxu1 %vm2783_vm2, %v2749_v22  ;;  %5478 = vmatmul.msk.f32.gmra.mxu2 %vm2783_vm2, %v2760_v38 }
 0x708   : > { %5468 = vmatmul.msk.f32.gmra.mxu1 %vm2783_vm2, %v2750_v59  ;;  %5479 = vmatmul.msk.f32.gmra.mxu2 %vm2783_vm2, %v2761_v62 }
 0x710   : > { %5469 = vmatmul.msk.f32.gmra.mxu1 %vm2783_vm2, %v2751_v61  ;;  %5480 = vmatmul.msk.f32.gmra.mxu2 %vm2783_vm2, %v2762_v31 }
 0x718   : > { %5470 = vmatmul.msk.f32.gmra.mxu1 %vm2783_vm2, %v2752_v34  ;;  %5481 = vmatmul.msk.f32.gmra.mxu2 %vm2783_vm2, %v2763_v35 }
 0x720   : > { %5471 = vmatmul.msk.f32.gmra.mxu1 %vm2783_vm2, %v2753_v37  ;;  %5482 = vmatmul.msk.f32.gmra.mxu2 %vm2783_vm2, %v2764_v47 }
 0x725   : > { %v2897_v41 = vpop.f32.mrf.mxu1 }
 0x726   : > { %v2898_v2 = vadd.f32 %v7638_v56, %v2897_v41 }
 0x728   : > { %v7641_v5 = vmax.f32 %v2898_v2, 0.0  ;;  %5483 = vmatmul.msk.f32.gmra.mxu2 %vm2783_vm2, %v2765_v3 }
 0x72a   : > { %10441 = vst [vmem:[#allocation4_spill] sm:$0xff] %v7641_v5  ;;  %3041 = vrot.lane.b32.xlu0 %v7641_v5, %s5547_s30  ;;  %v3089_v35 = vrot.slane %v7641_v5, 1 }
 0x72d   : > { %v7646_v8 = vpop.f32.mrf.mxu1 }
 0x730   : > { %5484 = vmatmul.msk.f32.gmra.mxu2 %vm2783_vm2, %v2766_v11 }
 0x735   : > { %v2903_v12 = vpop.f32.mrf.mxu1 }
 0x736   : > { %v2904_v17 = vadd.f32 %v7638_v56, %v2903_v12 }
 0x738   : > { %v7650_v18 = vmax.f32 %v2904_v17, 0.0  ;;  %5485 = vmatmul.msk.f32.gmra.mxu2 %vm2783_vm2, %v2767_v13 }
 0x73a   : > { %10442 = vst [vmem:[#allocation5_spill] sm:$0xff] %v7650_v18  ;;  %3043 = vrot.lane.b32.xlu1 %v7650_v18, %s5547_s30  ;;  %v3090_v11 = vrot.slane %v7650_v18, 1 }
 0x73d   : > { %v7655_v23 = vpop.f32.mrf.mxu1 }
 0x740   : > { %5486 = vmatmul.msk.f32.gmra.mxu2 %vm2783_vm2, %v2768_v19 }
 0x745   : > { %v2909_v24 = vpop.f32.mrf.mxu1 }
 0x746   : > { %v2910_v29 = vadd.f32 %v7638_v56, %v2909_v24 }
 0x748   : > { %v7659_v30 = vmax.f32 %v2910_v29, 0.0  ;;  %5487 = vmatmul.msk.f32.gmra.mxu2 %vm2783_vm2, %v2769_v25 }
 0x74a   : > { %10443 = vst [vmem:[#allocation6_spill] sm:$0xff] %v7659_v30  ;;  %3045 = vrot.lane.b32.xlu2 %v7659_v30, %s5547_s30 }
 0x74d   : > { %v7664_v48 = vpop.f32.mrf.mxu1 }
 0x753   : > { %v2945_v28 = vpop.f32.mrf.mxu2 }
 0x754   : > { %v2946_v49 = vadd.f32 %v7638_v56, %v2945_v28  ;;  %v3091_v28 = vrot.slane %v7659_v30, 1 }
 0x755   : > { %v2915_v44 = vpop.f32.mrf.mxu1 }
 0x756   : > { %v2916_v45 = vadd.f32 %v7638_v56, %v2915_v44  ;;  %v7694_v51 = vmax.f32 %v2946_v49, 0.0 }
 0x758   : > { %v7667_v50 = vmax.f32 %v2916_v45, 0.0  ;;  %10447 = vst [vmem:[#allocation10_spill] sm:$0xff] %v7694_v51 }
 0x75a   : > { %10444 = vst [vmem:[#allocation7_spill] sm:$0xff] %v7667_v50  ;;  %3047 = vrot.lane.b32.xlu0 %v7667_v50, %s5547_s30  ;;  %v3092_v2 = vrot.slane %v7667_v50, 1 }
 0x75b   : > { %v7671_v52 = vpop.f32.mrf.mxu2 }
 0x75d   : > { %v7673_v53 = vpop.f32.mrf.mxu1 }
 0x763   : > { %v2951_v6 = vpop.f32.mrf.mxu2 }
 0x764   : > { %v2952_v43 = vadd.f32 %v7638_v56, %v2951_v6 }
 0x765   : > { %v2921_v60 = vpop.f32.mrf.mxu1 }
 0x766   : > { %v2922_v36 = vadd.f32 %v7638_v56, %v2921_v60  ;;  %v7713_v46 = vmax.f32 %v2952_v43, 0.0 }
 0x768   : > { %v7676_v55 = vmax.f32 %v2922_v36, 0.0  ;;  %10450 = vst [vmem:[#allocation13_spill] sm:$0xff] %v7713_v46  ;;  %v3098_v29 = vrot.slane %v7713_v46, 1  ;;  %v3097_v36 = vrot.slane %v7694_v51, 1 }
 0x76a   : > { %10445 = vst [vmem:[#allocation8_spill] sm:$0xff] %v7676_v55  ;;  %3049 = vrot.lane.b32.xlu1 %v7676_v55, %s5547_s30  ;;  %v3093_v24 = vrot.slane %v7676_v55, 1 }
 0x76b   : > { %v7680_v33 = vpop.f32.mrf.mxu2 }
 0x76d   : > { %v7682_v39 = vpop.f32.mrf.mxu1 }
 0x773   : > { %v2957_v9 = vpop.f32.mrf.mxu2 }
 0x774   : > { %v2958_v38 = vadd.f32 %v7638_v56, %v2957_v9 }
 0x775   : > { %v2927_v42 = vpop.f32.mrf.mxu1 }
 0x776   : > { %v2928_v15 = vadd.f32 %v7638_v56, %v2927_v42  ;;  %v7730_v59 = vmax.f32 %v2958_v38, 0.0 }
 0x778   : > { %v7685_v27 = vmax.f32 %v2928_v15, 0.0  ;;  %10453 = vst [vmem:[#allocation16_spill] sm:$0xff] %v7730_v59  ;;  %v3099_v44 = vrot.slane %v7730_v59, 1 }
 0x77a   : > { %10446 = vst [vmem:[#allocation9_spill] sm:$0xff] %v7685_v27  ;;  %3051 = vrot.lane.b32.xlu2 %v7685_v27, %s5547_s30  ;;  %v3094_v45 = vrot.slane %v7685_v27, 1 }
 0x77b   : > { %v7689_v21 = vpop.f32.mrf.mxu2 }
 0x77d   : > { %v7692_v57 = vpop.f32.mrf.mxu1 }
 0x782   : > { %3057 = vrot.lane.b32.xlu2 %v7694_v51, %s5547_s30 }
 0x783   : > { %v2963_v32 = vpop.f32.mrf.mxu2 }
 0x784   : > { %v2964_v10 = vadd.f32 %v7638_v56, %v2963_v32 }
 0x785   : > { %v2933_v63 = vpop.f32.mrf.mxu1 }
 0x786   : > { %v2934_v14 = vadd.f32 %v7638_v56, %v2933_v63  ;;  %v7700_v1 = vmax.f32 %v2964_v10, 0.0 }
 0x788   : > { %10448 = vst [vmem:[#allocation11_spill] sm:$0xff] %v7700_v1  ;;  %v7702_v4 = vmax.f32 %v2934_v14, 0.0  ;;  %v3100_v9 = vrot.slane %v7700_v1, 1  ;;  %v3202_v14 = vrot.slane %v7650_v18, 2 }
 0x78a   : > { %10449 = vst [vmem:[#allocation12_spill] sm:$0xff] %v7702_v4  ;;  %3053 = vrot.lane.b32.xlu0 %v7702_v4, %s5547_s30  ;;  %3063 = vrot.lane.b32.xlu2 %v7700_v1, %s5547_s30  ;;  %v3095_v12 = vrot.slane %v7702_v4, 1 }
 0x78b   : > { %v7708_v20 = vpop.f32.mrf.mxu2 }
 0x78d   : > { %v7711_v26 = vpop.f32.mrf.mxu1 }
 0x792   : > { %3059 = vrot.lane.b32.xlu0 %v7713_v46, %s5547_s30 }
 0x793   : > { %v2969_v0 = vpop.f32.mrf.mxu2 }
 0x794   : > { %v2970_v54 = vadd.f32 %v7638_v56, %v2969_v0 }
 0x795   : > { %v2939_v40 = vpop.f32.mrf.mxu1 }
 0x796   : > { %v2940_v16 = vadd.f32 %v7638_v56, %v2939_v40  ;;  %v7719_v58 = vmax.f32 %v2970_v54, 0.0  ;;  %v3205_v40 = vrot.slane %v7676_v55, 2 }
 0x798   : > { %10451 = vst [vmem:[#allocation14_spill] sm:$0xff] %v7719_v58  ;;  %v7721_v7 = vmax.f32 %v2940_v16, 0.0 }
 0x79a   : > { %10452 = vst [vmem:[#allocation15_spill] sm:$0xff] %v7721_v7  ;;  %3055 = vrot.lane.b32.xlu1 %v7721_v7, %s5547_s30  ;;  %3065 = vrot.lane.b32.xlu0 %v7719_v58, %s5547_s30  ;;  %v3096_v25 = vrot.slane %v7721_v7, 1 }
 0x79b   : > { %v7727_v22 = vpop.f32.mrf.mxu2 }
 0x79c   : > { %v7814_v54 = vpop.permute.xlu0 %3041 }
 0x79d   : > { %10464 = vst [vmem:[#allocation27_spill] sm:$0xff] %v7814_v54 }
 0x7a2   : > { %3061 = vrot.lane.b32.xlu1 %v7730_v59, %s5547_s30 }
 0x7a3   : > { %v2975_v62 = vpop.f32.mrf.mxu2 }
 0x7a4   : > { %v2976_v61 = vadd.f32 %v7638_v56, %v2975_v62  ;;  %v7786_v42 = vpop.permute.xlu2 %3045 }
 0x7a5   : > { %10457 = vst [vmem:[#allocation20_spill] sm:$0xff] %v7786_v42 }
 0x7a6   : > { %v7735_v31 = vmax.f32 %v2976_v61, 0.0  ;;  %v3203_v61 = vrot.slane %v7659_v30, 2 }
 0x7a8   : > { %10454 = vst [vmem:[#allocation17_spill] sm:$0xff] %v7735_v31  ;;  %v3102_v60 = vrot.slane %v7735_v31, 1 }
 0x7aa   : > { %3067 = vrot.lane.b32.xlu1 %v7735_v31, %s5547_s30 }
 0x7ab   : > { %v7739_v34 = vpop.f32.mrf.mxu2 }
 0x7ac   : > { %v7797_v32 = vpop.permute.xlu1 %3043 }
 0x7ad   : > { %10459 = vst [vmem:[#allocation22_spill] sm:$0xff] %v7797_v32 }
 0x7b2   : > { %3105 = vrot.lane.b32.xlu1 %v3089_v35, %s5549_s7 }
 0x7b3   : > { %v2981_v37 = vpop.f32.mrf.mxu2 }
 0x7b4   : > { %v2982_v47 = vadd.f32 %v7638_v56, %v2981_v37 }
 0x7b6   : > { %v7744_v41 = vmax.f32 %v2982_v47, 0.0 }
 0x7b8   : > { %10455 = vst [vmem:[#allocation18_spill] sm:$0xff] %v7744_v41  ;;  %3069 = vrot.lane.b32.xlu2 %v7744_v41, %s5547_s30  ;;  %v3103_v15 = vrot.slane %v7744_v41, 1 }
 0x7ba   : > { %3111 = vrot.lane.b32.xlu1 %v3092_v2, %s5549_s7 }
 0x7bb   : > { %v7750_v3 = vpop.f32.mrf.mxu2 }
 0x7c0   : > { %3107 = vrot.lane.b32.xlu2 %v3090_v11, %s5549_s7 }
 0x7c2   : > { %3117 = vrot.lane.b32.xlu1 %v3095_v12, %s5549_s7 }
 0x7c3   : > { %v2987_v17 = vpop.f32.mrf.mxu2 }
 0x7c4   : > { %v2988_v13 = vadd.f32 %v7638_v56, %v2987_v17  ;;  %v3101_v56 = vrot.slane %v7719_v58, 1  ;;  %v3211_v17 = vrot.slane %v7730_v59, 2 }
 0x7c6   : > { %v7757_v19 = vmax.f32 %v2988_v13, 0.0 }
 0x7c8   : > { %10456 = vst [vmem:[#allocation19_spill] sm:$0xff] %v7757_v19  ;;  %3071 = vrot.lane.b32.xlu0 %v7757_v19, %s5547_s30  ;;  %3113 = vrot.lane.b32.xlu2 %v3093_v24, %s5549_s7  ;;  %v3104_v6 = vrot.slane %v7757_v19, 1 }
 0x7ca   : > { %3123 = vrot.lane.b32.xlu1 %v3098_v29, %s5549_s7 }
 0x7cc   : > { %v7824_v62 = vpop.permute.xlu0 %3047 }
 0x7cd   : > { %10467 = vst [vmem:[#allocation30_spill] sm:$0xff] %v7824_v62 }
 0x7d0   : > { %3119 = vrot.lane.b32.xlu2 %v3096_v25, %s5549_s7  ;;  %3109 = vrot.lane.b32.xlu0 %v3091_v28, %s5549_s7 }
 0x7d2   : > { %3129 = vrot.lane.b32.xlu1 %v3101_v56, %s5549_s7 }
 0x7d4   : > { %v7792_v49 = vpop.permute.xlu2 %3051 }
 0x7d5   : > { %10458 = vst [vmem:[#allocation21_spill] sm:$0xff] %v7792_v49 }
 0x7d8   : > { %3125 = vrot.lane.b32.xlu2 %v3099_v44, %s5549_s7  ;;  %3115 = vrot.lane.b32.xlu0 %v3094_v45, %s5549_s7 }
 0x7da   : > { %3135 = vrot.lane.b32.xlu1 %v3104_v6, %s5549_s7 }
 0x7dc   : > { %v7799_v10 = vpop.permute.xlu2 %3057  ;;  %v7804_v63 = vpop.permute.xlu1 %3049 }
 0x7dd   : > { %10460 = vst [vmem:[#allocation23_spill] sm:$0xff] %v7799_v10 }
 0x7de   : > { %10461 = vst [vmem:[#allocation24_spill] sm:$0xff] %v7804_v63 }
 0x7e0   : > { %3131 = vrot.lane.b32.xlu2 %v3102_v60, %s5549_s7  ;;  %3121 = vrot.lane.b32.xlu0 %v3097_v36, %s5549_s7 }
 0x7e2   : > { %3157 = vrot.lane.b32.xlu1 %v3091_v28, %s5551_s9 }
 0x7e4   : > { %v7809_v43 = vpop.permute.xlu2 %3063 }
 0x7e5   : > { %10462 = vst [vmem:[#allocation25_spill] sm:$0xff] %v7809_v43 }
 0x7e8   : > { %3153 = vrot.lane.b32.xlu2 %v3089_v35, %s5551_s9  ;;  %3127 = vrot.lane.b32.xlu0 %v3100_v9, %s5549_s7  ;;  %v3208_v35 = vrot.slane %v7721_v7, 2 }
 0x7ea   : > { %3163 = vrot.lane.b32.xlu1 %v3094_v45, %s5551_s9 }
 0x7f0   : > { %3159 = vrot.lane.b32.xlu2 %v3092_v2, %s5551_s9  ;;  %3133 = vrot.lane.b32.xlu0 %v3103_v15, %s5549_s7 }
 0x7f2   : > { %3169 = vrot.lane.b32.xlu1 %v3097_v36, %s5551_s9 }
 0x7f8   : > { %3165 = vrot.lane.b32.xlu2 %v3095_v12, %s5551_s9  ;;  %3155 = vrot.lane.b32.xlu0 %v3090_v11, %s5551_s9  ;;  %v3206_v11 = vrot.slane %v7685_v27, 2  ;;  %v3201_v12 = vrot.slane %v7641_v5, 2 }
 0x7fa   : > { %3175 = vrot.lane.b32.xlu1 %v3100_v9, %s5551_s9 }
 0x7fc   : > { %v7835_v2 = vpop.permute.xlu0 %3053 }
 0x7fd   : > { %10470 = vst [vmem:[#allocation33_spill] sm:$0xff] %v7835_v2 }
 0x800   : > { %3171 = vrot.lane.b32.xlu2 %v3098_v29, %s5551_s9  ;;  %3161 = vrot.lane.b32.xlu0 %v3093_v24, %s5551_s9  ;;  %v3209_v29 = vrot.slane %v7694_v51, 2 }
 0x802   : > { %3181 = vrot.lane.b32.xlu1 %v3103_v15, %s5551_s9 }
 0x804   : > { %v7849_v28 = vpop.permute.xlu0 %3059 }
 0x805   : > { %10473 = vst [vmem:[#allocation36_spill] sm:$0xff] %v7849_v28 }
 0x808   : > { %3177 = vrot.lane.b32.xlu2 %v3101_v56, %s5551_s9  ;;  %3167 = vrot.lane.b32.xlu0 %v3096_v25, %s5551_s9  ;;  %v3204_v25 = vrot.slane %v7667_v50, 2  ;;  %v3214_v56 = vrot.slane %v7735_v31, 2 }
 0x80a   : > { %3219 = vrot.lane.b32.xlu1 %v3202_v14, %s5553_s11 }
 0x80c   : > { %v7812_v0 = vpop.permute.xlu1 %3055  ;;  %v7863_v36 = vpop.permute.xlu0 %3065 }
 0x80d   : > { %10463 = vst [vmem:[#allocation26_spill] sm:$0xff] %v7812_v0 }
 0x80e   : > { %10476 = vst [vmem:[#allocation39_spill] sm:$0xff] %v7863_v36 }
 0x810   : > { %3183 = vrot.lane.b32.xlu2 %v3104_v6, %s5551_s9  ;;  %3173 = vrot.lane.b32.xlu0 %v3099_v44, %s5551_s9  ;;  %v3212_v6 = vrot.slane %v7700_v1, 2 }
 0x812   : > { %v7819_v16 = vpop.permute.xlu2 %3069  ;;  %3225 = vrot.lane.b32.xlu1 %v3205_v40, %s5553_s11 }
 0x813   : > { %10465 = vst [vmem:[#allocation28_spill] sm:$0xff] %v7819_v16 }
 0x814   : > { %v7822_v38 = vpop.permute.xlu1 %3061 }
 0x815   : > { %10466 = vst [vmem:[#allocation29_spill] sm:$0xff] %v7822_v38  ;;  %v3210_v38 = vrot.slane %v7713_v46, 2 }
 0x818   : > { %3221 = vrot.lane.b32.xlu2 %v3203_v61, %s5553_s11  ;;  %3179 = vrot.lane.b32.xlu0 %v3102_v60, %s5551_s9  ;;  %v3207_v60 = vrot.slane %v7702_v4, 2 }
 0x81a   : > { %v7830_v37 = vpop.permute.xlu2 %3107  ;;  %3231 = vrot.lane.b32.xlu1 %v3208_v35, %s5553_s11 }
 0x81b   : > { %10468 = vst [vmem:[#allocation31_spill] sm:$0xff] %v7830_v37 }
 0x81c   : > { %v7833_v47 = vpop.permute.xlu1 %3067 }
 0x81d   : > { %10469 = vst [vmem:[#allocation32_spill] sm:$0xff] %v7833_v47  ;;  %v3215_v47 = vrot.slane %v7744_v41, 2 }
 0x820   : > { %3227 = vrot.lane.b32.xlu2 %v3206_v11, %s5553_s11  ;;  %3217 = vrot.lane.b32.xlu0 %v3201_v12, %s5553_s11 }
 0x822   : > { %v7842_v13 = vpop.permute.xlu2 %3113  ;;  %3237 = vrot.lane.b32.xlu1 %v3211_v17, %s5553_s11 }
 0x823   : > { %10471 = vst [vmem:[#allocation34_spill] sm:$0xff] %v7842_v13 }
 0x824   : > { %v7845_v24 = vpop.permute.xlu1 %3105 }
 0x825   : > { %10472 = vst [vmem:[#allocation35_spill] sm:$0xff] %v7845_v24 }
 0x828   : > { %3233 = vrot.lane.b32.xlu2 %v3209_v29, %s5553_s11  ;;  %3223 = vrot.lane.b32.xlu0 %v3204_v25, %s5553_s11 }
 0x82a   : > { %v7854_v44 = vpop.permute.xlu2 %3119  ;;  %3243 = vrot.lane.b32.xlu1 %v3214_v56, %s5553_s11 }
 0x82b   : > { %10474 = vst [vmem:[#allocation37_spill] sm:$0xff] %v7854_v44 }
 0x82c   : > { %v7857_v45 = vpop.permute.xlu1 %3111 }
 0x82d   : > { %10475 = vst [vmem:[#allocation38_spill] sm:$0xff] %v7857_v45 }
 0x830   : > { %3239 = vrot.lane.b32.xlu2 %v3212_v6, %s5553_s11  ;;  %3229 = vrot.lane.b32.xlu0 %v3207_v60, %s5553_s11 }
 0x832   : > { %v7865_v9 = vpop.permute.xlu2 %3125  ;;  %3265 = vrot.lane.b32.xlu1 %v3201_v12, %s5554_s25  ;;  %v3213_v12 = vrot.slane %v7719_v58, 2 }
 0x833   : > { %10477 = vst [vmem:[#allocation40_spill] sm:$0xff] %v7865_v9 }
 0x834   : > { %v7868_v15 = vpop.permute.xlu1 %3117 }
 0x835   : > { %10478 = vst [vmem:[#allocation41_spill] sm:$0xff] %v7868_v15 }
 0x838   : > { %3245 = vrot.lane.b32.xlu2 %v3215_v47, %s5553_s11  ;;  %3235 = vrot.lane.b32.xlu0 %v3210_v38, %s5553_s11 }
 0x83a   : > { %v7874_v16 = vpop.permute.xlu0 %3071  ;;  %v7876_v45 = vpop.permute.xlu2 %3131  ;;  %3271 = vrot.lane.b32.xlu1 %v3204_v25, %s5554_s25 }
 0x83b   : > { %10479 = vst [vmem:[#allocation42_spill] sm:$0xff] %v7874_v16 }
 0x83c   : > { %10480 = vst [vmem:[#allocation43_spill] sm:$0xff] %v7876_v45  ;;  %v7879_v44 = vpop.permute.xlu1 %3123  ;;  %v3216_v45 = vrot.slane %v7757_v19, 2 }
 0x83d   : > { %10481 = vst [vmem:[#allocation44_spill] sm:$0xff] %v7879_v44 }
 0x840   : > { %3267 = vrot.lane.b32.xlu2 %v3202_v14, %s5554_s25  ;;  %3241 = vrot.lane.b32.xlu0 %v3213_v12, %s5553_s11 }
 0x842   : > { %v7884_v9 = vpop.permute.xlu2 %3153  ;;  %3277 = vrot.lane.b32.xlu1 %v3207_v60, %s5554_s25  ;;  %v7887_v15 = vpop.permute.xlu0 %3109 }
 0x843   : > { %10482 = vst [vmem:[#allocation45_spill] sm:$0xff] %v7884_v9 }
 0x844   : > { %10483 = vst [vmem:[#allocation46_spill] sm:$0xff] %v7887_v15  ;;  %v7889_v24 = vpop.permute.xlu1 %3129  ;;  %v3327_v15 = vrot.slane %v7744_v41, 3 }
 0x845   : > { %10484 = vst [vmem:[#allocation47_spill] sm:$0xff] %v7889_v24 }
 0x848   : > { %3273 = vrot.lane.b32.xlu2 %v3205_v40, %s5554_s25  ;;  %3247 = vrot.lane.b32.xlu0 %v3216_v45, %s5553_s11 }
 0x84a   : > { %v7894_v25 = vpop.permute.xlu2 %3159  ;;  %3283 = vrot.lane.b32.xlu1 %v3210_v38, %s5554_s25  ;;  %v7897_v14 = vpop.permute.xlu0 %3115 }
 0x84b   : > { %10485 = vst [vmem:[#allocation48_spill] sm:$0xff] %v7894_v25 }
 0x84c   : > { %10486 = vst [vmem:[#allocation49_spill] sm:$0xff] %v7897_v14  ;;  %v7899_v44 = vpop.permute.xlu1 %3135  ;;  %v3317_v14 = vrot.slane %v7676_v55, 3 }
 0x84d   : > { %10487 = vst [vmem:[#allocation50_spill] sm:$0xff] %v7899_v44 }
 0x850   : > { %3279 = vrot.lane.b32.xlu2 %v3208_v35, %s5554_s25  ;;  %3269 = vrot.lane.b32.xlu0 %v3203_v61, %s5554_s25  ;;  %v3315_v61 = vrot.slane %v7659_v30, 3 }
 0x852   : > { %v7903_v60 = vpop.permute.xlu2 %3165  ;;  %3289 = vrot.lane.b32.xlu1 %v3213_v12, %s5554_s25  ;;  %v7906_v24 = vpop.permute.xlu0 %3121 }
 0x853   : > { %10488 = vst [vmem:[#allocation51_spill] sm:$0xff] %v7903_v60  ;;  %v3320_v60 = vrot.slane %v7721_v7, 3 }
 0x854   : > { %10489 = vst [vmem:[#allocation52_spill] sm:$0xff] %v7906_v24  ;;  %v7908_v40 = vpop.permute.xlu1 %3157 }
 0x855   : > { %10490 = vst [vmem:[#allocation53_spill] sm:$0xff] %v7908_v40 }
 0x858   : > { %3285 = vrot.lane.b32.xlu2 %v3211_v17, %s5554_s25  ;;  %3275 = vrot.lane.b32.xlu0 %v3206_v11, %s5554_s25 }
 0x85a   : > { %v7912_v38 = vpop.permute.xlu2 %3171  ;;  %3295 = vrot.lane.b32.xlu1 %v3216_v45, %s5554_s25  ;;  %v7915_v44 = vpop.permute.xlu0 %3127  ;;  %v3313_v45 = vrot.slane %v7641_v5, 3 }
 0x85b   : > { %10491 = vst [vmem:[#allocation54_spill] sm:$0xff] %v7912_v38  ;;  %v3319_v38 = vrot.slane %v7702_v4, 3 }
 0x85c   : > { %10492 = vst [vmem:[#allocation55_spill] sm:$0xff] %v7915_v44  ;;  %v7917_v35 = vpop.permute.xlu1 %3163 }
 0x85d   : > { %10493 = vst [vmem:[#allocation56_spill] sm:$0xff] %v7917_v35 }
 0x860   : > { %3291 = vrot.lane.b32.xlu2 %v3214_v56, %s5554_s25  ;;  %3281 = vrot.lane.b32.xlu0 %v3209_v29, %s5554_s25  ;;  %v3318_v56 = vrot.slane %v7685_v27, 3 }
 0x862   : > { %v7922_v12 = vpop.permute.xlu2 %3177  ;;  %3333 = vrot.lane.b32.xlu1 %v3315_v61, %s5555_s26  ;;  %v7925_v17 = vpop.permute.xlu0 %3133 }
 0x863   : > { %10494 = vst [vmem:[#allocation57_spill] sm:$0xff] %v7922_v12 }
 0x864   : > { %10495 = vst [vmem:[#allocation58_spill] sm:$0xff] %v7925_v17  ;;  %v7927_v11 = vpop.permute.xlu1 %3169  ;;  %v3316_v17 = vrot.slane %v7667_v50, 3 }
 0x865   : > { %10496 = vst [vmem:[#allocation59_spill] sm:$0xff] %v7927_v11  ;;  %v3321_v11 = vrot.slane %v7694_v51, 3 }
 0x868   : > { %3329 = vrot.lane.b32.xlu2 %v3313_v45, %s5555_s26  ;;  %3287 = vrot.lane.b32.xlu0 %v3212_v6, %s5554_s25 }
 0x86a   : > { %v7933_v35 = vpop.permute.xlu2 %3183  ;;  %3339 = vrot.lane.b32.xlu1 %v3318_v56, %s5555_s26  ;;  %v7936_v29 = vpop.permute.xlu0 %3155 }
 0x86b   : > { %10497 = vst [vmem:[#allocation60_spill] sm:$0xff] %v7933_v35 }
 0x86c   : > { %10498 = vst [vmem:[#allocation61_spill] sm:$0xff] %v7936_v29  ;;  %v7938_v12 = vpop.permute.xlu1 %3175 }
 0x86d   : > { %10499 = vst [vmem:[#allocation62_spill] sm:$0xff] %v7938_v12  ;;  %v3314_v12 = vrot.slane %v7650_v18, 3 }
 0x870   : > { %3335 = vrot.lane.b32.xlu2 %v3316_v17, %s5555_s26  ;;  %3293 = vrot.lane.b32.xlu0 %v3215_v47, %s5554_s25  ;;  %v3324_v47 = vrot.slane %v7700_v1, 3 }
 0x872   : > { %v7944_v44 = vpop.permute.xlu2 %3221  ;;  %3345 = vrot.lane.b32.xlu1 %v3321_v11, %s5555_s26  ;;  %v7947_v6 = vpop.permute.xlu0 %3161 }
 0x873   : > { %10500 = vst [vmem:[#allocation63_spill] sm:$0xff] %v7944_v44 }
 0x874   : > { %10501 = vst [vmem:[#allocation64_spill] sm:$0xff] %v7947_v6  ;;  %v7949_v35 = vpop.permute.xlu1 %3181 }
 0x875   : > { %10502 = vst [vmem:[#allocation65_spill] sm:$0xff] %v7949_v35  ;;  %v3322_v35 = vrot.slane %v7713_v46, 3 }
 0x878   : > { %3341 = vrot.lane.b32.xlu2 %v3319_v38, %s5555_s26  ;;  %3331 = vrot.lane.b32.xlu0 %v3314_v12, %s5555_s26 }
 0x87a   : > { %v7956_v40 = vpop.permute.xlu2 %3227  ;;  %3351 = vrot.lane.b32.xlu1 %v3324_v47, %s5555_s26  ;;  %v7959_v44 = vpop.permute.xlu0 %3167 }
 0x87b   : > { %10503 = vst [vmem:[#allocation66_spill] sm:$0xff] %v7956_v40 }
 0x87c   : > { %10504 = vst [vmem:[#allocation67_spill] sm:$0xff] %v7959_v44  ;;  %v7961_v24 = vpop.permute.xlu1 %3219  ;;  %v3325_v44 = vrot.slane %v7719_v58, 3 }
 0x87d   : > { %10505 = vst [vmem:[#allocation68_spill] sm:$0xff] %v7961_v24 }
 0x880   : > { %3347 = vrot.lane.b32.xlu2 %v3322_v35, %s5555_s26  ;;  %3337 = vrot.lane.b32.xlu0 %v3317_v14, %s5555_s26 }
 0x882   : > { %v7968_v16 = vpop.permute.xlu2 %3233  ;;  %3357 = vrot.lane.b32.xlu1 %v3327_v15, %s5555_s26  ;;  %v7971_v40 = vpop.permute.xlu0 %3173 }
 0x883   : > { %10506 = vst [vmem:[#allocation69_spill] sm:$0xff] %v7968_v16 }
 0x884   : > { %10507 = vst [vmem:[#allocation70_spill] sm:$0xff] %v7971_v40  ;;  %v7973_v6 = vpop.permute.xlu1 %3225  ;;  %v3328_v40 = vrot.slane %v7757_v19, 3 }
 0x885   : > { %10508 = vst [vmem:[#allocation71_spill] sm:$0xff] %v7973_v6  ;;  %v3323_v6 = vrot.slane %v7730_v59, 3 }
 0x888   : > { %3353 = vrot.lane.b32.xlu2 %v3325_v44, %s5555_s26  ;;  %3343 = vrot.lane.b32.xlu0 %v3320_v60, %s5555_s26 }
 0x88a   : > { %v7979_v25 = vpop.permute.xlu2 %3239  ;;  %3379 = vrot.lane.b32.xlu1 %v3314_v12, %s5556_s27  ;;  %v7982_v9 = vpop.permute.xlu0 %3179  ;;  %v3326_v12 = vrot.slane %v7735_v31, 3 }
 0x88b   : > { %10509 = vst [vmem:[#allocation72_spill] sm:$0xff] %v7979_v25 }
 0x88c   : > { %10510 = vst [vmem:[#allocation73_spill] sm:$0xff] %v7982_v9  ;;  %v7984_v16 = vpop.permute.xlu1 %3231 }
 0x88d   : > { %10511 = vst [vmem:[#allocation74_spill] sm:$0xff] %v7984_v16 }
 0x890   : > { %3359 = vrot.lane.b32.xlu2 %v3328_v40, %s5555_s26  ;;  %3349 = vrot.lane.b32.xlu0 %v3323_v6, %s5555_s26 }
 0x892   : > { %v7990_v13 = vpop.permute.xlu2 %3245  ;;  %3385 = vrot.lane.b32.xlu1 %v3317_v14, %s5556_s27  ;;  %v7993_v36 = vpop.permute.xlu0 %3217 }
 0x893   : > { %10512 = vst [vmem:[#allocation75_spill] sm:$0xff] %v7990_v13 }
 0x894   : > { %10513 = vst [vmem:[#allocation76_spill] sm:$0xff] %v7993_v36  ;;  %v7995_v25 = vpop.permute.xlu1 %3237 }
 0x895   : > { %10514 = vst [vmem:[#allocation77_spill] sm:$0xff] %v7995_v25 }
 0x898   : > { %3381 = vrot.lane.b32.xlu2 %v3315_v61, %s5556_s27  ;;  %3355 = vrot.lane.b32.xlu0 %v3326_v12, %s5555_s26 }
 0x89a   : > { %v8000_v9 = vpop.permute.xlu2 %3267  ;;  %3391 = vrot.lane.b32.xlu1 %v3320_v60, %s5556_s27  ;;  %v8003_v16 = vpop.permute.xlu0 %3223 }
 0x89b   : > { %10515 = vst [vmem:[#allocation78_spill] sm:$0xff] %v8000_v9 }
 0x89c   : > { %10516 = vst [vmem:[#allocation79_spill] sm:$0xff] %v8003_v16  ;;  %v8005_v0 = vpop.permute.xlu1 %3243 }
 0x89d   : > { %10517 = vst [vmem:[#allocation80_spill] sm:$0xff] %v8005_v0 }
 0x8a0   : > { %3387 = vrot.lane.b32.xlu2 %v3318_v56, %s5556_s27  ;;  %3377 = vrot.lane.b32.xlu0 %v3313_v45, %s5556_s27  ;;  %v3425_v45 = vrot.slane %v7641_v5, 4 }
 0x8a2   : > { %v8009_v14 = vpop.permute.xlu2 %3273  ;;  %3397 = vrot.lane.b32.xlu1 %v3323_v6, %s5556_s27  ;;  %v8012_v25 = vpop.permute.xlu0 %3229 }
 0x8a3   : > { %10518 = vst [vmem:[#allocation81_spill] sm:$0xff] %v8009_v14 }
 0x8a4   : > { %10519 = vst [vmem:[#allocation82_spill] sm:$0xff] %v8012_v25  ;;  %v8014_v61 = vpop.permute.xlu1 %3265 }
 0x8a5   : > { %10520 = vst [vmem:[#allocation83_spill] sm:$0xff] %v8014_v61 }
 0x8a8   : > { %3393 = vrot.lane.b32.xlu2 %v3321_v11, %s5556_s27  ;;  %3383 = vrot.lane.b32.xlu0 %v3316_v17, %s5556_s27 }
 0x8aa   : > { %v8018_v60 = vpop.permute.xlu2 %3279  ;;  %3403 = vrot.lane.b32.xlu1 %v3326_v12, %s5556_s27  ;;  %v8021_v0 = vpop.permute.xlu0 %3235  ;;  %v3428_v12 = vrot.slane %v7667_v50, 4 }
 0x8ab   : > { %10521 = vst [vmem:[#allocation84_spill] sm:$0xff] %v8018_v60 }
 0x8ac   : > { %10522 = vst [vmem:[#allocation85_spill] sm:$0xff] %v8021_v0  ;;  %v8023_v56 = vpop.permute.xlu1 %3271 }
 0x8ad   : > { %10523 = vst [vmem:[#allocation86_spill] sm:$0xff] %v8023_v56 }
 0x8b0   : > { %3399 = vrot.lane.b32.xlu2 %v3324_v47, %s5556_s27  ;;  %3389 = vrot.lane.b32.xlu0 %v3319_v38, %s5556_s27 }
 0x8b2   : > { %v8028_v6 = vpop.permute.xlu2 %3285  ;;  %3441 = vrot.lane.b32.xlu1 %v3425_v45, %s5557_s29  ;;  %v8031_v11 = vpop.permute.xlu0 %3241 }
 0x8b3   : > { %10524 = vst [vmem:[#allocation87_spill] sm:$0xff] %v8028_v6  ;;  %v3426_v6 = vrot.slane %v7650_v18, 4 }
 0x8b4   : > { %10525 = vst [vmem:[#allocation88_spill] sm:$0xff] %v8031_v11  ;;  %v8033_v17 = vpop.permute.xlu1 %3277 }
 0x8b5   : > { %10526 = vst [vmem:[#allocation89_spill] sm:$0xff] %v8033_v17 }
 0x8b8   : > { %3405 = vrot.lane.b32.xlu2 %v3327_v15, %s5556_s27  ;;  %3395 = vrot.lane.b32.xlu0 %v3322_v35, %s5556_s27  ;;  %v3431_v15 = vrot.slane %v7702_v4, 4 }
 0x8ba   : > { %v8038_v0 = vpop.permute.xlu2 %3291  ;;  %3447 = vrot.lane.b32.xlu1 %v3428_v12, %s5557_s29  ;;  %v8041_v38 = vpop.permute.xlu0 %3247 }
 0x8bb   : > { %10527 = vst [vmem:[#allocation90_spill] sm:$0xff] %v8038_v0 }
 0x8bc   : > { %10528 = vst [vmem:[#allocation91_spill] sm:$0xff] %v8041_v38  ;;  %v8043_v47 = vpop.permute.xlu1 %3283  ;;  %v3429_v38 = vrot.slane %v7676_v55, 4 }
 0x8bd   : > { %10529 = vst [vmem:[#allocation92_spill] sm:$0xff] %v8043_v47  ;;  %v3434_v47 = vrot.slane %v7713_v46, 4 }
 0x8c0   : > { %3443 = vrot.lane.b32.xlu2 %v3426_v6, %s5557_s29  ;;  %3401 = vrot.lane.b32.xlu0 %v3325_v44, %s5556_s27 }
 0x8c2   : > { %v8049_v11 = vpop.permute.xlu2 %3329  ;;  %3453 = vrot.lane.b32.xlu1 %v3431_v15, %s5557_s29  ;;  %v8052_v35 = vpop.permute.xlu0 %3269 }
 0x8c3   : > { %10530 = vst [vmem:[#allocation93_spill] sm:$0xff] %v8049_v11  ;;  %v3440_v11 = vrot.slane %v7757_v19, 4 }
 0x8c4   : > { %10531 = vst [vmem:[#allocation94_spill] sm:$0xff] %v8052_v35  ;;  %v8054_v0 = vpop.permute.xlu1 %3289  ;;  %v3432_v35 = vrot.slane %v7721_v7, 4 }
 0x8c5   : > { %10532 = vst [vmem:[#allocation95_spill] sm:$0xff] %v8054_v0  ;;  %v3427_v0 = vrot.slane %v7659_v30, 4 }
 0x8c8   : > { %3449 = vrot.lane.b32.xlu2 %v3429_v38, %s5557_s29  ;;  %3407 = vrot.lane.b32.xlu0 %v3328_v40, %s5556_s27  ;;  %v3437_v40 = vrot.slane %v7719_v58, 4 }
 0x8ca   : > { %v8060_v13 = vpop.permute.xlu2 %3335  ;;  %3459 = vrot.lane.b32.xlu1 %v3434_v47, %s5557_s29  ;;  %v8063_v44 = vpop.permute.xlu0 %3275 }
 0x8cb   : > { %10533 = vst [vmem:[#allocation96_spill] sm:$0xff] %v8060_v13 }
 0x8cc   : > { %10534 = vst [vmem:[#allocation97_spill] sm:$0xff] %v8063_v44  ;;  %v8065_v17 = vpop.permute.xlu1 %3295  ;;  %v3430_v44 = vrot.slane %v7685_v27, 4 }
 0x8cd   : > { %10535 = vst [vmem:[#allocation98_spill] sm:$0xff] %v8065_v17  ;;  %v3435_v17 = vrot.slane %v7730_v59, 4 }
 0x8d0   : > { %3455 = vrot.lane.b32.xlu2 %v3432_v35, %s5557_s29  ;;  %3445 = vrot.lane.b32.xlu0 %v3427_v0, %s5557_s29 }
 0x8d2   : > { %v8072_v25 = vpop.permute.xlu2 %3341  ;;  %3465 = vrot.lane.b32.xlu1 %v3437_v40, %s5557_s29  ;;  %v8075_v13 = vpop.permute.xlu0 %3281 }
 0x8d3   : > { %10536 = vst [vmem:[#allocation99_spill] sm:$0xff] %v8072_v25 }
 0x8d4   : > { %10537 = vst [vmem:[#allocation100_spill] sm:$0xff] %v8075_v13  ;;  %v8077_v56 = vpop.permute.xlu1 %3333  ;;  %v3438_v13 = vrot.slane %v7735_v31, 4 }
 0x8d5   : > { %10538 = vst [vmem:[#allocation101_spill] sm:$0xff] %v8077_v56  ;;  %v3433_v56 = vrot.slane %v7694_v51, 4 }
 0x8d8   : > { %3461 = vrot.lane.b32.xlu2 %v3435_v17, %s5557_s29  ;;  %3451 = vrot.lane.b32.xlu0 %v3430_v44, %s5557_s29 }
 0x8da   : > { %v8084_v60 = vpop.permute.xlu2 %3347  ;;  %3471 = vrot.lane.b32.xlu1 %v3440_v11, %s5557_s29  ;;  %v8087_v25 = vpop.permute.xlu0 %3287 }
 0x8db   : > { %10539 = vst [vmem:[#allocation102_spill] sm:$0xff] %v8084_v60 }
 0x8dc   : > { %10540 = vst [vmem:[#allocation103_spill] sm:$0xff] %v8087_v25  ;;  %v8089_v61 = vpop.permute.xlu1 %3339  ;;  %v3436_v25 = vrot.slane %v7700_v1, 4 }
 0x8dd   : > { %10541 = vst [vmem:[#allocation104_spill] sm:$0xff] %v8089_v61 }
 0x8e0   : > { %3467 = vrot.lane.b32.xlu2 %v3438_v13, %s5557_s29  ;;  %3457 = vrot.lane.b32.xlu0 %v3433_v56, %s5557_s29 }
 0x8e2   : > { %v8095_v14 = vpop.permute.xlu2 %3353  ;;  %3493 = vrot.lane.b32.xlu1 %v3427_v0, %s5558_s14  ;;  %v8098_v60 = vpop.permute.xlu0 %3293  ;;  %v3439_v0 = vrot.slane %v7744_v41, 4 }
 0x8e3   : > { %10542 = vst [vmem:[#allocation105_spill] sm:$0xff] %v8095_v14 }
 0x8e4   : > { %10543 = vst [vmem:[#allocation106_spill] sm:$0xff] %v8098_v60  ;;  %v8100_v16 = vpop.permute.xlu1 %3345 }
 0x8e5   : > { %10544 = vst [vmem:[#allocation107_spill] sm:$0xff] %v8100_v16 }
 0x8e8   : > { %3489 = vrot.lane.b32.xlu2 %v3425_v45, %s5558_s14  ;;  %3463 = vrot.lane.b32.xlu0 %v3436_v25, %s5557_s29 }
 0x8ea   : > { %v8105_v61 = vpop.permute.xlu2 %3359  ;;  %3499 = vrot.lane.b32.xlu1 %v3430_v44, %s5558_s14  ;;  %v8108_v36 = vpop.permute.xlu0 %3331 }
 0x8eb   : > { %10545 = vst [vmem:[#allocation108_spill] sm:$0xff] %v8105_v61 }
 0x8ec   : > { %10546 = vst [vmem:[#allocation109_spill] sm:$0xff] %v8108_v36  ;;  %v8110_v14 = vpop.permute.xlu1 %3351 }
 0x8ed   : > { %10547 = vst [vmem:[#allocation110_spill] sm:$0xff] %v8110_v14 }
 0x8f0   : > { %3495 = vrot.lane.b32.xlu2 %v3428_v12, %s5558_s14  ;;  %3469 = vrot.lane.b32.xlu0 %v3439_v0, %s5557_s29 }
 0x8f2   : > { %v8115_v16 = vpop.permute.xlu2 %3381  ;;  %3505 = vrot.lane.b32.xlu1 %v3433_v56, %s5558_s14  ;;  %v8118_v45 = vpop.permute.xlu0 %3337 }
 0x8f3   : > { %10548 = vst [vmem:[#allocation111_spill] sm:$0xff] %v8115_v16 }
 0x8f4   : > { %10549 = vst [vmem:[#allocation112_spill] sm:$0xff] %v8118_v45  ;;  %v8120_v60 = vpop.permute.xlu1 %3357 }
 0x8f5   : > { %10550 = vst [vmem:[#allocation113_spill] sm:$0xff] %v8120_v60 }
 0x8f8   : > { %3501 = vrot.lane.b32.xlu2 %v3431_v15, %s5558_s14  ;;  %3491 = vrot.lane.b32.xlu0 %v3426_v6, %s5558_s14 }
 0x8fa   : > { %v8124_v44 = vpop.permute.xlu2 %3387  ;;  %3511 = vrot.lane.b32.xlu1 %v3436_v25, %s5558_s14  ;;  %v8127_v14 = vpop.permute.xlu0 %3343  ;;  %v3538_v25 = vrot.slane %v7650_v18, 5 }
 0x8fb   : > { %10551 = vst [vmem:[#allocation114_spill] sm:$0xff] %v8124_v44 }
 0x8fc   : > { %10552 = vst [vmem:[#allocation115_spill] sm:$0xff] %v8127_v14  ;;  %v8129_v12 = vpop.permute.xlu1 %3379 }
 0x8fd   : > { %10553 = vst [vmem:[#allocation116_spill] sm:$0xff] %v8129_v12 }
 0x900   : > { %3507 = vrot.lane.b32.xlu2 %v3434_v47, %s5558_s14  ;;  %3497 = vrot.lane.b32.xlu0 %v3429_v38, %s5558_s14 }
 0x902   : > { %v8133_v56 = vpop.permute.xlu2 %3393  ;;  %3517 = vrot.lane.b32.xlu1 %v3439_v0, %s5558_s14  ;;  %v8136_v60 = vpop.permute.xlu0 %3349  ;;  %v3541_v0 = vrot.slane %v7676_v55, 5 }
 0x903   : > { %10554 = vst [vmem:[#allocation117_spill] sm:$0xff] %v8133_v56  ;;  %v3542_v56 = vrot.slane %v7685_v27, 5 }
 0x904   : > { %10555 = vst [vmem:[#allocation118_spill] sm:$0xff] %v8136_v60  ;;  %v8138_v15 = vpop.permute.xlu1 %3385 }
 0x905   : > { %10556 = vst [vmem:[#allocation119_spill] sm:$0xff] %v8138_v15 }
 0x908   : > { %3513 = vrot.lane.b32.xlu2 %v3437_v40, %s5558_s14  ;;  %3503 = vrot.lane.b32.xlu0 %v3432_v35, %s5558_s14 }
 0x90a   : > { %v8143_v6 = vpop.permute.xlu2 %3399  ;;  %3555 = vrot.lane.b32.xlu1 %v3538_v25, %s5559_s15  ;;  %v8146_v38 = vpop.permute.xlu0 %3355 }
 0x90b   : > { %10557 = vst [vmem:[#allocation120_spill] sm:$0xff] %v8143_v6  ;;  %v3539_v6 = vrot.slane %v7659_v30, 5 }
 0x90c   : > { %10558 = vst [vmem:[#allocation121_spill] sm:$0xff] %v8146_v38  ;;  %v8148_v47 = vpop.permute.xlu1 %3391 }
 0x90d   : > { %10559 = vst [vmem:[#allocation122_spill] sm:$0xff] %v8148_v47  ;;  %v3550_v47 = vrot.slane %v7735_v31, 5 }
 0x910   : > { %3519 = vrot.lane.b32.xlu2 %v3440_v11, %s5558_s14  ;;  %3509 = vrot.lane.b32.xlu0 %v3435_v17, %s5558_s14  ;;  %v3544_v11 = vrot.slane %v7721_v7, 5 }
 0x912   : > { %v8153_v40 = vpop.permute.xlu2 %3405  ;;  %3561 = vrot.lane.b32.xlu1 %v3541_v0, %s5559_s15  ;;  %v8156_v35 = vpop.permute.xlu0 %3377 }
 0x913   : > { %10560 = vst [vmem:[#allocation123_spill] sm:$0xff] %v8153_v40 }
 0x914   : > { %10561 = vst [vmem:[#allocation124_spill] sm:$0xff] %v8156_v35  ;;  %v8158_v60 = vpop.permute.xlu1 %3397 }
 0x915   : > { %10562 = vst [vmem:[#allocation125_spill] sm:$0xff] %v8158_v60  ;;  %v3537_v60 = vrot.slane %v7641_v5, 5 }
 0x918   : > { %3557 = vrot.lane.b32.xlu2 %v3539_v6, %s5559_s15  ;;  %3515 = vrot.lane.b32.xlu0 %v3438_v13, %s5558_s14  ;;  %v3547_v13 = vrot.slane %v7730_v59, 5 }
 0x91a   : > { %v8164_v38 = vpop.permute.xlu2 %3443  ;;  %3567 = vrot.lane.b32.xlu1 %v3544_v11, %s5559_s15  ;;  %v8167_v17 = vpop.permute.xlu0 %3383 }
 0x91b   : > { %10563 = vst [vmem:[#allocation126_spill] sm:$0xff] %v8164_v38 }
 0x91c   : > { %10564 = vst [vmem:[#allocation127_spill] sm:$0xff] %v8167_v17  ;;  %v8169_v40 = vpop.permute.xlu1 %3403  ;;  %v3540_v17 = vrot.slane %v7667_v50, 5 }
 0x91d   : > { %10565 = vst [vmem:[#allocation128_spill] sm:$0xff] %v8169_v40  ;;  %v3545_v40 = vrot.slane %v7694_v51, 5 }
 0x920   : > { %3563 = vrot.lane.b32.xlu2 %v3542_v56, %s5559_s15  ;;  %3553 = vrot.lane.b32.xlu0 %v3537_v60, %s5559_s15 }
 0x922   : > { %v8176_v44 = vpop.permute.xlu2 %3449  ;;  %3573 = vrot.lane.b32.xlu1 %v3547_v13, %s5559_s15  ;;  %v8179_v61 = vpop.permute.xlu0 %3389 }
 0x923   : > { %10566 = vst [vmem:[#allocation129_spill] sm:$0xff] %v8176_v44 }
 0x924   : > { %10567 = vst [vmem:[#allocation130_spill] sm:$0xff] %v8179_v61  ;;  %v8181_v16 = vpop.permute.xlu1 %3441  ;;  %v3548_v61 = vrot.slane %v7700_v1, 5 }
 0x925   : > { %10568 = vst [vmem:[#allocation131_spill] sm:$0xff] %v8181_v16  ;;  %v3543_v16 = vrot.slane %v7702_v4, 5 }
 0x928   : > { %3569 = vrot.lane.b32.xlu2 %v3545_v40, %s5559_s15  ;;  %3559 = vrot.lane.b32.xlu0 %v3540_v17, %s5559_s15 }
 0x92a   : > { %v8188_v14 = vpop.permute.xlu2 %3455  ;;  %3579 = vrot.lane.b32.xlu1 %v3550_v47, %s5559_s15  ;;  %v8191_v35 = vpop.permute.xlu0 %3395 }
 0x92b   : > { %10569 = vst [vmem:[#allocation132_spill] sm:$0xff] %v8188_v14 }
 0x92c   : > { %10570 = vst [vmem:[#allocation133_spill] sm:$0xff] %v8191_v35  ;;  %v8193_v44 = vpop.permute.xlu1 %3447  ;;  %v3551_v35 = vrot.slane %v7744_v41, 5 }
 0x92d   : > { %10571 = vst [vmem:[#allocation134_spill] sm:$0xff] %v8193_v44  ;;  %v3546_v44 = vrot.slane %v7713_v46, 5 }
 0x930   : > { %3575 = vrot.lane.b32.xlu2 %v3548_v61, %s5559_s15  ;;  %3565 = vrot.lane.b32.xlu0 %v3543_v16, %s5559_s15 }
 0x932   : > { %v8199_v15 = vpop.permute.xlu2 %3461  ;;  %3601 = vrot.lane.b32.xlu1 %v3537_v60, %s5560_s16  ;;  %v8202_v14 = vpop.permute.xlu0 %3401  ;;  %v3549_v60 = vrot.slane %v7719_v58, 5 }
 0x933   : > { %10572 = vst [vmem:[#allocation135_spill] sm:$0xff] %v8199_v15 }
 0x934   : > { %10573 = vst [vmem:[#allocation136_spill] sm:$0xff] %v8202_v14  ;;  %v8204_v45 = vpop.permute.xlu1 %3453 }
 0x935   : > { %10574 = vst [vmem:[#allocation137_spill] sm:$0xff] %v8204_v45 }
 0x938   : > { %3581 = vrot.lane.b32.xlu2 %v3551_v35, %s5559_s15  ;;  %3571 = vrot.lane.b32.xlu0 %v3546_v44, %s5559_s15 }
 0x93a   : > { %v8210_v38 = vpop.permute.xlu2 %3467  ;;  %3607 = vrot.lane.b32.xlu1 %v3540_v17, %s5560_s16  ;;  %v8213_v15 = vpop.permute.xlu0 %3407  ;;  %v3552_v17 = vrot.slane %v7757_v19, 5 }
 0x93b   : > { %10575 = vst [vmem:[#allocation138_spill] sm:$0xff] %v8210_v38 }
 0x93c   : > { %10576 = vst [vmem:[#allocation139_spill] sm:$0xff] %v8213_v15  ;;  %v8215_v12 = vpop.permute.xlu1 %3459 }
 0x93d   : > { %10577 = vst [vmem:[#allocation140_spill] sm:$0xff] %v8215_v12 }
 0x940   : > { %3603 = vrot.lane.b32.xlu2 %v3538_v25, %s5560_s16  ;;  %3577 = vrot.lane.b32.xlu0 %v3549_v60, %s5559_s15 }
 0x942   : > { %v8220_v14 = vpop.permute.xlu2 %3489  ;;  %3613 = vrot.lane.b32.xlu1 %v3543_v16, %s5560_s16  ;;  %v8223_v45 = vpop.permute.xlu0 %3445 }
 0x943   : > { %10578 = vst [vmem:[#allocation141_spill] sm:$0xff] %v8220_v14 }
 0x944   : > { %10579 = vst [vmem:[#allocation142_spill] sm:$0xff] %v8223_v45  ;;  %v8225_v28 = vpop.permute.xlu1 %3465 }
 0x945   : > { %10580 = vst [vmem:[#allocation143_spill] sm:$0xff] %v8225_v28 }
 0x948   : > { %3609 = vrot.lane.b32.xlu2 %v3541_v0, %s5560_s16  ;;  %3583 = vrot.lane.b32.xlu0 %v3552_v17, %s5559_s15 }
 0x94a   : > { %v8230_v38 = vpop.permute.xlu2 %3495  ;;  %3619 = vrot.lane.b32.xlu1 %v3546_v44, %s5560_s16  ;;  %v8233_v25 = vpop.permute.xlu0 %3451 }
 0x94b   : > { %10581 = vst [vmem:[#allocation144_spill] sm:$0xff] %v8230_v38  ;;  %v3656_v38 = vrot.slane %v7721_v7, 6 }
 0x94c   : > { %10582 = vst [vmem:[#allocation145_spill] sm:$0xff] %v8233_v25  ;;  %v8235_v15 = vpop.permute.xlu1 %3471 }
 0x94d   : > { %10583 = vst [vmem:[#allocation146_spill] sm:$0xff] %v8235_v15 }
 0x950   : > { %3615 = vrot.lane.b32.xlu2 %v3544_v11, %s5560_s16  ;;  %3605 = vrot.lane.b32.xlu0 %v3539_v6, %s5560_s16  ;;  %v3651_v6 = vrot.slane %v7659_v30, 6 }
 0x952   : > { %v8239_v16 = vpop.permute.xlu2 %3501  ;;  %3625 = vrot.lane.b32.xlu1 %v3549_v60, %s5560_s16  ;;  %v8242_v28 = vpop.permute.xlu0 %3457 }
 0x953   : > { %10584 = vst [vmem:[#allocation147_spill] sm:$0xff] %v8239_v16 }
 0x954   : > { %10585 = vst [vmem:[#allocation148_spill] sm:$0xff] %v8242_v28  ;;  %v8244_v0 = vpop.permute.xlu1 %3493 }
 0x955   : > { %10586 = vst [vmem:[#allocation149_spill] sm:$0xff] %v8244_v0  ;;  %v3663_v0 = vrot.slane %v7744_v41, 6 }
 0x958   : > { %3621 = vrot.lane.b32.xlu2 %v3547_v13, %s5560_s16  ;;  %3611 = vrot.lane.b32.xlu0 %v3542_v56, %s5560_s16 }
 0x95a   : > { %v8248_v44 = vpop.permute.xlu2 %3507  ;;  %3631 = vrot.lane.b32.xlu1 %v3552_v17, %s5560_s16  ;;  %v8251_v15 = vpop.permute.xlu0 %3463  ;;  %v3649_v17 = vrot.slane %v7641_v5, 6 }
 0x95b   : > { %10587 = vst [vmem:[#allocation150_spill] sm:$0xff] %v8248_v44  ;;  %v3655_v44 = vrot.slane %v7702_v4, 6 }
 0x95c   : > { %10588 = vst [vmem:[#allocation151_spill] sm:$0xff] %v8251_v15  ;;  %v8253_v11 = vpop.permute.xlu1 %3499 }
 0x95d   : > { %10589 = vst [vmem:[#allocation152_spill] sm:$0xff] %v8253_v11 }
 0x960   : > { %3627 = vrot.lane.b32.xlu2 %v3550_v47, %s5560_s16  ;;  %3617 = vrot.lane.b32.xlu0 %v3545_v40, %s5560_s16  ;;  %v3654_v47 = vrot.slane %v7685_v27, 6 }
 0x962   : > { %v8258_v60 = vpop.permute.xlu2 %3513  ;;  %3669 = vrot.lane.b32.xlu1 %v3651_v6, %s5561_s17  ;;  %v8261_v56 = vpop.permute.xlu0 %3469 }
 0x963   : > { %10590 = vst [vmem:[#allocation153_spill] sm:$0xff] %v8258_v60 }
 0x964   : > { %10591 = vst [vmem:[#allocation154_spill] sm:$0xff] %v8261_v56  ;;  %v8263_v13 = vpop.permute.xlu1 %3505  ;;  %v3652_v56 = vrot.slane %v7667_v50, 6 }
 0x965   : > { %10592 = vst [vmem:[#allocation155_spill] sm:$0xff] %v8263_v13  ;;  %v3657_v13 = vrot.slane %v7694_v51, 6 }
 0x968   : > { %3665 = vrot.lane.b32.xlu2 %v3649_v17, %s5561_s17  ;;  %3623 = vrot.lane.b32.xlu0 %v3548_v61, %s5560_s16 }
 0x96a   : > { %v8269_v40 = vpop.permute.xlu2 %3519  ;;  %3675 = vrot.lane.b32.xlu1 %v3654_v47, %s5561_s17  ;;  %v8272_v60 = vpop.permute.xlu0 %3491 }
 0x96b   : > { %10593 = vst [vmem:[#allocation156_spill] sm:$0xff] %v8269_v40 }
 0x96c   : > { %10594 = vst [vmem:[#allocation157_spill] sm:$0xff] %v8272_v60  ;;  %v8274_v11 = vpop.permute.xlu1 %3511 }
 0x96d   : > { %10595 = vst [vmem:[#allocation158_spill] sm:$0xff] %v8274_v11  ;;  %v3650_v11 = vrot.slane %v7650_v18, 6 }
 0x970   : > { %3671 = vrot.lane.b32.xlu2 %v3652_v56, %s5561_s17  ;;  %3629 = vrot.lane.b32.xlu0 %v3551_v35, %s5560_s16  ;;  %v3660_v35 = vrot.slane %v7700_v1, 6 }
 0x972   : > { %v8280_v15 = vpop.permute.xlu2 %3557  ;;  %3681 = vrot.lane.b32.xlu1 %v3657_v13, %s5561_s17  ;;  %v8283_v61 = vpop.permute.xlu0 %3497 }
 0x973   : > { %10596 = vst [vmem:[#allocation159_spill] sm:$0xff] %v8280_v15  ;;  %v3653_v15 = vrot.slane %v7676_v55, 6 }
 0x974   : > { %10597 = vst [vmem:[#allocation160_spill] sm:$0xff] %v8283_v61  ;;  %v8285_v40 = vpop.permute.xlu1 %3517 }
 0x975   : > { %10598 = vst [vmem:[#allocation161_spill] sm:$0xff] %v8285_v40  ;;  %v3658_v40 = vrot.slane %v7713_v46, 6 }
 0x978   : > { %3677 = vrot.lane.b32.xlu2 %v3655_v44, %s5561_s17  ;;  %3667 = vrot.lane.b32.xlu0 %v3650_v11, %s5561_s17 }
 0x97a   : > { %v8292_v28 = vpop.permute.xlu2 %3563  ;;  %3687 = vrot.lane.b32.xlu1 %v3660_v35, %s5561_s17  ;;  %v8295_v25 = vpop.permute.xlu0 %3503 }
 0x97b   : > { %10599 = vst [vmem:[#allocation162_spill] sm:$0xff] %v8292_v28 }
 0x97c   : > { %10600 = vst [vmem:[#allocation163_spill] sm:$0xff] %v8295_v25  ;;  %v8297_v12 = vpop.permute.xlu1 %3555  ;;  %v3661_v25 = vrot.slane %v7719_v58, 6 }
 0x97d   : > { %10601 = vst [vmem:[#allocation164_spill] sm:$0xff] %v8297_v12 }
 0x980   : > { %3683 = vrot.lane.b32.xlu2 %v3658_v40, %s5561_s17  ;;  %3673 = vrot.lane.b32.xlu0 %v3653_v15, %s5561_s17 }
 0x982   : > { %v8304_v45 = vpop.permute.xlu2 %3569  ;;  %3693 = vrot.lane.b32.xlu1 %v3663_v0, %s5561_s17  ;;  %v8307_v28 = vpop.permute.xlu0 %3509 }
 0x983   : > { %10602 = vst [vmem:[#allocation165_spill] sm:$0xff] %v8304_v45 }
 0x984   : > { %10603 = vst [vmem:[#allocation166_spill] sm:$0xff] %v8307_v28  ;;  %v8309_v16 = vpop.permute.xlu1 %3561  ;;  %v3664_v28 = vrot.slane %v7757_v19, 6 }
 0x985   : > { %10604 = vst [vmem:[#allocation167_spill] sm:$0xff] %v8309_v16  ;;  %v3659_v16 = vrot.slane %v7730_v59, 6 }
 0x988   : > { %3689 = vrot.lane.b32.xlu2 %v3661_v25, %s5561_s17  ;;  %3679 = vrot.lane.b32.xlu0 %v3656_v38, %s5561_s17 }
 0x98a   : > { %v8315_v14 = vpop.permute.xlu2 %3575  ;;  %3715 = vrot.lane.b32.xlu1 %v3650_v11, %s5562_s19  ;;  %v8318_v45 = vpop.permute.xlu0 %3515  ;;  %v3662_v11 = vrot.slane %v7735_v31, 6 }
 0x98b   : > { %10605 = vst [vmem:[#allocation168_spill] sm:$0xff] %v8315_v14 }
 0x98c   : > { %10606 = vst [vmem:[#allocation169_spill] sm:$0xff] %v8318_v45  ;;  %v8320_v61 = vpop.permute.xlu1 %3567 }
 0x98d   : > { %10607 = vst [vmem:[#allocation170_spill] sm:$0xff] %v8320_v61 }
 0x990   : > { %3695 = vrot.lane.b32.xlu2 %v3664_v28, %s5561_s17  ;;  %3685 = vrot.lane.b32.xlu0 %v3659_v16, %s5561_s17 }
 0x992   : > { %v8326_v12 = vpop.permute.xlu2 %3581  ;;  %3721 = vrot.lane.b32.xlu1 %v3653_v15, %s5562_s19  ;;  %v8329_v14 = vpop.permute.xlu0 %3553 }
 0x993   : > { %10608 = vst [vmem:[#allocation171_spill] sm:$0xff] %v8326_v12  ;;  %v3762_v12 = vrot.slane %v7650_v18, 7 }
 0x994   : > { %10609 = vst [vmem:[#allocation172_spill] sm:$0xff] %v8329_v14  ;;  %v8331_v60 = vpop.permute.xlu1 %3573 }
 0x995   : > { %10610 = vst [vmem:[#allocation173_spill] sm:$0xff] %v8331_v60 }
 0x998   : > { %3717 = vrot.lane.b32.xlu2 %v3651_v6, %s5562_s19  ;;  %3691 = vrot.lane.b32.xlu0 %v3662_v11, %s5561_s17 }
 0x99a   : > { %v8336_v45 = vpop.permute.xlu2 %3603  ;;  %3727 = vrot.lane.b32.xlu1 %v3656_v38, %s5562_s19  ;;  %v8339_v61 = vpop.permute.xlu0 %3559 }
 0x99b   : > { %10611 = vst [vmem:[#allocation174_spill] sm:$0xff] %v8336_v45 }
 0x99c   : > { %10612 = vst [vmem:[#allocation175_spill] sm:$0xff] %v8339_v61  ;;  %v8341_v36 = vpop.permute.xlu1 %3579 }
 0x99d   : > { %10613 = vst [vmem:[#allocation176_spill] sm:$0xff] %v8341_v36 }
 0x9a0   : > { %3723 = vrot.lane.b32.xlu2 %v3654_v47, %s5562_s19  ;;  %3713 = vrot.lane.b32.xlu0 %v3649_v17, %s5562_s19 }
 0x9a2   : > { %v8345_v15 = vpop.permute.xlu2 %3609  ;;  %3733 = vrot.lane.b32.xlu1 %v3659_v16, %s5562_s19  ;;  %v8348_v60 = vpop.permute.xlu0 %3565  ;;  %v3761_v16 = vrot.slane %v7641_v5, 7 }
 0x9a3   : > { %10614 = vst [vmem:[#allocation177_spill] sm:$0xff] %v8345_v15 }
 0x9a4   : > { %10615 = vst [vmem:[#allocation178_spill] sm:$0xff] %v8348_v60  ;;  %v8350_v6 = vpop.permute.xlu1 %3601 }
 0x9a5   : > { %10616 = vst [vmem:[#allocation179_spill] sm:$0xff] %v8350_v6 }
 0x9a8   : > { %3729 = vrot.lane.b32.xlu2 %v3657_v13, %s5562_s19  ;;  %3719 = vrot.lane.b32.xlu0 %v3652_v56, %s5562_s19 }
 0x9aa   : > { %v8354_v38 = vpop.permute.xlu2 %3615  ;;  %3739 = vrot.lane.b32.xlu1 %v3662_v11, %s5562_s19  ;;  %v8357_v36 = vpop.permute.xlu0 %3571  ;;  %v3764_v11 = vrot.slane %v7667_v50, 7 }
 0x9ab   : > { %10617 = vst [vmem:[#allocation180_spill] sm:$0xff] %v8354_v38  ;;  %v3776_v38 = vrot.slane %v7757_v19, 7 }
 0x9ac   : > { %10618 = vst [vmem:[#allocation181_spill] sm:$0xff] %v8357_v36  ;;  %v8359_v47 = vpop.permute.xlu1 %3607 }
 0x9ad   : > { %10619 = vst [vmem:[#allocation182_spill] sm:$0xff] %v8359_v47 }
 0x9b0   : > { %3735 = vrot.lane.b32.xlu2 %v3660_v35, %s5562_s19  ;;  %3725 = vrot.lane.b32.xlu0 %v3655_v44, %s5562_s19 }
 0x9b2   : > { %v8364_v17 = vpop.permute.xlu2 %3621  ;;  %3777 = vrot.lane.b32.xlu1 %v3761_v16, %s5563_s20  ;;  %v8367_v56 = vpop.permute.xlu0 %3577 }
 0x9b3   : > { %10620 = vst [vmem:[#allocation183_spill] sm:$0xff] %v8364_v17 }
 0x9b4   : > { %10621 = vst [vmem:[#allocation184_spill] sm:$0xff] %v8367_v56  ;;  %v8369_v13 = vpop.permute.xlu1 %3613 }
 0x9b5   : > { %10622 = vst [vmem:[#allocation185_spill] sm:$0xff] %v8369_v13 }
 0x9b8   : > { %3741 = vrot.lane.b32.xlu2 %v3663_v0, %s5562_s19  ;;  %3731 = vrot.lane.b32.xlu0 %v3658_v40, %s5562_s19  ;;  %v3767_v0 = vrot.slane %v7702_v4, 7 }
 0x9ba   : > { %v8374_v35 = vpop.permute.xlu2 %3627  ;;  %3783 = vrot.lane.b32.xlu1 %v3764_v11, %s5563_s20  ;;  %v8377_v44 = vpop.permute.xlu0 %3583 }
 0x9bb   : > { %10623 = vst [vmem:[#allocation186_spill] sm:$0xff] %v8374_v35 }
 0x9bc   : > { %10624 = vst [vmem:[#allocation187_spill] sm:$0xff] %v8377_v44  ;;  %v8379_v17 = vpop.permute.xlu1 %3619  ;;  %v3765_v44 = vrot.slane %v7676_v55, 7 }
 0x9bd   : > { %10625 = vst [vmem:[#allocation188_spill] sm:$0xff] %v8379_v17  ;;  %v3770_v17 = vrot.slane %v7713_v46, 7 }
 0x9c0   : > { %3779 = vrot.lane.b32.xlu2 %v3762_v12, %s5563_s20  ;;  %3737 = vrot.lane.b32.xlu0 %v3661_v25, %s5562_s19 }
 0x9c2   : > { %v8385_v56 = vpop.permute.xlu2 %3665  ;;  %3789 = vrot.lane.b32.xlu1 %v3767_v0, %s5563_s20  ;;  %v8388_v40 = vpop.permute.xlu0 %3605 }
 0x9c3   : > { %10626 = vst [vmem:[#allocation189_spill] sm:$0xff] %v8385_v56 }
 0x9c4   : > { %10627 = vst [vmem:[#allocation190_spill] sm:$0xff] %v8388_v40  ;;  %v8390_v35 = vpop.permute.xlu1 %3625  ;;  %v3768_v40 = vrot.slane %v7721_v7, 7 }
 0x9c5   : > { %10628 = vst [vmem:[#allocation191_spill] sm:$0xff] %v8390_v35  ;;  %v3763_v35 = vrot.slane %v7659_v30, 7 }
 0x9c8   : > { %3785 = vrot.lane.b32.xlu2 %v3765_v44, %s5563_s20  ;;  %3743 = vrot.lane.b32.xlu0 %v3664_v28, %s5562_s19  ;;  %v3773_v28 = vrot.slane %v7719_v58, 7 }
 0x9ca   : > { %v8396_v36 = vpop.permute.xlu2 %3671  ;;  %3795 = vrot.lane.b32.xlu1 %v3770_v17, %s5563_s20  ;;  %v8399_v25 = vpop.permute.xlu0 %3611 }
 0x9cb   : > { %10629 = vst [vmem:[#allocation192_spill] sm:$0xff] %v8396_v36 }
 0x9cc   : > { %10630 = vst [vmem:[#allocation193_spill] sm:$0xff] %v8399_v25  ;;  %v8401_v13 = vpop.permute.xlu1 %3631  ;;  %v3766_v25 = vrot.slane %v7685_v27, 7 }
 0x9cd   : > { %10631 = vst [vmem:[#allocation194_spill] sm:$0xff] %v8401_v13  ;;  %v3771_v13 = vrot.slane %v7730_v59, 7 }
 0x9d0   : > { %3791 = vrot.lane.b32.xlu2 %v3768_v40, %s5563_s20  ;;  %3781 = vrot.lane.b32.xlu0 %v3763_v35, %s5563_s20 }
 0x9d2   : > { %v8408_v60 = vpop.permute.xlu2 %3677  ;;  %3801 = vrot.lane.b32.xlu1 %v3773_v28, %s5563_s20  ;;  %v8411_v36 = vpop.permute.xlu0 %3617 }
 0x9d3   : > { %10632 = vst [vmem:[#allocation195_spill] sm:$0xff] %v8408_v60 }
 0x9d4   : > { %10633 = vst [vmem:[#allocation196_spill] sm:$0xff] %v8411_v36  ;;  %v8413_v47 = vpop.permute.xlu1 %3669  ;;  %v3774_v36 = vrot.slane %v7735_v31, 7 }
 0x9d5   : > { %10634 = vst [vmem:[#allocation197_spill] sm:$0xff] %v8413_v47  ;;  %v3769_v47 = vrot.slane %v7694_v51, 7 }
 0x9d8   : > { %3797 = vrot.lane.b32.xlu2 %v3771_v13, %s5563_s20  ;;  %3787 = vrot.lane.b32.xlu0 %v3766_v25, %s5563_s20 }
 0x9da   : > { %v8420_v61 = vpop.permute.xlu2 %3683  ;;  %3807 = vrot.lane.b32.xlu1 %v3776_v38, %s5563_s20  ;;  %v8423_v60 = vpop.permute.xlu0 %3623 }
 0x9db   : > { %10635 = vst [vmem:[#allocation198_spill] sm:$0xff] %v8420_v61 }
 0x9dc   : > { %10636 = vst [vmem:[#allocation199_spill] sm:$0xff] %v8423_v60  ;;  %v8425_v56 = vpop.permute.xlu1 %3675  ;;  %v3772_v60 = vrot.slane %v7700_v1, 7 }
 0x9dd   : > { %10637 = vst [vmem:[#allocation200_spill] sm:$0xff] %v8425_v56 }
 0x9e0   : > { %3803 = vrot.lane.b32.xlu2 %v3774_v36, %s5563_s20  ;;  %3793 = vrot.lane.b32.xlu0 %v3769_v47, %s5563_s20 }
 0x9e2   : > { %v8431_v59 = vpop.permute.xlu2 %3689  ;;  %3829 = vrot.lane.b32.xlu1 %v3763_v35, %s5564_s21  ;;  %v8434_v61 = vpop.permute.xlu0 %3629  ;;  %v3775_v35 = vrot.slane %v7744_v41, 7 }
 0x9e3   : > { %10638 = vst [vmem:[#allocation201_spill] sm:$0xff] %v8431_v59 }
 0x9e4   : > { %10639 = vst [vmem:[#allocation202_spill] sm:$0xff] %v8434_v61  ;;  %v8436_v19 = vpop.permute.xlu1 %3681 }
 0x9e5   : > { %10640 = vst [vmem:[#allocation203_spill] sm:$0xff] %v8436_v19 }
 0x9e8   : > { %3825 = vrot.lane.b32.xlu2 %v3761_v16, %s5564_s21  ;;  %3799 = vrot.lane.b32.xlu0 %v3772_v60, %s5563_s20 }
 0x9ea   : > { %v8441_v31 = vpop.permute.xlu2 %3695  ;;  %3835 = vrot.lane.b32.xlu1 %v3766_v25, %s5564_s21  ;;  %v8444_v56 = vpop.permute.xlu0 %3667 }
 0x9eb   : > { %10641 = vst [vmem:[#allocation204_spill] sm:$0xff] %v8441_v31 }
 0x9ec   : > { %10642 = vst [vmem:[#allocation205_spill] sm:$0xff] %v8444_v56  ;;  %v8446_v59 = vpop.permute.xlu1 %3687 }
 0x9ed   : > { %10643 = vst [vmem:[#allocation206_spill] sm:$0xff] %v8446_v59 }
 0x9f0   : > { %3831 = vrot.lane.b32.xlu2 %v3764_v11, %s5564_s21  ;;  %3805 = vrot.lane.b32.xlu0 %v3775_v35, %s5563_s20 }
 0x9f2   : > { %v8451_v61 = vpop.permute.xlu2 %3717  ;;  %3841 = vrot.lane.b32.xlu1 %v3769_v47, %s5564_s21  ;;  %v8454_v16 = vpop.permute.xlu0 %3673 }
 0x9f3   : > { %10644 = vst [vmem:[#allocation207_spill] sm:$0xff] %v8451_v61 }
 0x9f4   : > { %10645 = vst [vmem:[#allocation208_spill] sm:$0xff] %v8454_v16  ;;  %v8456_v19 = vpop.permute.xlu1 %3693 }
 0x9f5   : > { %10646 = vst [vmem:[#allocation209_spill] sm:$0xff] %v8456_v19 }
 0x9f8   : > { %3837 = vrot.lane.b32.xlu2 %v3767_v0, %s5564_s21  ;;  %3827 = vrot.lane.b32.xlu0 %v3762_v12, %s5564_s21  ;;  %v8477_v12 = vld [vmem:[%s10412_s4] ss:$0 sm:$0xff] }
 0x9fa   : > { %v8460_v25 = vpop.permute.xlu2 %3723  ;;  %3847 = vrot.lane.b32.xlu1 %v3772_v60, %s5564_s21  ;;  %v8463_v31 = vpop.permute.xlu0 %3679  ;;  %v2907_v60 = vadd.f32 %v8477_v12, %v7655_v23 }
 0x9fb   : > { %10647 = vst [vmem:[#allocation210_spill] sm:$0xff] %v8460_v25 }
 0x9fc   : > { %10648 = vst [vmem:[#allocation211_spill] sm:$0xff] %v8463_v31  ;;  %v8465_v11 = vpop.permute.xlu1 %3715  ;;  %v8483_v25 = vmax.f32 %v2907_v60, 0.0 }
 0x9fd   : > { %10649 = vst [vmem:[#allocation212_spill] sm:$0xff] %v8465_v11 }
 0xa00   : > { %3843 = vrot.lane.b32.xlu2 %v3770_v17, %s5564_s21  ;;  %3833 = vrot.lane.b32.xlu0 %v3765_v44, %s5564_s21 }
 0xa02   : > { %v8469_v47 = vpop.permute.xlu2 %3729  ;;  %3853 = vrot.lane.b32.xlu1 %v3775_v35, %s5564_s21  ;;  %v8472_v19 = vpop.permute.xlu0 %3685  ;;  %v2925_v35 = vadd.f32 %v8477_v12, %v7682_v39 }
 0xa03   : > { %10650 = vst [vmem:[#allocation213_spill] sm:$0xff] %v8469_v47 }
 0xa04   : > { %10651 = vst [vmem:[#allocation214_spill] sm:$0xff] %v8472_v19  ;;  %v8481_v0 = vpop.permute.xlu1 %3721  ;;  %v8497_v23 = vmax.f32 %v2925_v35, 0.0 }
 0xa05   : > { %10652 = vst [vmem:[#allocation215_spill] sm:$0xff] %v8481_v0 }
 0xa06   : > { %v4194_v31 = vrot.slane %v8497_v23, 1 }
 0xa08   : > { %3849 = vrot.lane.b32.xlu2 %v3773_v28, %s5564_s21  ;;  %3839 = vrot.lane.b32.xlu0 %v3768_v40, %s5564_s21  ;;  %v2942_v28 = vpop.f32.mrf.mxu1  ;;  %v2913_v40 = vadd.f32 %v8477_v12, %v7664_v48  ;;  %v2901_v48 = vadd.f32 %v8477_v12, %v7646_v8 }
 0xa09   : > { %v2943_v39 = vadd.f32 %v8477_v12, %v2942_v28 }
 0xa0a   : > { %v8487_v17 = vpop.permute.xlu2 %3735  ;;  %4144 = vrot.lane.b32.xlu1 %v8483_v25, %s5547_s30  ;;  %v8491_v44 = vpop.permute.xlu0 %3691  ;;  %v8512_v35 = vmax.f32 %v2913_v40, 0.0  ;;  %v2961_v40 = vadd.f32 %v8477_v12, %v7689_v21  ;;  %v2919_v21 = vadd.f32 %v8477_v12, %v7673_v53  ;;  %v2967_v53 = vadd.f32 %v8477_v12, %v7708_v20 }
 0xa0b   : > { %10653 = vst [vmem:[#allocation216_spill] sm:$0xff] %v8487_v17 }
 0xa0c   : > { %10654 = vst [vmem:[#allocation217_spill] sm:$0xff] %v8491_v44  ;;  %v8495_v19 = vpop.permute.xlu1 %3727  ;;  %v8537_v8 = vmax.f32 %v2961_v40, 0.0  ;;  %v8559_v59 = vmax.f32 %v2919_v21, 0.0 }
 0xa0d   : > { %10655 = vst [vmem:[#allocation218_spill] sm:$0xff] %v8495_v19 }
 0xa0e   : > { %v4305_v7 = vrot.slane %v8559_v59, 2 }
 0xa10   : > { %3855 = vrot.lane.b32.xlu2 %v3776_v38, %s5564_s21  ;;  %3845 = vrot.lane.b32.xlu0 %v3771_v13, %s5564_s21  ;;  %v8514_v38 = vmax.f32 %v2943_v39, 0.0  ;;  %v2931_v13 = vadd.f32 %v8477_v12, %v7692_v57  ;;  %v2949_v57 = vadd.f32 %v8477_v12, %v7671_v52 }
 0xa12   : > { %v8503_v60 = vpop.permute.xlu2 %3741  ;;  %4150 = vrot.lane.b32.xlu1 %v8497_v23, %s5547_s30  ;;  %v8507_v44 = vpop.permute.xlu0 %3713 }
 0xa13   : > { %10656 = vst [vmem:[#allocation219_spill] sm:$0xff] %v8503_v60 }
 0xa14   : > { %10657 = vst [vmem:[#allocation220_spill] sm:$0xff] %v8507_v44  ;;  %v8510_v17 = vpop.permute.xlu1 %3733 }
 0xa15   : > { %10658 = vst [vmem:[#allocation221_spill] sm:$0xff] %v8510_v17  ;;  %v8533_v17 = vmax.f32 %v2901_v48, 0.0 }
 0xa17   : > { %v10417_v20 = vrot.slane %v8533_v17, 1 }
 0xa18   : > { %4146 = vrot.lane.b32.xlu2 %v8512_v35, %s5547_s30  ;;  %3851 = vrot.lane.b32.xlu0 %v3774_v36, %s5564_s21  ;;  %v8535_v36 = vmax.f32 %v2931_v13, 0.0  ;;  %v2979_v13 = vadd.f32 %v8477_v12, %v7739_v34  ;;  %v2937_v34 = vadd.f32 %v8477_v12, %v7711_v26  ;;  %v2955_v26 = vadd.f32 %v8477_v12, %v7680_v33 }
 0xa19   : > { %v4193_v33 = vrot.slane %v8559_v59, 1 }
 0xa1a   : > { %v8523_v60 = vpop.permute.xlu2 %3779  ;;  %4156 = vrot.lane.b32.xlu1 %v8514_v38, %s5547_s30  ;;  %v8527_v28 = vpop.permute.xlu0 %3719  ;;  %v8561_v52 = vmax.f32 %v2979_v13, 0.0  ;;  %v8579_v13 = vmax.f32 %v2967_v53, 0.0 }
 0xa1b   : > { %10659 = vst [vmem:[#allocation222_spill] sm:$0xff] %v8523_v60 }
 0xa1c   : > { %10660 = vst [vmem:[#allocation223_spill] sm:$0xff] %v8527_v28  ;;  %v8531_v39 = vpop.permute.xlu1 %3739  ;;  %v4315_v46 = vrot.slane %v8561_v52, 2  ;;  %v4313_v43 = vrot.slane %v8579_v13, 2 }
 0xa1d   : > { %10661 = vst [vmem:[#allocation224_spill] sm:$0xff] %v8531_v39  ;;  %v8557_v39 = vmax.f32 %v2949_v57, 0.0 }
 0xa1f   : > { %v4310_v58 = vrot.slane %v8557_v39, 2 }
 0xa20   : > { %4152 = vrot.lane.b32.xlu2 %v8535_v36, %s5547_s30  ;;  %4142 = vrot.lane.b32.xlu0 %v8533_v17, %s5547_s30 }
 0xa22   : > { %v8547_v47 = vpop.permute.xlu2 %3785  ;;  %4162 = vrot.lane.b32.xlu1 %v8537_v8, %s5547_s30  ;;  %v8551_v48 = vpop.permute.xlu0 %3725 }
 0xa23   : > { %10662 = vst [vmem:[#allocation225_spill] sm:$0xff] %v8547_v47 }
 0xa24   : > { %10663 = vst [vmem:[#allocation226_spill] sm:$0xff] %v8551_v48  ;;  %v8555_v40 = vpop.permute.xlu1 %3777  ;;  %v8581_v48 = vmax.f32 %v2937_v34, 0.0 }
 0xa25   : > { %10664 = vst [vmem:[#allocation227_spill] sm:$0xff] %v8555_v40 }
 0xa26   : > { %10668 = vst [vmem:[#allocation231_spill] sm:$0xff] %v8581_v48  ;;  %v4308_v9 = vrot.slane %v8581_v48, 2 }
 0xa28   : > { %4158 = vrot.lane.b32.xlu2 %v8557_v39, %s5547_s30  ;;  %4148 = vrot.lane.b32.xlu0 %v8559_v59, %s5547_s30 }
 0xa2a   : > { %v8571_v61 = vpop.permute.xlu2 %3791  ;;  %4168 = vrot.lane.b32.xlu1 %v8561_v52, %s5547_s30  ;;  %v8575_v57 = vpop.permute.xlu0 %3731 }
 0xa2b   : > { %10665 = vst [vmem:[#allocation228_spill] sm:$0xff] %v8571_v61 }
 0xa2c   : > { %10666 = vst [vmem:[#allocation229_spill] sm:$0xff] %v8575_v57  ;;  %v8577_v21 = vpop.permute.xlu1 %3783  ;;  %v2985_v57 = vadd.f32 %v8477_v12, %v7750_v3  ;;  %v2973_v3 = vadd.f32 %v8477_v12, %v7727_v22  ;;  %v4196_v22 = vrot.slane %v8581_v48, 1 }
 0xa2d   : > { %10667 = vst [vmem:[#allocation230_spill] sm:$0xff] %v8577_v21  ;;  %v8601_v21 = vmax.f32 %v2955_v26, 0.0 }
 0xa2e   : > { %v8603_v61 = vmax.f32 %v2985_v57, 0.0  ;;  %v8619_v57 = vmax.f32 %v2973_v3, 0.0 }
 0xa2f   : > { %10672 = vst [vmem:[#allocation235_spill] sm:$0xff] %v8601_v21  ;;  %v4199_v41 = vrot.slane %v8601_v21, 1  ;;  %v4311_v27 = vrot.slane %v8601_v21, 2 }
 0xa30   : > { %4164 = vrot.lane.b32.xlu2 %v8579_v13, %s5547_s30  ;;  %4154 = vrot.lane.b32.xlu0 %v8581_v48, %s5547_s30  ;;  %10676 = vst [vmem:[#allocation239_spill] sm:$0xff] %v8619_v57  ;;  %v4316_v63 = vrot.slane %v8603_v61, 2 }
 0xa32   : > { %v8592_v28 = vpop.permute.xlu2 %3797  ;;  %4206 = vrot.lane.b32.xlu1 %v10417_v20, %s5549_s7  ;;  %v8597_v53 = vpop.permute.xlu0 %3737 }
 0xa33   : > { %10669 = vst [vmem:[#allocation232_spill] sm:$0xff] %v8592_v28 }
 0xa34   : > { %10670 = vst [vmem:[#allocation233_spill] sm:$0xff] %v8597_v53  ;;  %v8599_v34 = vpop.permute.xlu1 %3789  ;;  %v4191_v53 = vrot.slane %v8483_v25, 1 }
 0xa35   : > { %10671 = vst [vmem:[#allocation234_spill] sm:$0xff] %v8599_v34  ;;  %v2990_v34 = vpop.f32.mrf.mxu2 }
 0xa38   : > { %4170 = vrot.lane.b32.xlu2 %v8603_v61, %s5547_s30  ;;  %4160 = vrot.lane.b32.xlu0 %v8601_v21, %s5547_s30 }
 0xa3a   : > { %v8612_v20 = vpop.permute.xlu2 %3803  ;;  %4212 = vrot.lane.b32.xlu1 %v4193_v33, %s5549_s7  ;;  %v8615_v28 = vpop.permute.xlu0 %3743 }
 0xa3b   : > { %10673 = vst [vmem:[#allocation236_spill] sm:$0xff] %v8612_v20  ;;  %v2991_v20 = vadd.f32 %v8477_v12, %v2990_v34 }
 0xa3c   : > { %10674 = vst [vmem:[#allocation237_spill] sm:$0xff] %v8615_v28  ;;  %v8617_v26 = vpop.permute.xlu1 %3795 }
 0xa3d   : > { %10675 = vst [vmem:[#allocation238_spill] sm:$0xff] %v8617_v26  ;;  %v8634_v26 = vmax.f32 %v2991_v20, 0.0  ;;  %v4197_v20 = vrot.slane %v8514_v38, 1 }
 0xa3f   : > { %10680 = vst [vmem:[#allocation243_spill] sm:$0xff] %v8634_v26  ;;  %v4205_v47 = vrot.slane %v8634_v26, 1 }
 0xa40   : > { %4208 = vrot.lane.b32.xlu2 %v4191_v53, %s5549_s7  ;;  %4166 = vrot.lane.b32.xlu0 %v8619_v57, %s5547_s30 }
 0xa42   : > { %v8627_v19 = vpop.permute.xlu2 %3825  ;;  %4218 = vrot.lane.b32.xlu1 %v4196_v22, %s5549_s7  ;;  %v8630_v28 = vpop.permute.xlu0 %3781 }
 0xa43   : > { %10677 = vst [vmem:[#allocation240_spill] sm:$0xff] %v8627_v19  ;;  %v4202_v19 = vrot.slane %v8619_v57, 1 }
 0xa44   : > { %10678 = vst [vmem:[#allocation241_spill] sm:$0xff] %v8630_v28  ;;  %v8632_v3 = vpop.permute.xlu1 %3801 }
 0xa45   : > { %10679 = vst [vmem:[#allocation242_spill] sm:$0xff] %v8632_v3  ;;  %v4192_v3 = vrot.slane %v8512_v35, 1 }
 0xa48   : > { %4214 = vrot.lane.b32.xlu2 %v4194_v31, %s5549_s7  ;;  %4172 = vrot.lane.b32.xlu0 %v8634_v26, %s5547_s30 }
 0xa4a   : > { %v8641_v12 = vpop.permute.xlu2 %3831  ;;  %4224 = vrot.lane.b32.xlu1 %v4199_v41, %s5549_s7  ;;  %v8644_v34 = vpop.permute.xlu0 %3787 }
 0xa4b   : > { %10681 = vst [vmem:[#allocation244_spill] sm:$0xff] %v8641_v12 }
 0xa4c   : > { %10682 = vst [vmem:[#allocation245_spill] sm:$0xff] %v8644_v34  ;;  %v8646_v28 = vpop.permute.xlu1 %3807  ;;  %v4195_v34 = vrot.slane %v8535_v36, 1 }
 0xa4d   : > { %10683 = vst [vmem:[#allocation246_spill] sm:$0xff] %v8646_v28  ;;  %v4200_v28 = vrot.slane %v8537_v8, 1 }
 0xa50   : > { %4220 = vrot.lane.b32.xlu2 %v4197_v20, %s5549_s7  ;;  %4210 = vrot.lane.b32.xlu0 %v4192_v3, %s5549_s7 }
 0xa52   : > { %v8653_v40 = vpop.permute.xlu2 %3837  ;;  %4230 = vrot.lane.b32.xlu1 %v4202_v19, %s5549_s7  ;;  %v8656_v12 = vpop.permute.xlu0 %3793 }
 0xa53   : > { %10684 = vst [vmem:[#allocation247_spill] sm:$0xff] %v8653_v40 }
 0xa54   : > { %10685 = vst [vmem:[#allocation248_spill] sm:$0xff] %v8656_v12  ;;  %v8658_v44 = vpop.permute.xlu1 %3829  ;;  %v4203_v12 = vrot.slane %v8561_v52, 1 }
 0xa55   : > { %10686 = vst [vmem:[#allocation249_spill] sm:$0xff] %v8658_v44  ;;  %v4198_v44 = vrot.slane %v8557_v39, 1 }
 0xa58   : > { %4226 = vrot.lane.b32.xlu2 %v4200_v28, %s5549_s7  ;;  %4216 = vrot.lane.b32.xlu0 %v4195_v34, %s5549_s7 }
 0xa5a   : > { %v8665_v0 = vpop.permute.xlu2 %3843  ;;  %4236 = vrot.lane.b32.xlu1 %v4205_v47, %s5549_s7  ;;  %v8668_v40 = vpop.permute.xlu0 %3799 }
 0xa5b   : > { %10687 = vst [vmem:[#allocation250_spill] sm:$0xff] %v8665_v0 }
 0xa5c   : > { %10688 = vst [vmem:[#allocation251_spill] sm:$0xff] %v8668_v40  ;;  %v8670_v6 = vpop.permute.xlu1 %3835  ;;  %v4201_v40 = vrot.slane %v8579_v13, 1 }
 0xa5d   : > { %10689 = vst [vmem:[#allocation252_spill] sm:$0xff] %v8670_v6  ;;  %v10693_v6 = vrot.slane %v8533_v17, 1 }
 0xa60   : > { %4232 = vrot.lane.b32.xlu2 %v4203_v12, %s5549_s7  ;;  %4222 = vrot.lane.b32.xlu0 %v4198_v44, %s5549_s7 }
 0xa62   : > { %v8676_v16 = vpop.permute.xlu2 %3849  ;;  %4258 = vrot.lane.b32.xlu1 %v4192_v3, %s5551_s9  ;;  %v8679_v14 = vpop.permute.xlu0 %3805  ;;  %v4204_v3 = vrot.slane %v8603_v61, 1 }
 0xa63   : > { %10690 = vst [vmem:[#allocation253_spill] sm:$0xff] %v8676_v16 }
 0xa64   : > { %10691 = vst [vmem:[#allocation254_spill] sm:$0xff] %v8679_v14  ;;  %v8681_v0 = vpop.permute.xlu1 %3841 }
 0xa65   : > { %10692 = vst [vmem:[#allocation255_spill] sm:$0xff] %v8681_v0 }
 0xa68   : > { %4254 = vrot.lane.b32.xlu2 %v10693_v6, %s5551_s9  ;;  %4228 = vrot.lane.b32.xlu0 %v4201_v40, %s5549_s7 }
 0xa6a   : > { %v8688_v15 = vpop.permute.xlu2 %3855  ;;  %4264 = vrot.lane.b32.xlu1 %v4195_v34, %s5551_s9  ;;  %v8691_v60 = vpop.permute.xlu0 %3827 }
 0xa6b   : > { %10694 = vst [vmem:[#allocation256_spill] sm:$0xff] %v8688_v15 }
 0xa6c   : > { %10695 = vst [vmem:[#allocation257_spill] sm:$0xff] %v8691_v60  ;;  %v8693_v16 = vpop.permute.xlu1 %3847  ;;  %v4302_v60 = vrot.slane %v8533_v17, 2 }
 0xa6d   : > { %10696 = vst [vmem:[#allocation258_spill] sm:$0xff] %v8693_v16  ;;  %v4304_v16 = vrot.slane %v8512_v35, 2 }
 0xa70   : > { %4260 = vrot.lane.b32.xlu2 %v4193_v33, %s5551_s9  ;;  %4234 = vrot.lane.b32.xlu0 %v4204_v3, %s5549_s7 }
 0xa72   : > { %v8698_v14 = vpop.permute.xlu2 %4146  ;;  %4270 = vrot.lane.b32.xlu1 %v4198_v44, %s5551_s9  ;;  %v8701_v6 = vpop.permute.xlu0 %3833 }
 0xa73   : > { %10697 = vst [vmem:[#allocation259_spill] sm:$0xff] %v8698_v14  ;;  %v4421_v14 = vrot.slane %v8514_v38, 3 }
 0xa74   : > { %10698 = vst [vmem:[#allocation260_spill] sm:$0xff] %v8701_v6  ;;  %v8703_v0 = vpop.permute.xlu1 %3853  ;;  %v4307_v6 = vrot.slane %v8535_v36, 2 }
 0xa75   : > { %10699 = vst [vmem:[#allocation261_spill] sm:$0xff] %v8703_v0 }
 0xa78   : > { %4266 = vrot.lane.b32.xlu2 %v4196_v22, %s5551_s9  ;;  %4256 = vrot.lane.b32.xlu0 %v4191_v53, %s5551_s9 }
 0xa7a   : > { %v8707_v34 = vpop.permute.xlu2 %4152  ;;  %4276 = vrot.lane.b32.xlu1 %v4201_v40, %s5551_s9  ;;  %v8710_v15 = vpop.permute.xlu0 %3839  ;;  %v4303_v40 = vrot.slane %v8483_v25, 2 }
 0xa7b   : > { %10700 = vst [vmem:[#allocation262_spill] sm:$0xff] %v8707_v34 }
 0xa7c   : > { %10701 = vst [vmem:[#allocation263_spill] sm:$0xff] %v8710_v15  ;;  %v8712_v33 = vpop.permute.xlu1 %4144 }
 0xa80   : > { %4272 = vrot.lane.b32.xlu2 %v4199_v41, %s5551_s9  ;;  %4262 = vrot.lane.b32.xlu0 %v4194_v31, %s5551_s9 }
 0xa82   : > { %v8716_v44 = vpop.permute.xlu2 %4158  ;;  %4282 = vrot.lane.b32.xlu1 %v4204_v3, %s5551_s9  ;;  %v8719_v0 = vpop.permute.xlu0 %3845  ;;  %v4306_v3 = vrot.slane %v8497_v23, 2 }
 0xa83   : > { %10702 = vst [vmem:[#allocation264_spill] sm:$0xff] %v8716_v44  ;;  %v4420_v44 = vrot.slane %v8581_v48, 3 }
 0xa84   : > { %10703 = vst [vmem:[#allocation265_spill] sm:$0xff] %v8719_v0  ;;  %v8721_v22 = vpop.permute.xlu1 %4150 }
 0xa88   : > { %4278 = vrot.lane.b32.xlu2 %v4202_v19, %s5551_s9  ;;  %4268 = vrot.lane.b32.xlu0 %v4197_v20, %s5551_s9 }
 0xa8a   : > { %v8726_v53 = vpop.permute.xlu2 %4164  ;;  %4320 = vrot.lane.b32.xlu1 %v4303_v40, %s5553_s11  ;;  %v8729_v41 = vpop.permute.xlu0 %3851 }
 0xa8b   : > { %10704 = vst [vmem:[#allocation266_spill] sm:$0xff] %v8726_v53  ;;  %v4422_v53 = vrot.slane %v8557_v39, 3 }
 0xa8c   : > { %10705 = vst [vmem:[#allocation267_spill] sm:$0xff] %v8729_v41  ;;  %v8731_v31 = vpop.permute.xlu1 %4156 }
 0xa90   : > { %4284 = vrot.lane.b32.xlu2 %v4205_v47, %s5551_s9  ;;  %4274 = vrot.lane.b32.xlu0 %v4200_v28, %s5551_s9  ;;  %v4309_v47 = vrot.slane %v8514_v38, 2 }
 0xa92   : > { %v8736_v0 = vpop.permute.xlu2 %4170  ;;  %4326 = vrot.lane.b32.xlu1 %v4306_v3, %s5553_s11  ;;  %v8739_v19 = vpop.permute.xlu0 %4142 }
 0xa94   : > { %v8741_v20 = vpop.permute.xlu1 %4162 }
 0xa95   : > { %10706 = vst [vmem:[#allocation268_spill] sm:$0xff] %v8741_v20 }
 0xa98   : > { %4322 = vrot.lane.b32.xlu2 %v4304_v16, %s5553_s11  ;;  %4280 = vrot.lane.b32.xlu0 %v4203_v12, %s5551_s9  ;;  %v4312_v12 = vrot.slane %v8537_v8, 2 }
 0xa9a   : > { %v8747_v41 = vpop.permute.xlu2 %4208  ;;  %4332 = vrot.lane.b32.xlu1 %v4309_v47, %s5553_s11  ;;  %v8750_v28 = vpop.permute.xlu0 %4148 }
 0xa9c   : > { %v8752_v15 = vpop.permute.xlu1 %4168 }
 0xaa0   : > { %4328 = vrot.lane.b32.xlu2 %v4307_v6, %s5553_s11  ;;  %4318 = vrot.lane.b32.xlu0 %v4302_v60, %s5553_s11 }
 0xaa2   : > { %v8759_v11 = vpop.permute.xlu2 %4214  ;;  %4338 = vrot.lane.b32.xlu1 %v4312_v12, %s5553_s11  ;;  %v8762_v56 = vpop.permute.xlu0 %4154 }
 0xaa3   : > { %10707 = vst [vmem:[#allocation269_spill] sm:$0xff] %v8762_v56 }
 0xaa4   : > { %v8764_v45 = vpop.permute.xlu1 %4206 }
 0xaa8   : > { %4334 = vrot.lane.b32.xlu2 %v4310_v58, %s5553_s11  ;;  %4324 = vrot.lane.b32.xlu0 %v4305_v7, %s5553_s11 }
 0xaaa   : > { %v8771_v4 = vpop.permute.xlu2 %4220  ;;  %4344 = vrot.lane.b32.xlu1 %v4315_v46, %s5553_s11  ;;  %v8774_v2 = vpop.permute.xlu0 %4160 }
 0xaab   : > { %10708 = vst [vmem:[#allocation270_spill] sm:$0xff] %v8774_v2 }
 0xaac   : > { %v8776_v1 = vpop.permute.xlu1 %4212 }
 0xab0   : > { %4340 = vrot.lane.b32.xlu2 %v4313_v43, %s5553_s11  ;;  %4330 = vrot.lane.b32.xlu0 %v4308_v9, %s5553_s11 }
 0xab2   : > { %v8782_v51 = vpop.permute.xlu2 %4226  ;;  %4366 = vrot.lane.b32.xlu1 %v4302_v60, %s5554_s25  ;;  %v8785_v10 = vpop.permute.xlu0 %4166  ;;  %v4314_v60 = vrot.slane %v8619_v57, 2 }
 0xab3   : > { %10709 = vst [vmem:[#allocation271_spill] sm:$0xff] %v8782_v51 }
 0xab4   : > { %10710 = vst [vmem:[#allocation272_spill] sm:$0xff] %v8785_v10  ;;  %v8787_v55 = vpop.permute.xlu1 %4218 }
 0xab5   : > { %10711 = vst [vmem:[#allocation273_spill] sm:$0xff] %v8787_v55 }
 0xab8   : > { %4346 = vrot.lane.b32.xlu2 %v4316_v63, %s5553_s11  ;;  %4336 = vrot.lane.b32.xlu0 %v4311_v27, %s5553_s11 }
 0xaba   : > { %v8793_v49 = vpop.permute.xlu2 %4232  ;;  %4372 = vrot.lane.b32.xlu1 %v4305_v7, %s5554_s25  ;;  %v8796_v24 = vpop.permute.xlu0 %4172  ;;  %v4317_v7 = vrot.slane %v8634_v26, 2 }
 0xabb   : > { %10712 = vst [vmem:[#allocation274_spill] sm:$0xff] %v8796_v24 }
 0xabc   : > { %v8798_v50 = vpop.permute.xlu1 %4224 }
 0xabd   : > { %10713 = vst [vmem:[#allocation275_spill] sm:$0xff] %v8798_v50  ;;  %v4429_v50 = vrot.slane %v8634_v26, 3 }
 0xac0   : > { %4368 = vrot.lane.b32.xlu2 %v4303_v40, %s5554_s25  ;;  %4342 = vrot.lane.b32.xlu0 %v4314_v60, %s5553_s11 }
 0xac2   : > { %v8803_v62 = vpop.permute.xlu2 %4254  ;;  %4378 = vrot.lane.b32.xlu1 %v4308_v9, %s5554_s25  ;;  %v8806_v30 = vpop.permute.xlu0 %4210 }
 0xac3   : > { %10714 = vst [vmem:[#allocation276_spill] sm:$0xff] %v8806_v30  ;;  %v4426_v30 = vrot.slane %v8619_v57, 3 }
 0xac4   : > { %v8808_v42 = vpop.permute.xlu1 %4230 }
 0xac5   : > { %10715 = vst [vmem:[#allocation277_spill] sm:$0xff] %v8808_v42  ;;  %v4428_v42 = vrot.slane %v8603_v61, 3 }
 0xac8   : > { %4374 = vrot.lane.b32.xlu2 %v4306_v3, %s5554_s25  ;;  %4348 = vrot.lane.b32.xlu0 %v4317_v7, %s5553_s11 }
 0xaca   : > { %v8813_v5 = vpop.permute.xlu2 %4260  ;;  %4384 = vrot.lane.b32.xlu1 %v4311_v27, %s5554_s25  ;;  %v8816_v40 = vpop.permute.xlu0 %4216 }
 0xacb   : > { %10716 = vst [vmem:[#allocation278_spill] sm:$0xff] %v8816_v40 }
 0xacc   : > { %v8818_v54 = vpop.permute.xlu1 %4236 }
 0xacd   : > { %10717 = vst [vmem:[#allocation279_spill] sm:$0xff] %v8818_v54  ;;  %v4424_v54 = vrot.slane %v8537_v8, 3 }
 0xad0   : > { %4380 = vrot.lane.b32.xlu2 %v4309_v47, %s5554_s25  ;;  %4370 = vrot.lane.b32.xlu0 %v4304_v16, %s5554_s25  ;;  %v4416_v16 = vrot.slane %v8512_v35, 3 }
 0xad2   : > { %v8822_v9 = vpop.permute.xlu2 %4266  ;;  %4390 = vrot.lane.b32.xlu1 %v4314_v60, %s5554_s25  ;;  %v8825_v29 = vpop.permute.xlu0 %4222 }
 0xad3   : > { %10718 = vst [vmem:[#allocation280_spill] sm:$0xff] %v8822_v9 }
 0xad4   : > { %10719 = vst [vmem:[#allocation281_spill] sm:$0xff] %v8825_v29  ;;  %v8827_v3 = vpop.permute.xlu1 %4258 }
 0xad5   : > { %10720 = vst [vmem:[#allocation282_spill] sm:$0xff] %v8827_v3 }
 0xad8   : > { %4386 = vrot.lane.b32.xlu2 %v4312_v12, %s5554_s25  ;;  %4376 = vrot.lane.b32.xlu0 %v4307_v6, %s5554_s25 }
 0xada   : > { %v8831_v27 = vpop.permute.xlu2 %4272  ;;  %4396 = vrot.lane.b32.xlu1 %v4317_v7, %s5554_s25  ;;  %v8834_v37 = vpop.permute.xlu0 %4228  ;;  %v4414_v7 = vrot.slane %v8533_v17, 3 }
 0xadb   : > { %10721 = vst [vmem:[#allocation283_spill] sm:$0xff] %v8831_v27 }
 0xadc   : > { %10722 = vst [vmem:[#allocation284_spill] sm:$0xff] %v8834_v37  ;;  %v8836_v47 = vpop.permute.xlu1 %4264  ;;  %v4417_v37 = vrot.slane %v8559_v59, 3 }
 0xadd   : > { %10723 = vst [vmem:[#allocation285_spill] sm:$0xff] %v8836_v47 }
 0xae0   : > { %4392 = vrot.lane.b32.xlu2 %v4315_v46, %s5554_s25  ;;  %4382 = vrot.lane.b32.xlu0 %v4310_v58, %s5554_s25  ;;  %v4419_v46 = vrot.slane %v8535_v36, 3 }
 0xae2   : > { %v8841_v60 = vpop.permute.xlu2 %4278  ;;  %4434 = vrot.lane.b32.xlu1 %v4416_v16, %s5555_s26  ;;  %v8844_v12 = vpop.permute.xlu0 %4234 }
 0xae3   : > { %10724 = vst [vmem:[#allocation286_spill] sm:$0xff] %v8841_v60  ;;  %v4423_v60 = vrot.slane %v8601_v21, 3 }
 0xae4   : > { %v8846_v6 = vpop.permute.xlu1 %4270 }
 0xae5   : > { %10725 = vst [vmem:[#allocation287_spill] sm:$0xff] %v8846_v6 }
 0xae8   : > { %4430 = vrot.lane.b32.xlu2 %v4414_v7, %s5555_s26  ;;  %4388 = vrot.lane.b32.xlu0 %v4313_v43, %s5554_s25 }
 0xaea   : > { %v8852_v18 = vpop.permute.xlu2 %4284  ;;  %4440 = vrot.lane.b32.xlu1 %v4419_v46, %s5555_s26  ;;  %v8855_v58 = vpop.permute.xlu0 %4256 }
 0xaeb   : > { %10726 = vst [vmem:[#allocation288_spill] sm:$0xff] %v8852_v18 }
 0xaec   : > { %v8857_v32 = vpop.permute.xlu1 %4276 }
 0xaed   : > { %10727 = vst [vmem:[#allocation289_spill] sm:$0xff] %v8857_v32  ;;  %v4415_v32 = vrot.slane %v8483_v25, 3 }
 0xaf0   : > { %4436 = vrot.lane.b32.xlu2 %v4417_v37, %s5555_s26  ;;  %4394 = vrot.lane.b32.xlu0 %v4316_v63, %s5554_s25  ;;  %v4425_v63 = vrot.slane %v8579_v13, 3 }
 0xaf2   : > { %v8863_v6 = vpop.permute.xlu2 %4322  ;;  %4446 = vrot.lane.b32.xlu1 %v4422_v53, %s5555_s26  ;;  %v8866_v43 = vpop.permute.xlu0 %4262 }
 0xaf3   : > { %10728 = vst [vmem:[#allocation290_spill] sm:$0xff] %v8863_v6  ;;  %v4418_v6 = vrot.slane %v8497_v23, 3 }
 0xaf4   : > { %v8868_v29 = vpop.permute.xlu1 %4282 }
 0xaf8   : > { %4442 = vrot.lane.b32.xlu2 %v4420_v44, %s5555_s26  ;;  %4432 = vrot.lane.b32.xlu0 %v4415_v32, %s5555_s26 }
 0xafa   : > { %v8875_v47 = vpop.permute.xlu2 %4328  ;;  %4452 = vrot.lane.b32.xlu1 %v4425_v63, %s5555_s26  ;;  %v8878_v40 = vpop.permute.xlu0 %4268 }
 0xafb   : > { %10729 = vst [vmem:[#allocation291_spill] sm:$0xff] %v8875_v47 }
 0xafc   : > { %v8880_v34 = vpop.permute.xlu1 %4320 }
 0xb00   : > { %4448 = vrot.lane.b32.xlu2 %v4423_v60, %s5555_s26  ;;  %4438 = vrot.lane.b32.xlu0 %v4418_v6, %s5555_s26 }
 0xb02   : > { %v8887_v3 = vpop.permute.xlu2 %4334  ;;  %4458 = vrot.lane.b32.xlu1 %v4428_v42, %s5555_s26  ;;  %v8890_v47 = vpop.permute.xlu0 %4274 }
 0xb03   : > { %10730 = vst [vmem:[#allocation292_spill] sm:$0xff] %v8887_v3 }
 0xb04   : > { %10731 = vst [vmem:[#allocation293_spill] sm:$0xff] %v8890_v47  ;;  %v8892_v10 = vpop.permute.xlu1 %4326 }
 0xb08   : > { %4454 = vrot.lane.b32.xlu2 %v4426_v30, %s5555_s26  ;;  %4444 = vrot.lane.b32.xlu0 %v4421_v14, %s5555_s26 }
 0xb0a   : > { %v8898_v27 = vpop.permute.xlu2 %4340  ;;  %4480 = vrot.lane.b32.xlu1 %v4415_v32, %s5556_s27  ;;  %v8901_v18 = vpop.permute.xlu0 %4280  ;;  %v4427_v32 = vrot.slane %v8561_v52, 3 }
 0xb0b   : > { %10732 = vst [vmem:[#allocation294_spill] sm:$0xff] %v8898_v27 }
 0xb0c   : > { %v8903_v3 = vpop.permute.xlu1 %4332 }
 0xb10   : > { %4460 = vrot.lane.b32.xlu2 %v4429_v50, %s5555_s26  ;;  %4450 = vrot.lane.b32.xlu0 %v4424_v54, %s5555_s26 }
 0xb12   : > { %v8909_v2 = vpop.permute.xlu2 %4346  ;;  %4486 = vrot.lane.b32.xlu1 %v4418_v6, %s5556_s27  ;;  %v8912_v24 = vpop.permute.xlu0 %4318 }
 0xb14   : > { %v8914_v27 = vpop.permute.xlu1 %4338 }
 0xb15   : > { %10733 = vst [vmem:[#allocation295_spill] sm:$0xff] %v8914_v27 }
 0xb18   : > { %4482 = vrot.lane.b32.xlu2 %v4416_v16, %s5556_s27  ;;  %4456 = vrot.lane.b32.xlu0 %v4427_v32, %s5555_s26 }
 0xb1a   : > { %v8919_v9 = vpop.permute.xlu2 %4368  ;;  %4492 = vrot.lane.b32.xlu1 %v4421_v14, %s5556_s27  ;;  %v8922_v55 = vpop.permute.xlu0 %4324 }
 0xb1b   : > { %10734 = vst [vmem:[#allocation296_spill] sm:$0xff] %v8922_v55 }
 0xb1c   : > { %v8924_v47 = vpop.permute.xlu1 %4344 }
 0xb20   : > { %4488 = vrot.lane.b32.xlu2 %v4419_v46, %s5556_s27  ;;  %4478 = vrot.lane.b32.xlu0 %v4414_v7, %s5556_s27 }
 0xb22   : > { %v8928_v6 = vpop.permute.xlu2 %4374  ;;  %4498 = vrot.lane.b32.xlu1 %v4424_v54, %s5556_s27  ;;  %v8931_v27 = vpop.permute.xlu0 %4330  ;;  %v4526_v54 = vrot.slane %v8533_v17, 4 }
 0xb23   : > { %10735 = vst [vmem:[#allocation297_spill] sm:$0xff] %v8931_v27  ;;  %v4527_v27 = vrot.slane %v8483_v25, 4 }
 0xb24   : > { %v8933_v16 = vpop.permute.xlu1 %4366 }
 0xb28   : > { %4494 = vrot.lane.b32.xlu2 %v4422_v53, %s5556_s27  ;;  %4484 = vrot.lane.b32.xlu0 %v4417_v37, %s5556_s27 }
 0xb2a   : > { %v8937_v14 = vpop.permute.xlu2 %4380  ;;  %4504 = vrot.lane.b32.xlu1 %v4427_v32, %s5556_s27  ;;  %v8940_v56 = vpop.permute.xlu0 %4336  ;;  %v4529_v32 = vrot.slane %v8559_v59, 4 }
 0xb2b   : > { %10736 = vst [vmem:[#allocation298_spill] sm:$0xff] %v8937_v14 }
 0xb2c   : > { %10737 = vst [vmem:[#allocation299_spill] sm:$0xff] %v8940_v56  ;;  %v8942_v46 = vpop.permute.xlu1 %4372 }
 0xb2d   : > { %10738 = vst [vmem:[#allocation300_spill] sm:$0xff] %v8942_v46 }
 0xb30   : > { %4500 = vrot.lane.b32.xlu2 %v4425_v63, %s5556_s27  ;;  %4490 = vrot.lane.b32.xlu0 %v4420_v44, %s5556_s27 }
 0xb32   : > { %v8947_v7 = vpop.permute.xlu2 %4386  ;;  %4542 = vrot.lane.b32.xlu1 %v4526_v54, %s5557_s29  ;;  %v8950_v53 = vpop.permute.xlu0 %4342 }
 0xb33   : > { %10739 = vst [vmem:[#allocation301_spill] sm:$0xff] %v8947_v7 }
 0xb34   : > { %10740 = vst [vmem:[#allocation302_spill] sm:$0xff] %v8950_v53  ;;  %v8952_v37 = vpop.permute.xlu1 %4378 }
 0xb35   : > { %10741 = vst [vmem:[#allocation303_spill] sm:$0xff] %v8952_v37 }
 0xb38   : > { %4506 = vrot.lane.b32.xlu2 %v4428_v42, %s5556_s27  ;;  %4496 = vrot.lane.b32.xlu0 %v4423_v60, %s5556_s27  ;;  %v4532_v42 = vrot.slane %v8581_v48, 4 }
 0xb3a   : > { %v8957_v56 = vpop.permute.xlu2 %4392  ;;  %4548 = vrot.lane.b32.xlu1 %v4529_v32, %s5557_s29  ;;  %v8960_v44 = vpop.permute.xlu0 %4348 }
 0xb3b   : > { %10742 = vst [vmem:[#allocation304_spill] sm:$0xff] %v8960_v44  ;;  %v4530_v44 = vrot.slane %v8497_v23, 4 }
 0xb3c   : > { %v8962_v63 = vpop.permute.xlu1 %4384 }
 0xb3d   : > { %10743 = vst [vmem:[#allocation305_spill] sm:$0xff] %v8962_v63  ;;  %v4535_v63 = vrot.slane %v8601_v21, 4 }
 0xb40   : > { %4544 = vrot.lane.b32.xlu2 %v4527_v27, %s5557_s29  ;;  %4502 = vrot.lane.b32.xlu0 %v4426_v30, %s5556_s27 }
 0xb42   : > { %v8968_v53 = vpop.permute.xlu2 %4430  ;;  %4554 = vrot.lane.b32.xlu1 %v4532_v42, %s5557_s29  ;;  %v8971_v60 = vpop.permute.xlu0 %4370 }
 0xb43   : > { %10744 = vst [vmem:[#allocation306_spill] sm:$0xff] %v8971_v60  ;;  %v4533_v60 = vrot.slane %v8514_v38, 4 }
 0xb44   : > { %v8973_v37 = vpop.permute.xlu1 %4390 }
 0xb45   : > { %10745 = vst [vmem:[#allocation307_spill] sm:$0xff] %v8973_v37  ;;  %v4528_v37 = vrot.slane %v8512_v35, 4 }
 0xb48   : > { %4550 = vrot.lane.b32.xlu2 %v4530_v44, %s5557_s29  ;;  %4508 = vrot.lane.b32.xlu0 %v4429_v50, %s5556_s27  ;;  %v4538_v50 = vrot.slane %v8619_v57, 4 }
 0xb4a   : > { %v8979_v7 = vpop.permute.xlu2 %4436  ;;  %4560 = vrot.lane.b32.xlu1 %v4535_v63, %s5557_s29  ;;  %v8982_v30 = vpop.permute.xlu0 %4376 }
 0xb4b   : > { %10746 = vst [vmem:[#allocation308_spill] sm:$0xff] %v8979_v7  ;;  %v4541_v7 = vrot.slane %v8634_v26, 4 }
 0xb4c   : > { %10747 = vst [vmem:[#allocation309_spill] sm:$0xff] %v8982_v30  ;;  %v8984_v48 = vpop.permute.xlu1 %4396  ;;  %v4536_v30 = vrot.slane %v8537_v8, 4 }
 0xb4d   : > { %10748 = vst [vmem:[#allocation310_spill] sm:$0xff] %v8984_v48  ;;  %v4531_v48 = vrot.slane %v8535_v36, 4 }
 0xb50   : > { %4556 = vrot.lane.b32.xlu2 %v4533_v60, %s5557_s29  ;;  %4546 = vrot.lane.b32.xlu0 %v4528_v37, %s5557_s29 }
 0xb52   : > { %v8991_v51 = vpop.permute.xlu2 %4442  ;;  %4566 = vrot.lane.b32.xlu1 %v4538_v50, %s5557_s29  ;;  %v8994_v21 = vpop.permute.xlu0 %4382 }
 0xb53   : > { %10749 = vst [vmem:[#allocation311_spill] sm:$0xff] %v8991_v51 }
 0xb54   : > { %10750 = vst [vmem:[#allocation312_spill] sm:$0xff] %v8994_v21  ;;  %v8996_v20 = vpop.permute.xlu1 %4434  ;;  %v10439_v21 = vrot.slane %v8561_v52, 4 }
 0xb55   : > { %10751 = vst [vmem:[#allocation313_spill] sm:$0xff] %v8996_v20  ;;  %v4534_v20 = vrot.slane %v8557_v39, 4 }
 0xb58   : > { %4562 = vrot.lane.b32.xlu2 %v4536_v30, %s5557_s29  ;;  %4552 = vrot.lane.b32.xlu0 %v4531_v48, %s5557_s29 }
 0xb5a   : > { %v9003_v46 = vpop.permute.xlu2 %4448  ;;  %4572 = vrot.lane.b32.xlu1 %v4541_v7, %s5557_s29  ;;  %v9006_v57 = vpop.permute.xlu0 %4388 }
 0xb5b   : > { %10752 = vst [vmem:[#allocation314_spill] sm:$0xff] %v9003_v46 }
 0xb5c   : > { %10753 = vst [vmem:[#allocation315_spill] sm:$0xff] %v9006_v57  ;;  %v9008_v51 = vpop.permute.xlu1 %4440  ;;  %v4537_v57 = vrot.slane %v8579_v13, 4 }
 0xb5d   : > { %10754 = vst [vmem:[#allocation316_spill] sm:$0xff] %v9008_v51 }
 0xb60   : > { %4568 = vrot.lane.b32.xlu2 %v10439_v21, %s5557_s29  ;;  %4558 = vrot.lane.b32.xlu0 %v4534_v20, %s5557_s29 }
 0xb62   : > { %v9016_v55 = vpop.permute.xlu2 %4454  ;;  %4594 = vrot.lane.b32.xlu1 %v4528_v37, %s5558_s14  ;;  %v4395_v46 = vpop.permute.xlu0 %4394 }
 0xb63   : > { %10755 = vst [vmem:[#allocation317_spill] sm:$0xff] %v9016_v55  ;;  %v4540_v55 = vrot.slane %v8603_v61, 4 }
 0xb64   : > { %v9019_v26 = vpop.permute.xlu1 %4446 }
 0xb65   : > { %10756 = vst [vmem:[#allocation318_spill] sm:$0xff] %v9019_v26 }
 0xb68   : > { %4590 = vrot.lane.b32.xlu2 %v4526_v54, %s5558_s14  ;;  %4564 = vrot.lane.b32.xlu0 %v4537_v57, %s5557_s29 }
 0xb6a   : > { %v9024_v51 = vpop.permute.xlu2 %4460  ;;  %4600 = vrot.lane.b32.xlu1 %v4531_v48, %s5558_s14  ;;  %v4433_v21 = vpop.permute.xlu0 %4432 }
 0xb6c   : > { %v9027_v14 = vpop.permute.xlu1 %4452 }
 0xb6d   : > { %10757 = vst [vmem:[#allocation319_spill] sm:$0xff] %v9027_v14 }
 0xb70   : > { %4596 = vrot.lane.b32.xlu2 %v4529_v32, %s5558_s14  ;;  %4570 = vrot.lane.b32.xlu0 %v4540_v55, %s5557_s29 }
 0xb72   : > { %v9032_v37 = vpop.permute.xlu2 %4482  ;;  %4606 = vrot.lane.b32.xlu1 %v4534_v20, %s5558_s14  ;;  %v9035_v54 = vpop.permute.xlu0 %4438 }
 0xb73   : > { %10758 = vst [vmem:[#allocation320_spill] sm:$0xff] %v9032_v37 }
 0xb74   : > { %v4459_v26 = vpop.permute.xlu1 %4458 }
 0xb78   : > { %4602 = vrot.lane.b32.xlu2 %v4532_v42, %s5558_s14  ;;  %4592 = vrot.lane.b32.xlu0 %v4527_v27, %s5558_s14 }
 0xb7a   : > { %v9039_v48 = vpop.permute.xlu2 %4488  ;;  %4612 = vrot.lane.b32.xlu1 %v4537_v57, %s5558_s14  ;;  %v9042_v14 = vpop.permute.xlu0 %4444  ;;  %v10440_v57 = vrot.slane %v8483_v25, 5 }
 0xb7c   : > { %v4481_v32 = vpop.permute.xlu1 %4480 }
 0xb80   : > { %4608 = vrot.lane.b32.xlu2 %v4535_v63, %s5558_s14  ;;  %4598 = vrot.lane.b32.xlu0 %v4530_v44, %s5558_s14 }
 0xb82   : > { %v9046_v37 = vpop.permute.xlu2 %4494  ;;  %4618 = vrot.lane.b32.xlu1 %v4540_v55, %s5558_s14  ;;  %v9049_v20 = vpop.permute.xlu0 %4450  ;;  %v4988_v55 = vsel %vm1677_vm3, %v8603_v61, %v8736_v0 }
 0xb84   : > { %v9051_v42 = vpop.permute.xlu1 %4486 }
 0xb88   : > { %4614 = vrot.lane.b32.xlu2 %v4538_v50, %s5558_s14  ;;  %4604 = vrot.lane.b32.xlu0 %v4533_v60, %s5558_s14  ;;  %v5004_v60 = vsel %vm3889_vm4, %v4988_v55, %v8844_v12 }
 0xb89   : > { %v5020_v50 = vsel %vm3906_vm5, %v5004_v60, %v8868_v29  ;;  %v4987_v60 = vsel %vm1677_vm3, %v8561_v52, %v8752_v15 }
 0xb8a   : > { %v9056_v27 = vpop.permute.xlu2 %4500  ;;  %4656 = vrot.lane.b32.xlu1 %v10440_v57, %s5559_s15  ;;  %v4457_v44 = vpop.permute.xlu0 %4456  ;;  %v5036_v57 = vsel %vm3923_vm6, %v5020_v50, %v8909_v2 }
 0xb8b   : > { %10759 = vst [vmem:[#allocation321_spill] sm:$0xff] %v9056_v27  ;;  %v4642_v27 = vrot.slane %v8497_v23, 5  ;;  %v5052_v0 = vsel %vm3940_vm7, %v5036_v57, %v4395_v46  ;;  %v4640_v57 = vrot.slane %v8512_v35, 5 }
 0xb8c   : > { %v9061_v63 = vpop.permute.xlu1 %4492  ;;  %v5068_v12 = vsel %vm3957_vm8, %v5052_v0, %v4459_v26 }
 0xb90   : > { %4620 = vrot.lane.b32.xlu2 %v4541_v7, %s5558_s14  ;;  %4610 = vrot.lane.b32.xlu0 %v4536_v30, %s5558_s14  ;;  %v4975_v7 = vsel %vm1677_vm3, %v8483_v25, %v8712_v33  ;;  %v5003_v33 = vsel %vm3889_vm4, %v4987_v60, %v8793_v49 }
 0xb91   : > { %v4991_v46 = vsel %vm3889_vm4, %v4975_v7, %v8747_v41  ;;  %v10760_v41 = vrot.slane %v8561_v52, 4  ;;  %v5019_v15 = vsel %vm3906_vm5, %v5003_v33, %v8901_v18  ;;  %v4978_v18 = vsel %vm1677_vm3, %v8497_v23, %v8721_v22 }
 0xb92   : > { %v4507_v55 = vpop.permute.xlu2 %4506  ;;  %4662 = vrot.lane.b32.xlu1 %v4642_v27, %s5559_s15  ;;  %v4479_v29 = vpop.permute.xlu0 %4478  ;;  %v5007_v26 = vsel %vm3906_vm5, %v4991_v46, %v8855_v58  ;;  %v4645_v58 = vrot.slane %v8514_v38, 5  ;;  %v5035_v49 = vsel %vm3923_vm6, %v5019_v15, %v8924_v47  ;;  %v4638_v22 = vrot.slane %v8533_v17, 5 }
 0xb93   : > { %v9081_v2 = vsel %vm3974_vm9, %v5068_v12, %v4507_v55  ;;  %v5023_v50 = vsel %vm3923_vm6, %v5007_v26, %v8880_v34  ;;  %v5051_v7 = vsel %vm3940_vm7, %v5035_v49, %v8957_v56  ;;  %v4974_v56 = vsel %vm1677_vm3, %v8533_v17, %v8739_v19 }
 0xb94   : > { %v9086_v30 = vpop.permute.xlu1 %4498  ;;  %v5039_v0 = vsel %vm3940_vm7, %v5023_v50, %v8919_v9  ;;  %v4643_v50 = vrot.slane %v8535_v36, 5  ;;  %v4648_v19 = vrot.slane %v8537_v8, 5 }
 0xb95   : > { %v5055_v34 = vsel %vm3957_vm8, %v5039_v0, %v4433_v21  ;;  %v5067_v21 = vsel %vm3957_vm8, %v5051_v7, %v4457_v44  ;;  %v4990_v44 = vsel %vm3889_vm4, %v4974_v56, %v8764_v45 }
 0xb96   : > { %v5071_v9 = vsel %vm3974_vm9, %v5055_v34, %v4481_v32  ;;  %v4994_v32 = vsel %vm3889_vm4, %v4978_v18, %v8759_v11  ;;  %v5006_v33 = vsel %vm3906_vm5, %v4990_v44, %v8803_v62  ;;  %v10761_v18 = vld [vmem:[#allocation298_spill] sm:$0xff]  ;;  %v10764_v44 = vld [vmem:[#allocation308_spill] sm:$0xff] }
 0xb97   : > { %v5010_v60 = vsel %vm3906_vm5, %v4994_v32, %v8866_v43  ;;  %v5022_v45 = vsel %vm3923_vm6, %v5006_v33, %v8912_v24 }
 0xb98   : > { %4658 = vrot.lane.b32.xlu2 %v4640_v57, %s5559_s15  ;;  %4616 = vrot.lane.b32.xlu0 %v10760_v41, %s5558_s14  ;;  %v5026_v11 = vsel %vm3923_vm6, %v5010_v60, %v8892_v10  ;;  %v5038_v62 = vsel %vm3940_vm7, %v5022_v45, %v8933_v16 }
 0xb99   : > { %v5042_v0 = vsel %vm3940_vm7, %v5026_v11, %v8928_v6  ;;  %v5054_v15 = vsel %vm3957_vm8, %v5038_v62, %v8968_v53  ;;  %v4977_v53 = vsel %vm1677_vm3, %v8559_v59, %v8750_v28  ;;  %v4651_v28 = vrot.slane %v8561_v52, 5 }
 0xb9a   : > { %v4545_v12 = vpop.permute.xlu2 %4544  ;;  %4668 = vrot.lane.b32.xlu1 %v4645_v58, %s5559_s15  ;;  %v4485_v55 = vpop.permute.xlu0 %4484  ;;  %v5058_v10 = vsel %vm3957_vm8, %v5042_v0, %v9035_v54  ;;  %v4981_v54 = vsel %vm1677_vm3, %v8514_v38, %v8731_v31  ;;  %v5070_v16 = vsel %vm3974_vm9, %v5054_v15, %v4479_v29  ;;  %v4641_v31 = vrot.slane %v8559_v59, 5  ;;  %v10765_v0 = vld [vmem:[#allocation268_spill] sm:$0xff]  ;;  %v10768_v15 = vld [vmem:[#allocation231_spill] sm:$0xff] }
 0xb9b   : > { %v9121_v46 = vsel %vm3991_vm10, %v5071_v9, %v4545_v12  ;;  %v5074_v43 = vsel %vm3974_vm9, %v5058_v10, %v9051_v42  ;;  %v4997_v42 = vsel %vm3889_vm4, %v4981_v54, %v8771_v4  ;;  %v4646_v12 = vrot.slane %v8557_v39, 5 }
 0xb9c   : > { %v4505_v47 = vpop.permute.xlu1 %4504  ;;  %v5013_v9 = vsel %vm3906_vm5, %v4997_v42, %v8878_v40  ;;  %v4993_v29 = vsel %vm3889_vm4, %v4977_v53, %v8776_v1  ;;  %v10762_v40 = vld [vmem:[#allocation296_spill] sm:$0xff]  ;;  %v4649_v42 = vrot.slane %v8579_v13, 5  ;;  %v4644_v53 = vrot.slane %v10768_v15, 5 }
 0xb9d   : > { %v9130_v26 = vsel %vm3974_vm9, %v5067_v21, %v4505_v47  ;;  %v5029_v4 = vsel %vm3923_vm6, %v5013_v9, %v8903_v3  ;;  %v5009_v7 = vsel %vm3906_vm5, %v4993_v29, %v8813_v5  ;;  %v10763_v47 = vld [vmem:[#allocation300_spill] sm:$0xff]  ;;  %v10770_v9 = vld [vmem:[#allocation273_spill] sm:$0xff]  ;;  %v10771_v29 = vld [vmem:[#allocation295_spill] sm:$0xff] }
 0xb9e   : > { %v5045_v21 = vsel %vm3940_vm7, %v5029_v4, %v10761_v18  ;;  %v5025_v1 = vsel %vm3923_vm6, %v5009_v7, %v10762_v40  ;;  %v10772_v7 = vld [vmem:[#allocation280_spill] sm:$0xff] }
 0xb9f   : > { %v5061_v3 = vsel %vm3957_vm8, %v5045_v21, %v9042_v14  ;;  %v5041_v5 = vsel %vm3940_vm7, %v5025_v1, %v10763_v47  ;;  %v4984_v14 = vsel %vm1677_vm3, %v8537_v8, %v10765_v0  ;;  %v10773_v21 = vld [vmem:[#allocation301_spill] sm:$0xff]  ;;  %v10776_v0 = vld [vmem:[#allocation311_spill] sm:$0xff] }
 0xba0   : > { %4664 = vrot.lane.b32.xlu2 %v4643_v50, %s5559_s15  ;;  %4654 = vrot.lane.b32.xlu0 %v4638_v22, %s5559_s15  ;;  %v5077_v32 = vsel %vm3974_vm9, %v5061_v3, %v9061_v63  ;;  %v5057_v11 = vsel %vm3957_vm8, %v5041_v5, %v10764_v44  ;;  %v10766_v63 = vld [vmem:[#allocation271_spill] sm:$0xff]  ;;  %v10774_v1 = vld [vmem:[#allocation297_spill] sm:$0xff] }
 0xba1   : > { %v5073_v45 = vsel %vm3974_vm9, %v5057_v11, %v4485_v55  ;;  %v5000_v62 = vsel %vm3889_vm4, %v4984_v14, %v10766_v63  ;;  %v10775_v5 = vld [vmem:[#allocation303_spill] sm:$0xff] }
 0xba2   : > { %v4551_v6 = vpop.permute.xlu2 %4550  ;;  %4674 = vrot.lane.b32.xlu1 %v4648_v19, %s5559_s15  ;;  %v4491_v41 = vpop.permute.xlu0 %4490 }
 0xba3   : > { %v9166_v24 = vsel %vm3991_vm10, %v5074_v43, %v4551_v6  ;;  %v10767_v6 = vld [vmem:[#allocation269_spill] sm:$0xff] }
 0xba4   : > { %v4543_v34 = vpop.permute.xlu1 %4542  ;;  %v4980_v54 = vsel %vm1677_vm3, %v10768_v15, %v10767_v6 }
 0xba5   : > { %v9175_v49 = vsel %vm3991_vm10, %v5070_v16, %v4543_v34  ;;  %v10769_v16 = vld [vmem:[#allocation293_spill] sm:$0xff]  ;;  %v4996_v55 = vsel %vm3889_vm4, %v4980_v54, %v10770_v9 }
 0xba6   : > { %v5016_v34 = vsel %vm3906_vm5, %v5000_v62, %v10769_v16  ;;  %v5012_v18 = vsel %vm3906_vm5, %v4996_v55, %v10772_v7  ;;  %v10778_v62 = vld [vmem:[#allocation243_spill] sm:$0xff]  ;;  %v4652_v55 = vrot.slane %v8603_v61, 5  ;;  %v10783_v7 = vld [vmem:[#allocation288_spill] sm:$0xff] }
 0xba7   : > { %v5032_v4 = vsel %vm3923_vm6, %v5016_v34, %v10771_v29  ;;  %v5028_v3 = vsel %vm3923_vm6, %v5012_v18, %v10774_v1  ;;  %v10780_v16 = vld [vmem:[#allocation235_spill] sm:$0xff]  ;;  %v10785_v1 = vld [vmem:[#allocation304_spill] sm:$0xff] }
 0xba8   : > { %4670 = vrot.lane.b32.xlu2 %v4646_v12, %s5559_s15  ;;  %4660 = vrot.lane.b32.xlu0 %v4641_v31, %s5559_s15  ;;  %v5048_v40 = vsel %vm3940_vm7, %v5032_v4, %v10773_v21  ;;  %v10781_v34 = vld [vmem:[#allocation279_spill] sm:$0xff]  ;;  %v4647_v29 = vrot.slane %v10780_v16, 5 }
 0xba9   : > { %v5064_v47 = vsel %vm3957_vm8, %v5048_v40, %v9049_v20  ;;  %v10777_v20 = vld [vmem:[#allocation274_spill] sm:$0xff]  ;;  %v10784_v21 = vld [vmem:[#allocation283_spill] sm:$0xff] }
 0xbaa   : > { %v4557_v56 = vpop.permute.xlu2 %4556  ;;  %4680 = vrot.lane.b32.xlu1 %v4651_v28, %s5559_s15  ;;  %v4497_v60 = vpop.permute.xlu0 %4496  ;;  %v4989_v6 = vsel %vm1677_vm3, %v10778_v62, %v10777_v20  ;;  %v10789_v20 = vld [vmem:[#allocation314_spill] sm:$0xff] }
 0xbab   : > { %v9211_v33 = vsel %vm3991_vm10, %v5077_v32, %v4557_v56  ;;  %v5044_v32 = vsel %vm3940_vm7, %v5028_v3, %v10775_v5  ;;  %v5080_v56 = vsel %vm3974_vm9, %v5064_v47, %v9086_v30  ;;  %v10779_v30 = vld [vmem:[#allocation270_spill] sm:$0xff]  ;;  %v5005_v9 = vsel %vm3889_vm4, %v4989_v6, %v10781_v34  ;;  %v10786_v47 = vld [vmem:[#allocation299_spill] sm:$0xff] }
 0xbac   : > { %v4549_v10 = vpop.permute.xlu1 %4548  ;;  %v5060_v14 = vsel %vm3957_vm8, %v5044_v32, %v10776_v0  ;;  %v5021_v18 = vsel %vm3906_vm5, %v5005_v9, %v10783_v7  ;;  %v10787_v32 = vld [vmem:[#allocation310_spill] sm:$0xff]  ;;  %v10790_v34 = vld [vmem:[#allocation259_spill] sm:$0xff] }
 0xbad   : > { %v9220_v43 = vsel %vm3991_vm10, %v5073_v45, %v4549_v10  ;;  %v5076_v10 = vsel %vm3974_vm9, %v5060_v14, %v4491_v41  ;;  %v10782_v41 = vld [vmem:[#allocation275_spill] sm:$0xff]  ;;  %v5037_v3 = vsel %vm3923_vm6, %v5021_v18, %v10785_v1  ;;  %v4976_v9 = vsel %vm1677_vm3, %v8512_v35, %v10790_v34  ;;  %v10792_v18 = vld [vmem:[#allocation272_spill] sm:$0xff] }
 0xbb0   : > { %4676 = vrot.lane.b32.xlu2 %v4649_v42, %s5559_s15  ;;  %4666 = vrot.lane.b32.xlu0 %v4644_v53, %s5559_s15 }
 0xbb2   : > { %v4563_v44 = vpop.permute.xlu2 %4562  ;;  %4702 = vrot.lane.b32.xlu1 %v4638_v22, %s5560_s16  ;;  %v4503_v11 = vpop.permute.xlu0 %4502  ;;  %v4983_v22 = vsel %vm1677_vm3, %v10780_v16, %v10779_v30 }
 0xbb3   : > { %v9253_v45 = vsel %vm3991_vm10, %v5080_v56, %v4563_v44  ;;  %v4999_v4 = vsel %vm3889_vm4, %v4983_v22, %v10782_v41  ;;  %v5053_v56 = vsel %vm3940_vm7, %v5037_v3, %v10787_v32  ;;  %v10788_v44 = vld [vmem:[#allocation305_spill] sm:$0xff] }
 0xbb4   : > { %v4555_v63 = vpop.permute.xlu1 %4554  ;;  %v5015_v40 = vsel %vm3906_vm5, %v4999_v4, %v10784_v21  ;;  %v5069_v14 = vsel %vm3957_vm8, %v5053_v56, %v9024_v51  ;;  %v10791_v4 = vld [vmem:[#allocation276_spill] sm:$0xff]  ;;  %v10793_v21 = vld [vmem:[#allocation239_spill] sm:$0xff]  ;;  %v10797_v56 = vld [vmem:[#allocation286_spill] sm:$0xff] }
 0xbb5   : > { %v9260_v54 = vsel %vm3991_vm10, %v5076_v10, %v4555_v63  ;;  %v5031_v5 = vsel %vm3923_vm6, %v5015_v40, %v10786_v47  ;;  %v10794_v40 = vld [vmem:[#allocation282_spill] sm:$0xff]  ;;  %v4650_v3 = vrot.slane %v10793_v21, 5  ;;  %v10795_v47 = vld [vmem:[#allocation277_spill] sm:$0xff] }
 0xbb6   : > { %v5047_v0 = vsel %vm3940_vm7, %v5031_v5, %v10788_v44 }
 0xbb7   : > { %v5063_v6 = vsel %vm3957_vm8, %v5047_v0, %v10789_v20  ;;  %v10798_v0 = vld [vmem:[#allocation306_spill] sm:$0xff] }
 0xbb8   : > { %4682 = vrot.lane.b32.xlu2 %v4652_v55, %s5559_s15  ;;  %4672 = vrot.lane.b32.xlu0 %v4647_v29, %s5559_s15  ;;  %v5079_v41 = vsel %vm3974_vm9, %v5063_v6, %v4497_v60  ;;  %v10796_v60 = vld [vmem:[#allocation290_spill] sm:$0xff]  ;;  %v10801_v6 = vld [vmem:[#allocation313_spill] sm:$0xff] }
 0xbba   : > { %v4569_v10 = vpop.permute.xlu2 %4568  ;;  %4708 = vrot.lane.b32.xlu1 %v4641_v31, %s5560_s16  ;;  %v4509_v63 = vpop.permute.xlu0 %4508  ;;  %v4992_v31 = vsel %vm3889_vm4, %v4976_v9, %v10791_v4  ;;  %v10802_v9 = vld [vmem:[#allocation307_spill] sm:$0xff] }
 0xbbb   : > { %v9294_v30 = vsel %vm3991_vm10, %v9130_v26, %v4569_v10  ;;  %v5085_v22 = vsel %vm3974_vm9, %v5069_v14, %v4509_v63  ;;  %v4986_v26 = vsel %vm1677_vm3, %v10793_v21, %v10792_v18  ;;  %v5008_v1 = vsel %vm3906_vm5, %v4992_v31, %v10794_v40  ;;  %v10800_v63 = vld [vmem:[#allocation302_spill] sm:$0xff] }
 0xbbc   : > { %v4561_v51 = vpop.permute.xlu1 %4560  ;;  %v5002_v5 = vsel %vm3889_vm4, %v4986_v26, %v10795_v47  ;;  %v5024_v32 = vsel %vm3923_vm6, %v5008_v1, %v10796_v60  ;;  %v10799_v10 = vrot.slane %v8483_v25, 5  ;;  %v10804_v26 = vld [vmem:[#allocation317_spill] sm:$0xff] }
 0xbbd   : > { %v9304_v7 = vsel %vm3991_vm10, %v5079_v41, %v4561_v51  ;;  %v5018_v44 = vsel %vm3906_vm5, %v5002_v5, %v10797_v56  ;;  %v5040_v14 = vsel %vm3940_vm7, %v5024_v32, %v10798_v0  ;;  %v10803_v51 = vld [vmem:[#allocation320_spill] sm:$0xff]  ;;  %v10805_v5 = vld [vmem:[#allocation262_spill] sm:$0xff] }
 0xbbe   : > { %v5034_v20 = vsel %vm3923_vm6, %v5018_v44, %v10800_v63  ;;  %v5056_v34 = vsel %vm3957_vm8, %v5040_v14, %v10801_v6  ;;  %v4979_v60 = vsel %vm1677_vm3, %v8535_v36, %v10805_v5  ;;  %v10806_v44 = vld [vmem:[#allocation278_spill] sm:$0xff]  ;;  %v10807_v14 = vld [vmem:[#allocation285_spill] sm:$0xff]  ;;  %v10808_v63 = vld [vmem:[#allocation291_spill] sm:$0xff] }
 0xbbf   : > { %v5050_v41 = vsel %vm3940_vm7, %v5034_v20, %v10802_v9  ;;  %v5072_v4 = vsel %vm3974_vm9, %v5056_v34, %v10803_v51  ;;  %v10809_v6 = vld [vmem:[#allocation309_spill] sm:$0xff] }
 0xbc0   : > { %4704 = vrot.lane.b32.xlu2 %v10799_v10, %s5560_s16  ;;  %4678 = vrot.lane.b32.xlu0 %v4650_v3, %s5559_s15  ;;  %v5066_v40 = vsel %vm3957_vm8, %v5050_v41, %v10804_v26  ;;  %v10811_v26 = vld [vmem:[#allocation264_spill] sm:$0xff]  ;;  %v10812_v5 = vld [vmem:[#allocation281_spill] sm:$0xff] }
 0xbc1   : > { %v5082_v32 = vsel %vm3974_vm9, %v5066_v40, %v4503_v11  ;;  %v10810_v11 = vld [vmem:[#allocation316_spill] sm:$0xff] }
 0xbc2   : > { %v4591_v31 = vpop.permute.xlu2 %4590  ;;  %4714 = vrot.lane.b32.xlu1 %v4644_v53, %s5560_s16  ;;  %v4547_v18 = vpop.permute.xlu0 %4546  ;;  %v4995_v53 = vsel %vm3889_vm4, %v4979_v60, %v10806_v44 }
 0xbc3   : > { %v9337_v1 = vsel %vm2783_vm2, %v9175_v49, %v4591_v31  ;;  %v5088_v47 = vsel %vm3991_vm10, %v5072_v4, %v4547_v18  ;;  %v5011_v10 = vsel %vm3906_vm5, %v4995_v53, %v10807_v14  ;;  %v4653_v49 = vrot.slane %v10778_v62, 5  ;;  %v10816_v14 = vld [vmem:[#allocation318_spill] sm:$0xff] }
 0xbc4   : > { %v4567_v56 = vpop.permute.xlu1 %4566  ;;  %v5027_v20 = vsel %vm3923_vm6, %v5011_v10, %v10808_v63 }
 0xbc5   : > { %v5098_v0 = vsel %vm3991_vm10, %v5082_v32, %v4567_v56  ;;  %v5043_v34 = vsel %vm3940_vm7, %v5027_v20, %v10809_v6  ;;  %v10813_v32 = vld [vmem:[#allocation287_spill] sm:$0xff]  ;;  %v10814_v56 = vld [vmem:[#allocation292_spill] sm:$0xff] }
 0xbc6   : > { %v5059_v9 = vsel %vm3957_vm8, %v5043_v34, %v10810_v11  ;;  %v10817_v34 = vld [vmem:[#allocation266_spill] sm:$0xff] }
 0xbc7   : > { %v5075_v41 = vsel %vm3974_vm9, %v5059_v9, %v9039_v48  ;;  %v10818_v9 = vld [vmem:[#allocation284_spill] sm:$0xff] }
 0xbc8   : > { %4710 = vrot.lane.b32.xlu2 %v4642_v27, %s5560_s16  ;;  %4684 = vrot.lane.b32.xlu0 %v4653_v49, %s5559_s15  ;;  %v4982_v27 = vsel %vm1677_vm3, %v8557_v39, %v10811_v26 }
 0xbc9   : > { %v4998_v60 = vsel %vm3889_vm4, %v4982_v27, %v10812_v5  ;;  %v10823_v5 = vld [vmem:[#allocation321_spill] sm:$0xff] }
 0xbca   : > { %v4597_v51 = vpop.permute.xlu2 %4596  ;;  %4720 = vrot.lane.b32.xlu1 %v4647_v29, %s5560_s16  ;;  %v4553_v4 = vpop.permute.xlu0 %4552  ;;  %v5014_v29 = vsel %vm3906_vm5, %v4998_v60, %v10813_v32 }
 0xbcb   : > { %v9365_v31 = vsel %vm2783_vm2, %v9220_v43, %v4597_v51  ;;  %v5091_v18 = vsel %vm3991_vm10, %v5075_v41, %v4553_v4  ;;  %v5030_v44 = vsel %vm3923_vm6, %v5014_v29, %v10814_v56  ;;  %v10815_v43 = vld [vmem:[#allocation312_spill] sm:$0xff]  ;;  %v10819_v51 = vld [vmem:[#allocation289_spill] sm:$0xff]  ;;  %v10820_v4 = vld [vmem:[#allocation294_spill] sm:$0xff] }
 0xbcc   : > { %v4573_v40 = vpop.permute.xlu1 %4572  ;;  %v5046_v53 = vsel %vm3940_vm7, %v5030_v44, %v10815_v43 }
 0xbcd   : > { %v5101_v48 = vsel %vm3991_vm10, %v5085_v22, %v4573_v40  ;;  %v5062_v22 = vsel %vm3957_vm8, %v5046_v53, %v10816_v14  ;;  %v10822_v40 = vld [vmem:[#allocation319_spill] sm:$0xff] }
 0xbce   : > { %v5078_v10 = vsel %vm3974_vm9, %v5062_v22, %v9046_v37  ;;  %v4750_v22 = vrot.slane %v8533_v17, 6 }
 0xbd0   : > { %4716 = vrot.lane.b32.xlu2 %v4645_v58, %s5560_s16  ;;  %4706 = vrot.lane.b32.xlu0 %v4640_v57, %s5560_s16  ;;  %v4985_v57 = vsel %vm1677_vm3, %v8579_v13, %v10817_v34  ;;  %v4753_v34 = vrot.slane %v8559_v59, 6 }
 0xbd1   : > { %v5001_v41 = vsel %vm3889_vm4, %v4985_v57, %v10818_v9 }
 0xbd2   : > { %v4603_v63 = vpop.permute.xlu2 %4602  ;;  %4726 = vrot.lane.b32.xlu1 %v4650_v3, %s5560_s16  ;;  %v4559_v20 = vpop.permute.xlu0 %4558  ;;  %v5017_v3 = vsel %vm3906_vm5, %v5001_v41, %v10819_v51  ;;  %v4751_v51 = vrot.slane %v8483_v25, 6 }
 0xbd3   : > { %v9393_v6 = vsel %vm2783_vm2, %v9260_v54, %v4603_v63  ;;  %v5094_v58 = vsel %vm3991_vm10, %v5078_v10, %v4559_v20  ;;  %v5033_v26 = vsel %vm3923_vm6, %v5017_v3, %v10820_v4  ;;  %v10821_v54 = vld [vmem:[#allocation315_spill] sm:$0xff]  ;;  %v4761_v3 = vrot.slane %v8579_v13, 6 }
 0xbd4   : > { %v4595_v11 = vpop.permute.xlu1 %4594  ;;  %v5049_v27 = vsel %vm3940_vm7, %v5033_v26, %v10821_v54 }
 0xbd5   : > { %v5104_v37 = vsel %vm2783_vm2, %v5088_v47, %v4595_v11  ;;  %v5065_v47 = vsel %vm3957_vm8, %v5049_v27, %v10822_v40  ;;  %v4759_v40 = vrot.slane %v10780_v16, 6 }
 0xbd6   : > { %v5081_v60 = vsel %vm3974_vm9, %v5065_v47, %v10823_v5  ;;  %v4754_v47 = vrot.slane %v8497_v23, 6  ;;  %v4764_v5 = vrot.slane %v8603_v61, 6 }
 0xbd8   : > { %4722 = vrot.lane.b32.xlu2 %v4648_v19, %s5560_s16  ;;  %4712 = vrot.lane.b32.xlu0 %v4643_v50, %s5560_s16  ;;  %v4752_v50 = vrot.slane %v8512_v35, 6 }
 0xbda   : > { %v4609_v32 = vpop.permute.xlu2 %4608  ;;  %4732 = vrot.lane.b32.xlu1 %v4653_v49, %s5560_s16  ;;  %v4565_v29 = vpop.permute.xlu0 %4564 }
 0xbdb   : > { %v9421_v56 = vsel %vm2783_vm2, %v9304_v7, %v4609_v32  ;;  %v5097_v19 = vsel %vm3991_vm10, %v5081_v60, %v4565_v29 }
 0xbdc   : > { %v4601_v44 = vpop.permute.xlu1 %4600 }
 0xbdd   : > { %v5107_v43 = vsel %vm2783_vm2, %v5091_v18, %v4601_v44 }
 0xbe0   : > { %4728 = vrot.lane.b32.xlu2 %v4651_v28, %s5560_s16  ;;  %4718 = vrot.lane.b32.xlu0 %v4646_v12, %s5560_s16  ;;  %v4755_v12 = vrot.slane %v8535_v36, 6 }
 0xbe2   : > { %v4615_v49 = vpop.permute.xlu2 %4614  ;;  %4770 = vrot.lane.b32.xlu1 %v4752_v50, %s5561_s17  ;;  %v4571_v7 = vpop.permute.xlu0 %4570 }
 0xbe3   : > { %v9436_v53 = vsel %vm2783_vm2, %v5098_v0, %v4615_v49  ;;  %v5100_v18 = vsel %vm3991_vm10, %v9081_v2, %v4571_v7  ;;  %v4757_v49 = vrot.slane %v8514_v38, 6 }
 0xbe4   : > { %v4607_v14 = vpop.permute.xlu1 %4606 }
 0xbe5   : > { %v5110_v28 = vsel %vm2783_vm2, %v5094_v58, %v4607_v14 }
 0xbe8   : > { %4766 = vrot.lane.b32.xlu2 %v4750_v22, %s5561_s17  ;;  %4724 = vrot.lane.b32.xlu0 %v4649_v42, %s5560_s16  ;;  %v4758_v42 = vrot.slane %v8557_v39, 6 }
 0xbea   : > { %v4621_v0 = vpop.permute.xlu2 %4620  ;;  %4776 = vrot.lane.b32.xlu1 %v4755_v12, %s5561_s17  ;;  %v4593_v2 = vpop.permute.xlu0 %4592 }
 0xbeb   : > { %v9453_v10 = vsel %vm2783_vm2, %v5101_v48, %v4621_v0  ;;  %v5103_v63 = vsel %vm2783_vm2, %v9121_v46, %v4593_v2  ;;  %v4765_v2 = vrot.slane %v10778_v62, 6 }
 0xbec   : > { %v4613_v20 = vpop.permute.xlu1 %4612 }
 0xbed   : > { %v5113_v58 = vsel %vm2783_vm2, %v5097_v19, %v4613_v20 }
 0xbf0   : > { %4772 = vrot.lane.b32.xlu2 %v4753_v34, %s5561_s17  ;;  %4730 = vrot.lane.b32.xlu0 %v4652_v55, %s5560_s16  ;;  %v4756_v55 = vrot.slane %v10768_v15, 6 }
 0xbf2   : > { %v4659_v48 = vpop.permute.xlu2 %4658  ;;  %4782 = vrot.lane.b32.xlu1 %v4758_v42, %s5561_s17  ;;  %v4599_v46 = vpop.permute.xlu0 %4598 }
 0xbf3   : > { %v9470_v57 = vsel %vm4024_vm11, %v5104_v37, %v4659_v48  ;;  %v5106_v11 = vsel %vm2783_vm2, %v9166_v24, %v4599_v46 }
 0xbf4   : > { %v4619_v9 = vpop.permute.xlu1 %4618 }
 0xbf5   : > { %v5116_v41 = vsel %vm2783_vm2, %v5100_v18, %v4619_v9  ;;  %v4763_v9 = vrot.slane %v8561_v52, 6 }
 0xbf8   : > { %4778 = vrot.lane.b32.xlu2 %v4756_v55, %s5561_s17  ;;  %4768 = vrot.lane.b32.xlu0 %v4751_v51, %s5561_s17 }
 0xbfa   : > { %v4665_v37 = vpop.permute.xlu2 %4664  ;;  %4788 = vrot.lane.b32.xlu1 %v4761_v3, %s5561_s17  ;;  %v4605_v24 = vpop.permute.xlu0 %4604 }
 0xbfb   : > { %v9486_v4 = vsel %vm4024_vm11, %v5107_v43, %v4665_v37  ;;  %v5109_v26 = vsel %vm2783_vm2, %v9211_v33, %v4605_v24  ;;  %v4762_v43 = vrot.slane %v10793_v21, 6 }
 0xbfc   : > { %v4657_v54 = vpop.permute.xlu1 %4656 }
 0xbfd   : > { %v5119_v27 = vsel %vm4024_vm11, %v5103_v63, %v4657_v54  ;;  %v4760_v63 = vrot.slane %v8537_v8, 6 }
 0xc00   : > { %4784 = vrot.lane.b32.xlu2 %v4759_v40, %s5561_s17  ;;  %4774 = vrot.lane.b32.xlu0 %v4754_v47, %s5561_s17 }
 0xc02   : > { %v4671_v60 = vpop.permute.xlu2 %4670  ;;  %4794 = vrot.lane.b32.xlu1 %v4764_v5, %s5561_s17  ;;  %v4611_v33 = vpop.permute.xlu0 %4610 }
 0xc03   : > { %v9502_v32 = vsel %vm4024_vm11, %v5110_v28, %v4671_v60  ;;  %v5112_v29 = vsel %vm2783_vm2, %v9253_v45, %v4611_v33 }
 0xc04   : > { %v4663_v19 = vpop.permute.xlu1 %4662 }
 0xc05   : > { %v5122_v44 = vsel %vm4024_vm11, %v5106_v11, %v4663_v19 }
 0xc08   : > { %4790 = vrot.lane.b32.xlu2 %v4762_v43, %s5561_s17  ;;  %4780 = vrot.lane.b32.xlu0 %v4757_v49, %s5561_s17 }
 0xc0a   : > { %v4677_v7 = vpop.permute.xlu2 %4676  ;;  %4816 = vrot.lane.b32.xlu1 %v4751_v51, %s5562_s19  ;;  %v4617_v18 = vpop.permute.xlu0 %4616 }
 0xc0b   : > { %v9515_v14 = vsel %vm4024_vm11, %v5113_v58, %v4677_v7  ;;  %v5115_v45 = vsel %vm2783_vm2, %v9294_v30, %v4617_v18 }
 0xc0c   : > { %v4669_v28 = vpop.permute.xlu1 %4668 }
 0xc0d   : > { %v5125_v0 = vsel %vm4024_vm11, %v5109_v26, %v4669_v28 }
 0xc10   : > { %4796 = vrot.lane.b32.xlu2 %v4765_v2, %s5561_s17  ;;  %4786 = vrot.lane.b32.xlu0 %v4760_v63, %s5561_s17 }
 0xc12   : > { %v4683_v20 = vpop.permute.xlu2 %4682  ;;  %4822 = vrot.lane.b32.xlu1 %v4754_v47, %s5562_s19  ;;  %v4655_v58 = vpop.permute.xlu0 %4654 }
 0xc13   : > { %v9528_v48 = vsel %vm4024_vm11, %v5116_v41, %v4683_v20  ;;  %v5118_v30 = vsel %vm4024_vm11, %v9337_v1, %v4655_v58 }
 0xc14   : > { %v4675_v46 = vpop.permute.xlu1 %4674 }
 0xc15   : > { %v5128_v11 = vsel %vm4024_vm11, %v5112_v29, %v4675_v46 }
 0xc18   : > { %4818 = vrot.lane.b32.xlu2 %v4752_v50, %s5562_s19  ;;  %4792 = vrot.lane.b32.xlu0 %v4763_v9, %s5561_s17 }
 0xc1a   : > { %v4705_v51 = vpop.permute.xlu2 %4704  ;;  %4828 = vrot.lane.b32.xlu1 %v4757_v49, %s5562_s19  ;;  %v4661_v41 = vpop.permute.xlu0 %4660 }
 0xc1b   : > { %v9540_v37 = vsel %vm4041_vm12, %v5119_v27, %v4705_v51  ;;  %v5121_v1 = vsel %vm4024_vm11, %v9365_v31, %v4661_v41  ;;  %v4869_v51 = vrot.slane %v8514_v38, 7  ;;  %v4872_v38 = vrot.slane %v8537_v8, 7 }
 0xc1c   : > { %v4681_v24 = vpop.permute.xlu1 %4680 }
 0xc1d   : > { %v5131_v26 = vsel %vm4024_vm11, %v5115_v45, %v4681_v24 }
 0xc20   : > { %4824 = vrot.lane.b32.xlu2 %v4755_v12, %s5562_s19  ;;  %4814 = vrot.lane.b32.xlu0 %v4750_v22, %s5562_s19 }
 0xc22   : > { %v4711_v50 = vpop.permute.xlu2 %4710  ;;  %4834 = vrot.lane.b32.xlu1 %v4760_v63, %s5562_s19  ;;  %v4667_v54 = vpop.permute.xlu0 %4666 }
 0xc23   : > { %v9553_v27 = vsel %vm4041_vm12, %v5122_v44, %v4711_v50  ;;  %v5124_v31 = vsel %vm4024_vm11, %v9393_v6, %v4667_v54 }
 0xc24   : > { %v4703_v47 = vpop.permute.xlu1 %4702 }
 0xc25   : > { %v5134_v60 = vsel %vm4041_vm12, %v5118_v30, %v4703_v47  ;;  %v4866_v30 = vrot.slane %v8497_v23, 7 }
 0xc28   : > { %4830 = vrot.lane.b32.xlu2 %v4758_v42, %s5562_s19  ;;  %4820 = vrot.lane.b32.xlu0 %v4753_v34, %s5562_s19  ;;  %v4862_v34 = vrot.slane %v8533_v17, 7  ;;  %v4865_v17 = vrot.slane %v8559_v59, 7  ;;  %v4868_v59 = vrot.slane %v10768_v15, 7  ;;  %v4871_v15 = vrot.slane %v10780_v16, 7 }
 0xc2a   : > { %v4717_v22 = vpop.permute.xlu2 %4716  ;;  %4840 = vrot.lane.b32.xlu1 %v4763_v9, %s5562_s19  ;;  %v4673_v12 = vpop.permute.xlu0 %4672 }
 0xc2b   : > { %v9566_v33 = vsel %vm4041_vm12, %v5125_v0, %v4717_v22  ;;  %v5127_v6 = vsel %vm4024_vm11, %v9421_v56, %v4673_v12 }
 0xc2c   : > { %v4709_v29 = vpop.permute.xlu1 %4708 }
 0xc2d   : > { %v5137_v19 = vsel %vm4041_vm12, %v5121_v1, %v4709_v29 }
 0xc30   : > { %4836 = vrot.lane.b32.xlu2 %v4761_v3, %s5562_s19  ;;  %4826 = vrot.lane.b32.xlu0 %v4756_v55, %s5562_s19 }
 0xc32   : > { %v4723_v42 = vpop.permute.xlu2 %4722  ;;  %4878 = vrot.lane.b32.xlu1 %v4862_v34, %s5563_s20  ;;  %v4679_v44 = vpop.permute.xlu0 %4678 }
 0xc33   : > { %v9580_v49 = vsel %vm4041_vm12, %v5128_v11, %v4723_v42  ;;  %v5130_v56 = vsel %vm4024_vm11, %v9436_v53, %v4679_v44  ;;  %v4873_v42 = vrot.slane %v8579_v13, 7 }
 0xc34   : > { %v4715_v7 = vpop.permute.xlu1 %4714 }
 0xc35   : > { %v5140_v18 = vsel %vm4041_vm12, %v5124_v31, %v4715_v7 }
 0xc38   : > { %4842 = vrot.lane.b32.xlu2 %v4764_v5, %s5562_s19  ;;  %4832 = vrot.lane.b32.xlu0 %v4759_v40, %s5562_s19  ;;  %v4863_v5 = vrot.slane %v8483_v25, 7 }
 0xc3a   : > { %v4729_v55 = vpop.permute.xlu2 %4728  ;;  %4884 = vrot.lane.b32.xlu1 %v4865_v17, %s5563_s20  ;;  %v4685_v3 = vpop.permute.xlu0 %4684 }
 0xc3b   : > { %v9594_v45 = vsel %vm4041_vm12, %v5131_v26, %v4729_v55  ;;  %v5133_v53 = vsel %vm4024_vm11, %v9453_v10, %v4685_v3 }
 0xc3c   : > { %v4721_v28 = vpop.permute.xlu1 %4720 }
 0xc3d   : > { %v5143_v0 = vsel %vm4041_vm12, %v5127_v6, %v4721_v28  ;;  %v4876_v28 = vrot.slane %v8603_v61, 7 }
 0xc40   : > { %4880 = vrot.lane.b32.xlu2 %v4863_v5, %s5563_s20  ;;  %4838 = vrot.lane.b32.xlu0 %v4762_v43, %s5562_s19 }
 0xc42   : > { %v4767_v40 = vpop.permute.xlu2 %4766  ;;  %4890 = vrot.lane.b32.xlu1 %v4868_v59, %s5563_s20  ;;  %v4707_v63 = vpop.permute.xlu0 %4706 }
 0xc43   : > { %v9607_v10 = vsel %vm4058_vm13, %v5134_v60, %v4767_v40  ;;  %v5136_v20 = vsel %vm4041_vm12, %v9470_v57, %v4707_v63  ;;  %v4874_v63 = vrot.slane %v10793_v21, 7  ;;  %v4877_v21 = vrot.slane %v10778_v62, 7 }
 0xc44   : > { %v4727_v25 = vpop.permute.xlu1 %4726 }
 0xc45   : > { %v5146_v58 = vsel %vm4041_vm12, %v5130_v56, %v4727_v25 }
 0xc48   : > { %4886 = vrot.lane.b32.xlu2 %v4866_v30, %s5563_s20  ;;  %4844 = vrot.lane.b32.xlu0 %v4765_v2, %s5562_s19  ;;  %v4864_v2 = vrot.slane %v8512_v35, 7  ;;  %v4867_v35 = vrot.slane %v8535_v36, 7  ;;  %v4870_v36 = vrot.slane %v8557_v39, 7  ;;  %v4875_v39 = vrot.slane %v8561_v52, 7 }
 0xc4a   : > { %v4773_v43 = vpop.permute.xlu2 %4772  ;;  %4896 = vrot.lane.b32.xlu1 %v4871_v15, %s5563_s20  ;;  %v4713_v46 = vpop.permute.xlu0 %4712 }
 0xc4b   : > { %v9622_v57 = vsel %vm4058_vm13, %v5137_v19, %v4773_v43  ;;  %v5139_v23 = vsel %vm4041_vm12, %v9486_v4, %v4713_v46 }
 0xc4c   : > { %v4733_v11 = vpop.permute.xlu1 %4732 }
 0xc4d   : > { %v5149_v9 = vsel %vm4041_vm12, %v5133_v53, %v4733_v11 }
 0xc50   : > { %4892 = vrot.lane.b32.xlu2 %v4869_v51, %s5563_s20  ;;  %4882 = vrot.lane.b32.xlu0 %v4864_v2, %s5563_s20 }
 0xc52   : > { %v4779_v41 = vpop.permute.xlu2 %4778  ;;  %4926 = vrot.lane.b32.xlu1 %v4862_v34, %s5564_s21  ;;  %v4719_v1 = vpop.permute.xlu0 %4718 }
 0xc53   : > { %v9633_v24 = vsel %vm4058_vm13, %v5140_v18, %v4779_v41  ;;  %v5142_v4 = vsel %vm4041_vm12, %v9502_v32, %v4719_v1 }
 0xc54   : > { %v4771_v26 = vpop.permute.xlu1 %4770 }
 0xc55   : > { %v5152_v50 = vsel %vm4058_vm13, %v5136_v20, %v4771_v26 }
 0xc58   : > { %4898 = vrot.lane.b32.xlu2 %v4872_v38, %s5563_s20  ;;  %4888 = vrot.lane.b32.xlu0 %v4867_v35, %s5563_s20 }
 0xc5a   : > { %v4785_v54 = vpop.permute.xlu2 %4784  ;;  %4932 = vrot.lane.b32.xlu1 %v4865_v17, %s5564_s21  ;;  %v4725_v31 = vpop.permute.xlu0 %4724 }
 0xc5b   : > { %v9646_v47 = vsel %vm4058_vm13, %v5143_v0, %v4785_v54  ;;  %v5145_v32 = vsel %vm4041_vm12, %v9515_v14, %v4725_v31  ;;  %v10825_v54 = vld [vmem:[#allocation5_spill] sm:$0xff] }
 0xc5c   : > { %v4777_v60 = vpop.permute.xlu1 %4776 }
 0xc5d   : > { %v5155_v22 = vsel %vm4058_vm13, %v5139_v23, %v4777_v60 }
 0xc60   : > { %4928 = vrot.lane.b32.xlu2 %v4863_v5, %s5564_s21  ;;  %4894 = vrot.lane.b32.xlu0 %v4870_v36, %s5563_s20 }
 0xc62   : > { %v4791_v12 = vpop.permute.xlu2 %4790  ;;  %4938 = vrot.lane.b32.xlu1 %v4868_v59, %s5564_s21  ;;  %v4731_v6 = vpop.permute.xlu0 %4730 }
 0xc63   : > { %v9656_v29 = vsel %vm4058_vm13, %v5146_v58, %v4791_v12  ;;  %v5148_v19 = vsel %vm4041_vm12, %v9528_v48, %v4731_v6  ;;  %v10828_v12 = vld [vmem:[#allocation27_spill] sm:$0xff]  ;;  %v10829_v6 = vld [vmem:[#allocation4_spill] sm:$0xff] }
 0xc64   : > { %v4783_v14 = vpop.permute.xlu1 %4782 }
 0xc65   : > { %v5158_v34 = vsel %vm4058_vm13, %v5142_v4, %v4783_v14  ;;  %v10830_v14 = vld [vmem:[#allocation20_spill] sm:$0xff] }
 0xc68   : > { %4934 = vrot.lane.b32.xlu2 %v4866_v30, %s5564_s21  ;;  %4900 = vrot.lane.b32.xlu0 %v4873_v42, %s5563_s20 }
 0xc6a   : > { %v4797_v44 = vpop.permute.xlu2 %4796  ;;  %4904 = vrot.lane.b32.xlu1 %v4875_v39, %s5563_s20  ;;  %v4769_v56 = vpop.permute.xlu0 %4768 }
 0xc6b   : > { %v9667_v7 = vsel %vm4058_vm13, %v5149_v9, %v4797_v44  ;;  %v9671_v48 = vsel %vm4058_vm13, %v9540_v37, %v4769_v56  ;;  %v10833_v44 = vld [vmem:[#allocation7_spill] sm:$0xff] }
 0xc6c   : > { %v4789_v18 = vpop.permute.xlu1 %4788 }
 0xc6d   : > { %v5161_v13 = vsel %vm4058_vm13, %v5145_v32, %v4789_v18  ;;  %v10826_v32 = vld [vmem:[#allocation31_spill] sm:$0xff]  ;;  %v10834_v18 = vld [vmem:[#allocation68_spill] sm:$0xff] }
 0xc70   : > { %4940 = vrot.lane.b32.xlu2 %v4869_v51, %s5564_s21  ;;  %4930 = vrot.lane.b32.xlu0 %v4864_v2, %s5564_s21 }
 0xc72   : > { %v4819_v52 = vpop.permute.xlu2 %4818  ;;  %4942 = vrot.lane.b32.xlu1 %v4870_v36, %s5564_s21  ;;  %v4775_v17 = vpop.permute.xlu0 %4774 }
 0xc73   : > { %v9678_v55 = vsel %vm4075_vm14, %v5152_v50, %v4819_v52  ;;  %v9682_v3 = vsel %vm4058_vm13, %v9553_v27, %v4775_v17  ;;  %v10835_v52 = vld [vmem:[#allocation21_spill] sm:$0xff] }
 0xc74   : > { %v4795_v37 = vpop.permute.xlu1 %4794  ;;  %v10836_v17 = vld [vmem:[#allocation9_spill] sm:$0xff] }
 0xc75   : > { %v5164_v53 = vsel %vm4058_vm13, %v5148_v19, %v4795_v37  ;;  %v3873_v19 = vsel %vm1677_vm3, %v10829_v6, %v10828_v12  ;;  %v9772_v37 = vsel %vm1677_vm3, %v10836_v17, %v10835_v52  ;;  %v10854_v17 = vld [vmem:[#allocation34_spill] sm:$0xff] }
 0xc78   : > { %4906 = vrot.lane.b32.xlu2 %v4876_v28, %s5563_s20  ;;  %4936 = vrot.lane.b32.xlu0 %v4867_v35, %s5564_s21  ;;  %v10824_v35 = vld [vmem:[#allocation22_spill] sm:$0xff] }
 0xc79   : > { %v3874_v31 = vsel %vm1677_vm3, %v10825_v54, %v10824_v35 }
 0xc7a   : > { %v4825_v0 = vpop.permute.xlu2 %4824  ;;  %4948 = vrot.lane.b32.xlu1 %v4873_v42, %s5564_s21  ;;  %v4781_v5 = vpop.permute.xlu0 %4780  ;;  %v3891_v60 = vsel %vm3889_vm4, %v3874_v31, %v10826_v32  ;;  %v10847_v32 = vld [vmem:[#allocation36_spill] sm:$0xff] }
 0xc7b   : > { %v9690_v59 = vsel %vm4075_vm14, %v5155_v22, %v4825_v0  ;;  %v9694_v27 = vsel %vm4058_vm13, %v9566_v33, %v4781_v5  ;;  %v10827_v22 = vld [vmem:[#allocation61_spill] sm:$0xff]  ;;  %v10839_v5 = vld [vmem:[#allocation23_spill] sm:$0xff] }
 0xc7c   : > { %v9696_v40 = vpop.permute.xlu1 %4816  ;;  %v3908_v36 = vsel %vm3906_vm5, %v3891_v60, %v10827_v22  ;;  %v10848_v60 = vld [vmem:[#allocation13_spill] sm:$0xff] }
 0xc7d   : > { %v9797_v22 = vsel %vm1677_vm3, %v10848_v60, %v10847_v32  ;;  %v10863_v60 = vld [vmem:[#allocation164_spill] sm:$0xff] }
 0xc80   : > { %4944 = vrot.lane.b32.xlu2 %v4871_v15, %s5564_s21  ;;  %4902 = vrot.lane.b32.xlu0 %v4874_v63, %s5563_s20 }
 0xc82   : > { %v4831_v61 = vpop.permute.xlu2 %4830  ;;  %4954 = vrot.lane.b32.xlu1 %v4876_v28, %s5564_s21  ;;  %v4787_v20 = vpop.permute.xlu0 %4786  ;;  %v10838_v28 = vld [vmem:[#allocation8_spill] sm:$0xff] }
 0xc83   : > { %v9705_v25 = vsel %vm4075_vm14, %v5158_v34, %v4831_v61  ;;  %v5160_v33 = vsel %vm4058_vm13, %v9580_v49, %v4787_v20  ;;  %v10831_v34 = vld [vmem:[#allocation6_spill] sm:$0xff] }
 0xc84   : > { %v9709_v58 = vpop.permute.xlu1 %4822  ;;  %v9762_v42 = vsel %vm1677_vm3, %v10831_v34, %v10830_v14  ;;  %v10841_v20 = vld [vmem:[#allocation78_spill] sm:$0xff] }
 0xc85   : > { %v10850_v34 = vld [vmem:[#allocation26_spill] sm:$0xff] }
 0xc88   : > { %4950 = vrot.lane.b32.xlu2 %v4874_v63, %s5564_s21  ;;  %4908 = vrot.lane.b32.xlu0 %v4877_v21, %s5563_s20  ;;  %v10840_v63 = vld [vmem:[#allocation10_spill] sm:$0xff] }
 0xc89   : > { %v9780_v61 = vsel %vm1677_vm3, %v10840_v63, %v10839_v5  ;;  %v10856_v63 = vld [vmem:[#allocation35_spill] sm:$0xff] }
 0xc8a   : > { %v4837_v16 = vpop.permute.xlu2 %4836  ;;  %v4793_v30 = vpop.permute.xlu0 %4792 }
 0xc8b   : > { %v9715_v15 = vsel %vm4075_vm14, %v5161_v13, %v4837_v16  ;;  %v5163_v43 = vsel %vm4058_vm13, %v9594_v45, %v4793_v30  ;;  %v3925_v13 = vsel %vm3923_vm6, %v3908_v36, %v10834_v18  ;;  %v10843_v16 = vld [vmem:[#allocation11_spill] sm:$0xff]  ;;  %v10849_v36 = vld [vmem:[#allocation116_spill] sm:$0xff] }
 0xc8c   : > { %v9719_v46 = vpop.permute.xlu1 %4828  ;;  %v10852_v18 = vld [vmem:[#allocation39_spill] sm:$0xff] }
 0xc90   : > { %4956 = vrot.lane.b32.xlu2 %v4877_v21, %s5564_s21  ;;  %4946 = vrot.lane.b32.xlu0 %v4872_v38, %s5564_s21  ;;  %v10842_v21 = vld [vmem:[#allocation25_spill] sm:$0xff] }
 0xc91   : > { %v9787_v30 = vsel %vm1677_vm3, %v10843_v16, %v10842_v21  ;;  %v10858_v21 = vld [vmem:[#allocation38_spill] sm:$0xff] }
 0xc92   : > { %v4843_v62 = vpop.permute.xlu2 %4842  ;;  %v9725_v49 = vpop.permute.xlu0 %4814 }
 0xc93   : > { %v9728_v23 = vsel %vm4075_vm14, %v5164_v53, %v4843_v62  ;;  %v10837_v53 = vld [vmem:[#allocation24_spill] sm:$0xff] }
 0xc94   : > { %v4835_v11 = vpop.permute.xlu1 %4834  ;;  %v3877_v0 = vsel %vm1677_vm3, %v10838_v28, %v10837_v53  ;;  %v10845_v62 = vld [vmem:[#allocation12_spill] sm:$0xff]  ;;  %v10855_v28 = vld [vmem:[#allocation126_spill] sm:$0xff] }
 0xc95   : > { %v5176_v9 = vsel %vm4075_vm14, %v5160_v33, %v4835_v11  ;;  %v3942_v33 = vsel %vm3940_vm7, %v3925_v13, %v10841_v20  ;;  %v10853_v13 = vld [vmem:[#allocation14_spill] sm:$0xff]  ;;  %v3894_v53 = vsel %vm3889_vm4, %v3877_v0, %v10854_v17  ;;  %v10857_v20 = vld [vmem:[#allocation37_spill] sm:$0xff] }
 0xc96   : > { %v9814_v52 = vsel %vm1677_vm3, %v10853_v13, %v10852_v18  ;;  %v10868_v13 = vld [vmem:[#allocation71_spill] sm:$0xff] }
 0xc98   : > { %4952 = vrot.lane.b32.xlu0 %v4875_v39, %s5564_s21  ;;  %v10832_v39 = vld [vmem:[#allocation30_spill] sm:$0xff] }
 0xc99   : > { %v3876_v56 = vsel %vm1677_vm3, %v10833_v44, %v10832_v39  ;;  %v10851_v39 = vld [vmem:[#allocation15_spill] sm:$0xff] }
 0xc9a   : > { %v4881_v45 = vpop.permute.xlu2 %4880  ;;  %v9732_v51 = vpop.permute.xlu0 %4820  ;;  %v3880_v44 = vsel %vm1677_vm3, %v10851_v39, %v10850_v34  ;;  %v3893_v16 = vsel %vm3889_vm4, %v3876_v56, %v10858_v21  ;;  %v10865_v56 = vld [vmem:[#allocation64_spill] sm:$0xff]  ;;  %v10866_v39 = vld [vmem:[#allocation67_spill] sm:$0xff] }
 0xc9b   : > { %v3911_v34 = vsel %vm3906_vm5, %v3894_v53, %v10865_v56  ;;  %v10877_v56 = vld [vmem:[#allocation83_spill] sm:$0xff] }
 0xc9c   : > { %v4841_v2 = vpop.permute.xlu1 %4840  ;;  %v3928_v17 = vsel %vm3923_vm6, %v3911_v34, %v10868_v13 }
 0xc9d   : > { %v9735_v41 = vsel %vm4075_vm14, %v5163_v43, %v4841_v2  ;;  %v10844_v43 = vld [vmem:[#allocation33_spill] sm:$0xff] }
 0xc9e   : > { %v3879_v11 = vsel %vm1677_vm3, %v10845_v62, %v10844_v43  ;;  %v10846_v2 = vld [vmem:[#allocation109_spill] sm:$0xff] }
 0xc9f   : > { %v3959_v35 = vsel %vm3957_vm8, %v3942_v33, %v10846_v2  ;;  %v3897_v33 = vsel %vm3889_vm4, %v3880_v44, %v10857_v20  ;;  %v10859_v43 = vld [vmem:[#allocation157_spill] sm:$0xff] }
 0xca0   : > { %v3976_v12 = vsel %vm3974_vm9, %v3959_v35, %v10849_v36  ;;  %v10860_v2 = vld [vmem:[#allocation41_spill] sm:$0xff]  ;;  %v10864_v36 = vld [vmem:[#allocation51_spill] sm:$0xff]  ;;  %v3914_v44 = vsel %vm3906_vm5, %v3897_v33, %v10866_v39 }
 0xca1   : > { %v3896_v0 = vsel %vm3889_vm4, %v3879_v11, %v10860_v2  ;;  %v10861_v35 = vld [vmem:[#allocation45_spill] sm:$0xff]  ;;  %v10867_v11 = vld [vmem:[#allocation174_spill] sm:$0xff]  ;;  %v10878_v39 = vld [vmem:[#allocation119_spill] sm:$0xff] }
 0xca2   : > { %v9737_v8 = vpop.permute.xlu2 %4886  ;;  %v9739_v1 = vpop.permute.xlu0 %4826  ;;  %v10871_v20 = vld [vmem:[#allocation205_spill] sm:$0xff] }
 0xca4   : > { %v9741_v4 = vpop.permute.xlu1 %4878 }
 0xcaa   : > { %v9743_v26 = vpop.permute.xlu2 %4892  ;;  %v9745_v50 = vpop.permute.xlu0 %4832 }
 0xcac   : > { %v9747_v38 = vpop.permute.xlu1 %4884 }
 0xcb2   : > { %v4899_v54 = vpop.permute.xlu2 %4898  ;;  %v4839_v31 = vpop.permute.xlu0 %4838 }
 0xcb3   : > { %v9802_v6 = vsel %vm4092_vm15, %v5176_v9, %v4899_v54  ;;  %v9806_v14 = vsel %vm4075_vm14, %v9656_v29, %v4839_v31  ;;  %v3993_v9 = vsel %vm3991_vm10, %v3976_v12, %v10855_v28  ;;  %v3890_v29 = vsel %vm3889_vm4, %v3873_v19, %v10856_v63  ;;  %v10862_v31 = vld [vmem:[#allocation48_spill] sm:$0xff]  ;;  %v10869_v28 = vld [vmem:[#allocation74_spill] sm:$0xff] }
 0xcb4   : > { %v9820_v5 = vpop.permute.xlu1 %4890  ;;  %v4009_v62 = vsel %vm2783_vm2, %v3993_v9, %v10859_v43  ;;  %v3907_v54 = vsel %vm3906_vm5, %v3890_v29, %v10861_v35  ;;  %v3910_v32 = vsel %vm3906_vm5, %v3893_v16, %v10862_v31  ;;  %v9840_v12 = vsel %vm3906_vm5, %v3896_v0, %v10864_v36  ;;  %v10870_v63 = vld [vmem:[#allocation76_spill] sm:$0xff]  ;;  %v10872_v16 = vld [vmem:[#allocation79_spill] sm:$0xff]  ;;  %v10873_v43 = vld [vmem:[#allocation81_spill] sm:$0xff] }
 0xcb5   : > { %v4026_v19 = vsel %vm4024_vm11, %v4009_v62, %v10863_v60  ;;  %v3931_v9 = vsel %vm3923_vm6, %v3914_v44, %v10869_v28  ;;  %v3924_v29 = vsel %vm3923_vm6, %v3907_v54, %v10870_v63  ;;  %v3927_v53 = vsel %vm3923_vm6, %v3910_v32, %v10872_v16  ;;  %v10874_v62 = vld [vmem:[#allocation212_spill] sm:$0xff]  ;;  %v10876_v54 = vld [vmem:[#allocation222_spill] sm:$0xff]  ;;  %v10882_v28 = vld [vmem:[#allocation129_spill] sm:$0xff] }
 0xcb6   : > { %v4043_v18 = vsel %vm4041_vm12, %v4026_v19, %v10867_v11  ;;  %v3945_v33 = vsel %vm3940_vm7, %v3928_v17, %v10873_v43  ;;  %v5167_v0 = vsel %vm4075_vm14, %v9671_v48, %v9696_v40  ;;  %v10875_v35 = vld [vmem:[#allocation112_spill] sm:$0xff]  ;;  %v3941_v34 = vsel %vm3940_vm7, %v3924_v29, %v10877_v56  ;;  %v10879_v11 = vld [vmem:[#allocation257_spill] sm:$0xff]  ;;  %v10883_v29 = vld [vmem:[#allocation86_spill] sm:$0xff] }
 0xcb7   : > { %v4060_v21 = vsel %vm4058_vm13, %v4043_v18, %v10871_v20  ;;  %v3962_v31 = vsel %vm3957_vm8, %v3945_v33, %v10875_v35  ;;  %v5183_v19 = vsel %vm4092_vm15, %v5167_v0, %v4881_v45  ;;  %v10880_v18 = vld [vmem:[#allocation84_spill] sm:$0xff]  ;;  %v10881_v17 = vld [vmem:[#allocation93_spill] sm:$0xff]  ;;  %v3944_v16 = vsel %vm3940_vm7, %v3927_v53, %v10883_v29  ;;  %v10887_v35 = vld [vmem:[#allocation167_spill] sm:$0xff] }
 0xcb8   : > { %v4077_v2 = vsel %vm4075_vm14, %v4060_v21, %v10874_v62  ;;  %v3979_v44 = vsel %vm3974_vm9, %v3962_v31, %v10878_v39  ;;  %v3948_v13 = vsel %vm3940_vm7, %v3931_v9, %v10880_v18  ;;  %v3958_v45 = vsel %vm3957_vm8, %v3941_v34, %v10881_v17  ;;  %v10884_v43 = vld [vmem:[#allocation124_spill] sm:$0xff]  ;;  %v10886_v9 = vld [vmem:[#allocation131_spill] sm:$0xff]  ;;  %v10890_v34 = vld [vmem:[#allocation141_spill] sm:$0xff] }
 0xcb9   : > { %v4094_v60 = vsel %vm4092_vm15, %v4077_v2, %v10876_v54  ;;  %v3996_v63 = vsel %vm3991_vm10, %v3979_v44, %v10882_v28  ;;  %v3975_v33 = vsel %vm3974_vm9, %v3958_v45, %v10884_v43  ;;  %v10885_v62 = vld [vmem:[#allocation160_spill] sm:$0xff]  ;;  %v10889_v56 = vld [vmem:[#allocation115_spill] sm:$0xff]  ;;  %v10891_v44 = vld [vmem:[#allocation177_spill] sm:$0xff] }
 0xcba   : > { %v4929_v32 = vpop.permute.xlu2 %4928  ;;  %v9870_v36 = vpop.permute.xlu0 %4844  ;;  %v4111_v48 = vsel %vm4109_vm0, %v4094_v60, %v10879_v11  ;;  %v4012_v2 = vsel %vm2783_vm2, %v3996_v63, %v10885_v62  ;;  %v3992_v0 = vsel %vm3991_vm10, %v3975_v33, %v10886_v9  ;;  %v3965_v53 = vsel %vm3957_vm8, %v3948_v13, %v10889_v56  ;;  %v10893_v17 = vld [vmem:[#allocation172_spill] sm:$0xff]  ;;  %v10896_v29 = vld [vmem:[#allocation179_spill] sm:$0xff] }
 0xcbb   : > { %v5199_v40 = vsel %vm4109_vm0, %v5183_v19, %v4929_v32  ;;  %v4029_v31 = vsel %vm4024_vm11, %v4012_v2, %v10887_v35  ;;  %v5216_v54 = vperm.slane %v4111_v48, 0  ;;  %v10888_v19 = vld [vmem:[#allocation96_spill] sm:$0xff]  ;;  %v4008_v39 = vsel %vm2783_vm2, %v3992_v0, %v10890_v34  ;;  %v10897_v43 = vld [vmem:[#allocation215_spill] sm:$0xff]  ;;  %v10899_v0 = vld [vmem:[#allocation189_spill] sm:$0xff] }
 0xcbc   : > { %v5217_v20 = vperm.slane %v5199_v40, 0  ;;  %v9885_v21 = vpop.permute.xlu1 %4896  ;;  %v3961_v32 = vsel %vm3957_vm8, %v3944_v16, %v10888_v19  ;;  %v4046_v11 = vsel %vm4041_vm12, %v4029_v31, %v10891_v44  ;;  %v10892_v40 = vld [vmem:[#allocation122_spill] sm:$0xff]  ;;  %v4025_v45 = vsel %vm4024_vm11, %v4008_v39, %v10893_v17  ;;  %v10894_v48 = vld [vmem:[#allocation208_spill] sm:$0xff]  ;;  %v10900_v31 = vld [vmem:[#allocation225_spill] sm:$0xff] }
 0xcbd   : > { %v3982_v18 = vsel %vm3974_vm9, %v3965_v53, %v10892_v40  ;;  %v4063_v28 = vsel %vm4058_vm13, %v4046_v11, %v10894_v48  ;;  %v4042_v16 = vsel %vm4041_vm12, %v4025_v45, %v10896_v29  ;;  %v5170_v62 = vsel %vm4075_vm14, %v9682_v3, %v9709_v58  ;;  %v10898_v2 = vld [vmem:[#allocation132_spill] sm:$0xff]  ;;  %v10903_v44 = vld [vmem:[#allocation134_spill] sm:$0xff]  ;;  %v10904_v40 = vld [vmem:[#allocation227_spill] sm:$0xff] }
 0xcbe   : > { %v5279_v60 = vrot.slane %v5217_v20, 6  ;;  %v10895_v20 = vld [vmem:[#allocation127_spill] sm:$0xff]  ;;  %v4080_v33 = vsel %vm4075_vm14, %v4063_v28, %v10897_v43  ;;  %v3999_v9 = vsel %vm3991_vm10, %v3982_v18, %v10898_v2  ;;  %v4059_v35 = vsel %vm4058_vm13, %v4042_v16, %v10899_v0  ;;  %v10901_v56 = vld [vmem:[#allocation220_spill] sm:$0xff]  ;;  %v10910_v2 = vld [vmem:[#allocation18_spill] sm:$0xff] }
 0xcbf   : > { %v3978_v13 = vsel %vm3974_vm9, %v3961_v32, %v10895_v20  ;;  %v4076_v53 = vsel %vm4075_vm14, %v4059_v35, %v10901_v56  ;;  %v10902_v3 = vld [vmem:[#allocation260_spill] sm:$0xff]  ;;  %v5166_v34 = vsel %vm4075_vm14, %v9607_v10, %v9725_v49  ;;  %v10911_v35 = vld [vmem:[#allocation82_spill] sm:$0xff]  ;;  %v10914_v56 = vld [vmem:[#allocation211_spill] sm:$0xff] }
 0xcc0   : > { %v5296_v63 = vsel %vm5294_vm1, %v5216_v54, %v5279_v60  ;;  %v4097_v54 = vsel %vm4092_vm15, %v4080_v33, %v10900_v31  ;;  %v5186_v60 = vsel %vm4092_vm15, %v5170_v62, %v9737_v8  ;;  %v3995_v11 = vsel %vm3991_vm10, %v3978_v13, %v10903_v44  ;;  %v10905_v48 = vld [vmem:[#allocation144_spill] sm:$0xff]  ;;  %v10908_v13 = vld [vmem:[#allocation170_spill] sm:$0xff]  ;;  %v10912_v31 = vld [vmem:[#allocation175_spill] sm:$0xff] }
 0xcc1   : > { %5313 = vst [vmem:[#allocation1 + $0x1] ss:$4 sm:$0xff] %v5296_v63  ;;  %v4114_v58 = vsel %vm4109_vm0, %v4097_v54, %v10902_v3  ;;  %v4093_v8 = vsel %vm4092_vm15, %v4076_v53, %v10904_v40  ;;  %v5182_v18 = vsel %vm4092_vm15, %v5166_v34, %v9741_v4  ;;  %v4011_v28 = vsel %vm2783_vm2, %v3995_v11, %v10905_v48  ;;  %v10906_v63 = vld [vmem:[#allocation163_spill] sm:$0xff]  ;;  %v10907_v10 = vld [vmem:[#allocation240_spill] sm:$0xff]  ;;  %v10916_v11 = vld [vmem:[#allocation182_spill] sm:$0xff] }
 0xcc2   : > { %v4935_v19 = vpop.permute.xlu2 %4934  ;;  %v9929_v32 = vpop.permute.xlu0 %4882  ;;  %v4015_v20 = vsel %vm2783_vm2, %v3999_v9, %v10906_v63  ;;  %v4110_v49 = vsel %vm4109_vm0, %v4093_v8, %v10907_v10  ;;  %v5222_v43 = vperm.slane %v4114_v58, 0  ;;  %v10909_v4 = vld [vmem:[#allocation28_spill] sm:$0xff]  ;;  %v3930_v9 = vsel %vm3923_vm6, %v9840_v12, %v10911_v35  ;;  %v10917_v12 = vld [vmem:[#allocation218_spill] sm:$0xff] }
 0xcc3   : > { %v5202_v39 = vsel %vm4109_vm0, %v5186_v60, %v4935_v19  ;;  %v4032_v16 = vsel %vm4024_vm11, %v4015_v20, %v10908_v13  ;;  %v9957_v0 = vsel %vm1677_vm3, %v10910_v2, %v10909_v4  ;;  %v4028_v54 = vsel %vm4024_vm11, %v4011_v28, %v10912_v31  ;;  %v10913_v60 = vld [vmem:[#allocation180_spill] sm:$0xff]  ;;  %v10924_v31 = vld [vmem:[#allocation29_spill] sm:$0xff] }
 0xcc4   : > { %v5223_v17 = vperm.slane %v5202_v39, 0  ;;  %v4927_v45 = vpop.permute.xlu1 %4926  ;;  %v4049_v19 = vsel %vm4041_vm12, %v4032_v16, %v10913_v60  ;;  %v5214_v3 = vperm.slane %v4110_v49, 0  ;;  %v10915_v39 = vld [vmem:[#allocation89_spill] sm:$0xff]  ;;  %v4045_v40 = vsel %vm4041_vm12, %v4028_v54, %v10916_v11  ;;  %v10919_v48 = vld [vmem:[#allocation228_spill] sm:$0xff]  ;;  %v10921_v16 = vld [vmem:[#allocation263_spill] sm:$0xff] }
 0xcc5   : > { %v5198_v29 = vsel %vm4109_vm0, %v5182_v18, %v4927_v45  ;;  %v4066_v53 = vsel %vm4058_vm13, %v4049_v19, %v10914_v56  ;;  %v3947_v44 = vsel %vm3940_vm7, %v3930_v9, %v10915_v39  ;;  %v5173_v18 = vsel %vm4075_vm14, %v9694_v27, %v9719_v46  ;;  %v10925_v54 = vld [vmem:[#allocation16_spill] sm:$0xff]  ;;  %v10926_v19 = vld [vmem:[#allocation130_spill] sm:$0xff] }
 0xcc6   : > { %v5282_v33 = vrot.slane %v5223_v17, 6  ;;  %v5215_v62 = vperm.slane %v5198_v29, 0  ;;  %v4083_v8 = vsel %vm4075_vm14, %v4066_v53, %v10917_v12  ;;  %v10918_v17 = vld [vmem:[#allocation192_spill] sm:$0xff]  ;;  %v5189_v63 = vsel %vm4092_vm15, %v5173_v18, %v9743_v26  ;;  %v10920_v29 = vld [vmem:[#allocation223_spill] sm:$0xff] }
 0xcc7   : > { %v4062_v45 = vsel %vm4058_vm13, %v4045_v40, %v10918_v17  ;;  %v4100_v28 = vsel %vm4092_vm15, %v4083_v8, %v10919_v48  ;;  %v5169_v46 = vsel %vm4075_vm14, %v9622_v57, %v9732_v51  ;;  %v3883_v60 = vsel %vm1677_vm3, %v10925_v54, %v10924_v31  ;;  %v10927_v51 = vld [vmem:[#allocation244_spill] sm:$0xff]  ;;  %v10930_v40 = vld [vmem:[#allocation42_spill] sm:$0xff]  ;;  %v10931_v12 = vld [vmem:[#allocation19_spill] sm:$0xff] }
 0xcc8   : > { %v5299_v58 = vsel %vm5294_vm1, %v5222_v43, %v5282_v33  ;;  %v5278_v34 = vrot.slane %v5215_v62, 6  ;;  %v4079_v13 = vsel %vm4075_vm14, %v4062_v45, %v10920_v29  ;;  %v4117_v27 = vsel %vm4109_vm0, %v4100_v28, %v10921_v16  ;;  %v10922_v33 = vld [vmem:[#allocation99_spill] sm:$0xff]  ;;  %v10923_v62 = vld [vmem:[#allocation230_spill] sm:$0xff]  ;;  %v10932_v18 = vld [vmem:[#allocation44_spill] sm:$0xff] }
 0xcc9   : > { %5319 = vst [vmem:[#allocation1 + $0x20] ss:$4 sm:$0xff] %v5299_v58  ;;  %v3964_v26 = vsel %vm3957_vm8, %v3947_v44, %v10922_v33  ;;  %v4096_v4 = vsel %vm4092_vm15, %v4079_v13, %v10923_v62  ;;  %v5185_v2 = vsel %vm4092_vm15, %v5169_v46, %v9747_v38  ;;  %v10929_v44 = vld [vmem:[#allocation40_spill] sm:$0xff]  ;;  %v3888_v8 = vsel %vm1677_vm3, %v10931_v12, %v10930_v40  ;;  %v10933_v45 = vld [vmem:[#allocation147_spill] sm:$0xff]  ;;  %v10934_v28 = vld [vmem:[#allocation178_spill] sm:$0xff] }
 0xcca   : > { %v5295_v20 = vsel %vm5294_vm1, %v5214_v3, %v5278_v34  ;;  %v4941_v10 = vpop.permute.xlu2 %4940  ;;  %v9985_v49 = vpop.permute.xlu0 %4888  ;;  %v3981_v57 = vsel %vm3974_vm9, %v3964_v26, %v10926_v19  ;;  %v4113_v56 = vsel %vm4109_vm0, %v4096_v4, %v10927_v51  ;;  %v10928_v3 = vld [vmem:[#allocation137_spill] sm:$0xff]  ;;  %v5228_v34 = vperm.slane %v4117_v27, 0  ;;  %v10935_v13 = vld [vmem:[#allocation46_spill] sm:$0xff]  ;;  %v10936_v27 = vld [vmem:[#allocation47_spill] sm:$0xff] }
 0xccb   : > { %5311 = vst [vmem:[#allocation1] ss:$4 sm:$0xff] %v5295_v20  ;;  %v5205_v43 = vsel %vm4109_vm0, %v5189_v63, %v4941_v10  ;;  %v3998_v58 = vsel %vm3991_vm10, %v3981_v57, %v10928_v3  ;;  %v10013_v11 = vsel %vm3889_vm4, %v3883_v60, %v10929_v44  ;;  %v3899_v17 = vsel %vm3889_vm4, %v9797_v22, %v10932_v18  ;;  %v10938_v33 = vld [vmem:[#allocation185_spill] sm:$0xff]  ;;  %v10939_v62 = vld [vmem:[#allocation50_spill] sm:$0xff]  ;;  %v10946_v3 = vld [vmem:[#allocation56_spill] sm:$0xff] }
 0xccc   : > { %v5229_v35 = vperm.slane %v5205_v43, 0  ;;  %v4933_v9 = vpop.permute.xlu1 %4932  ;;  %v4014_v48 = vsel %vm2783_vm2, %v3998_v58, %v10933_v45  ;;  %v5220_v20 = vperm.slane %v4113_v56, 0  ;;  %v3892_v16 = vsel %vm3889_vm4, %v9762_v42, %v10935_v13  ;;  %v10937_v43 = vld [vmem:[#allocation49_spill] sm:$0xff]  ;;  %v10941_v42 = vld [vmem:[#allocation195_spill] sm:$0xff]  ;;  %v10943_v60 = vld [vmem:[#allocation54_spill] sm:$0xff] }
 0xccd   : > { %v5201_v53 = vsel %vm4109_vm0, %v5185_v2, %v4933_v9  ;;  %v4031_v63 = vsel %vm4024_vm11, %v4014_v48, %v10934_v28  ;;  %v3902_v46 = vsel %vm3889_vm4, %v9814_v52, %v10936_v27  ;;  %v3895_v22 = vsel %vm3889_vm4, %v9772_v37, %v10937_v43  ;;  %v10940_v2 = vld [vmem:[#allocation52_spill] sm:$0xff]  ;;  %v10942_v54 = vld [vmem:[#allocation53_spill] sm:$0xff]  ;;  %v10944_v57 = vld [vmem:[#allocation226_spill] sm:$0xff] }
 0xcce   : > { %v5285_v39 = vrot.slane %v5229_v35, 6  ;;  %v5221_v38 = vperm.slane %v5201_v53, 0  ;;  %v4048_v26 = vsel %vm4041_vm12, %v4031_v63, %v10938_v33  ;;  %v3905_v4 = vsel %vm3889_vm4, %v3888_v8, %v10939_v62  ;;  %v10945_v56 = vld [vmem:[#allocation55_spill] sm:$0xff]  ;;  %v10948_v40 = vld [vmem:[#allocation57_spill] sm:$0xff]  ;;  %v10949_v8 = vld [vmem:[#allocation58_spill] sm:$0xff] }
 0xccf   : > { %v3898_v35 = vsel %vm3889_vm4, %v9780_v61, %v10940_v2  ;;  %v4065_v9 = vsel %vm4058_vm13, %v4048_v26, %v10941_v42  ;;  %v3909_v37 = vsel %vm3906_vm5, %v3892_v16, %v10942_v54  ;;  %v3916_v19 = vsel %vm3906_vm5, %v3899_v17, %v10943_v60  ;;  %v10951_v17 = vld [vmem:[#allocation59_spill] sm:$0xff]  ;;  %v10952_v48 = vld [vmem:[#allocation60_spill] sm:$0xff]  ;;  %v10955_v13 = vld [vmem:[#allocation65_spill] sm:$0xff] }
 0xcd0   : > { %v5302_v10 = vsel %vm5294_vm1, %v5228_v34, %v5285_v39  ;;  %v5281_v29 = vrot.slane %v5221_v38, 6  ;;  %v4082_v51 = vsel %vm4075_vm14, %v4065_v9, %v10944_v57  ;;  %v5172_v61 = vsel %vm4075_vm14, %v9633_v24, %v9739_v1  ;;  %v10947_v34 = vld [vmem:[#allocation234_spill] sm:$0xff]  ;;  %v10950_v1 = vld [vmem:[#allocation247_spill] sm:$0xff]  ;;  %v10961_v9 = vld [vmem:[#allocation88_spill] sm:$0xff] }
 0xcd1   : > { %5325 = vst [vmem:[#allocation1 + $0x23] ss:$4 sm:$0xff] %v5302_v10  ;;  %v3901_v53 = vsel %vm3889_vm4, %v9787_v30, %v10945_v56  ;;  %v3912_v58 = vsel %vm3906_vm5, %v3895_v22, %v10946_v3  ;;  %v4099_v39 = vsel %vm4092_vm15, %v4082_v51, %v10947_v34  ;;  %v5188_v38 = vsel %vm4092_vm15, %v5172_v61, %v9820_v5  ;;  %v10953_v5 = vld [vmem:[#allocation62_spill] sm:$0xff]  ;;  %v10954_v10 = vld [vmem:[#allocation63_spill] sm:$0xff]  ;;  %v10958_v22 = vld [vmem:[#allocation72_spill] sm:$0xff] }
 0xcd2   : > { %v5298_v52 = vsel %vm5294_vm1, %v5220_v20, %v5281_v29  ;;  %v10045_v31 = vpop.permute.xlu0 %4894  ;;  %v3919_v12 = vsel %vm3906_vm5, %v3902_v46, %v10948_v40  ;;  %v3904_v24 = vsel %vm3889_vm4, %v9957_v0, %v10949_v8  ;;  %v4116_v30 = vsel %vm4109_vm0, %v4099_v39, %v10950_v1  ;;  %v10956_v16 = vld [vmem:[#allocation66_spill] sm:$0xff]  ;;  %v10957_v46 = vld [vmem:[#allocation69_spill] sm:$0xff]  ;;  %v10959_v26 = vld [vmem:[#allocation75_spill] sm:$0xff]  ;;  %v10099_v51 = vpop.permute.xlu2 %4906 }
 0xcd3   : > { %5317 = vst [vmem:[#allocation1 + $0x3] ss:$4 sm:$0xff] %v5298_v52  ;;  %v3915_v45 = vsel %vm3906_vm5, %v3898_v35, %v10951_v17  ;;  %v3922_v28 = vsel %vm3906_vm5, %v3905_v4, %v10952_v48  ;;  %v3918_v63 = vsel %vm3906_vm5, %v3901_v53, %v10953_v5  ;;  %v3926_v29 = vsel %vm3923_vm6, %v3909_v37, %v10954_v10  ;;  %v10960_v35 = vld [vmem:[#allocation85_spill] sm:$0xff]  ;;  %v10962_v54 = vld [vmem:[#allocation91_spill] sm:$0xff]  ;;  %v10963_v60 = vld [vmem:[#allocation94_spill] sm:$0xff] }
 0xcd4   : > { %v4939_v44 = vpop.permute.xlu1 %4938  ;;  %v3921_v0 = vsel %vm3906_vm5, %v3904_v24, %v10955_v13  ;;  %v3929_v27 = vsel %vm3923_vm6, %v3912_v58, %v10956_v16  ;;  %v3932_v43 = vsel %vm3923_vm6, %v3915_v45, %v10957_v46  ;;  %v3935_v33 = vsel %vm3923_vm6, %v3918_v63, %v10958_v22  ;;  %v10964_v61 = vld [vmem:[#allocation92_spill] sm:$0xff]  ;;  %v10965_v53 = vld [vmem:[#allocation95_spill] sm:$0xff]  ;;  %v10966_v58 = vld [vmem:[#allocation101_spill] sm:$0xff] }
 0xcd5   : > { %v5204_v18 = vsel %vm4109_vm0, %v5188_v38, %v4939_v44  ;;  %v3938_v62 = vsel %vm3923_vm6, %v3921_v0, %v10959_v26  ;;  %v5226_v4 = vperm.slane %v4116_v30, 0  ;;  %v3933_v42 = vsel %vm3923_vm6, %v3916_v19, %v10960_v35  ;;  %v10967_v38 = vld [vmem:[#allocation97_spill] sm:$0xff]  ;;  %v10968_v40 = vld [vmem:[#allocation98_spill] sm:$0xff]  ;;  %v10969_v8 = vld [vmem:[#allocation100_spill] sm:$0xff] }
 0xcd6   : > { %v5227_v20 = vperm.slane %v5204_v18, 0  ;;  %v3936_v52 = vsel %vm3923_vm6, %v3919_v12, %v10961_v9  ;;  %v3939_v37 = vsel %vm3923_vm6, %v3922_v28, %v10962_v54  ;;  %v3943_v57 = vsel %vm3940_vm7, %v3926_v29, %v10963_v60  ;;  %v10970_v1 = vld [vmem:[#allocation111_spill] sm:$0xff]  ;;  %v10971_v18 = vld [vmem:[#allocation102_spill] sm:$0xff]  ;;  %v10973_v28 = vld [vmem:[#allocation104_spill] sm:$0xff] }
 0xcd7   : > { %v3950_v56 = vsel %vm3940_vm7, %v3933_v42, %v10964_v61  ;;  %v3953_v3 = vsel %vm3940_vm7, %v3936_v52, %v10965_v53  ;;  %v3960_v19 = vsel %vm3957_vm8, %v3943_v57, %v10966_v58  ;;  %v3946_v44 = vsel %vm3940_vm7, %v3929_v27, %v10967_v38  ;;  %v10972_v45 = vld [vmem:[#allocation103_spill] sm:$0xff]  ;;  %v10974_v63 = vld [vmem:[#allocation142_spill] sm:$0xff]  ;;  %v10975_v29 = vld [vmem:[#allocation105_spill] sm:$0xff] }
 0xcd8   : > { %v5284_v2 = vrot.slane %v5227_v20, 6  ;;  %v3956_v12 = vsel %vm3940_vm7, %v3939_v37, %v10968_v40  ;;  %v3949_v24 = vsel %vm3940_vm7, %v3932_v43, %v10969_v8  ;;  %v3977_v30 = vsel %vm3974_vm9, %v3960_v19, %v10970_v1  ;;  %v10976_v0 = vld [vmem:[#allocation106_spill] sm:$0xff]  ;;  %v10977_v27 = vld [vmem:[#allocation107_spill] sm:$0xff]  ;;  %v10978_v43 = vld [vmem:[#allocation149_spill] sm:$0xff] }
 0xcd9   : > { %v3967_v17 = vsel %vm3957_vm8, %v3950_v56, %v10971_v18  ;;  %v3952_v48 = vsel %vm3940_vm7, %v3935_v33, %v10972_v45  ;;  %v3963_v5 = vsel %vm3957_vm8, %v3946_v44, %v10973_v28  ;;  %v3994_v20 = vsel %vm3991_vm10, %v3977_v30, %v10974_v63  ;;  %v10979_v33 = vld [vmem:[#allocation108_spill] sm:$0xff]  ;;  %v10981_v35 = vld [vmem:[#allocation114_spill] sm:$0xff]  ;;  %v10982_v9 = vld [vmem:[#allocation159_spill] sm:$0xff] }
 0xcda   : > { %v5301_v34 = vsel %vm5294_vm1, %v5226_v4, %v5284_v2  ;;  %v10108_v39 = vpop.permute.xlu0 %4900  ;;  %v10130_v13 = vsel %vm3957_vm8, %v3953_v3, %v10975_v29  ;;  %v10134_v16 = vsel %vm3940_vm7, %v3938_v62, %v10976_v0  ;;  %v3966_v46 = vsel %vm3957_vm8, %v3949_v24, %v10977_v27  ;;  %v10980_v4 = vld [vmem:[#allocation110_spill] sm:$0xff]  ;;  %v10983_v52 = vld [vmem:[#allocation117_spill] sm:$0xff]  ;;  %v10984_v37 = vld [vmem:[#allocation120_spill] sm:$0xff] }
 0xcdb   : > { %5323 = vst [vmem:[#allocation1 + $0x22] ss:$4 sm:$0xff] %v5301_v34  ;;  %v4010_v22 = vsel %vm2783_vm2, %v3994_v20, %v10978_v43  ;;  %v10142_v26 = vsel %vm3957_vm8, %v3956_v12, %v10979_v33  ;;  %v3969_v2 = vsel %vm3957_vm8, %v3952_v48, %v10980_v4  ;;  %v3980_v42 = vsel %vm3974_vm9, %v3963_v5, %v10981_v35  ;;  %v10985_v57 = vld [vmem:[#allocation133_spill] sm:$0xff]  ;;  %v10986_v56 = vld [vmem:[#allocation190_spill] sm:$0xff]  ;;  %v10987_v3 = vld [vmem:[#allocation140_spill] sm:$0xff] }
 0xcdc   : > { %v10126_v10 = vpop.permute.xlu1 %4904  ;;  %v4027_v62 = vsel %vm4024_vm11, %v4010_v22, %v10982_v9  ;;  %v3983_v54 = vsel %vm3974_vm9, %v3966_v46, %v10983_v52  ;;  %v3986_v60 = vsel %vm3974_vm9, %v3969_v2, %v10984_v37  ;;  %v3984_v61 = vsel %vm3974_vm9, %v3967_v17, %v10985_v57  ;;  %v10988_v19 = vld [vmem:[#allocation145_spill] sm:$0xff]  ;;  %v10989_v38 = vld [vmem:[#allocation148_spill] sm:$0xff]  ;;  %v10991_v8 = vld [vmem:[#allocation150_spill] sm:$0xff] }
 0xcdd   : > { %v4044_v53 = vsel %vm4041_vm12, %v4027_v62, %v10986_v56  ;;  %v4001_v58 = vsel %vm3991_vm10, %v3984_v61, %v10987_v3  ;;  %v3997_v34 = vsel %vm3991_vm10, %v3980_v42, %v10988_v19  ;;  %v4000_v44 = vsel %vm3991_vm10, %v3983_v54, %v10989_v38  ;;  %v10990_v40 = vld [vmem:[#allocation197_spill] sm:$0xff]  ;;  %v10992_v1 = vld [vmem:[#allocation151_spill] sm:$0xff]  ;;  %v10993_v18 = vld [vmem:[#allocation152_spill] sm:$0xff]  ;;  %v4945_v42 = vpop.permute.xlu2 %4944 }
 0xcde   : > { %v4061_v12 = vsel %vm4058_vm13, %v4044_v53, %v10990_v40  ;;  %v4017_v24 = vsel %vm2783_vm2, %v4001_v58, %v10991_v8  ;;  %v4003_v30 = vsel %vm3991_vm10, %v3986_v60, %v10992_v1  ;;  %v4013_v17 = vsel %vm2783_vm2, %v3997_v34, %v10993_v18  ;;  %v10994_v45 = vld [vmem:[#allocation207_spill] sm:$0xff]  ;;  %v10996_v63 = vld [vmem:[#allocation158_spill] sm:$0xff]  ;;  %v10997_v29 = vld [vmem:[#allocation241_spill] sm:$0xff] }
 0xcdf   : > { %v4078_v48 = vsel %vm4075_vm14, %v4061_v12, %v10994_v45  ;;  %v10995_v28 = vld [vmem:[#allocation155_spill] sm:$0xff]  ;;  %v4019_v20 = vsel %vm2783_vm2, %v4003_v30, %v10996_v63  ;;  %v5184_v27 = vsel %vm4092_vm15, %v9678_v55, %v9929_v32  ;;  %v10998_v43 = vld [vmem:[#allocation162_spill] sm:$0xff]  ;;  %v10999_v33 = vld [vmem:[#allocation165_spill] sm:$0xff]  ;;  %v5175_v55 = vsel %vm4075_vm14, %v9646_v47, %v9745_v50 }
 0xce0   : > { %v4016_v5 = vsel %vm2783_vm2, %v4000_v44, %v10995_v28  ;;  %v4095_v0 = vsel %vm4092_vm15, %v4078_v48, %v10997_v29  ;;  %v4030_v22 = vsel %vm4024_vm11, %v4013_v17, %v10998_v43  ;;  %v11000_v2 = vld [vmem:[#allocation249_spill] sm:$0xff]  ;;  %v5190_v32 = vsel %vm4092_vm15, %v9705_v25, %v10045_v31  ;;  %v11002_v60 = vld [vmem:[#allocation168_spill] sm:$0xff]  ;;  %v11006_v38 = vld [vmem:[#allocation198_spill] sm:$0xff] }
 0xce1   : > { %v4033_v4 = vsel %vm4024_vm11, %v4016_v5, %v10999_v33  ;;  %v4112_v35 = vsel %vm4109_vm0, %v4095_v0, %v11000_v2  ;;  %v11001_v62 = vld [vmem:[#allocation181_spill] sm:$0xff]  ;;  %v4036_v57 = vsel %vm4024_vm11, %v4019_v20, %v11002_v60  ;;  %v11003_v61 = vld [vmem:[#allocation188_spill] sm:$0xff]  ;;  %v5191_v53 = vsel %vm4092_vm15, %v5175_v55, %v9885_v21  ;;  %v11007_v40 = vld [vmem:[#allocation199_spill] sm:$0xff] }
 0xce2   : > { %v4931_v46 = vpop.permute.xlu0 %4930  ;;  %v4034_v52 = vsel %vm4024_vm11, %v4017_v24, %v11001_v62  ;;  %v11004_v58 = vld [vmem:[#allocation193_spill] sm:$0xff]  ;;  %v5218_v50 = vperm.slane %v4112_v35, 0  ;;  %v5207_v19 = vsel %vm4109_vm0, %v5191_v53, %v4945_v42  ;;  %v11005_v31 = vld [vmem:[#allocation196_spill] sm:$0xff]  ;;  %v4053_v12 = vsel %vm4041_vm12, %v4036_v57, %v11007_v40  ;;  %v11009_v24 = vld [vmem:[#allocation203_spill] sm:$0xff] }
 0xce3   : > { %v5200_v9 = vsel %vm4109_vm0, %v5184_v27, %v4931_v46  ;;  %v4051_v56 = vsel %vm4041_vm12, %v4034_v52, %v11003_v61  ;;  %v4047_v47 = vsel %vm4041_vm12, %v4030_v22, %v11004_v58  ;;  %v4050_v34 = vsel %vm4041_vm12, %v4033_v4, %v11005_v31  ;;  %v11008_v8 = vld [vmem:[#allocation200_spill] sm:$0xff]  ;;  %v11010_v30 = vld [vmem:[#allocation206_spill] sm:$0xff]  ;;  %v11012_v5 = vld [vmem:[#allocation213_spill] sm:$0xff] }
 0xce4   : > { %v5219_v54 = vperm.slane %v5200_v9, 0  ;;  %v4943_v37 = vpop.permute.xlu1 %4942  ;;  %v4068_v44 = vsel %vm4058_vm13, %v4051_v56, %v11006_v38  ;;  %v4064_v21 = vsel %vm4058_vm13, %v4047_v47, %v11008_v8  ;;  %v4067_v1 = vsel %vm4058_vm13, %v4050_v34, %v11009_v24  ;;  %v11011_v48 = vld [vmem:[#allocation210_spill] sm:$0xff]  ;;  %v11013_v20 = vld [vmem:[#allocation229_spill] sm:$0xff]  ;;  %v11014_v27 = vld [vmem:[#allocation216_spill] sm:$0xff] }
 0xce5   : > { %v5206_v3 = vsel %vm4109_vm0, %v5190_v32, %v4943_v37  ;;  %v4070_v18 = vsel %vm4058_vm13, %v4053_v12, %v11010_v30  ;;  %v4081_v28 = vsel %vm4075_vm14, %v4064_v21, %v11011_v48  ;;  %v4084_v63 = vsel %vm4075_vm14, %v4067_v1, %v11012_v5  ;;  %v11015_v43 = vld [vmem:[#allocation238_spill] sm:$0xff]  ;;  %v11016_v33 = vld [vmem:[#allocation248_spill] sm:$0xff]  ;;  %v11017_v42 = vld [vmem:[#allocation245_spill] sm:$0xff] }
 0xce6   : > { %v5280_v25 = vrot.slane %v5219_v54, 6  ;;  %v5231_v45 = vperm.slane %v5206_v3, 0  ;;  %v4085_v29 = vsel %vm4075_vm14, %v4068_v44, %v11013_v20  ;;  %v5233_v0 = vperm.slane %v5207_v19, 0  ;;  %v11018_v62 = vld [vmem:[#allocation250_spill] sm:$0xff]  ;;  %v11019_v55 = vld [vmem:[#allocation255_spill] sm:$0xff]  ;;  %v11020_v37 = vld [vmem:[#allocation252_spill] sm:$0xff]  ;;  %v4951_v20 = vpop.permute.xlu2 %4950 }
 0xce7   : > { %v4087_v46 = vsel %vm4075_vm14, %v4070_v18, %v11014_v27  ;;  %v4102_v22 = vsel %vm4092_vm15, %v4085_v29, %v11015_v43  ;;  %v4101_v4 = vsel %vm4092_vm15, %v4084_v63, %v11016_v33  ;;  %v5187_v2 = vsel %vm4092_vm15, %v9690_v59, %v9985_v49  ;;  %v11021_v56 = vld [vmem:[#allocation136_spill] sm:$0xff]  ;;  %v11022_v3 = vld [vmem:[#allocation251_spill] sm:$0xff]  ;;  %v11028_v30 = vld [vmem:[#allocation153_spill] sm:$0xff] }
 0xce8   : > { %v5297_v17 = vsel %vm5294_vm1, %v5218_v50, %v5280_v25  ;;  %v4098_v9 = vsel %vm4092_vm15, %v4081_v28, %v11017_v42  ;;  %v4119_v52 = vsel %vm4109_vm0, %v4102_v22, %v11018_v62  ;;  %v4118_v32 = vsel %vm4109_vm0, %v4101_v4, %v11019_v55  ;;  %v11023_v25 = vld [vmem:[#allocation258_spill] sm:$0xff]  ;;  %v11025_v44 = vld [vmem:[#allocation143_spill] sm:$0xff]  ;;  %v11031_v27 = vld [vmem:[#allocation161_spill] sm:$0xff] }
 0xce9   : > { %5315 = vst [vmem:[#allocation1 + $0x2] ss:$4 sm:$0xff] %v5297_v17  ;;  %v4115_v60 = vsel %vm4109_vm0, %v4098_v9, %v11020_v37  ;;  %v5193_v57 = vsel %vm4092_vm15, %v9715_v15, %v10108_v39  ;;  %v5286_v59 = vrot.slane %v5231_v45, 6  ;;  %v3987_v53 = vsel %vm3974_vm9, %v10130_v13, %v11021_v56  ;;  %v11024_v15 = vld [vmem:[#allocation113_spill] sm:$0xff]  ;;  %v11026_v8 = vld [vmem:[#allocation123_spill] sm:$0xff]  ;;  %v11029_v48 = vld [vmem:[#allocation154_spill] sm:$0xff] }
 0xcea   : > { %v4937_v35 = vpop.permute.xlu0 %4936  ;;  %v4104_v58 = vsel %vm4092_vm15, %v4087_v46, %v11022_v3  ;;  %v5287_v47 = vrot.slane %v5233_v0, 6  ;;  %v5230_v19 = vperm.slane %v4118_v32, 0  ;;  %v3972_v39 = vsel %vm3957_vm8, %v10134_v16, %v11024_v15  ;;  %v11027_v24 = vld [vmem:[#allocation139_spill] sm:$0xff]  ;;  %v11030_v0 = vld [vmem:[#allocation146_spill] sm:$0xff]  ;;  %v11032_v43 = vld [vmem:[#allocation184_spill] sm:$0xff] }
 0xceb   : > { %v5203_v54 = vsel %vm4109_vm0, %v5187_v2, %v4937_v35  ;;  %v4121_v31 = vsel %vm4109_vm0, %v4104_v58, %v11023_v25  ;;  %v4004_v40 = vsel %vm3991_vm10, %v3987_v53, %v11025_v44  ;;  %v5232_v13 = vperm.slane %v4119_v52, 0  ;;  %v11033_v2 = vld [vmem:[#allocation171_spill] sm:$0xff]  ;;  %v11035_v55 = vld [vmem:[#allocation201_spill] sm:$0xff]  ;;  %v11039_v58 = vld [vmem:[#allocation156_spill] sm:$0xff] }
 0xcec   : > { %v5225_v49 = vperm.slane %v5203_v54, 0  ;;  %v4949_v61 = vpop.permute.xlu1 %4948  ;;  %v5224_v12 = vperm.slane %v4115_v60, 0  ;;  %v3989_v21 = vsel %vm3974_vm9, %v3972_v39, %v11026_v8  ;;  %v3990_v1 = vsel %vm3974_vm9, %v10142_v26, %v11027_v24  ;;  %v11034_v42 = vld [vmem:[#allocation191_spill] sm:$0xff]  ;;  %v11036_v54 = vld [vmem:[#allocation202_spill] sm:$0xff]  ;;  %v11038_v56 = vld [vmem:[#allocation233_spill] sm:$0xff] }
 0xced   : > { %v5209_v50 = vsel %vm4109_vm0, %v5193_v57, %v4949_v61  ;;  %v4020_v18 = vsel %vm2783_vm2, %v4004_v40, %v11028_v30  ;;  %v5303_v17 = vsel %vm5294_vm1, %v5230_v19, %v5286_v59  ;;  %v4006_v28 = vsel %vm3991_vm10, %v3989_v21, %v11029_v48  ;;  %v11044_v39 = vld [vmem:[#allocation253_spill] sm:$0xff]  ;;  %v11045_v40 = vld [vmem:[#allocation254_spill] sm:$0xff] }
 0xcee   : > { %v5283_v34 = vrot.slane %v5225_v49, 6  ;;  %v5237_v38 = vperm.slane %v5209_v50, 0  ;;  %v5236_v5 = vperm.slane %v4121_v31, 0  ;;  %v5304_v63 = vsel %vm5294_vm1, %v5232_v13, %v5287_v47  ;;  %v11037_v49 = vld [vmem:[#allocation209_spill] sm:$0xff]  ;;  %v11040_v50 = vld [vmem:[#allocation219_spill] sm:$0xff]  ;;  %v11042_v31 = vld [vmem:[#allocation70_spill] sm:$0xff] }
 0xcef   : > { %v4007_v26 = vsel %vm3991_vm10, %v3990_v1, %v11030_v0  ;;  %v4022_v46 = vsel %vm2783_vm2, %v4006_v28, %v11031_v27  ;;  %v4037_v22 = vsel %vm4024_vm11, %v4020_v18, %v11032_v43  ;;  %v5196_v60 = vsel %vm4092_vm15, %v9728_v23, %v10099_v51  ;;  %v11041_v51 = vld [vmem:[#allocation242_spill] sm:$0xff]  ;;  %v11048_v1 = vld [vmem:[#allocation261_spill] sm:$0xff] }
 0xcf0   : > { %v5326_v45 = vld.sshfl [vmem:[#allocation1] sm:$0xff pattern:$0x73625140]  ;;  %v5327_v16 = vld.sshfl [vmem:[#allocation1 + $0x8] sm:$0xff pattern:$0x73625140]  ;;  %v5300_v33 = vsel %vm5294_vm1, %v5224_v12, %v5283_v34  ;;  %v4039_v35 = vsel %vm4024_vm11, %v4022_v46, %v11033_v2  ;;  %v4054_v9 = vsel %vm4041_vm12, %v4037_v22, %v11034_v42  ;;  %v4023_v47 = vsel %vm2783_vm2, %v4007_v26, %v11039_v58 }
 0xcf1   : > { %5330 = vst [vmem:[#allocation1] ss:$4 sm:$0xff] %v5303_v17  ;;  %v5289_v29 = vrot.slane %v5237_v38, 6  ;;  %v4071_v32 = vsel %vm4058_vm13, %v4054_v9, %v11035_v55  ;;  %v4056_v37 = vsel %vm4041_vm12, %v4039_v35, %v11036_v54  ;;  %v3917_v34 = vsel %vm3906_vm5, %v10013_v11, %v11042_v31  ;;  %v11043_v38 = vld [vmem:[#allocation187_spill] sm:$0xff]  ;;  %v11046_v12 = vld [vmem:[#allocation77_spill] sm:$0xff]  ;;  %v11047_v21 = vld [vmem:[#allocation194_spill] sm:$0xff] }
 0xcf2   : > { %5331 = vst [vmem:[#allocation1 + $0x1] ss:$4 sm:$0xff] %v5304_v63  ;;  %v4903_v4 = vpop.permute.xlu0 %4902  ;;  %v4073_v61 = vsel %vm4058_vm13, %v4056_v37, %v11037_v49  ;;  %v4040_v15 = vsel %vm4024_vm11, %v4023_v47, %v11043_v38  ;;  %v3934_v8 = vsel %vm3923_vm6, %v3917_v34, %v11046_v12  ;;  %v11049_v11 = vld [vmem:[#allocation87_spill] sm:$0xff]  ;;  %v11051_v28 = vld [vmem:[#allocation118_spill] sm:$0xff]  ;;  %v11052_v63 = vld [vmem:[#allocation237_spill] sm:$0xff]  ;;  %v5181_v0 = vsel %vm4075_vm14, %v9667_v7, %v9870_v36 }
 0xcf3   : > { %5350 = vst [vmem:[%s5611_s28] sm:$0xff] %v5326_v45  ;;  %v5306_v62 = vsel %vm5294_vm1, %v5236_v5, %v5289_v29  ;;  %v5194_v52 = vsel %vm4092_vm15, %v9806_v14, %v4903_v4  ;;  %v4088_v14 = vsel %vm4075_vm14, %v4071_v32, %v11038_v56  ;;  %v4090_v23 = vsel %vm4075_vm14, %v4073_v61, %v11040_v50  ;;  %v11050_v45 = vld [vmem:[#allocation204_spill] sm:$0xff]  ;;  %v11053_v27 = vld [vmem:[#allocation125_spill] sm:$0xff]  ;;  %v11054_v43 = vld [vmem:[#allocation246_spill] sm:$0xff]  ;;  %v4957_v4 = vpop.permute.xlu2 %4956 }
 0xcf4   : > { %5351 = vst [vmem:[%s5611_s28 + $0x8] sm:$0xff] %v5327_v16  ;;  %v5210_v57 = vsel %vm4109_vm0, %v5194_v52, %v4951_v20  ;;  %v4955_v59 = vpop.permute.xlu1 %4954  ;;  %v4105_v19 = vsel %vm4092_vm15, %v4088_v14, %v11041_v51  ;;  %v4107_v13 = vsel %vm4092_vm15, %v4090_v23, %v11045_v40  ;;  %v4057_v24 = vsel %vm4041_vm12, %v4040_v15, %v11047_v21  ;;  %v11055_v35 = vld [vmem:[#allocation135_spill] sm:$0xff]  ;;  %v11056_v9 = vld [vmem:[#allocation256_spill] sm:$0xff]  ;;  %v11058_v54 = vld [vmem:[#allocation17_spill] sm:$0xff] }
 0xcf5   : > { %5321 = vst [vmem:[#allocation1 + $0x21] ss:$4 sm:$0xff] %v5300_v33  ;;  %v5239_v53 = vperm.slane %v5210_v57, 0  ;;  %v5212_v3 = vsel %vm4109_vm0, %v5196_v60, %v4955_v59  ;;  %v4122_v44 = vsel %vm4109_vm0, %v4105_v19, %v11044_v39  ;;  %v4124_v30 = vsel %vm4109_vm0, %v4107_v13, %v11048_v1  ;;  %v11057_v32 = vld [vmem:[#allocation32_spill] sm:$0xff]  ;;  %v11059_v60 = vld [vmem:[#allocation166_spill] sm:$0xff]  ;;  %v11060_v61 = vld [vmem:[#allocation43_spill] sm:$0xff] }
 0xcf6   : > { %5333 = vst [vmem:[#allocation1 + $0x3] ss:$4 sm:$0xff] %v5306_v62  ;;  %v5243_v25 = vperm.slane %v5212_v3, 0  ;;  %v3951_v17 = vsel %vm3940_vm7, %v3934_v8, %v11049_v11  ;;  %v4074_v16 = vsel %vm4058_vm13, %v4057_v24, %v11050_v45  ;;  %v5238_v29 = vperm.slane %v4122_v44, 0  ;;  %v11061_v14 = vld [vmem:[#allocation173_spill] sm:$0xff]  ;;  %v11063_v47 = vld [vmem:[#allocation183_spill] sm:$0xff] }
 0xcf7   : > { %v5290_v18 = vrot.slane %v5239_v53, 6  ;;  %v3968_v5 = vsel %vm3957_vm8, %v3951_v17, %v11051_v28  ;;  %v4091_v20 = vsel %vm4075_vm14, %v4074_v16, %v11052_v63  ;;  %v5242_v33 = vperm.slane %v4124_v30, 0  ;;  %v11062_v3 = vld [vmem:[#allocation73_spill] sm:$0xff]  ;;  %v11064_v19 = vld [vmem:[#allocation80_spill] sm:$0xff]  ;;  %v11065_v31 = vld [vmem:[#allocation214_spill] sm:$0xff] }
 0xcf8   : > { %v5292_v48 = vrot.slane %v5243_v25, 6  ;;  %v3985_v46 = vsel %vm3974_vm9, %v3968_v5, %v11053_v27  ;;  %v4108_v22 = vsel %vm4092_vm15, %v4091_v20, %v11054_v43  ;;  %v3886_v37 = vsel %vm1677_vm3, %v11058_v54, %v11057_v32  ;;  %v11066_v38 = vld [vmem:[#allocation90_spill] sm:$0xff]  ;;  %v11067_v39 = vld [vmem:[#allocation221_spill] sm:$0xff]  ;;  %v11069_v8 = vld [vmem:[#allocation232_spill] sm:$0xff] }
 0xcf9   : > { %v4002_v42 = vsel %vm3991_vm10, %v3985_v46, %v11055_v35  ;;  %v4125_v62 = vsel %vm4109_vm0, %v4108_v22, %v11056_v9  ;;  %v5307_v36 = vsel %vm5294_vm1, %v5238_v29, %v5290_v18  ;;  %v3903_v56 = vsel %vm3889_vm4, %v3886_v37, %v11060_v61  ;;  %v11068_v13 = vld [vmem:[#allocation121_spill] sm:$0xff]  ;;  %v11070_v1 = vld [vmem:[#allocation128_spill] sm:$0xff]  ;;  %v11072_v45 = vld [vmem:[#allocation138_spill] sm:$0xff] }
 0xcfa   : > { %v4909_v26 = vpop.permute.xlu0 %4908  ;;  %v4018_v57 = vsel %vm2783_vm2, %v4002_v42, %v11059_v60  ;;  %v5309_v59 = vsel %vm5294_vm1, %v5242_v33, %v5292_v48  ;;  %v3920_v58 = vsel %vm3906_vm5, %v3903_v56, %v11062_v3  ;;  %v5244_v23 = vperm.slane %v4125_v62, 0  ;;  %v11071_v18 = vld [vmem:[#allocation265_spill] sm:$0xff]  ;;  %v11074_v63 = vld [vmem:[#allocation176_spill] sm:$0xff]  ;;  %v11079_v9 = vld [vmem:[#allocation267_spill] sm:$0xff] }
 0xcfb   : > { %v5197_v2 = vsel %vm4092_vm15, %v5181_v0, %v4909_v26  ;;  %v4035_v53 = vsel %vm4024_vm11, %v4018_v57, %v11061_v14  ;;  %v3937_v25 = vsel %vm3923_vm6, %v3920_v58, %v11064_v19  ;;  %v11073_v28 = vld [vmem:[#allocation169_spill] sm:$0xff]  ;;  %v11075_v26 = vld [vmem:[#allocation186_spill] sm:$0xff]  ;;  %v11077_v22 = vld [vmem:[#allocation224_spill] sm:$0xff]  ;;  %v5195_v35 = vsel %vm4092_vm15, %v9735_v41, %v10126_v10 }
 0xcfc   : > { %v5328_v52 = vld.sshfl [vmem:[#allocation1 + $0x20] sm:$0xff pattern:$0x73625140]  ;;  %v5329_v7 = vld.sshfl [vmem:[#allocation1 + $0x28] sm:$0xff pattern:$0x73625140]  ;;  %v5213_v55 = vsel %vm4109_vm0, %v5197_v2, %v4957_v4  ;;  %v4052_v50 = vsel %vm4041_vm12, %v4035_v53, %v11063_v47  ;;  %v3954_v15 = vsel %vm3940_vm7, %v3937_v25, %v11066_v38 }
 0xcfd   : > { %5352 = vst [vmem:[%s5611_s28 + $0x10] sm:$0xff] %v5328_v52  ;;  %v5245_v49 = vperm.slane %v5213_v55, 0  ;;  %v4069_v34 = vsel %vm4058_vm13, %v4052_v50, %v11065_v31  ;;  %v3971_v12 = vsel %vm3957_vm8, %v3954_v15, %v11068_v13  ;;  %v11076_v46 = vld [vmem:[#allocation217_spill] sm:$0xff]  ;;  %v11078_v4 = vld [vmem:[#allocation236_spill] sm:$0xff] }
 0xcfe   : > { %5353 = vst [vmem:[%s5611_s28 + $0x18] sm:$0xff] %v5329_v7  ;;  %v4086_v44 = vsel %vm4075_vm14, %v4069_v34, %v11067_v39  ;;  %v3988_v30 = vsel %vm3974_vm9, %v3971_v12, %v11070_v1 }
 0xcff   : > { %5334 = vst [vmem:[#allocation1 + $0x20] ss:$4 sm:$0xff] %v5307_v36  ;;  %v5293_v51 = vrot.slane %v5245_v49, 6  ;;  %v4103_v21 = vsel %vm4092_vm15, %v4086_v44, %v11069_v8  ;;  %v4005_v16 = vsel %vm3991_vm10, %v3988_v30, %v11072_v45 }
 0xd00   : > { %5336 = vst [vmem:[#allocation1 + $0x22] ss:$4 sm:$0xff] %v5309_v59  ;;  %v4120_v11 = vsel %vm4109_vm0, %v4103_v21, %v11071_v18  ;;  %v4021_v5 = vsel %vm2783_vm2, %v4005_v16, %v11073_v28 }
 0xd01   : > { %v5310_v40 = vsel %vm5294_vm1, %v5244_v23, %v5293_v51  ;;  %v4038_v20 = vsel %vm4024_vm11, %v4021_v5, %v11074_v63  ;;  %v5234_v29 = vperm.slane %v4120_v11, 0 }
 0xd02   : > { %5337 = vst [vmem:[#allocation1 + $0x23] ss:$4 sm:$0xff] %v5310_v40  ;;  %v4947_v24 = vpop.permute.xlu0 %4946  ;;  %v4055_v27 = vsel %vm4041_vm12, %v4038_v20, %v11075_v26 }
 0xd03   : > { %v5208_v17 = vsel %vm4109_vm0, %v9802_v6, %v4947_v24  ;;  %v4072_v43 = vsel %vm4058_vm13, %v4055_v27, %v11076_v46 }
 0xd04   : > { %v5235_v48 = vperm.slane %v5208_v17, 0  ;;  %v4089_v33 = vsel %vm4075_vm14, %v4072_v43, %v11077_v22 }
 0xd05   : > { %v4106_v2 = vsel %vm4092_vm15, %v4089_v33, %v11078_v4 }
 0xd06   : > { %v5288_v0 = vrot.slane %v5235_v48, 6  ;;  %v4123_v62 = vsel %vm4109_vm0, %v4106_v2, %v11079_v9 }
 0xd07   : > { %v5240_v36 = vperm.slane %v4123_v62, 0 }
 0xd08   : > { %v5305_v6 = vsel %vm5294_vm1, %v5234_v29, %v5288_v0 }
 0xd09   : > { %5332 = vst [vmem:[#allocation1 + $0x2] ss:$4 sm:$0xff] %v5305_v6 }
 0xd0a   : > { %v4953_v42 = vpop.permute.xlu0 %4952 }
 0xd0b   : > { %v5211_v52 = vsel %vm4109_vm0, %v5195_v35, %v4953_v42 }
 0xd0c   : > { %v5241_v7 = vperm.slane %v5211_v52, 0 }
 0xd0e   : > { %v5291_v55 = vrot.slane %v5241_v7, 6 }
 0xd10   : > { %v5338_v32 = vld.sshfl [vmem:[#allocation1] sm:$0xff pattern:$0x73625140]  ;;  %v5339_v54 = vld.sshfl [vmem:[#allocation1 + $0x8] sm:$0xff pattern:$0x73625140]  ;;  %v5308_v37 = vsel %vm5294_vm1, %v5240_v36, %v5291_v55 }
 0xd11   : > { %5354 = vst [vmem:[%s5611_s28 + $0x20] sm:$0xff] %v5338_v32 }
 0xd12   : > { %5355 = vst [vmem:[%s5611_s28 + $0x28] sm:$0xff] %v5339_v54 }
 0xd13   : > { %5335 = vst [vmem:[#allocation1 + $0x21] ss:$4 sm:$0xff] %v5308_v37 }
 0xd1a   : > { %v5340_v60 = vld.sshfl [vmem:[#allocation1 + $0x20] sm:$0xff pattern:$0x73625140]  ;;  %v5341_v57 = vld.sshfl [vmem:[#allocation1 + $0x28] sm:$0xff pattern:$0x73625140] }
 0xd1b   : > { %5356 = vst [vmem:[%s5611_s28 + $0x30] sm:$0xff] %v5340_v60 }
 0xd1c   : > { %5357 = vst [vmem:[%s5611_s28 + $0x38] sm:$0xff] %v5341_v57 }
 0xd1d PF: > { %s15_s18 = sadd.s32 1, %s5543_s18  }
 0xd1e   : > { %p12_p5 = scmp.ge.s32.totalorder %s15_s18, 4  }
 0xd20   :  { %14 = sbr.rel (!%p12_p5) target bundleno = 1 (0x1), region = 83 }

</bundles_post_ra>
